<compile_context>
chip_gen: v5e
topology: v5e:2x2
jax: 0.10.0
libtpu: 0.0.40
codegen_flags: <defaults>
</compile_context>

<pallas_src>
import functools

import jax
import jax.numpy as jnp
from jax import lax
from jax.experimental import pallas as pl
from jax.experimental.pallas import tpu as pltpu

f32 = jnp.float32
bf16 = jnp.bfloat16
i32 = jnp.int32


# ----------------------------------------------------------------------------
# Shared helpers
# ----------------------------------------------------------------------------
def _act(h, name):
    if name is None:
        return h
    if name == "ReLU":
        return jnp.maximum(h, 0.0)
    if name == "Tanh":
        return jnp.tanh(h)
    raise ValueError(f"unsupported activation {name}")


# ----------------------------------------------------------------------------
# Parameter construction (deterministic, mirrors make_mlp from the repo)
# ----------------------------------------------------------------------------
def init_mlp(key, din, dh, dout, n_layers, layer_norm, hidden_act, output_act):
    sizes = [din] + [dh] * (n_layers - 1) + [dout]
    layers = []
    for l in range(n_layers):
        key, kw, kb = jax.random.split(key, 3)
        fan_in = sizes[l]
        lim = 1.0 / (fan_in ** 0.5)
        W = jax.random.uniform(kw, (sizes[l], sizes[l + 1]), f32, -lim, lim)
        b = jax.random.uniform(kb, (sizes[l + 1],), f32, -lim, lim)
        is_last = l == n_layers - 1
        act = output_act if is_last else hidden_act
        # make_mlp: LayerNorm after every hidden linear; after the output
        # linear only when an output activation is requested.
        use_ln = layer_norm and ((not is_last) or (output_act is not None))
        g = jnp.ones((sizes[l + 1],), f32) if use_ln else None
        bt = jnp.zeros((sizes[l + 1],), f32) if use_ln else None
        layers.append((W, b, g, bt, act))
    return layers


def init_hierarchical_gnn_block(key, hparams):
    L, H = hparams["latent"], hparams["hidden"]
    ln = hparams["layernorm"]
    ha = hparams["hidden_activation"]
    k = jax.random.split(key, 5)
    return {
        "edge_network": init_mlp(k[0], 3 * L, H, L, hparams["nb_edge_layer"], ln, ha, "Tanh"),
        "node_network": init_mlp(k[1], 3 * L, H, L, hparams["nb_node_layer"], ln, ha, ha),
        "supernode_network": init_mlp(k[2], 3 * L, H, L, hparams["nb_node_layer"], ln, ha, ha),
        "superedge_network": init_mlp(k[3], 3 * L, H, L, hparams["nb_edge_layer"], ln, ha, "Tanh"),
        "bipartite_edge_scoring": init_mlp(k[4], 2 * L, H, 1, hparams["output_layers"], ln, "Tanh", None),
    }


_NET_ORDER = ("bipartite_edge_scoring", "supernode_network", "node_network",
              "superedge_network", "edge_network")


def _pack_params(params):
    """Pack all MLP parameters into two slabs (review item #1).

    wslab : bf16 (sum of din over matmul layers, L)  -- MXU weight slab
    vslab : f32  (n_rows, VW)                        -- biases, LN gamma/beta,
                                                        Dout==1 weight rows
    Returns a static `plan` of row offsets so the kernel slices the slabs at
    compile-time-constant positions.
    """
    douts = [W.shape[1] for n in _NET_ORDER for (W, *_r) in params[n] if W.shape[1] > 1]
    LW = douts[0]
    assert all(d == LW for d in douts), "all matmul layers must share the latent width"
    scalar_dins = [W.shape[0] for n in _NET_ORDER for (W, *_r) in params[n] if W.shape[1] == 1]
    VW = max([LW] + scalar_dins)

    w_blocks, v_rows, plan = [], [], {}
    w_off = 0

    def add_vec(v):
        v_rows.append(jnp.pad(v.astype(f32), (0, VW - v.shape[0])))
        return len(v_rows) - 1

    for name in _NET_ORDER:
        layer_plan = []
        for (W, b, g, bt, act) in params[name]:
            din, dout = W.shape
            meta = {"act": act, "scalar_out": dout == 1, "din": din, "dout": dout,
                    "ln": g is not None}
            if dout == 1:
                meta["w_vrow"] = add_vec(W[:, 0])   # f32 VPU row (exact)
                meta["b_vrow"] = add_vec(b)
            else:
                meta["w_off"] = w_off
                w_blocks.append(W)
                w_off += din
                meta["b_vrow"] = add_vec(b)
            if g is not None:
                meta["g_vrow"] = add_vec(g)
                meta["bt_vrow"] = add_vec(bt)
            layer_plan.append(meta)
        plan[name] = layer_plan

    wslab = jnp.concatenate(w_blocks, axis=0).astype(bf16)
    vslab = jnp.stack(v_rows, axis=0)
    return plan, wslab, vslab, LW, VW


# ----------------------------------------------------------------------------
# Fused forward pass (single Pallas kernel)
# ----------------------------------------------------------------------------
def hierarchical_gnn_block_forward(params, nodes, edges, supernodes, superedges,
                                   graph, bipartite_graph,
                                   bipartite_graph_attention_logits,
                                   super_graph, super_graph_attention):
    N, L = nodes.shape
    E = edges.shape[0]
    S = supernodes.shape[0]
    SE = superedges.shape[0]
    B = bipartite_graph.shape[1]
    TOT = N + E + S + SE

    plan, wslab, vslab, LW, VW = _pack_params(params)
    assert L == LW

    # Index vectors passed ONCE, lane-dense (1, C); columns rebuilt in-kernel.
    src_row = bipartite_graph[0].reshape(1, B).astype(i32)
    dst_row = bipartite_graph[1].reshape(1, B).astype(i32)
    g0_row = graph[0].reshape(1, E).astype(i32)
    g1_row = graph[1].reshape(1, E).astype(i32)
    sg0_row = super_graph[0].reshape(1, SE).astype(i32)
    sg1_row = super_graph[1].reshape(1, SE).astype(i32)

    logits = bipartite_graph_attention_logits.reshape(B, 1).astype(f32)
    sg_att = super_graph_attention.reshape(SE, 1).astype(f32)

    def kernel(nodes_ref, edges_ref, sn_ref, se_ref,
               src_ref, dst_ref, g0_ref, g1_ref, sg0_ref, sg1_ref,
               logits_ref, sgatt_ref, w_ref, v_ref, out_ref):

        vslab_v = v_ref[...]                               # (n_rows, VW) f32

        def vrow(idx):
            return vslab_v[idx:idx + 1, :]                 # (1, VW)

        def col_from_row(row):
            # (1, C) i32 -> (C, 1) i32 "transpose" via a masked lane reduction
            # built from broadcasted_iota (no relayout op; f32 sums of small
            # ints are exact).
            C = row.shape[1]
            lane = lax.broadcasted_iota(i32, (C, C), 1)
            sub = lax.broadcasted_iota(i32, (C, C), 0)
            col = jnp.sum(jnp.where(lane == sub, row.astype(f32), 0.0),
                          axis=1, keepdims=True)
            return col.astype(i32)

        def gmask(idx_col, nrows):
            # gather one-hot mask: (C, nrows) bool, [c, r] = (idx[c] == r)
            return lax.broadcasted_iota(i32, (idx_col.shape[0], nrows), 1) == idx_col

        def smask(idx_row, nrows):
            # scatter one-hot mask: (nrows, C) bool, [r, c] = (idx[c] == r)
            return lax.broadcasted_iota(i32, (nrows, idx_row.shape[1]), 0) == idx_row

        def mm(a_bf, b_bf):
            return jnp.dot(a_bf, b_bf, preferred_element_type=f32)

        def apply_mlp(pieces_bf, layers):
            # pieces_bf: bf16 (C, d_i) first-layer inputs; the packed weight is
            # sliced per piece instead of concatenating the inputs.
            h = None
            for li, meta in enumerate(layers):
                if meta["scalar_out"]:
                    # Dout == 1: VPU multiply + lane reduce (f32 weight row).
                    xs = pieces_bf if li == 0 else [h]
                    assert sum(x.shape[-1] for x in xs) == meta["din"]
                    wr = vrow(meta["w_vrow"])
                    acc = vrow(meta["b_vrow"])[:, 0:1]
                    off = 0
                    for x in xs:
                        d = x.shape[-1]
                        acc = acc + jnp.sum(x.astype(f32) * wr[:, off:off + d],
                                            axis=-1, keepdims=True)
                        off += d
                    h = acc
                else:
                    xs = pieces_bf if li == 0 else [h.astype(bf16)]
                    assert sum(x.shape[-1] for x in xs) == meta["din"]
                    acc = None
                    off = meta["w_off"]
                    for x in xs:
                        d = x.shape[-1]
                        part = jnp.dot(x, w_ref[off:off + d, :],
                                       preferred_element_type=f32)
                        acc = part if acc is None else acc + part
                        off += d
                    h = acc + vrow(meta["b_vrow"])
                if meta["ln"]:  # LayerNorm in f32, eps matches torch
                    mu = jnp.mean(h, axis=-1, keepdims=True)
                    var = jnp.mean(jnp.square(h - mu), axis=-1, keepdims=True)
                    h = (h - mu) * lax.rsqrt(var + 1e-5) * vrow(meta["g_vrow"]) \
                        + vrow(meta["bt_vrow"])
                h = _act(h, meta["act"])
            return h

        # ---- load features, cast to bf16 once (MXU operands) ----------------
        x_nodes = nodes_ref[...]
        x_edges = edges_ref[...]
        x_sn = sn_ref[...]
        x_se = se_ref[...]
        xb_nodes = x_nodes.astype(bf16)
        xb_edges = x_edges.astype(bf16)
        xb_sn = x_sn.astype(bf16)
        xb_se = x_se.astype(bf16)

        # ---- index rows and in-kernel derived columns ------------------------
        src_row_v = src_ref[...]
        dst_row_v = dst_ref[...]
        g0_row_v = g0_ref[...]
        g1_row_v = g1_ref[...]
        sg0_row_v = sg0_ref[...]
        sg1_row_v = sg1_ref[...]
        src_col = col_from_row(src_row_v)
        dst_col = col_from_row(dst_row_v)
        g0_col = col_from_row(g0_row_v)
        g1_col = col_from_row(g1_row_v)
        sg0_col = col_from_row(sg0_row_v)
        sg1_col = col_from_row(sg1_row_v)

        # one-hot masks; bool -> bf16 is an exact 0/1 MXU operand
        src_gm = gmask(src_col, N)                     # (B, N)
        src_sm = smask(src_row_v, N)                   # (N, B)
        oh_src_g = src_gm.astype(bf16)
        oh_src_s = src_sm.astype(bf16)
        oh_dst_g = gmask(dst_col, S).astype(bf16)      # (B, S)
        oh_dst_s = smask(dst_row_v, S).astype(bf16)    # (S, B)
        oh_g0_g = gmask(g0_col, N).astype(bf16)        # (E, N)
        oh_g1_g = gmask(g1_col, N).astype(bf16)        # (E, N)
        oh_g1_s = smask(g1_row_v, N).astype(bf16)      # (N, E)
        oh_sg0_se = gmask(sg0_col, SE).astype(bf16)    # (SE, SE) superedges[sg0]
        oh_sg0_g = gmask(sg0_col, S).astype(bf16)      # (SE, S)  supernodes[sg0]
        oh_sg1_g = gmask(sg1_col, S).astype(bf16)      # (SE, S)
        oh_sg1_s = smask(sg1_row_v, S).astype(bf16)    # (S, SE)

        # ---- bipartite attention ---------------------------------------------
        nodes_src = mm(oh_src_g, xb_nodes)             # nodes[src]      (B, L)
        sn_dst = mm(oh_dst_g, xb_sn)                   # supernodes[dst] (B, L)
        score = apply_mlp([nodes_src.astype(bf16), sn_dst.astype(bf16)],
                          plan["bipartite_edge_scoring"])            # (B, 1)
        # Matches torch exactly: unshifted exp with the 1e-12 guard applied in
        # unshifted space (no exp(-max) term -> no spurious overflow).
        e_z = jnp.exp(logits_ref[...] + score)                       # (B, 1)
        # Segment-sum over src and gather back as exact f32 one-hot matmuls on
        # the otherwise idle MXU (no (B, N) where/reduce passes, no XLU
        # sublane reductions).
        denom_node = jnp.dot(src_sm.astype(f32), e_z,
                             preferred_element_type=f32)             # (N, 1)
        denom_edge = jnp.dot(src_gm.astype(f32), denom_node,
                             preferred_element_type=f32)             # (B, 1)
        att = e_z / (1e-12 + denom_edge)                             # (B, 1)

        # ---- supernode update --------------------------------------------------
        # TODO(synk): torch uses dim_size = bipartite_graph[1].max()+1 (data
        # dependent); JAX needs a static size, so the supernode count S is used
        # (inputs guarantee max(bipartite_graph[1]) == S - 1).
        node_messages = mm(oh_dst_s, (att * nodes_src).astype(bf16))            # (S, L)
        se_gath = mm(oh_sg0_se, xb_se)                                          # superedges[sg0]
        attention_messages = mm(oh_sg1_s, (se_gath * sgatt_ref[...]).astype(bf16))  # (S, L)
        sn_new = apply_mlp([xb_sn, attention_messages.astype(bf16),
                            node_messages.astype(bf16)],
                           plan["supernode_network"]) + x_sn
        snb_new = sn_new.astype(bf16)          # cast once, gathered 3x below

        # ---- node update --------------------------------------------------------
        sn_new_dst = mm(oh_dst_g, snb_new)                                      # (B, L)
        supernode_messages = mm(oh_src_s, (att * sn_new_dst).astype(bf16))      # (N, L)
        edge_messages = mm(oh_g1_s, xb_edges)                                   # (N, L)
        nodes_new = apply_mlp([xb_nodes, edge_messages.astype(bf16),
                               supernode_messages.astype(bf16)],
                              plan["node_network"]) + x_nodes
        nb_new = nodes_new.astype(bf16)        # cast once, gathered 2x below

        # ---- superedge update ----------------------------------------------------
        sn0 = mm(oh_sg0_g, snb_new)
        sn1 = mm(oh_sg1_g, snb_new)
        se_new = apply_mlp([sn0.astype(bf16), sn1.astype(bf16), xb_se],
                           plan["superedge_network"]) + x_se

        # ---- edge update -----------------------------------------------------------
        n0 = mm(oh_g0_g, nb_new)
        n1 = mm(oh_g1_g, nb_new)
        edges_new = apply_mlp([n0.astype(bf16), n1.astype(bf16), xb_edges],
                              plan["edge_network"]) + x_edges

        # ---- single packed output (one output DMA program) ------------------------
        out_ref[0:N, :] = nodes_new
        out_ref[N:N + E, :] = edges_new
        out_ref[N + E:N + E + S, :] = sn_new
        out_ref[N + E + S:TOT, :] = se_new

    out = pl.pallas_call(
        kernel,
        out_shape=jax.ShapeDtypeStruct((TOT, L), f32),
        # gridless: every operand is a whole-array VMEM block; working set is
        # well under the scoped default on all of v5e / v6e / v7x.
        compiler_params=pltpu.CompilerParams(vmem_limit_bytes=32 * 1024 * 1024),
    )(nodes.astype(f32), edges.astype(f32), supernodes.astype(f32), superedges.astype(f32),
      src_row, dst_row, g0_row, g1_row, sg0_row, sg1_row,
      logits, sg_att, wslab, vslab)

    return out[0:N], out[N:N + E], out[N + E:N + E + S], out[N + E + S:TOT]


# ----------------------------------------------------------------------------
# Pure-JAX f32 reference (correctness sanity check only)
# ----------------------------------------------------------------------------
def _reference_forward(params, nodes, edges, supernodes, superedges, graph,
                       bipartite_graph, logits, super_graph, super_graph_attention):
    def mlp(x, layers):
        h = x
        for (W, b, g, bt, act) in layers:
            h = h @ W + b
            if g is not None:
                mu = h.mean(-1, keepdims=True)
                var = ((h - mu) ** 2).mean(-1, keepdims=True)
                h = (h - mu) * jax.lax.rsqrt(var + 1e-5) * g + bt
            h = _act(h, act)
        return h

    src, dst = bipartite_graph[0], bipartite_graph[1]
    sg0, sg1 = super_graph[0], super_graph[1]
    N, S = nodes.shape[0], supernodes.shape[0]
    score = mlp(jnp.concatenate([nodes[src], supernodes[dst]], -1),
                params["bipartite_edge_scoring"])[:, 0]
    att = jnp.exp(logits + score)
    att = att / (1e-12 + jax.ops.segment_sum(att, src, N)[src])
    att = att[:, None]
    node_messages = jax.ops.segment_sum(att * nodes[src], dst, S)
    attention_messages = jax.ops.segment_sum(superedges[sg0] * super_graph_attention, sg1, S)
    supernodes = mlp(jnp.concatenate([supernodes, attention_messages, node_messages], -1),
                     params["supernode_network"]) + supernodes
    supernode_messages = jax.ops.segment_sum(att * supernodes[dst], src, N)
    edge_messages = jax.ops.segment_sum(edges, graph[1], N)
    nodes = mlp(jnp.concatenate([nodes, edge_messages, supernode_messages], -1),
                params["node_network"]) + nodes
    superedges = mlp(jnp.concatenate([supernodes[sg0], supernodes[sg1], superedges], -1),
                     params["superedge_network"]) + superedges
    edges = mlp(jnp.concatenate([nodes[graph[0]], nodes[graph[1]], edges], -1),
                params["edge_network"]) + edges
    return nodes, edges, supernodes, superedges


# ----------------------------------------------------------------------------
# Demo
# ----------------------------------------------------------------------------
if __name__ == "__main__":
    hparams = {
        "spatial_channels": 3,
        "cell_channels": 8,
        "regime": [],
        "latent": 32,
        "hidden": 32,
        "nb_edge_layer": 2,
        "nb_node_layer": 2,
        "output_layers": 2,
        "layernorm": True,
        "hidden_activation": "ReLU",
    }

    L = hparams["latent"]
    N, E, S, SE, B = 64, 128, 8, 16, 128

    key = jax.random.PRNGKey(0)
    kp, k1, k2, k3, k4, k5, k6, k7, k8, k9 = jax.random.split(key, 10)

    params = init_hierarchical_gnn_block(kp, hparams)

    nodes = jax.random.normal(k1, (N, L), f32)
    edges = jax.random.normal(k2, (E, L), f32)
    supernodes = jax.random.normal(k3, (S, L), f32)
    superedges = jax.random.normal(k4, (SE, L), f32)

    graph = jax.random.randint(k5, (2, E), 0, N, i32)
    bip_src = jax.random.randint(k6, (B,), 0, N, i32)
    bip_dst = jax.random.randint(k7, (B,), 0, S, i32).at[0].set(S - 1)
    bipartite_graph = jnp.stack([bip_src, bip_dst], axis=0)
    bipartite_graph_attention_logits = 0.1 * jax.random.normal(k8, (B,), f32)
    super_graph = jax.random.randint(k9, (2, SE), 0, S, i32)
    super_graph_attention = jax.nn.softmax(
        jax.random.normal(jax.random.PRNGKey(42), (SE, 1), f32), axis=0)

    fwd = jax.jit(functools.partial(hierarchical_gnn_block_forward, params))
    out = fwd(nodes, edges, supernodes, superedges, graph, bipartite_graph,
              bipartite_graph_attention_logits, super_graph, super_graph_attention)
    out = jax.block_until_ready(out)

    ref = _reference_forward(params, nodes, edges, supernodes, superedges, graph,
                             bipartite_graph, bipartite_graph_attention_logits,
                             super_graph, super_graph_attention)

    n_o, e_o, sn_o, se_o = out
    assert n_o.shape == (N, L) and e_o.shape == (E, L)
    assert sn_o.shape == (S, L) and se_o.shape == (SE, L)
    for o, r in zip(out, ref):
        assert bool(jnp.all(jnp.isfinite(o)))
        # bf16 MXU operands (weights / gathered features) vs. all-f32 reference
        assert float(jnp.max(jnp.abs(o - r))) < 0.5, "mismatch vs f32 reference"
    print("KERNEL_OK")
</pallas_src>

<mosaic_0001>
module attributes {stable_mosaic.version = 11 : i64} {
  func.func @kernel(%arg0: memref<64x32xf32, #tpu.memory_space<vmem>>, %arg1: memref<128x32xf32, #tpu.memory_space<vmem>>, %arg2: memref<8x32xf32, #tpu.memory_space<vmem>>, %arg3: memref<16x32xf32, #tpu.memory_space<vmem>>, %arg4: memref<1x128xi32, #tpu.memory_space<vmem>>, %arg5: memref<1x128xi32, #tpu.memory_space<vmem>>, %arg6: memref<1x128xi32, #tpu.memory_space<vmem>>, %arg7: memref<1x128xi32, #tpu.memory_space<vmem>>, %arg8: memref<1x16xi32, #tpu.memory_space<vmem>>, %arg9: memref<1x16xi32, #tpu.memory_space<vmem>>, %arg10: memref<128x1xf32, #tpu.memory_space<vmem>>, %arg11: memref<16x1xf32, #tpu.memory_space<vmem>>, %arg12: memref<576x32xbf16, #tpu.memory_space<vmem>>, %arg13: memref<29x32xf32, #tpu.memory_space<vmem>>, %arg14: memref<216x32xf32, #tpu.memory_space<vmem>>) attributes {dimension_semantics = [], scalar_prefetch = 0 : i64, scratch_operands = 0 : i64, tpu.core_type = #tpu.core_type<tc>} {
    %c0 = arith.constant 0 : index
    %c0_0 = arith.constant 0 : index
    %0 = vector.load %arg13[%c0, %c0_0] : memref<29x32xf32, #tpu.memory_space<vmem>>, vector<29x32xf32>
    %c0_1 = arith.constant 0 : index
    %c0_2 = arith.constant 0 : index
    %1 = vector.load %arg0[%c0_1, %c0_2] : memref<64x32xf32, #tpu.memory_space<vmem>>, vector<64x32xf32>
    %c0_3 = arith.constant 0 : index
    %c0_4 = arith.constant 0 : index
    %2 = vector.load %arg1[%c0_3, %c0_4] : memref<128x32xf32, #tpu.memory_space<vmem>>, vector<128x32xf32>
    %c0_5 = arith.constant 0 : index
    %c0_6 = arith.constant 0 : index
    %3 = vector.load %arg2[%c0_5, %c0_6] : memref<8x32xf32, #tpu.memory_space<vmem>>, vector<8x32xf32>
    %c0_7 = arith.constant 0 : index
    %c0_8 = arith.constant 0 : index
    %4 = vector.load %arg3[%c0_7, %c0_8] : memref<16x32xf32, #tpu.memory_space<vmem>>, vector<16x32xf32>
    %5 = arith.truncf %1 : vector<64x32xf32> to vector<64x32xbf16>
    %6 = arith.truncf %2 : vector<128x32xf32> to vector<128x32xbf16>
    %7 = arith.truncf %3 : vector<8x32xf32> to vector<8x32xbf16>
    %8 = arith.truncf %4 : vector<16x32xf32> to vector<16x32xbf16>
    %c0_9 = arith.constant 0 : index
    %c0_10 = arith.constant 0 : index
    %9 = vector.load %arg4[%c0_9, %c0_10] : memref<1x128xi32, #tpu.memory_space<vmem>>, vector<1x128xi32>
    %c0_11 = arith.constant 0 : index
    %c0_12 = arith.constant 0 : index
    %10 = vector.load %arg5[%c0_11, %c0_12] : memref<1x128xi32, #tpu.memory_space<vmem>>, vector<1x128xi32>
    %c0_13 = arith.constant 0 : index
    %c0_14 = arith.constant 0 : index
    %11 = vector.load %arg6[%c0_13, %c0_14] : memref<1x128xi32, #tpu.memory_space<vmem>>, vector<1x128xi32>
    %c0_15 = arith.constant 0 : index
    %c0_16 = arith.constant 0 : index
    %12 = vector.load %arg7[%c0_15, %c0_16] : memref<1x128xi32, #tpu.memory_space<vmem>>, vector<1x128xi32>
    %c0_17 = arith.constant 0 : index
    %c0_18 = arith.constant 0 : index
    %13 = vector.load %arg8[%c0_17, %c0_18] : memref<1x16xi32, #tpu.memory_space<vmem>>, vector<1x16xi32>
    %c0_19 = arith.constant 0 : index
    %c0_20 = arith.constant 0 : index
    %14 = vector.load %arg9[%c0_19, %c0_20] : memref<1x16xi32, #tpu.memory_space<vmem>>, vector<1x16xi32>
    %15 = tpu.iota {dimensions = array<i32: 1>} : vector<128x128xi32>
    %16 = tpu.iota {dimensions = array<i32: 0>} : vector<128x128xi32>
    %17 = arith.cmpi eq, %15, %16 : vector<128x128xi32>
    %18 = arith.sitofp %9 : vector<1x128xi32> to vector<1x128xf32>
    %cst = arith.constant 0.000000e+00 : f32
    %19 = vector.shape_cast %18 : vector<1x128xf32> to vector<1x128xf32>
    %20 = vector.broadcast %19 : vector<1x128xf32> to vector<128x128xf32>
    %21 = vector.broadcast %cst : f32 to vector<128x128xf32>
    %22 = arith.select %17, %20, %21 : vector<128x128xi1>, vector<128x128xf32>
    %cst_21 = arith.constant dense<0.000000e+00> : vector<128xf32>
    %23 = vector.multi_reduction <add>, %22, %cst_21 [1] : vector<128x128xf32> to vector<128xf32>
    %24 = vector.shape_cast %23 : vector<128xf32> to vector<128x1xf32>
    %25 = arith.fptosi %24 : vector<128x1xf32> to vector<128x1xi32>
    %26 = tpu.iota {dimensions = array<i32: 1>} : vector<128x128xi32>
    %27 = tpu.iota {dimensions = array<i32: 0>} : vector<128x128xi32>
    %28 = arith.cmpi eq, %26, %27 : vector<128x128xi32>
    %29 = arith.sitofp %10 : vector<1x128xi32> to vector<1x128xf32>
    %cst_22 = arith.constant 0.000000e+00 : f32
    %30 = vector.shape_cast %29 : vector<1x128xf32> to vector<1x128xf32>
    %31 = vector.broadcast %30 : vector<1x128xf32> to vector<128x128xf32>
    %32 = vector.broadcast %cst_22 : f32 to vector<128x128xf32>
    %33 = arith.select %28, %31, %32 : vector<128x128xi1>, vector<128x128xf32>
    %cst_23 = arith.constant dense<0.000000e+00> : vector<128xf32>
    %34 = vector.multi_reduction <add>, %33, %cst_23 [1] : vector<128x128xf32> to vector<128xf32>
    %35 = vector.shape_cast %34 : vector<128xf32> to vector<128x1xf32>
    %36 = arith.fptosi %35 : vector<128x1xf32> to vector<128x1xi32>
    %37 = tpu.iota {dimensions = array<i32: 1>} : vector<128x128xi32>
    %38 = tpu.iota {dimensions = array<i32: 0>} : vector<128x128xi32>
    %39 = arith.cmpi eq, %37, %38 : vector<128x128xi32>
    %40 = arith.sitofp %11 : vector<1x128xi32> to vector<1x128xf32>
    %cst_24 = arith.constant 0.000000e+00 : f32
    %41 = vector.shape_cast %40 : vector<1x128xf32> to vector<1x128xf32>
    %42 = vector.broadcast %41 : vector<1x128xf32> to vector<128x128xf32>
    %43 = vector.broadcast %cst_24 : f32 to vector<128x128xf32>
    %44 = arith.select %39, %42, %43 : vector<128x128xi1>, vector<128x128xf32>
    %cst_25 = arith.constant dense<0.000000e+00> : vector<128xf32>
    %45 = vector.multi_reduction <add>, %44, %cst_25 [1] : vector<128x128xf32> to vector<128xf32>
    %46 = vector.shape_cast %45 : vector<128xf32> to vector<128x1xf32>
    %47 = arith.fptosi %46 : vector<128x1xf32> to vector<128x1xi32>
    %48 = tpu.iota {dimensions = array<i32: 1>} : vector<128x128xi32>
    %49 = tpu.iota {dimensions = array<i32: 0>} : vector<128x128xi32>
    %50 = arith.cmpi eq, %48, %49 : vector<128x128xi32>
    %51 = arith.sitofp %12 : vector<1x128xi32> to vector<1x128xf32>
    %cst_26 = arith.constant 0.000000e+00 : f32
    %52 = vector.shape_cast %51 : vector<1x128xf32> to vector<1x128xf32>
    %53 = vector.broadcast %52 : vector<1x128xf32> to vector<128x128xf32>
    %54 = vector.broadcast %cst_26 : f32 to vector<128x128xf32>
    %55 = arith.select %50, %53, %54 : vector<128x128xi1>, vector<128x128xf32>
    %cst_27 = arith.constant dense<0.000000e+00> : vector<128xf32>
    %56 = vector.multi_reduction <add>, %55, %cst_27 [1] : vector<128x128xf32> to vector<128xf32>
    %57 = vector.shape_cast %56 : vector<128xf32> to vector<128x1xf32>
    %58 = arith.fptosi %57 : vector<128x1xf32> to vector<128x1xi32>
    %59 = tpu.iota {dimensions = array<i32: 1>} : vector<16x16xi32>
    %60 = tpu.iota {dimensions = array<i32: 0>} : vector<16x16xi32>
    %61 = arith.cmpi eq, %59, %60 : vector<16x16xi32>
    %62 = arith.sitofp %13 : vector<1x16xi32> to vector<1x16xf32>
    %cst_28 = arith.constant 0.000000e+00 : f32
    %63 = vector.shape_cast %62 : vector<1x16xf32> to vector<1x16xf32>
    %64 = vector.broadcast %63 : vector<1x16xf32> to vector<16x16xf32>
    %65 = vector.broadcast %cst_28 : f32 to vector<16x16xf32>
    %66 = arith.select %61, %64, %65 : vector<16x16xi1>, vector<16x16xf32>
    %cst_29 = arith.constant dense<0.000000e+00> : vector<16xf32>
    %67 = vector.multi_reduction <add>, %66, %cst_29 [1] : vector<16x16xf32> to vector<16xf32>
    %68 = vector.shape_cast %67 : vector<16xf32> to vector<16x1xf32>
    %69 = arith.fptosi %68 : vector<16x1xf32> to vector<16x1xi32>
    %70 = tpu.iota {dimensions = array<i32: 1>} : vector<16x16xi32>
    %71 = tpu.iota {dimensions = array<i32: 0>} : vector<16x16xi32>
    %72 = arith.cmpi eq, %70, %71 : vector<16x16xi32>
    %73 = arith.sitofp %14 : vector<1x16xi32> to vector<1x16xf32>
    %cst_30 = arith.constant 0.000000e+00 : f32
    %74 = vector.shape_cast %73 : vector<1x16xf32> to vector<1x16xf32>
    %75 = vector.broadcast %74 : vector<1x16xf32> to vector<16x16xf32>
    %76 = vector.broadcast %cst_30 : f32 to vector<16x16xf32>
    %77 = arith.select %72, %75, %76 : vector<16x16xi1>, vector<16x16xf32>
    %cst_31 = arith.constant dense<0.000000e+00> : vector<16xf32>
    %78 = vector.multi_reduction <add>, %77, %cst_31 [1] : vector<16x16xf32> to vector<16xf32>
    %79 = vector.shape_cast %78 : vector<16xf32> to vector<16x1xf32>
    %80 = arith.fptosi %79 : vector<16x1xf32> to vector<16x1xi32>
    %81 = tpu.iota {dimensions = array<i32: 1>} : vector<128x64xi32>
    %82 = vector.broadcast %25 : vector<128x1xi32> to vector<128x64xi32>
    %83 = arith.cmpi eq, %81, %82 : vector<128x64xi32>
    %84 = tpu.iota {dimensions = array<i32: 0>} : vector<64x128xi32>
    %85 = vector.broadcast %9 : vector<1x128xi32> to vector<64x128xi32>
    %86 = arith.cmpi eq, %84, %85 : vector<64x128xi32>
    %87 = arith.extui %83 : vector<128x64xi1> to vector<128x64xi32>
    %88 = arith.sitofp %87 : vector<128x64xi32> to vector<128x64xf32>
    %89 = arith.truncf %88 : vector<128x64xf32> to vector<128x64xbf16>
    %90 = arith.extui %86 : vector<64x128xi1> to vector<64x128xi32>
    %91 = arith.sitofp %90 : vector<64x128xi32> to vector<64x128xf32>
    %92 = arith.truncf %91 : vector<64x128xf32> to vector<64x128xbf16>
    %93 = tpu.iota {dimensions = array<i32: 1>} : vector<128x8xi32>
    %94 = vector.broadcast %36 : vector<128x1xi32> to vector<128x8xi32>
    %95 = arith.cmpi eq, %93, %94 : vector<128x8xi32>
    %96 = arith.extui %95 : vector<128x8xi1> to vector<128x8xi32>
    %97 = arith.sitofp %96 : vector<128x8xi32> to vector<128x8xf32>
    %98 = arith.truncf %97 : vector<128x8xf32> to vector<128x8xbf16>
    %99 = tpu.iota {dimensions = array<i32: 0>} : vector<8x128xi32>
    %100 = vector.broadcast %10 : vector<1x128xi32> to vector<8x128xi32>
    %101 = arith.cmpi eq, %99, %100 : vector<8x128xi32>
    %102 = arith.extui %101 : vector<8x128xi1> to vector<8x128xi32>
    %103 = arith.sitofp %102 : vector<8x128xi32> to vector<8x128xf32>
    %104 = arith.truncf %103 : vector<8x128xf32> to vector<8x128xbf16>
    %105 = tpu.iota {dimensions = array<i32: 1>} : vector<128x64xi32>
    %106 = vector.broadcast %47 : vector<128x1xi32> to vector<128x64xi32>
    %107 = arith.cmpi eq, %105, %106 : vector<128x64xi32>
    %108 = arith.extui %107 : vector<128x64xi1> to vector<128x64xi32>
    %109 = arith.sitofp %108 : vector<128x64xi32> to vector<128x64xf32>
    %110 = arith.truncf %109 : vector<128x64xf32> to vector<128x64xbf16>
    %111 = tpu.iota {dimensions = array<i32: 1>} : vector<128x64xi32>
    %112 = vector.broadcast %58 : vector<128x1xi32> to vector<128x64xi32>
    %113 = arith.cmpi eq, %111, %112 : vector<128x64xi32>
    %114 = arith.extui %113 : vector<128x64xi1> to vector<128x64xi32>
    %115 = arith.sitofp %114 : vector<128x64xi32> to vector<128x64xf32>
    %116 = arith.truncf %115 : vector<128x64xf32> to vector<128x64xbf16>
    %117 = tpu.iota {dimensions = array<i32: 0>} : vector<64x128xi32>
    %118 = vector.broadcast %12 : vector<1x128xi32> to vector<64x128xi32>
    %119 = arith.cmpi eq, %117, %118 : vector<64x128xi32>
    %120 = arith.extui %119 : vector<64x128xi1> to vector<64x128xi32>
    %121 = arith.sitofp %120 : vector<64x128xi32> to vector<64x128xf32>
    %122 = arith.truncf %121 : vector<64x128xf32> to vector<64x128xbf16>
    %123 = tpu.iota {dimensions = array<i32: 1>} : vector<16x16xi32>
    %124 = vector.broadcast %69 : vector<16x1xi32> to vector<16x16xi32>
    %125 = arith.cmpi eq, %123, %124 : vector<16x16xi32>
    %126 = arith.extui %125 : vector<16x16xi1> to vector<16x16xi32>
    %127 = arith.sitofp %126 : vector<16x16xi32> to vector<16x16xf32>
    %128 = arith.truncf %127 : vector<16x16xf32> to vector<16x16xbf16>
    %129 = tpu.iota {dimensions = array<i32: 1>} : vector<16x8xi32>
    %130 = vector.broadcast %69 : vector<16x1xi32> to vector<16x8xi32>
    %131 = arith.cmpi eq, %129, %130 : vector<16x8xi32>
    %132 = arith.extui %131 : vector<16x8xi1> to vector<16x8xi32>
    %133 = arith.sitofp %132 : vector<16x8xi32> to vector<16x8xf32>
    %134 = arith.truncf %133 : vector<16x8xf32> to vector<16x8xbf16>
    %135 = tpu.iota {dimensions = array<i32: 1>} : vector<16x8xi32>
    %136 = vector.broadcast %80 : vector<16x1xi32> to vector<16x8xi32>
    %137 = arith.cmpi eq, %135, %136 : vector<16x8xi32>
    %138 = arith.extui %137 : vector<16x8xi1> to vector<16x8xi32>
    %139 = arith.sitofp %138 : vector<16x8xi32> to vector<16x8xf32>
    %140 = arith.truncf %139 : vector<16x8xf32> to vector<16x8xbf16>
    %141 = tpu.iota {dimensions = array<i32: 0>} : vector<8x16xi32>
    %142 = vector.broadcast %14 : vector<1x16xi32> to vector<8x16xi32>
    %143 = arith.cmpi eq, %141, %142 : vector<8x16xi32>
    %144 = arith.extui %143 : vector<8x16xi1> to vector<8x16xi32>
    %145 = arith.sitofp %144 : vector<8x16xi32> to vector<8x16xf32>
    %146 = arith.truncf %145 : vector<8x16xf32> to vector<8x16xbf16>
    %cst_32 = arith.constant dense<0.000000e+00> : vector<128x32xf32>
    %147 = tpu.matmul %89, %5, %cst_32 {dimension_numbers = #tpu.dot_dimension_numbers<[1], [0], [0], [1], [0, 0, 1, 1], [], []>} : vector<128x64xbf16>, vector<64x32xbf16>, vector<128x32xf32> -> vector<128x32xf32>
    %cst_33 = arith.constant dense<0.000000e+00> : vector<128x32xf32>
    %148 = tpu.matmul %98, %7, %cst_33 {dimension_numbers = #tpu.dot_dimension_numbers<[1], [0], [0], [1], [0, 0, 1, 1], [], []>} : vector<128x8xbf16>, vector<8x32xbf16>, vector<128x32xf32> -> vector<128x32xf32>
    %149 = arith.truncf %147 : vector<128x32xf32> to vector<128x32xbf16>
    %150 = arith.truncf %148 : vector<128x32xf32> to vector<128x32xbf16>
    %c0_34 = arith.constant 0 : index
    %c0_35 = arith.constant 0 : index
    %151 = vector.load %arg12[%c0_34, %c0_35] : memref<576x32xbf16, #tpu.memory_space<vmem>>, vector<32x32xbf16>
    %cst_36 = arith.constant dense<0.000000e+00> : vector<128x32xf32>
    %152 = tpu.matmul %149, %151, %cst_36 {dimension_numbers = #tpu.dot_dimension_numbers<[1], [0], [0], [1], [0, 0, 1, 1], [], []>} : vector<128x32xbf16>, vector<32x32xbf16>, vector<128x32xf32> -> vector<128x32xf32>
    %c32 = arith.constant 32 : index
    %c0_37 = arith.constant 0 : index
    %153 = vector.load %arg12[%c32, %c0_37] : memref<576x32xbf16, #tpu.memory_space<vmem>>, vector<32x32xbf16>
    %cst_38 = arith.constant dense<0.000000e+00> : vector<128x32xf32>
    %154 = tpu.matmul %150, %153, %cst_38 {dimension_numbers = #tpu.dot_dimension_numbers<[1], [0], [0], [1], [0, 0, 1, 1], [], []>} : vector<128x32xbf16>, vector<32x32xbf16>, vector<128x32xf32> -> vector<128x32xf32>
    %155 = arith.addf %152, %154 : vector<128x32xf32>
    %156 = vector.extract_strided_slice %0 {offsets = [0, 0], sizes = [1, 32], strides = [1, 1]} : vector<29x32xf32> to vector<1x32xf32>
    %157 = vector.broadcast %156 : vector<1x32xf32> to vector<128x32xf32>
    %158 = arith.addf %155, %157 : vector<128x32xf32>
    %cst_39 = arith.constant dense<0.000000e+00> : vector<128xf32>
    %159 = vector.multi_reduction <add>, %158, %cst_39 [1] : vector<128x32xf32> to vector<128xf32>
    %160 = vector.shape_cast %159 : vector<128xf32> to vector<128x1xf32>
    %cst_40 = arith.constant 3.200000e+01 : f32
    %161 = vector.broadcast %cst_40 : f32 to vector<128x1xf32>
    %162 = arith.divf %160, %161 : vector<128x1xf32>
    %163 = vector.broadcast %162 : vector<128x1xf32> to vector<128x32xf32>
    %164 = arith.subf %158, %163 : vector<128x32xf32>
    %165 = arith.mulf %164, %164 : vector<128x32xf32>
    %cst_41 = arith.constant dense<0.000000e+00> : vector<128xf32>
    %166 = vector.multi_reduction <add>, %165, %cst_41 [1] : vector<128x32xf32> to vector<128xf32>
    %167 = vector.shape_cast %166 : vector<128xf32> to vector<128x1xf32>
    %cst_42 = arith.constant 3.200000e+01 : f32
    %168 = vector.broadcast %cst_42 : f32 to vector<128x1xf32>
    %169 = arith.divf %167, %168 : vector<128x1xf32>
    %170 = vector.broadcast %162 : vector<128x1xf32> to vector<128x32xf32>
    %171 = arith.subf %158, %170 : vector<128x32xf32>
    %cst_43 = arith.constant 9.99999974E-6 : f32
    %172 = vector.broadcast %cst_43 : f32 to vector<128x1xf32>
    %173 = arith.addf %169, %172 : vector<128x1xf32>
    %174 = math.rsqrt %173 : vector<128x1xf32>
    %175 = vector.broadcast %174 : vector<128x1xf32> to vector<128x32xf32>
    %176 = arith.mulf %171, %175 : vector<128x32xf32>
    %177 = vector.extract_strided_slice %0 {offsets = [1, 0], sizes = [1, 32], strides = [1, 1]} : vector<29x32xf32> to vector<1x32xf32>
    %178 = vector.broadcast %177 : vector<1x32xf32> to vector<128x32xf32>
    %179 = arith.mulf %176, %178 : vector<128x32xf32>
    %180 = vector.extract_strided_slice %0 {offsets = [2, 0], sizes = [1, 32], strides = [1, 1]} : vector<29x32xf32> to vector<1x32xf32>
    %181 = vector.broadcast %180 : vector<1x32xf32> to vector<128x32xf32>
    %182 = arith.addf %179, %181 : vector<128x32xf32>
    %183 = math.tanh %182 : vector<128x32xf32>
    %184 = vector.extract_strided_slice %0 {offsets = [3, 0], sizes = [1, 32], strides = [1, 1]} : vector<29x32xf32> to vector<1x32xf32>
    %185 = vector.extract_strided_slice %0 {offsets = [4, 0], sizes = [1, 32], strides = [1, 1]} : vector<29x32xf32> to vector<1x32xf32>
    %186 = vector.extract_strided_slice %185 {offsets = [0, 0], sizes = [1, 1], strides = [1, 1]} : vector<1x32xf32> to vector<1x1xf32>
    %187 = vector.broadcast %184 : vector<1x32xf32> to vector<128x32xf32>
    %188 = arith.mulf %183, %187 : vector<128x32xf32>
    %cst_44 = arith.constant dense<0.000000e+00> : vector<128xf32>
    %189 = vector.multi_reduction <add>, %188, %cst_44 [1] : vector<128x32xf32> to vector<128xf32>
    %190 = vector.shape_cast %189 : vector<128xf32> to vector<128x1xf32>
    %191 = vector.broadcast %186 : vector<1x1xf32> to vector<128x1xf32>
    %192 = arith.addf %191, %190 : vector<128x1xf32>
    %c0_45 = arith.constant 0 : index
    %c0_46 = arith.constant 0 : index
    %193 = vector.load %arg10[%c0_45, %c0_46] : memref<128x1xf32, #tpu.memory_space<vmem>>, vector<128x1xf32>
    %194 = arith.addf %193, %192 : vector<128x1xf32>
    %195 = math.exp %194 : vector<128x1xf32>
    %196 = arith.extui %86 : vector<64x128xi1> to vector<64x128xi32>
    %197 = arith.sitofp %196 : vector<64x128xi32> to vector<64x128xf32>
    %cst_47 = arith.constant dense<0.000000e+00> : vector<64x1xf32>
    %198 = tpu.matmul %197, %195, %cst_47 {dimension_numbers = #tpu.dot_dimension_numbers<[1], [0], [0], [1], [0, 0, 1, 1], [], []>} : vector<64x128xf32>, vector<128x1xf32>, vector<64x1xf32> -> vector<64x1xf32>
    %199 = arith.extui %83 : vector<128x64xi1> to vector<128x64xi32>
    %200 = arith.sitofp %199 : vector<128x64xi32> to vector<128x64xf32>
    %cst_48 = arith.constant dense<0.000000e+00> : vector<128x1xf32>
    %201 = tpu.matmul %200, %198, %cst_48 {dimension_numbers = #tpu.dot_dimension_numbers<[1], [0], [0], [1], [0, 0, 1, 1], [], []>} : vector<128x64xf32>, vector<64x1xf32>, vector<128x1xf32> -> vector<128x1xf32>
    %cst_49 = arith.constant 9.99999996E-13 : f32
    %202 = vector.broadcast %cst_49 : f32 to vector<128x1xf32>
    %203 = arith.addf %202, %201 : vector<128x1xf32>
    %204 = arith.divf %195, %203 : vector<128x1xf32>
    %205 = vector.broadcast %204 : vector<128x1xf32> to vector<128x32xf32>
    %206 = arith.mulf %205, %147 : vector<128x32xf32>
    %207 = arith.truncf %206 : vector<128x32xf32> to vector<128x32xbf16>
    %cst_50 = arith.constant dense<0.000000e+00> : vector<8x32xf32>
    %208 = tpu.matmul %104, %207, %cst_50 {dimension_numbers = #tpu.dot_dimension_numbers<[1], [0], [0], [1], [0, 0, 1, 1], [], []>} : vector<8x128xbf16>, vector<128x32xbf16>, vector<8x32xf32> -> vector<8x32xf32>
    %cst_51 = arith.constant dense<0.000000e+00> : vector<16x32xf32>
    %209 = tpu.matmul %128, %8, %cst_51 {dimension_numbers = #tpu.dot_dimension_numbers<[1], [0], [0], [1], [0, 0, 1, 1], [], []>} : vector<16x16xbf16>, vector<16x32xbf16>, vector<16x32xf32> -> vector<16x32xf32>
    %c0_52 = arith.constant 0 : index
    %c0_53 = arith.constant 0 : index
    %210 = vector.load %arg11[%c0_52, %c0_53] : memref<16x1xf32, #tpu.memory_space<vmem>>, vector<16x1xf32>
    %211 = vector.broadcast %210 : vector<16x1xf32> to vector<16x32xf32>
    %212 = arith.mulf %209, %211 : vector<16x32xf32>
    %213 = arith.truncf %212 : vector<16x32xf32> to vector<16x32xbf16>
    %cst_54 = arith.constant dense<0.000000e+00> : vector<8x32xf32>
    %214 = tpu.matmul %146, %213, %cst_54 {dimension_numbers = #tpu.dot_dimension_numbers<[1], [0], [0], [1], [0, 0, 1, 1], [], []>} : vector<8x16xbf16>, vector<16x32xbf16>, vector<8x32xf32> -> vector<8x32xf32>
    %215 = arith.truncf %214 : vector<8x32xf32> to vector<8x32xbf16>
    %216 = arith.truncf %208 : vector<8x32xf32> to vector<8x32xbf16>
    %c64 = arith.constant 64 : index
    %c0_55 = arith.constant 0 : index
    %217 = vector.load %arg12[%c64, %c0_55] : memref<576x32xbf16, #tpu.memory_space<vmem>>, vector<32x32xbf16>
    %cst_56 = arith.constant dense<0.000000e+00> : vector<8x32xf32>
    %218 = tpu.matmul %7, %217, %cst_56 {dimension_numbers = #tpu.dot_dimension_numbers<[1], [0], [0], [1], [0, 0, 1, 1], [], []>} : vector<8x32xbf16>, vector<32x32xbf16>, vector<8x32xf32> -> vector<8x32xf32>
    %c96 = arith.constant 96 : index
    %c0_57 = arith.constant 0 : index
    %219 = vector.load %arg12[%c96, %c0_57] : memref<576x32xbf16, #tpu.memory_space<vmem>>, vector<32x32xbf16>
    %cst_58 = arith.constant dense<0.000000e+00> : vector<8x32xf32>
    %220 = tpu.matmul %215, %219, %cst_58 {dimension_numbers = #tpu.dot_dimension_numbers<[1], [0], [0], [1], [0, 0, 1, 1], [], []>} : vector<8x32xbf16>, vector<32x32xbf16>, vector<8x32xf32> -> vector<8x32xf32>
    %221 = arith.addf %218, %220 : vector<8x32xf32>
    %c128 = arith.constant 128 : index
    %c0_59 = arith.constant 0 : index
    %222 = vector.load %arg12[%c128, %c0_59] : memref<576x32xbf16, #tpu.memory_space<vmem>>, vector<32x32xbf16>
    %cst_60 = arith.constant dense<0.000000e+00> : vector<8x32xf32>
    %223 = tpu.matmul %216, %222, %cst_60 {dimension_numbers = #tpu.dot_dimension_numbers<[1], [0], [0], [1], [0, 0, 1, 1], [], []>} : vector<8x32xbf16>, vector<32x32xbf16>, vector<8x32xf32> -> vector<8x32xf32>
    %224 = arith.addf %221, %223 : vector<8x32xf32>
    %225 = vector.extract_strided_slice %0 {offsets = [5, 0], sizes = [1, 32], strides = [1, 1]} : vector<29x32xf32> to vector<1x32xf32>
    %226 = vector.broadcast %225 : vector<1x32xf32> to vector<8x32xf32>
    %227 = arith.addf %224, %226 : vector<8x32xf32>
    %cst_61 = arith.constant dense<0.000000e+00> : vector<8xf32>
    %228 = vector.multi_reduction <add>, %227, %cst_61 [1] : vector<8x32xf32> to vector<8xf32>
    %229 = vector.shape_cast %228 : vector<8xf32> to vector<8x1xf32>
    %cst_62 = arith.constant 3.200000e+01 : f32
    %230 = vector.broadcast %cst_62 : f32 to vector<8x1xf32>
    %231 = arith.divf %229, %230 : vector<8x1xf32>
    %232 = vector.broadcast %231 : vector<8x1xf32> to vector<8x32xf32>
    %233 = arith.subf %227, %232 : vector<8x32xf32>
    %234 = arith.mulf %233, %233 : vector<8x32xf32>
    %cst_63 = arith.constant dense<0.000000e+00> : vector<8xf32>
    %235 = vector.multi_reduction <add>, %234, %cst_63 [1] : vector<8x32xf32> to vector<8xf32>
    %236 = vector.shape_cast %235 : vector<8xf32> to vector<8x1xf32>
    %cst_64 = arith.constant 3.200000e+01 : f32
    %237 = vector.broadcast %cst_64 : f32 to vector<8x1xf32>
    %238 = arith.divf %236, %237 : vector<8x1xf32>
    %239 = vector.broadcast %231 : vector<8x1xf32> to vector<8x32xf32>
    %240 = arith.subf %227, %239 : vector<8x32xf32>
    %cst_65 = arith.constant 9.99999974E-6 : f32
    %241 = vector.broadcast %cst_65 : f32 to vector<8x1xf32>
    %242 = arith.addf %238, %241 : vector<8x1xf32>
    %243 = math.rsqrt %242 : vector<8x1xf32>
    %244 = vector.broadcast %243 : vector<8x1xf32> to vector<8x32xf32>
    %245 = arith.mulf %240, %244 : vector<8x32xf32>
    %246 = vector.extract_strided_slice %0 {offsets = [6, 0], sizes = [1, 32], strides = [1, 1]} : vector<29x32xf32> to vector<1x32xf32>
    %247 = vector.broadcast %246 : vector<1x32xf32> to vector<8x32xf32>
    %248 = arith.mulf %245, %247 : vector<8x32xf32>
    %249 = vector.extract_strided_slice %0 {offsets = [7, 0], sizes = [1, 32], strides = [1, 1]} : vector<29x32xf32> to vector<1x32xf32>
    %250 = vector.broadcast %249 : vector<1x32xf32> to vector<8x32xf32>
    %251 = arith.addf %248, %250 : vector<8x32xf32>
    %cst_66 = arith.constant 0.000000e+00 : f32
    %252 = vector.broadcast %cst_66 : f32 to vector<8x32xf32>
    %253 = arith.maximumf %251, %252 : vector<8x32xf32>
    %254 = arith.truncf %253 : vector<8x32xf32> to vector<8x32xbf16>
    %c160 = arith.constant 160 : index
    %c0_67 = arith.constant 0 : index
    %255 = vector.load %arg12[%c160, %c0_67] : memref<576x32xbf16, #tpu.memory_space<vmem>>, vector<32x32xbf16>
    %cst_68 = arith.constant dense<0.000000e+00> : vector<8x32xf32>
    %256 = tpu.matmul %254, %255, %cst_68 {dimension_numbers = #tpu.dot_dimension_numbers<[1], [0], [0], [1], [0, 0, 1, 1], [], []>} : vector<8x32xbf16>, vector<32x32xbf16>, vector<8x32xf32> -> vector<8x32xf32>
    %257 = vector.extract_strided_slice %0 {offsets = [8, 0], sizes = [1, 32], strides = [1, 1]} : vector<29x32xf32> to vector<1x32xf32>
    %258 = vector.broadcast %257 : vector<1x32xf32> to vector<8x32xf32>
    %259 = arith.addf %256, %258 : vector<8x32xf32>
    %cst_69 = arith.constant dense<0.000000e+00> : vector<8xf32>
    %260 = vector.multi_reduction <add>, %259, %cst_69 [1] : vector<8x32xf32> to vector<8xf32>
    %261 = vector.shape_cast %260 : vector<8xf32> to vector<8x1xf32>
    %cst_70 = arith.constant 3.200000e+01 : f32
    %262 = vector.broadcast %cst_70 : f32 to vector<8x1xf32>
    %263 = arith.divf %261, %262 : vector<8x1xf32>
    %264 = vector.broadcast %263 : vector<8x1xf32> to vector<8x32xf32>
    %265 = arith.subf %259, %264 : vector<8x32xf32>
    %266 = arith.mulf %265, %265 : vector<8x32xf32>
    %cst_71 = arith.constant dense<0.000000e+00> : vector<8xf32>
    %267 = vector.multi_reduction <add>, %266, %cst_71 [1] : vector<8x32xf32> to vector<8xf32>
    %268 = vector.shape_cast %267 : vector<8xf32> to vector<8x1xf32>
    %cst_72 = arith.constant 3.200000e+01 : f32
    %269 = vector.broadcast %cst_72 : f32 to vector<8x1xf32>
    %270 = arith.divf %268, %269 : vector<8x1xf32>
    %271 = vector.broadcast %263 : vector<8x1xf32> to vector<8x32xf32>
    %272 = arith.subf %259, %271 : vector<8x32xf32>
    %cst_73 = arith.constant 9.99999974E-6 : f32
    %273 = vector.broadcast %cst_73 : f32 to vector<8x1xf32>
    %274 = arith.addf %270, %273 : vector<8x1xf32>
    %275 = math.rsqrt %274 : vector<8x1xf32>
    %276 = vector.broadcast %275 : vector<8x1xf32> to vector<8x32xf32>
    %277 = arith.mulf %272, %276 : vector<8x32xf32>
    %278 = vector.extract_strided_slice %0 {offsets = [9, 0], sizes = [1, 32], strides = [1, 1]} : vector<29x32xf32> to vector<1x32xf32>
    %279 = vector.broadcast %278 : vector<1x32xf32> to vector<8x32xf32>
    %280 = arith.mulf %277, %279 : vector<8x32xf32>
    %281 = vector.extract_strided_slice %0 {offsets = [10, 0], sizes = [1, 32], strides = [1, 1]} : vector<29x32xf32> to vector<1x32xf32>
    %282 = vector.broadcast %281 : vector<1x32xf32> to vector<8x32xf32>
    %283 = arith.addf %280, %282 : vector<8x32xf32>
    %cst_74 = arith.constant 0.000000e+00 : f32
    %284 = vector.broadcast %cst_74 : f32 to vector<8x32xf32>
    %285 = arith.maximumf %283, %284 : vector<8x32xf32>
    %286 = arith.addf %285, %3 : vector<8x32xf32>
    %287 = arith.truncf %286 : vector<8x32xf32> to vector<8x32xbf16>
    %cst_75 = arith.constant dense<0.000000e+00> : vector<128x32xf32>
    %288 = tpu.matmul %98, %287, %cst_75 {dimension_numbers = #tpu.dot_dimension_numbers<[1], [0], [0], [1], [0, 0, 1, 1], [], []>} : vector<128x8xbf16>, vector<8x32xbf16>, vector<128x32xf32> -> vector<128x32xf32>
    %289 = vector.broadcast %204 : vector<128x1xf32> to vector<128x32xf32>
    %290 = arith.mulf %289, %288 : vector<128x32xf32>
    %291 = arith.truncf %290 : vector<128x32xf32> to vector<128x32xbf16>
    %cst_76 = arith.constant dense<0.000000e+00> : vector<64x32xf32>
    %292 = tpu.matmul %92, %291, %cst_76 {dimension_numbers = #tpu.dot_dimension_numbers<[1], [0], [0], [1], [0, 0, 1, 1], [], []>} : vector<64x128xbf16>, vector<128x32xbf16>, vector<64x32xf32> -> vector<64x32xf32>
    %cst_77 = arith.constant dense<0.000000e+00> : vector<64x32xf32>
    %293 = tpu.matmul %122, %6, %cst_77 {dimension_numbers = #tpu.dot_dimension_numbers<[1], [0], [0], [1], [0, 0, 1, 1], [], []>} : vector<64x128xbf16>, vector<128x32xbf16>, vector<64x32xf32> -> vector<64x32xf32>
    %294 = arith.truncf %293 : vector<64x32xf32> to vector<64x32xbf16>
    %295 = arith.truncf %292 : vector<64x32xf32> to vector<64x32xbf16>
    %c192 = arith.constant 192 : index
    %c0_78 = arith.constant 0 : index
    %296 = vector.load %arg12[%c192, %c0_78] : memref<576x32xbf16, #tpu.memory_space<vmem>>, vector<32x32xbf16>
    %cst_79 = arith.constant dense<0.000000e+00> : vector<64x32xf32>
    %297 = tpu.matmul %5, %296, %cst_79 {dimension_numbers = #tpu.dot_dimension_numbers<[1], [0], [0], [1], [0, 0, 1, 1], [], []>} : vector<64x32xbf16>, vector<32x32xbf16>, vector<64x32xf32> -> vector<64x32xf32>
    %c224 = arith.constant 224 : index
    %c0_80 = arith.constant 0 : index
    %298 = vector.load %arg12[%c224, %c0_80] : memref<576x32xbf16, #tpu.memory_space<vmem>>, vector<32x32xbf16>
    %cst_81 = arith.constant dense<0.000000e+00> : vector<64x32xf32>
    %299 = tpu.matmul %294, %298, %cst_81 {dimension_numbers = #tpu.dot_dimension_numbers<[1], [0], [0], [1], [0, 0, 1, 1], [], []>} : vector<64x32xbf16>, vector<32x32xbf16>, vector<64x32xf32> -> vector<64x32xf32>
    %300 = arith.addf %297, %299 : vector<64x32xf32>
    %c256 = arith.constant 256 : index
    %c0_82 = arith.constant 0 : index
    %301 = vector.load %arg12[%c256, %c0_82] : memref<576x32xbf16, #tpu.memory_space<vmem>>, vector<32x32xbf16>
    %cst_83 = arith.constant dense<0.000000e+00> : vector<64x32xf32>
    %302 = tpu.matmul %295, %301, %cst_83 {dimension_numbers = #tpu.dot_dimension_numbers<[1], [0], [0], [1], [0, 0, 1, 1], [], []>} : vector<64x32xbf16>, vector<32x32xbf16>, vector<64x32xf32> -> vector<64x32xf32>
    %303 = arith.addf %300, %302 : vector<64x32xf32>
    %304 = vector.extract_strided_slice %0 {offsets = [11, 0], sizes = [1, 32], strides = [1, 1]} : vector<29x32xf32> to vector<1x32xf32>
    %305 = vector.broadcast %304 : vector<1x32xf32> to vector<64x32xf32>
    %306 = arith.addf %303, %305 : vector<64x32xf32>
    %cst_84 = arith.constant dense<0.000000e+00> : vector<64xf32>
    %307 = vector.multi_reduction <add>, %306, %cst_84 [1] : vector<64x32xf32> to vector<64xf32>
    %308 = vector.shape_cast %307 : vector<64xf32> to vector<64x1xf32>
    %cst_85 = arith.constant 3.200000e+01 : f32
    %309 = vector.broadcast %cst_85 : f32 to vector<64x1xf32>
    %310 = arith.divf %308, %309 : vector<64x1xf32>
    %311 = vector.broadcast %310 : vector<64x1xf32> to vector<64x32xf32>
    %312 = arith.subf %306, %311 : vector<64x32xf32>
    %313 = arith.mulf %312, %312 : vector<64x32xf32>
    %cst_86 = arith.constant dense<0.000000e+00> : vector<64xf32>
    %314 = vector.multi_reduction <add>, %313, %cst_86 [1] : vector<64x32xf32> to vector<64xf32>
    %315 = vector.shape_cast %314 : vector<64xf32> to vector<64x1xf32>
    %cst_87 = arith.constant 3.200000e+01 : f32
    %316 = vector.broadcast %cst_87 : f32 to vector<64x1xf32>
    %317 = arith.divf %315, %316 : vector<64x1xf32>
    %318 = vector.broadcast %310 : vector<64x1xf32> to vector<64x32xf32>
    %319 = arith.subf %306, %318 : vector<64x32xf32>
    %cst_88 = arith.constant 9.99999974E-6 : f32
    %320 = vector.broadcast %cst_88 : f32 to vector<64x1xf32>
    %321 = arith.addf %317, %320 : vector<64x1xf32>
    %322 = math.rsqrt %321 : vector<64x1xf32>
    %323 = vector.broadcast %322 : vector<64x1xf32> to vector<64x32xf32>
    %324 = arith.mulf %319, %323 : vector<64x32xf32>
    %325 = vector.extract_strided_slice %0 {offsets = [12, 0], sizes = [1, 32], strides = [1, 1]} : vector<29x32xf32> to vector<1x32xf32>
    %326 = vector.broadcast %325 : vector<1x32xf32> to vector<64x32xf32>
    %327 = arith.mulf %324, %326 : vector<64x32xf32>
    %328 = vector.extract_strided_slice %0 {offsets = [13, 0], sizes = [1, 32], strides = [1, 1]} : vector<29x32xf32> to vector<1x32xf32>
    %329 = vector.broadcast %328 : vector<1x32xf32> to vector<64x32xf32>
    %330 = arith.addf %327, %329 : vector<64x32xf32>
    %cst_89 = arith.constant 0.000000e+00 : f32
    %331 = vector.broadcast %cst_89 : f32 to vector<64x32xf32>
    %332 = arith.maximumf %330, %331 : vector<64x32xf32>
    %333 = arith.truncf %332 : vector<64x32xf32> to vector<64x32xbf16>
    %c288 = arith.constant 288 : index
    %c0_90 = arith.constant 0 : index
    %334 = vector.load %arg12[%c288, %c0_90] : memref<576x32xbf16, #tpu.memory_space<vmem>>, vector<32x32xbf16>
    %cst_91 = arith.constant dense<0.000000e+00> : vector<64x32xf32>
    %335 = tpu.matmul %333, %334, %cst_91 {dimension_numbers = #tpu.dot_dimension_numbers<[1], [0], [0], [1], [0, 0, 1, 1], [], []>} : vector<64x32xbf16>, vector<32x32xbf16>, vector<64x32xf32> -> vector<64x32xf32>
    %336 = vector.extract_strided_slice %0 {offsets = [14, 0], sizes = [1, 32], strides = [1, 1]} : vector<29x32xf32> to vector<1x32xf32>
    %337 = vector.broadcast %336 : vector<1x32xf32> to vector<64x32xf32>
    %338 = arith.addf %335, %337 : vector<64x32xf32>
    %cst_92 = arith.constant dense<0.000000e+00> : vector<64xf32>
    %339 = vector.multi_reduction <add>, %338, %cst_92 [1] : vector<64x32xf32> to vector<64xf32>
    %340 = vector.shape_cast %339 : vector<64xf32> to vector<64x1xf32>
    %cst_93 = arith.constant 3.200000e+01 : f32
    %341 = vector.broadcast %cst_93 : f32 to vector<64x1xf32>
    %342 = arith.divf %340, %341 : vector<64x1xf32>
    %343 = vector.broadcast %342 : vector<64x1xf32> to vector<64x32xf32>
    %344 = arith.subf %338, %343 : vector<64x32xf32>
    %345 = arith.mulf %344, %344 : vector<64x32xf32>
    %cst_94 = arith.constant dense<0.000000e+00> : vector<64xf32>
    %346 = vector.multi_reduction <add>, %345, %cst_94 [1] : vector<64x32xf32> to vector<64xf32>
    %347 = vector.shape_cast %346 : vector<64xf32> to vector<64x1xf32>
    %cst_95 = arith.constant 3.200000e+01 : f32
    %348 = vector.broadcast %cst_95 : f32 to vector<64x1xf32>
    %349 = arith.divf %347, %348 : vector<64x1xf32>
    %350 = vector.broadcast %342 : vector<64x1xf32> to vector<64x32xf32>
    %351 = arith.subf %338, %350 : vector<64x32xf32>
    %cst_96 = arith.constant 9.99999974E-6 : f32
    %352 = vector.broadcast %cst_96 : f32 to vector<64x1xf32>
    %353 = arith.addf %349, %352 : vector<64x1xf32>
    %354 = math.rsqrt %353 : vector<64x1xf32>
    %355 = vector.broadcast %354 : vector<64x1xf32> to vector<64x32xf32>
    %356 = arith.mulf %351, %355 : vector<64x32xf32>
    %357 = vector.extract_strided_slice %0 {offsets = [15, 0], sizes = [1, 32], strides = [1, 1]} : vector<29x32xf32> to vector<1x32xf32>
    %358 = vector.broadcast %357 : vector<1x32xf32> to vector<64x32xf32>
    %359 = arith.mulf %356, %358 : vector<64x32xf32>
    %360 = vector.extract_strided_slice %0 {offsets = [16, 0], sizes = [1, 32], strides = [1, 1]} : vector<29x32xf32> to vector<1x32xf32>
    %361 = vector.broadcast %360 : vector<1x32xf32> to vector<64x32xf32>
    %362 = arith.addf %359, %361 : vector<64x32xf32>
    %cst_97 = arith.constant 0.000000e+00 : f32
    %363 = vector.broadcast %cst_97 : f32 to vector<64x32xf32>
    %364 = arith.maximumf %362, %363 : vector<64x32xf32>
    %365 = arith.addf %364, %1 : vector<64x32xf32>
    %366 = arith.truncf %365 : vector<64x32xf32> to vector<64x32xbf16>
    %cst_98 = arith.constant dense<0.000000e+00> : vector<16x32xf32>
    %367 = tpu.matmul %134, %287, %cst_98 {dimension_numbers = #tpu.dot_dimension_numbers<[1], [0], [0], [1], [0, 0, 1, 1], [], []>} : vector<16x8xbf16>, vector<8x32xbf16>, vector<16x32xf32> -> vector<16x32xf32>
    %cst_99 = arith.constant dense<0.000000e+00> : vector<16x32xf32>
    %368 = tpu.matmul %140, %287, %cst_99 {dimension_numbers = #tpu.dot_dimension_numbers<[1], [0], [0], [1], [0, 0, 1, 1], [], []>} : vector<16x8xbf16>, vector<8x32xbf16>, vector<16x32xf32> -> vector<16x32xf32>
    %369 = arith.truncf %367 : vector<16x32xf32> to vector<16x32xbf16>
    %370 = arith.truncf %368 : vector<16x32xf32> to vector<16x32xbf16>
    %c320 = arith.constant 320 : index
    %c0_100 = arith.constant 0 : index
    %371 = vector.load %arg12[%c320, %c0_100] : memref<576x32xbf16, #tpu.memory_space<vmem>>, vector<32x32xbf16>
    %cst_101 = arith.constant dense<0.000000e+00> : vector<16x32xf32>
    %372 = tpu.matmul %369, %371, %cst_101 {dimension_numbers = #tpu.dot_dimension_numbers<[1], [0], [0], [1], [0, 0, 1, 1], [], []>} : vector<16x32xbf16>, vector<32x32xbf16>, vector<16x32xf32> -> vector<16x32xf32>
    %c352 = arith.constant 352 : index
    %c0_102 = arith.constant 0 : index
    %373 = vector.load %arg12[%c352, %c0_102] : memref<576x32xbf16, #tpu.memory_space<vmem>>, vector<32x32xbf16>
    %cst_103 = arith.constant dense<0.000000e+00> : vector<16x32xf32>
    %374 = tpu.matmul %370, %373, %cst_103 {dimension_numbers = #tpu.dot_dimension_numbers<[1], [0], [0], [1], [0, 0, 1, 1], [], []>} : vector<16x32xbf16>, vector<32x32xbf16>, vector<16x32xf32> -> vector<16x32xf32>
    %375 = arith.addf %372, %374 : vector<16x32xf32>
    %c384 = arith.constant 384 : index
    %c0_104 = arith.constant 0 : index
    %376 = vector.load %arg12[%c384, %c0_104] : memref<576x32xbf16, #tpu.memory_space<vmem>>, vector<32x32xbf16>
    %cst_105 = arith.constant dense<0.000000e+00> : vector<16x32xf32>
    %377 = tpu.matmul %8, %376, %cst_105 {dimension_numbers = #tpu.dot_dimension_numbers<[1], [0], [0], [1], [0, 0, 1, 1], [], []>} : vector<16x32xbf16>, vector<32x32xbf16>, vector<16x32xf32> -> vector<16x32xf32>
    %378 = arith.addf %375, %377 : vector<16x32xf32>
    %379 = vector.extract_strided_slice %0 {offsets = [17, 0], sizes = [1, 32], strides = [1, 1]} : vector<29x32xf32> to vector<1x32xf32>
    %380 = vector.broadcast %379 : vector<1x32xf32> to vector<16x32xf32>
    %381 = arith.addf %378, %380 : vector<16x32xf32>
    %cst_106 = arith.constant dense<0.000000e+00> : vector<16xf32>
    %382 = vector.multi_reduction <add>, %381, %cst_106 [1] : vector<16x32xf32> to vector<16xf32>
    %383 = vector.shape_cast %382 : vector<16xf32> to vector<16x1xf32>
    %cst_107 = arith.constant 3.200000e+01 : f32
    %384 = vector.broadcast %cst_107 : f32 to vector<16x1xf32>
    %385 = arith.divf %383, %384 : vector<16x1xf32>
    %386 = vector.broadcast %385 : vector<16x1xf32> to vector<16x32xf32>
    %387 = arith.subf %381, %386 : vector<16x32xf32>
    %388 = arith.mulf %387, %387 : vector<16x32xf32>
    %cst_108 = arith.constant dense<0.000000e+00> : vector<16xf32>
    %389 = vector.multi_reduction <add>, %388, %cst_108 [1] : vector<16x32xf32> to vector<16xf32>
    %390 = vector.shape_cast %389 : vector<16xf32> to vector<16x1xf32>
    %cst_109 = arith.constant 3.200000e+01 : f32
    %391 = vector.broadcast %cst_109 : f32 to vector<16x1xf32>
    %392 = arith.divf %390, %391 : vector<16x1xf32>
    %393 = vector.broadcast %385 : vector<16x1xf32> to vector<16x32xf32>
    %394 = arith.subf %381, %393 : vector<16x32xf32>
    %cst_110 = arith.constant 9.99999974E-6 : f32
    %395 = vector.broadcast %cst_110 : f32 to vector<16x1xf32>
    %396 = arith.addf %392, %395 : vector<16x1xf32>
    %397 = math.rsqrt %396 : vector<16x1xf32>
    %398 = vector.broadcast %397 : vector<16x1xf32> to vector<16x32xf32>
    %399 = arith.mulf %394, %398 : vector<16x32xf32>
    %400 = vector.extract_strided_slice %0 {offsets = [18, 0], sizes = [1, 32], strides = [1, 1]} : vector<29x32xf32> to vector<1x32xf32>
    %401 = vector.broadcast %400 : vector<1x32xf32> to vector<16x32xf32>
    %402 = arith.mulf %399, %401 : vector<16x32xf32>
    %403 = vector.extract_strided_slice %0 {offsets = [19, 0], sizes = [1, 32], strides = [1, 1]} : vector<29x32xf32> to vector<1x32xf32>
    %404 = vector.broadcast %403 : vector<1x32xf32> to vector<16x32xf32>
    %405 = arith.addf %402, %404 : vector<16x32xf32>
    %cst_111 = arith.constant 0.000000e+00 : f32
    %406 = vector.broadcast %cst_111 : f32 to vector<16x32xf32>
    %407 = arith.maximumf %405, %406 : vector<16x32xf32>
    %408 = arith.truncf %407 : vector<16x32xf32> to vector<16x32xbf16>
    %c416 = arith.constant 416 : index
    %c0_112 = arith.constant 0 : index
    %409 = vector.load %arg12[%c416, %c0_112] : memref<576x32xbf16, #tpu.memory_space<vmem>>, vector<32x32xbf16>
    %cst_113 = arith.constant dense<0.000000e+00> : vector<16x32xf32>
    %410 = tpu.matmul %408, %409, %cst_113 {dimension_numbers = #tpu.dot_dimension_numbers<[1], [0], [0], [1], [0, 0, 1, 1], [], []>} : vector<16x32xbf16>, vector<32x32xbf16>, vector<16x32xf32> -> vector<16x32xf32>
    %411 = vector.extract_strided_slice %0 {offsets = [20, 0], sizes = [1, 32], strides = [1, 1]} : vector<29x32xf32> to vector<1x32xf32>
    %412 = vector.broadcast %411 : vector<1x32xf32> to vector<16x32xf32>
    %413 = arith.addf %410, %412 : vector<16x32xf32>
    %cst_114 = arith.constant dense<0.000000e+00> : vector<16xf32>
    %414 = vector.multi_reduction <add>, %413, %cst_114 [1] : vector<16x32xf32> to vector<16xf32>
    %415 = vector.shape_cast %414 : vector<16xf32> to vector<16x1xf32>
    %cst_115 = arith.constant 3.200000e+01 : f32
    %416 = vector.broadcast %cst_115 : f32 to vector<16x1xf32>
    %417 = arith.divf %415, %416 : vector<16x1xf32>
    %418 = vector.broadcast %417 : vector<16x1xf32> to vector<16x32xf32>
    %419 = arith.subf %413, %418 : vector<16x32xf32>
    %420 = arith.mulf %419, %419 : vector<16x32xf32>
    %cst_116 = arith.constant dense<0.000000e+00> : vector<16xf32>
    %421 = vector.multi_reduction <add>, %420, %cst_116 [1] : vector<16x32xf32> to vector<16xf32>
    %422 = vector.shape_cast %421 : vector<16xf32> to vector<16x1xf32>
    %cst_117 = arith.constant 3.200000e+01 : f32
    %423 = vector.broadcast %cst_117 : f32 to vector<16x1xf32>
    %424 = arith.divf %422, %423 : vector<16x1xf32>
    %425 = vector.broadcast %417 : vector<16x1xf32> to vector<16x32xf32>
    %426 = arith.subf %413, %425 : vector<16x32xf32>
    %cst_118 = arith.constant 9.99999974E-6 : f32
    %427 = vector.broadcast %cst_118 : f32 to vector<16x1xf32>
    %428 = arith.addf %424, %427 : vector<16x1xf32>
    %429 = math.rsqrt %428 : vector<16x1xf32>
    %430 = vector.broadcast %429 : vector<16x1xf32> to vector<16x32xf32>
    %431 = arith.mulf %426, %430 : vector<16x32xf32>
    %432 = vector.extract_strided_slice %0 {offsets = [21, 0], sizes = [1, 32], strides = [1, 1]} : vector<29x32xf32> to vector<1x32xf32>
    %433 = vector.broadcast %432 : vector<1x32xf32> to vector<16x32xf32>
    %434 = arith.mulf %431, %433 : vector<16x32xf32>
    %435 = vector.extract_strided_slice %0 {offsets = [22, 0], sizes = [1, 32], strides = [1, 1]} : vector<29x32xf32> to vector<1x32xf32>
    %436 = vector.broadcast %435 : vector<1x32xf32> to vector<16x32xf32>
    %437 = arith.addf %434, %436 : vector<16x32xf32>
    %438 = math.tanh %437 : vector<16x32xf32>
    %439 = arith.addf %438, %4 : vector<16x32xf32>
    %cst_119 = arith.constant dense<0.000000e+00> : vector<128x32xf32>
    %440 = tpu.matmul %110, %366, %cst_119 {dimension_numbers = #tpu.dot_dimension_numbers<[1], [0], [0], [1], [0, 0, 1, 1], [], []>} : vector<128x64xbf16>, vector<64x32xbf16>, vector<128x32xf32> -> vector<128x32xf32>
    %cst_120 = arith.constant dense<0.000000e+00> : vector<128x32xf32>
    %441 = tpu.matmul %116, %366, %cst_120 {dimension_numbers = #tpu.dot_dimension_numbers<[1], [0], [0], [1], [0, 0, 1, 1], [], []>} : vector<128x64xbf16>, vector<64x32xbf16>, vector<128x32xf32> -> vector<128x32xf32>
    %442 = arith.truncf %440 : vector<128x32xf32> to vector<128x32xbf16>
    %443 = arith.truncf %441 : vector<128x32xf32> to vector<128x32xbf16>
    %c448 = arith.constant 448 : index
    %c0_121 = arith.constant 0 : index
    %444 = vector.load %arg12[%c448, %c0_121] : memref<576x32xbf16, #tpu.memory_space<vmem>>, vector<32x32xbf16>
    %cst_122 = arith.constant dense<0.000000e+00> : vector<128x32xf32>
    %445 = tpu.matmul %442, %444, %cst_122 {dimension_numbers = #tpu.dot_dimension_numbers<[1], [0], [0], [1], [0, 0, 1, 1], [], []>} : vector<128x32xbf16>, vector<32x32xbf16>, vector<128x32xf32> -> vector<128x32xf32>
    %c480 = arith.constant 480 : index
    %c0_123 = arith.constant 0 : index
    %446 = vector.load %arg12[%c480, %c0_123] : memref<576x32xbf16, #tpu.memory_space<vmem>>, vector<32x32xbf16>
    %cst_124 = arith.constant dense<0.000000e+00> : vector<128x32xf32>
    %447 = tpu.matmul %443, %446, %cst_124 {dimension_numbers = #tpu.dot_dimension_numbers<[1], [0], [0], [1], [0, 0, 1, 1], [], []>} : vector<128x32xbf16>, vector<32x32xbf16>, vector<128x32xf32> -> vector<128x32xf32>
    %448 = arith.addf %445, %447 : vector<128x32xf32>
    %c512 = arith.constant 512 : index
    %c0_125 = arith.constant 0 : index
    %449 = vector.load %arg12[%c512, %c0_125] : memref<576x32xbf16, #tpu.memory_space<vmem>>, vector<32x32xbf16>
    %cst_126 = arith.constant dense<0.000000e+00> : vector<128x32xf32>
    %450 = tpu.matmul %6, %449, %cst_126 {dimension_numbers = #tpu.dot_dimension_numbers<[1], [0], [0], [1], [0, 0, 1, 1], [], []>} : vector<128x32xbf16>, vector<32x32xbf16>, vector<128x32xf32> -> vector<128x32xf32>
    %451 = arith.addf %448, %450 : vector<128x32xf32>
    %452 = vector.extract_strided_slice %0 {offsets = [23, 0], sizes = [1, 32], strides = [1, 1]} : vector<29x32xf32> to vector<1x32xf32>
    %453 = vector.broadcast %452 : vector<1x32xf32> to vector<128x32xf32>
    %454 = arith.addf %451, %453 : vector<128x32xf32>
    %cst_127 = arith.constant dense<0.000000e+00> : vector<128xf32>
    %455 = vector.multi_reduction <add>, %454, %cst_127 [1] : vector<128x32xf32> to vector<128xf32>
    %456 = vector.shape_cast %455 : vector<128xf32> to vector<128x1xf32>
    %cst_128 = arith.constant 3.200000e+01 : f32
    %457 = vector.broadcast %cst_128 : f32 to vector<128x1xf32>
    %458 = arith.divf %456, %457 : vector<128x1xf32>
    %459 = vector.broadcast %458 : vector<128x1xf32> to vector<128x32xf32>
    %460 = arith.subf %454, %459 : vector<128x32xf32>
    %461 = arith.mulf %460, %460 : vector<128x32xf32>
    %cst_129 = arith.constant dense<0.000000e+00> : vector<128xf32>
    %462 = vector.multi_reduction <add>, %461, %cst_129 [1] : vector<128x32xf32> to vector<128xf32>
    %463 = vector.shape_cast %462 : vector<128xf32> to vector<128x1xf32>
    %cst_130 = arith.constant 3.200000e+01 : f32
    %464 = vector.broadcast %cst_130 : f32 to vector<128x1xf32>
    %465 = arith.divf %463, %464 : vector<128x1xf32>
    %466 = vector.broadcast %458 : vector<128x1xf32> to vector<128x32xf32>
    %467 = arith.subf %454, %466 : vector<128x32xf32>
    %cst_131 = arith.constant 9.99999974E-6 : f32
    %468 = vector.broadcast %cst_131 : f32 to vector<128x1xf32>
    %469 = arith.addf %465, %468 : vector<128x1xf32>
    %470 = math.rsqrt %469 : vector<128x1xf32>
    %471 = vector.broadcast %470 : vector<128x1xf32> to vector<128x32xf32>
    %472 = arith.mulf %467, %471 : vector<128x32xf32>
    %473 = vector.extract_strided_slice %0 {offsets = [24, 0], sizes = [1, 32], strides = [1, 1]} : vector<29x32xf32> to vector<1x32xf32>
    %474 = vector.broadcast %473 : vector<1x32xf32> to vector<128x32xf32>
    %475 = arith.mulf %472, %474 : vector<128x32xf32>
    %476 = vector.extract_strided_slice %0 {offsets = [25, 0], sizes = [1, 32], strides = [1, 1]} : vector<29x32xf32> to vector<1x32xf32>
    %477 = vector.broadcast %476 : vector<1x32xf32> to vector<128x32xf32>
    %478 = arith.addf %475, %477 : vector<128x32xf32>
    %cst_132 = arith.constant 0.000000e+00 : f32
    %479 = vector.broadcast %cst_132 : f32 to vector<128x32xf32>
    %480 = arith.maximumf %478, %479 : vector<128x32xf32>
    %481 = arith.truncf %480 : vector<128x32xf32> to vector<128x32xbf16>
    %c544 = arith.constant 544 : index
    %c0_133 = arith.constant 0 : index
    %482 = vector.load %arg12[%c544, %c0_133] : memref<576x32xbf16, #tpu.memory_space<vmem>>, vector<32x32xbf16>
    %cst_134 = arith.constant dense<0.000000e+00> : vector<128x32xf32>
    %483 = tpu.matmul %481, %482, %cst_134 {dimension_numbers = #tpu.dot_dimension_numbers<[1], [0], [0], [1], [0, 0, 1, 1], [], []>} : vector<128x32xbf16>, vector<32x32xbf16>, vector<128x32xf32> -> vector<128x32xf32>
    %484 = vector.extract_strided_slice %0 {offsets = [26, 0], sizes = [1, 32], strides = [1, 1]} : vector<29x32xf32> to vector<1x32xf32>
    %485 = vector.broadcast %484 : vector<1x32xf32> to vector<128x32xf32>
    %486 = arith.addf %483, %485 : vector<128x32xf32>
    %cst_135 = arith.constant dense<0.000000e+00> : vector<128xf32>
    %487 = vector.multi_reduction <add>, %486, %cst_135 [1] : vector<128x32xf32> to vector<128xf32>
    %488 = vector.shape_cast %487 : vector<128xf32> to vector<128x1xf32>
    %cst_136 = arith.constant 3.200000e+01 : f32
    %489 = vector.broadcast %cst_136 : f32 to vector<128x1xf32>
    %490 = arith.divf %488, %489 : vector<128x1xf32>
    %491 = vector.broadcast %490 : vector<128x1xf32> to vector<128x32xf32>
    %492 = arith.subf %486, %491 : vector<128x32xf32>
    %493 = arith.mulf %492, %492 : vector<128x32xf32>
    %cst_137 = arith.constant dense<0.000000e+00> : vector<128xf32>
    %494 = vector.multi_reduction <add>, %493, %cst_137 [1] : vector<128x32xf32> to vector<128xf32>
    %495 = vector.shape_cast %494 : vector<128xf32> to vector<128x1xf32>
    %cst_138 = arith.constant 3.200000e+01 : f32
    %496 = vector.broadcast %cst_138 : f32 to vector<128x1xf32>
    %497 = arith.divf %495, %496 : vector<128x1xf32>
    %498 = vector.broadcast %490 : vector<128x1xf32> to vector<128x32xf32>
    %499 = arith.subf %486, %498 : vector<128x32xf32>
    %cst_139 = arith.constant 9.99999974E-6 : f32
    %500 = vector.broadcast %cst_139 : f32 to vector<128x1xf32>
    %501 = arith.addf %497, %500 : vector<128x1xf32>
    %502 = math.rsqrt %501 : vector<128x1xf32>
    %503 = vector.broadcast %502 : vector<128x1xf32> to vector<128x32xf32>
    %504 = arith.mulf %499, %503 : vector<128x32xf32>
    %505 = vector.extract_strided_slice %0 {offsets = [27, 0], sizes = [1, 32], strides = [1, 1]} : vector<29x32xf32> to vector<1x32xf32>
    %506 = vector.broadcast %505 : vector<1x32xf32> to vector<128x32xf32>
    %507 = arith.mulf %504, %506 : vector<128x32xf32>
    %508 = vector.extract_strided_slice %0 {offsets = [28, 0], sizes = [1, 32], strides = [1, 1]} : vector<29x32xf32> to vector<1x32xf32>
    %509 = vector.broadcast %508 : vector<1x32xf32> to vector<128x32xf32>
    %510 = arith.addf %507, %509 : vector<128x32xf32>
    %511 = math.tanh %510 : vector<128x32xf32>
    %512 = arith.addf %511, %2 : vector<128x32xf32>
    %c0_140 = arith.constant 0 : index
    %c0_141 = arith.constant 0 : index
    %513 = vector.load %arg14[%c0_140, %c0_141] : memref<216x32xf32, #tpu.memory_space<vmem>>, vector<64x32xf32>
    tpu.vector_store %arg14[%c0_140, %c0_141], %365 {strides = array<i32>} : memref<216x32xf32, #tpu.memory_space<vmem>>, vector<64x32xf32>,
    %c64_142 = arith.constant 64 : index
    %c0_143 = arith.constant 0 : index
    %514 = vector.load %arg14[%c64_142, %c0_143] : memref<216x32xf32, #tpu.memory_space<vmem>>, vector<128x32xf32>
    tpu.vector_store %arg14[%c64_142, %c0_143], %512 {strides = array<i32>} : memref<216x32xf32, #tpu.memory_space<vmem>>, vector<128x32xf32>,
    %c192_144 = arith.constant 192 : index
    %c0_145 = arith.constant 0 : index
    %515 = vector.load %arg14[%c192_144, %c0_145] : memref<216x32xf32, #tpu.memory_space<vmem>>, vector<8x32xf32>
    tpu.vector_store %arg14[%c192_144, %c0_145], %286 {strides = array<i32>} : memref<216x32xf32, #tpu.memory_space<vmem>>, vector<8x32xf32>,
    %c200 = arith.constant 200 : index
    %c0_146 = arith.constant 0 : index
    %516 = vector.load %arg14[%c200, %c0_146] : memref<216x32xf32, #tpu.memory_space<vmem>>, vector<16x32xf32>
    tpu.vector_store %arg14[%c200, %c0_146], %439 {strides = array<i32>} : memref<216x32xf32, #tpu.memory_space<vmem>>, vector<16x32xf32>,
    return
  }
}

</mosaic_0001>

<bundles_post_ra>
// kernel: hierarchical_gnn_block_forward.1
= control target key start
LH: loop header
LB: loop body
LE: loop exit
PB: predicated region body
PF: predicated region fallthrough
CT: control target
= control target key end

     0   :  { %v99_v0 = vlaneseq  ;;  %v9544_v7 = vmov 0  ;;  %v9547_v16 = vmov 0  ;;  %s9444_s5 = inlined_call_operand.vmem [shape: s32[1,128], index: 5, kind: input, shape index: {}]   ;;  %s9445_s4 = inlined_call_operand.vmem [shape: s32[1,128], index: 4, kind: input, shape index: {}]   ;;  %s9446_s0 = inlined_call_operand.vmem [shape: f32[64,32], index: 0, kind: input, shape index: {}]   ;;  %s9447_s2 = inlined_call_operand.vmem [shape: f32[8,32], index: 2, kind: input, shape index: {}]   ;;  %s9448_s12 = inlined_call_operand.vmem [shape: bf16[576,32], index: 12, kind: input, shape index: {}]   ;;  %s9449_s13 = inlined_call_operand.vmem [shape: f32[29,32], index: 13, kind: input, shape index: {}]   ;;  %s9450_s10 = inlined_call_operand.vmem [shape: f32[128,1], index: 10, kind: input, shape index: {}]   ;;  %s9451_s8 = inlined_call_operand.vmem [shape: s32[1,16], index: 8, kind: input, shape index: {}]   ;;  %s9452_s3 = inlined_call_operand.vmem [shape: f32[16,32], index: 3, kind: input, shape index: {}]   ;;  %s9453_s11 = inlined_call_operand.vmem [shape: f32[16,1], index: 11, kind: input, shape index: {}]   ;;  %s9454_s9 = inlined_call_operand.vmem [shape: s32[1,16], index: 9, kind: input, shape index: {}]   ;;  %s9455_s14 = inlined_call_operand.vmem [shape: f32[216,32], index: 14, kind: output, shape index: {}]   ;;  %s9456_s1 = inlined_call_operand.vmem [shape: f32[128,32], index: 1, kind: input, shape index: {}]   ;;  %s9457_s7 = inlined_call_operand.vmem [shape: s32[1,128], index: 7, kind: input, shape index: {}]   ;;  %s9458_s6 = inlined_call_operand.vmem [shape: s32[1,128], index: 6, kind: input, shape index: {}]  }
   0x1   :  { %v94_v1 = vld [vmem:[%s9444_s5] sm:$0x1]  ;;  %v58_v56 = vld [vmem:[%s9446_s0 + $0x30] sm:$0xff]  ;;  %v59_v57 = vld [vmem:[%s9446_s0 + $0x38] sm:$0xff] }
   0x2   :  { %v93_v2 = vld [vmem:[%s9445_s4] sm:$0x1]  ;;  %v6079_v3 = vand.u32 127, %v99_v0  ;;  %v6081_v4 = vshrl.u32 %v99_v0, 7  ;;  %v202_v5 = vcvt.s32.f32 %v94_v1  ;;  %v6294_v58 = vpack.c.bf16 %v59_v57, %v58_v56  ;;  %v57_v62 = vld [vmem:[%s9446_s0 + $0x28] sm:$0xff]  ;;  %v54_v0 = vld [vmem:[%s9446_s0 + $0x10] sm:$0xff] }
   0x3   :  { %v134_v6 = vcvt.s32.f32 %v93_v2  ;;  %v56_v61 = vld [vmem:[%s9446_s0 + $0x20] sm:$0xff]  ;;  %v55_v1 = vld [vmem:[%s9446_s0 + $0x18] sm:$0xff] }
   0x4   :  { %9543 = vst [vmem:[#allocation2_spill] sm:$0xff] %v6079_v3  ;;  %vm6085_vm0 = vcmp.eq.s32.totalorder %v6079_v3, %v6081_v4  ;;  %v6089_v8 = vperm.slane %v202_v5, 0  ;;  %v6094_v10 = vadd.s32 16, %v6081_v4  ;;  %v6097_v11 = vadd.s32 8, %v6081_v4  ;;  %770 = vmatpush.bf16.msra.mxu0 %v6294_v58  ;;  %v76_v5 = vld [vmem:[%s9447_s2] sm:$0xff] }
   0x5   :  { %v9545_v7 = vsel %vm6085_vm0, 4294967295, %v9544_v7  ;;  %v6091_v9 = vperm.slane %v134_v6, 0  ;;  %v6108_v14 = vadd.s32 24, %v6081_v4  ;;  %v6133_v20 = vadd.s32 32, %v6081_v4  ;;  %9559 = vst [vmem:[#allocation14_spill] sm:$0xff] %v6294_v58  ;;  %v52_v6 = vld [vmem:[%s9446_s0] sm:$0xff] }
   0x6   :  { %9546 = vst [vmem:[#allocation3_spill] sm:$0xff] %v9545_v7  ;;  %v206_v12 = vsel %vm6085_vm0, %v6089_v8, 0.0  ;;  %vm9530_vm1 = vcmp.eq.s32.totalorder %v6079_v3, %v6094_v10  ;;  %vm6116_vm2 = vcmp.eq.s32.totalorder %v6079_v3, %v6097_v11  ;;  %v6150_v24 = vadd.s32 40, %v6081_v4 }
   0x7   :  { %v138_v13 = vsel %vm6085_vm0, %v6091_v9, 0.0  ;;  %222 = vadd.xlane.f32.xlu1 %v206_v12  ;;  %v140_v15 = vsel %vm9530_vm1, %v6091_v9, 0.0  ;;  %v9548_v16 = vsel %vm6116_vm2, 4294967295, %v9547_v16  ;;  %vm9468_vm3 = vcmp.eq.s32.totalorder %v6079_v3, %v6108_v14 }
   0x8   :  { %154 = vadd.xlane.f32.xlu0 %v138_v13  ;;  %158 = vadd.xlane.f32.xlu2 %v140_v15  ;;  %9549 = vst [vmem:[#allocation4_spill] sm:$0xff] %v9548_v16  ;;  %v207_v17 = vsel %vm6116_vm2, %v6089_v8, 0.0  ;;  %v139_v18 = vsel %vm6116_vm2, %v6091_v9, 0.0  ;;  %v141_v19 = vsel %vm9468_vm3, %v6091_v9, 0.0  ;;  %vm9467_vm4 = vcmp.eq.s32.totalorder %v6079_v3, %v6133_v20 }
   0x9   :  { %v209_v21 = vsel %vm9468_vm3, %v6089_v8, 0.0  ;;  %v208_v22 = vsel %vm9530_vm1, %v6089_v8, 0.0  ;;  %v142_v23 = vsel %vm9467_vm4, %v6091_v9, 0.0  ;;  %vm9526_vm5 = vcmp.eq.s32.totalorder %v6079_v3, %v6150_v24 }
   0xa   :  { %v143_v25 = vsel %vm9526_vm5, %v6091_v9, 0.0  ;;  %v210_v26 = vsel %vm9467_vm4, %v6089_v8, 0.0  ;;  %v211_v27 = vsel %vm9526_vm5, %v6089_v8, 0.0  ;;  %v6167_v28 = vadd.s32 56, %v6081_v4 }
   0xb   :  { %v6170_v29 = vadd.s32 48, %v6081_v4  ;;  %v6189_v33 = vadd.s32 64, %v6081_v4  ;;  %v6192_v34 = vadd.s32 72, %v6081_v4  ;;  %v6211_v38 = vadd.s32 80, %v6081_v4 }
   0xc   :  { %9550 = vst [vmem:[#allocation5_spill] sm:$0xff] %v6167_v28  ;;  %vm9469_vm6 = vcmp.eq.s32.totalorder %v6079_v3, %v6167_v28  ;;  %v6228_v42 = vadd.s32 88, %v6081_v4  ;;  %v6245_v46 = vadd.s32 104, %v6081_v4  ;;  %v6248_v47 = vadd.s32 96, %v6081_v4 }
   0xd   :  { %vm9525_vm7 = vcmp.eq.s32.totalorder %v6079_v3, %v6170_v29  ;;  %v145_v30 = vsel %vm9469_vm6, %v6091_v9, 0.0  ;;  %9551 = vst [vmem:[#allocation6_spill] sm:$0xff] %v6189_v33  ;;  %vm9466_vm8 = vcmp.eq.s32.totalorder %v6079_v3, %v6189_v33  ;;  %vm9465_vm9 = vcmp.eq.s32.totalorder %v6079_v3, %v6192_v34 }
   0xe   :  { %v144_v31 = vsel %vm9525_vm7, %v6091_v9, 0.0  ;;  %v212_v32 = vsel %vm9525_vm7, %v6089_v8, 0.0  ;;  %9552 = vst [vmem:[#allocation7_spill] sm:$0xff] %v6192_v34  ;;  %v213_v35 = vsel %vm9469_vm6, %v6089_v8, 0.0  ;;  %v146_v36 = vsel %vm9466_vm8, %v6091_v9, 0.0 }
   0xf   :  { %224 = vadd.xlane.f32.xlu1 %v207_v17  ;;  %v147_v37 = vsel %vm9465_vm9, %v6091_v9, 0.0  ;;  %9553 = vst [vmem:[#allocation8_spill] sm:$0xff] %v6211_v38  ;;  %vm9464_vm10 = vcmp.eq.s32.totalorder %v6079_v3, %v6211_v38  ;;  %v215_v39 = vsel %vm9465_vm9, %v6089_v8, 0.0  ;;  %v214_v40 = vsel %vm9466_vm8, %v6089_v8, 0.0 }
  0x10   :  { %156 = vadd.xlane.f32.xlu0 %v139_v18  ;;  %160 = vadd.xlane.f32.xlu2 %v141_v19  ;;  %v148_v41 = vsel %vm9464_vm10, %v6091_v9, 0.0  ;;  %9554 = vst [vmem:[#allocation9_spill] sm:$0xff] %v6228_v42  ;;  %vm9463_vm11 = vcmp.eq.s32.totalorder %v6079_v3, %v6228_v42  ;;  %v216_v44 = vsel %vm9464_vm10, %v6089_v8, 0.0  ;;  %vm9462_vm12 = vcmp.eq.s32.totalorder %v6079_v3, %v6245_v46 }
  0x11   :  { %v149_v43 = vsel %vm9463_vm11, %v6091_v9, 0.0  ;;  %v217_v45 = vsel %vm9463_vm11, %v6089_v8, 0.0  ;;  %9555 = vst [vmem:[#allocation10_spill] sm:$0xff] %v6245_v46  ;;  %vm9461_vm13 = vcmp.eq.s32.totalorder %v6079_v3, %v6248_v47  ;;  %v151_v48 = vsel %vm9462_vm12, %v6091_v9, 0.0 }
  0x12   :  { %9556 = vst [vmem:[#allocation11_spill] sm:$0xff] %v6248_v47  ;;  %v150_v49 = vsel %vm9461_vm13, %v6091_v9, 0.0  ;;  %v218_v50 = vsel %vm9461_vm13, %v6089_v8, 0.0  ;;  %v6267_v51 = vadd.s32 112, %v6081_v4  ;;  %v6270_v52 = vadd.s32 120, %v6081_v4 }
  0x13   :  { %v219_v53 = vsel %vm9462_vm12, %v6089_v8, 0.0  ;;  %v6311_v63 = vpack.c.bf16 %v57_v62, %v56_v61  ;;  %v6320_v2 = vpack.c.bf16 %v55_v1, %v54_v0  ;;  %vm9538_vm9 = vcmask 523264  }
  0x14   :  { %9557 = vst [vmem:[#allocation12_spill] sm:$0xff] %v6267_v51  ;;  %vm9460_vm14 = vcmp.eq.s32.totalorder %v6079_v3, %v6267_v51  ;;  %vm9459_vm15 = vcmp.eq.s32.totalorder %v6079_v3, %v6270_v52  ;;  %vm9531_vm4 = vcmask 64512  }
  0x15   :  { %9558 = vst [vmem:[#allocation13_spill] sm:$0xff] %v6270_v52  ;;  %v152_v54 = vsel %vm9460_vm14, %v6091_v9, 0.0  ;;  %v153_v55 = vsel %vm9459_vm15, %v6091_v9, 0.0  ;;  %v221_v59 = vsel %vm9459_vm15, %v6089_v8, 0.0  ;;  %v220_v60 = vsel %vm9460_vm14, %v6089_v8, 0.0  ;;  %771 = vmatpush.bf16.msra.mxu0 %v6311_v63  ;;  %v53_v8 = vld [vmem:[%s9446_s0 + $0x8] sm:$0xff] }
  0x16   :  { %9560 = vst [vmem:[#allocation15_spill] sm:$0xff] %v6311_v63  ;;  %v6332_v9 = vpack.c.bf16 %v76_v5, %v76_v5  ;;  %vm9539_vm15 = vcmask 1043456   ;;  %v6334_v12 = vpack.c.bf16 %v53_v8, %v52_v6 }
  0x17   :  { %228 = vadd.xlane.f32.xlu1 %v209_v21  ;;  %9561 = vst [vmem:[#allocation16_spill] sm:$0xff] %v6320_v2 }
  0x18   :  { %226 = vadd.xlane.f32.xlu0 %v208_v22  ;;  %162 = vadd.xlane.f32.xlu2 %v142_v23  ;;  %9562 = vst [vmem:[#allocation17_spill] sm:$0xff] %v6332_v9  ;;  %v842_v13 = vsel %vm9539_vm15, %v6332_v9, 0 }
  0x19   :  { %772 = vmatpush.bf16.msra.mxu0 %v6320_v2  ;;  %9563 = vst [vmem:[#allocation18_spill] sm:$0xff] %v6334_v12  ;;  %851 = vmatpush.bf16.msra.mxu1 %v842_v13 }
  0x1d   :  { %773 = vmatpush.bf16.msra.mxu0 %v6334_v12 }
  0x1f   :  { %230 = vadd.xlane.f32.xlu1 %v210_v26 }
  0x20   :  { %164 = vadd.xlane.f32.xlu0 %v143_v25  ;;  %232 = vadd.xlane.f32.xlu2 %v211_v27 }
  0x27   :  { %168 = vadd.xlane.f32.xlu1 %v145_v30 }
  0x28   :  { %166 = vadd.xlane.f32.xlu0 %v144_v31  ;;  %234 = vadd.xlane.f32.xlu2 %v212_v32 }
  0x2f   :  { %170 = vadd.xlane.f32.xlu1 %v146_v36 }
  0x30   :  { %236 = vadd.xlane.f32.xlu0 %v213_v35  ;;  %172 = vadd.xlane.f32.xlu2 %v147_v37 }
  0x37   :  { %240 = vadd.xlane.f32.xlu1 %v215_v39 }
  0x38   :  { %238 = vadd.xlane.f32.xlu0 %v214_v40  ;;  %174 = vadd.xlane.f32.xlu2 %v148_v41 }
  0x3f   :  { %242 = vadd.xlane.f32.xlu1 %v216_v44 }
  0x40   :  { %176 = vadd.xlane.f32.xlu0 %v149_v43  ;;  %244 = vadd.xlane.f32.xlu2 %v217_v45 }
  0x47   :  { %180 = vadd.xlane.f32.xlu1 %v151_v48 }
  0x48   :  { %178 = vadd.xlane.f32.xlu0 %v150_v49  ;;  %246 = vadd.xlane.f32.xlu2 %v218_v50 }
  0x4f   :  { %182 = vadd.xlane.f32.xlu1 %v152_v54  ;;  %v9470_v54 = vmov 0.0  }
  0x50   :  { %248 = vadd.xlane.f32.xlu0 %v219_v53  ;;  %184 = vadd.xlane.f32.xlu2 %v153_v55 }
  0x57   :  { %252 = vadd.xlane.f32.xlu1 %v221_v59 }
  0x58   :  { %250 = vadd.xlane.f32.xlu0 %v220_v60 }
  0x7a   :  { %v223_v15 = vpop.xlane.xlu1 %222 }
  0x7b   :  { %v155_v17 = vpop.xlane.xlu0 %154  ;;  %v5415_v18 = vceil.f32 %v223_v15  ;;  %v5416_v19 = vfloor.f32 %v223_v15  ;;  %v159_v21 = vpop.xlane.xlu2 %158  ;;  %vm5414_vm14 = vcmp.lt.s32.totalorder %v223_v15, 0 }
  0x7c   :  { %vm5334_vm13 = vcmp.lt.s32.totalorder %v155_v17, 0  ;;  %v5335_v22 = vceil.f32 %v155_v17  ;;  %v5336_v23 = vfloor.f32 %v155_v17  ;;  %v5345_v41 = vceil.f32 %v159_v21 }
  0x7d   :  { %v5417_v25 = vsel %vm5414_vm14, %v5415_v18, %v5416_v19  ;;  %v5346_v44 = vfloor.f32 %v159_v21  ;;  %vm5344_vm14 = vcmp.lt.s32.totalorder %v159_v21, 0 }
  0x7e   :  { %v5337_v26 = vsel %vm5334_vm13, %v5335_v22, %v5336_v23  ;;  %v5418_v32 = vcvt.f32.s32 %v5417_v25 }
  0x7f   :  { %v5338_v31 = vcvt.f32.s32 %v5337_v26  ;;  %v5347_v57 = vsel %vm5344_vm14, %v5345_v41, %v5346_v44 }
  0x80   :  { %vm520_vm10 = vcmp.eq.s32.totalorder %v6079_v3, %v5418_v32  ;;  %v5348_v19 = vcvt.f32.s32 %v5347_v57 }
  0x81   :  { %vm435_vm13 = vcmp.eq.s32.totalorder %v6079_v3, %v5338_v31  ;;  %v4932_v55 = vsel %vm520_vm10, 1.0, %v9470_v54 }
  0x82   :  { %v225_v27 = vpop.xlane.xlu1 %224  ;;  %v6346_v59 = vsel %vm435_vm13, 1.0, %v9470_v54 }
  0x83   :  { %v157_v30 = vpop.xlane.xlu0 %156  ;;  %vm5419_vm12 = vcmp.lt.s32.totalorder %v225_v27, 0  ;;  %v5420_v35 = vceil.f32 %v225_v27  ;;  %v5421_v36 = vfloor.f32 %v225_v27  ;;  %v161_v37 = vpop.xlane.xlu2 %160 }
  0x84   :  { %vm5339_vm11 = vcmp.lt.s32.totalorder %v157_v30, 0  ;;  %v5340_v39 = vceil.f32 %v157_v30  ;;  %v5341_v40 = vfloor.f32 %v157_v30  ;;  %v5350_v50 = vceil.f32 %v161_v37 }
  0x85   :  { %v5422_v43 = vsel %vm5419_vm12, %v5420_v35, %v5421_v36  ;;  %v5351_v53 = vfloor.f32 %v161_v37  ;;  %vm5349_vm3 = vcmp.lt.s32.totalorder %v161_v37, 0 }
  0x86   :  { %v5342_v45 = vsel %vm5339_vm11, %v5340_v39, %v5341_v40  ;;  %v5423_v48 = vcvt.f32.s32 %v5422_v43 }
  0x87   :  { %v5343_v49 = vcvt.f32.s32 %v5342_v45  ;;  %v5352_v13 = vsel %vm5349_vm3, %v5350_v50, %v5351_v53 }
  0x88   :  { %vm521_vm8 = vcmp.eq.s32.totalorder %v6079_v3, %v5423_v48  ;;  %v5353_v23 = vcvt.f32.s32 %v5352_v13 }
  0x89   :  { %vm436_vm6 = vcmp.eq.s32.totalorder %v6079_v3, %v5343_v49  ;;  %v4933_v56 = vsel %vm521_vm8, 1.0, %v9470_v54 }
  0x8a   :  { %v6349_v60 = vsel %vm436_vm6, 1.0, %v9470_v54  ;;  %v6351_v61 = vpack.c.bf16 %v4933_v56, %v4932_v55  ;;  %v229_v62 = vpop.xlane.xlu1 %228  ;;  %vm437_vm6 = vcmp.eq.s32.totalorder %v6079_v3, %v5348_v19  ;;  %vm438_vm12 = vcmp.eq.s32.totalorder %v6079_v3, %v5353_v23 }
  0x8b   :  { %v227_v0 = vpop.xlane.xlu0 %226  ;;  %v492_v1 = vpack.c.bf16 %v6349_v60, %v6346_v59  ;;  %vm5429_vm11 = vcmp.lt.s32.totalorder %v229_v62, 0  ;;  %v5430_v5 = vceil.f32 %v229_v62  ;;  %v5431_v6 = vfloor.f32 %v229_v62  ;;  %v163_v8 = vpop.xlane.xlu2 %162 }
  0x8c   :  { %9564 = vst [vmem:[#allocation19_spill] sm:$0xff] %v6351_v61  ;;  %5002 = vmatmul.msk.bf16.vlgmr.msra.gmra.mxu1 %vm9531_vm4, %v6351_v61  ;;  %vm5424_vm8 = vcmp.lt.s32.totalorder %v227_v0, 0  ;;  %v5425_v15 = vceil.f32 %v227_v0  ;;  %v5426_v17 = vfloor.f32 %v227_v0  ;;  %v6364_v27 = vsel %vm437_vm6, 1.0, %v9470_v54 }
  0x8d   :  { %4994 = vmatmul.msk.bf16.vlgmr.msra.gmra.mxu0 %vm9538_vm9, %v492_v1  ;;  %v5432_v18 = vsel %vm5429_vm11, %v5430_v5, %v5431_v6  ;;  %vm5354_vm14 = vcmp.lt.s32.totalorder %v163_v8, 0  ;;  %v5355_v32 = vceil.f32 %v163_v8  ;;  %v5356_v37 = vfloor.f32 %v163_v8 }
  0x8e   :  { %v5427_v21 = vsel %vm5424_vm8, %v5425_v15, %v5426_v17  ;;  %v5433_v22 = vcvt.f32.s32 %v5432_v18  ;;  %v6369_v41 = vsel %vm438_vm12, 1.0, %v9470_v54 }
  0x8f   :  { %v5428_v25 = vcvt.f32.s32 %v5427_v21  ;;  %v5357_v50 = vsel %vm5354_vm14, %v5355_v32, %v5356_v37  ;;  %v493_v56 = vpack.c.bf16 %v6369_v41, %v6364_v27 }
  0x90   :  { %vm523_vm3 = vcmp.eq.s32.totalorder %v6079_v3, %v5433_v22  ;;  %v5358_v0 = vcvt.f32.s32 %v5357_v50 }
  0x91   :  { %vm522_vm10 = vcmp.eq.s32.totalorder %v6079_v3, %v5428_v25  ;;  %v4935_v36 = vsel %vm523_vm3, 1.0, %v9470_v54 }
  0x92   :  { %v231_v30 = vpop.xlane.xlu1 %230  ;;  %v4934_v35 = vsel %vm522_vm10, 1.0, %v9470_v54  ;;  %vm439_vm6 = vcmp.eq.s32.totalorder %v6079_v3, %v5358_v0 }
  0x93   :  { %v165_v26 = vpop.xlane.xlu0 %164  ;;  %v233_v31 = vpop.xlane.xlu2 %232  ;;  %v5435_v43 = vceil.f32 %v231_v30  ;;  %v5436_v44 = vfloor.f32 %v231_v30  ;;  %v6371_v49 = vpack.c.bf16 %v4935_v36, %v4934_v35  ;;  %vm5434_vm11 = vcmp.lt.s32.totalorder %v231_v30, 0 }
  0x94   :  { %v5360_v39 = vceil.f32 %v165_v26  ;;  %v5361_v40 = vfloor.f32 %v165_v26  ;;  %v5440_v45 = vceil.f32 %v233_v31  ;;  %v5441_v48 = vfloor.f32 %v233_v31 }
  0x95   :  { %vm5359_vm13 = vcmp.lt.s32.totalorder %v165_v26, 0  ;;  %9565 = vst [vmem:[#allocation20_spill] sm:$0xff] %v6371_v49  ;;  %vm5439_vm8 = vcmp.lt.s32.totalorder %v233_v31, 0  ;;  %v5437_v57 = vsel %vm5434_vm11, %v5435_v43, %v5436_v44  ;;  %v6384_v13 = vsel %vm439_vm6, 1.0, %v9470_v54 }
  0x96   :  { %v5362_v55 = vsel %vm5359_vm13, %v5360_v39, %v5361_v40  ;;  %v5442_v62 = vsel %vm5439_vm8, %v5440_v45, %v5441_v48  ;;  %v5438_v5 = vcvt.f32.s32 %v5437_v57 }
  0x97   :  { %v5363_v1 = vcvt.f32.s32 %v5362_v55  ;;  %v5443_v6 = vcvt.f32.s32 %v5442_v62 }
  0x98   :  { %vm524_vm3 = vcmp.eq.s32.totalorder %v6079_v3, %v5438_v5 }
  0x99   :  { %vm440_vm10 = vcmp.eq.s32.totalorder %v6079_v3, %v5363_v1  ;;  %vm525_vm12 = vcmp.eq.s32.totalorder %v6079_v3, %v5443_v6  ;;  %v4936_v19 = vsel %vm524_vm3, 1.0, %v9470_v54 }
  0x9a   :  { %v169_v8 = vpop.xlane.xlu1 %168  ;;  %v6387_v18 = vsel %vm440_vm10, 1.0, %v9470_v54  ;;  %v4937_v21 = vsel %vm525_vm12, 1.0, %v9470_v54 }
  0x9b   :  { %v167_v53 = vpop.xlane.xlu0 %166  ;;  %v235_v15 = vpop.xlane.xlu2 %234  ;;  %vm5369_vm14 = vcmp.lt.s32.totalorder %v169_v8, 0  ;;  %v5370_v22 = vceil.f32 %v169_v8  ;;  %v5371_v23 = vfloor.f32 %v169_v8  ;;  %v6391_v36 = vpack.c.bf16 %v4937_v21, %v4936_v19 }
  0x9c   :  { %5003 = vmatmul.msk.bf16.gmra.mxu1 %vm9531_vm4, %v6371_v49  ;;  %v5365_v25 = vceil.f32 %v167_v53  ;;  %v5366_v26 = vfloor.f32 %v167_v53  ;;  %v5445_v30 = vceil.f32 %v235_v15  ;;  %v5446_v31 = vfloor.f32 %v235_v15 }
  0x9d   :  { %4995 = vmatmul.msk.bf16.gmra.mxu0 %vm9538_vm9, %v493_v56  ;;  %vm5364_vm13 = vcmp.lt.s32.totalorder %v167_v53, 0  ;;  %9566 = vst [vmem:[#allocation21_spill] sm:$0xff] %v6391_v36  ;;  %vm5444_vm11 = vcmp.lt.s32.totalorder %v235_v15, 0  ;;  %v494_v37 = vpack.c.bf16 %v6387_v18, %v6384_v13  ;;  %v5372_v40 = vsel %vm5369_vm14, %v5370_v22, %v5371_v23 }
  0x9e   :  { %v5367_v43 = vsel %vm5364_vm13, %v5365_v25, %v5366_v26  ;;  %v5447_v44 = vsel %vm5444_vm11, %v5445_v30, %v5446_v31  ;;  %v5373_v50 = vcvt.f32.s32 %v5372_v40 }
  0x9f   :  { %v5368_v48 = vcvt.f32.s32 %v5367_v43  ;;  %v5448_v53 = vcvt.f32.s32 %v5447_v44 }
  0xa0   :  { %vm442_vm10 = vcmp.eq.s32.totalorder %v6079_v3, %v5373_v50 }
  0xa1   :  { %vm441_vm6 = vcmp.eq.s32.totalorder %v6079_v3, %v5368_v48  ;;  %vm526_vm3 = vcmp.eq.s32.totalorder %v6079_v3, %v5448_v53  ;;  %v6407_v1 = vsel %vm442_vm10, 1.0, %v9470_v54 }
  0xa2   :  { %v171_v39 = vpop.xlane.xlu1 %170  ;;  %v6404_v0 = vsel %vm441_vm6, 1.0, %v9470_v54  ;;  %v4938_v5 = vsel %vm526_vm3, 1.0, %v9470_v54 }
  0xa3   :  { %v237_v17 = vpop.xlane.xlu0 %236  ;;  %v173_v56 = vpop.xlane.xlu2 %172  ;;  %vm5374_vm14 = vcmp.lt.s32.totalorder %v171_v39, 0  ;;  %v5375_v8 = vceil.f32 %v171_v39  ;;  %v5376_v15 = vfloor.f32 %v171_v39 }
  0xa4   :  { %v5450_v32 = vceil.f32 %v237_v17  ;;  %v5451_v35 = vfloor.f32 %v237_v17  ;;  %vm5449_vm8 = vcmp.lt.s32.totalorder %v237_v17, 0  ;;  %v5380_v17 = vceil.f32 %v173_v56 }
  0xa5   :  { %v5381_v25 = vfloor.f32 %v173_v56  ;;  %v5377_v31 = vsel %vm5374_vm14, %v5375_v8, %v5376_v15 }
  0xa6   :  { %v5452_v45 = vsel %vm5449_vm8, %v5450_v32, %v5451_v35  ;;  %vm5379_vm8 = vcmp.lt.s32.totalorder %v173_v56, 0  ;;  %v495_v32 = vpack.c.bf16 %v6407_v1, %v6404_v0  ;;  %v5378_v39 = vcvt.f32.s32 %v5377_v31 }
  0xa7   :  { %v5453_v55 = vcvt.f32.s32 %v5452_v45  ;;  %v5382_v40 = vsel %vm5379_vm8, %v5380_v17, %v5381_v25 }
  0xa8   :  { %v5383_v45 = vcvt.f32.s32 %v5382_v40  ;;  %vm443_vm6 = vcmp.eq.s32.totalorder %v6079_v3, %v5378_v39 }
  0xa9   :  { %vm527_vm12 = vcmp.eq.s32.totalorder %v6079_v3, %v5453_v55  ;;  %v6423_v55 = vsel %vm443_vm6, 1.0, %v9470_v54 }
  0xaa   :  { %v241_v57 = vpop.xlane.xlu1 %240  ;;  %v4939_v6 = vsel %vm527_vm12, 1.0, %v9470_v54  ;;  %vm444_vm12 = vcmp.eq.s32.totalorder %v6079_v3, %v5383_v45 }
  0xab   :  { %v239_v62 = vpop.xlane.xlu0 %238  ;;  %v5460_v19 = vceil.f32 %v241_v57  ;;  %v5461_v21 = vfloor.f32 %v241_v57  ;;  %v6411_v26 = vpack.c.bf16 %v4939_v6, %v4938_v5  ;;  %vm5459_vm13 = vcmp.lt.s32.totalorder %v241_v57, 0  ;;  %v175_v30 = vpop.xlane.xlu2 %174 }
  0xac   :  { %5004 = vmatmul.msk.bf16.gmra.mxu1 %vm9531_vm4, %v6391_v36  ;;  %v5455_v22 = vceil.f32 %v239_v62  ;;  %v5456_v23 = vfloor.f32 %v239_v62  ;;  %vm5454_vm11 = vcmp.lt.s32.totalorder %v239_v62, 0  ;;  %v5385_v62 = vceil.f32 %v175_v30 }
  0xad   :  { %4996 = vmatmul.msk.bf16.gmra.mxu0 %vm9538_vm9, %v494_v37  ;;  %9567 = vst [vmem:[#allocation22_spill] sm:$0xff] %v6411_v26  ;;  %v5462_v35 = vsel %vm5459_vm13, %v5460_v19, %v5461_v21  ;;  %v5386_v5 = vfloor.f32 %v175_v30  ;;  %v6428_v8 = vsel %vm444_vm12, 1.0, %v9470_v54 }
  0xae   :  { %v5457_v37 = vsel %vm5454_vm11, %v5455_v22, %v5456_v23  ;;  %v5463_v44 = vcvt.f32.s32 %v5462_v35  ;;  %vm5384_vm11 = vcmp.lt.s32.totalorder %v175_v30, 0  ;;  %v496_v31 = vpack.c.bf16 %v6428_v8, %v6423_v55 }
  0xaf   :  { %v5458_v43 = vcvt.f32.s32 %v5457_v37  ;;  %v5387_v37 = vsel %vm5384_vm11, %v5385_v62, %v5386_v5 }
  0xb0   :  { %vm529_vm3 = vcmp.eq.s32.totalorder %v6079_v3, %v5463_v44  ;;  %v5388_v44 = vcvt.f32.s32 %v5387_v37 }
  0xb1   :  { %vm528_vm10 = vcmp.eq.s32.totalorder %v6079_v3, %v5458_v43  ;;  %v4941_v57 = vsel %vm529_vm3, 1.0, %v9470_v54 }
  0xb2   :  { %v243_v50 = vpop.xlane.xlu1 %242  ;;  %v4940_v56 = vsel %vm528_vm10, 1.0, %v9470_v54  ;;  %vm445_vm3 = vcmp.eq.s32.totalorder %v6079_v3, %v5388_v44 }
  0xb3   :  { %v177_v48 = vpop.xlane.xlu0 %176  ;;  %v245_v53 = vpop.xlane.xlu2 %244  ;;  %v5465_v15 = vceil.f32 %v243_v50  ;;  %v5466_v17 = vfloor.f32 %v243_v50  ;;  %v6430_v23 = vpack.c.bf16 %v4941_v57, %v4940_v56  ;;  %vm5464_vm14 = vcmp.lt.s32.totalorder %v243_v50, 0 }
  0xb4   :  { %v5390_v6 = vceil.f32 %v177_v48  ;;  %v5470_v19 = vceil.f32 %v245_v53  ;;  %v5471_v21 = vfloor.f32 %v245_v53  ;;  %v5391_v22 = vfloor.f32 %v177_v48 }
  0xb5   :  { %9568 = vst [vmem:[#allocation23_spill] sm:$0xff] %v6430_v23  ;;  %vm5469_vm13 = vcmp.lt.s32.totalorder %v245_v53, 0  ;;  %vm5389_vm8 = vcmp.lt.s32.totalorder %v177_v48, 0  ;;  %v6444_v62 = vsel %vm445_vm3, 1.0, %v9470_v54 }
  0xb6   :  { %v5472_v35 = vsel %vm5469_vm13, %v5470_v19, %v5471_v21  ;;  %v5392_v40 = vsel %vm5389_vm8, %v5390_v6, %v5391_v22 }
  0xb7   :  { %v5473_v43 = vcvt.f32.s32 %v5472_v35  ;;  %v5393_v45 = vcvt.f32.s32 %v5392_v40 }
  0xb9   :  { %vm531_vm10 = vcmp.eq.s32.totalorder %v6079_v3, %v5473_v43  ;;  %vm446_vm12 = vcmp.eq.s32.totalorder %v6079_v3, %v5393_v45 }
  0xba   :  { %v181_v50 = vpop.xlane.xlu1 %180  ;;  %v4943_v56 = vsel %vm531_vm10, 1.0, %v9470_v54  ;;  %v6447_v5 = vsel %vm446_vm12, 1.0, %v9470_v54 }
  0xbb   :  { %v179_v25 = vpop.xlane.xlu0 %178  ;;  %v247_v30 = vpop.xlane.xlu2 %246  ;;  %9569 = vst [vmem:[#allocation24_spill] sm:$0xff] %v6447_v5  ;;  %vm5399_vm8 = vcmp.lt.s32.totalorder %v181_v50, 0  ;;  %v497_v37 = vpack.c.bf16 %v6447_v5, %v6444_v62 }
  0xbc   :  { %5005 = vmatmul.msk.bf16.gmra.mxu1 %vm9531_vm4, %v6411_v26  ;;  %v5395_v57 = vceil.f32 %v179_v25  ;;  %v5475_v6 = vceil.f32 %v247_v30  ;;  %v5396_v21 = vfloor.f32 %v179_v25  ;;  %vm5394_vm11 = vcmp.lt.s32.totalorder %v179_v25, 0 }
  0xbd   :  { %4997 = vmatmul.msk.bf16.gmra.mxu0 %vm9538_vm9, %v495_v32  ;;  %v5467_v32 = vsel %vm5464_vm14, %v5465_v15, %v5466_v17  ;;  %v5476_v15 = vfloor.f32 %v247_v30  ;;  %vm5474_vm14 = vcmp.lt.s32.totalorder %v247_v30, 0 }
  0xbe   :  { %v5468_v39 = vcvt.f32.s32 %v5467_v32  ;;  %v5401_v32 = vfloor.f32 %v181_v50  ;;  %v5397_v43 = vsel %vm5394_vm11, %v5395_v57, %v5396_v21 }
  0xbf   :  { %v5477_v40 = vsel %vm5474_vm14, %v5475_v6, %v5476_v15 }
  0xc0   :  { %vm530_vm6 = vcmp.eq.s32.totalorder %v6079_v3, %v5468_v39  ;;  %v5478_v45 = vcvt.f32.s32 %v5477_v40 }
  0xc1   :  { %v4942_v53 = vsel %vm530_vm6, 1.0, %v9470_v54 }
  0xc2   :  { %v6449_v22 = vpack.c.bf16 %v4943_v56, %v4942_v53  ;;  %v183_v35 = vpop.xlane.xlu1 %182  ;;  %vm532_vm6 = vcmp.eq.s32.totalorder %v6079_v3, %v5478_v45  ;;  %v5299_v45 = vld [vmem:[%s9448_s12 + $0x18] sm:$0xff] }
  0xc3   :  { %v249_v48 = vpop.xlane.xlu0 %248  ;;  %v4944_v56 = vsel %vm532_vm6, 1.0, %v9470_v54  ;;  %v185_v15 = vpop.xlane.xlu2 %184  ;;  %vm5404_vm11 = vcmp.lt.s32.totalorder %v183_v35, 0  ;;  %v5405_v40 = vceil.f32 %v183_v35  ;;  %960 = vmatpush.bf16.msra.mxu2 %v5299_v45 }
  0xc4   :  { %v5480_v17 = vceil.f32 %v249_v48  ;;  %v5481_v19 = vfloor.f32 %v249_v48  ;;  %9570 = vst [vmem:[#allocation25_spill] sm:$0xff] %v6449_v22  ;;  %vm5479_vm13 = vcmp.lt.s32.totalorder %v249_v48, 0  ;;  %v5398_v48 = vcvt.f32.s32 %v5397_v43 }
  0xc5   :  { %v5410_v43 = vceil.f32 %v185_v15 }
  0xc6   :  { %v5482_v39 = vsel %vm5479_vm13, %v5480_v17, %v5481_v19  ;;  %vm447_vm3 = vcmp.eq.s32.totalorder %v6079_v3, %v5398_v48 }
  0xc7   :  { %v5483_v30 = vcvt.f32.s32 %v5482_v39  ;;  %v6463_v6 = vsel %vm447_vm3, 1.0, %v9470_v54  ;;  %v5406_v39 = vfloor.f32 %v183_v35 }
  0xc8   :  { %9571 = vst [vmem:[#allocation26_spill] sm:$0xff] %v6463_v6 }
  0xc9   :  { %vm533_vm10 = vcmp.eq.s32.totalorder %v6079_v3, %v5483_v30  ;;  %v5297_v30 = vld [vmem:[%s9448_s12 + $0x8] sm:$0xff]  ;;  %v5407_v35 = vsel %vm5404_vm11, %v5405_v40, %v5406_v39 }
  0xca   :  { %v4945_v57 = vsel %vm533_vm10, 1.0, %v9470_v54  ;;  %5332 = vmatpush.bf16.msra.mxu3 %v5297_v30  ;;  %1045 = vmatpush.bf16.msrb.mxu0 %v5297_v30 }
  0xcb   :  { %v251_v53 = vpop.xlane.xlu0 %250 }
  0xcc   :  { %5006 = vmatmul.msk.bf16.gmra.mxu1 %vm9531_vm4, %v6430_v23  ;;  %v5485_v21 = vceil.f32 %v251_v53  ;;  %vm5484_vm13 = vcmp.lt.s32.totalorder %v251_v53, 0  ;;  %v6589_v23 = vld [vmem:[%s9449_s13] sm:$0xff] }
  0xcd   :  { %4998 = vmatmul.msk.bf16.gmra.mxu0 %vm9538_vm9, %v496_v31  ;;  %v5400_v31 = vceil.f32 %v181_v50  ;;  %v253_v50 = vpop.xlane.xlu1 %252  ;;  %v6592_v61 = vperm.slane %v6589_v23, 0 }
  0xce   :  { %v5490_v17 = vceil.f32 %v253_v50  ;;  %v5491_v19 = vfloor.f32 %v253_v50  ;;  %vm5489_vm14 = vcmp.lt.s32.totalorder %v253_v50, 0 }
  0xcf   :  { %v5402_v44 = vsel %vm5399_vm8, %v5400_v31, %v5401_v32  ;;  %v5486_v31 = vfloor.f32 %v251_v53  ;;  %vm5409_vm8 = vcmp.lt.s32.totalorder %v185_v15, 0 }
  0xd0   :  { %v5403_v25 = vcvt.f32.s32 %v5402_v44  ;;  %v5411_v44 = vfloor.f32 %v185_v15  ;;  %v5298_v15 = vld [vmem:[%s9448_s12 + $0x10] sm:$0xff] }
  0xd1   :  { %v5487_v50 = vsel %vm5484_vm13, %v5485_v21, %v5486_v31  ;;  %961 = vmatpush.bf16.msra.mxu2 %v5298_v15 }
  0xd2   :  { %vm448_vm12 = vcmp.eq.s32.totalorder %v6079_v3, %v5403_v25  ;;  %v5492_v25 = vsel %vm5489_vm14, %v5490_v17, %v5491_v19  ;;  %v5412_v53 = vsel %vm5409_vm8, %v5410_v43, %v5411_v44  ;;  %v5296_v17 = vld [vmem:[%s9448_s12] sm:$0xff]  ;;  %v5408_v19 = vcvt.f32.s32 %v5407_v35 }
  0xd3   :  { %v6466_v32 = vsel %vm448_vm12, 1.0, %v9470_v54  ;;  %v5413_v21 = vcvt.f32.s32 %v5412_v53  ;;  %1046 = vmatpush.bf16.msrb.mxu0 %v5296_v17  ;;  %5333 = vmatpush.bf16.msra.mxu3 %v5296_v17  ;;  %vm9540_vm14 = vcmask 261120  }
  0xd4   :  { %9572 = vst [vmem:[#allocation27_spill] sm:$0xff] %v6466_v32  ;;  %v498_v48 = vpack.c.bf16 %v6466_v32, %v6463_v6  ;;  %vm449_vm3 = vcmp.eq.s32.totalorder %v6079_v3, %v5408_v19 }
  0xd5   :  { %vm450_vm12 = vcmp.eq.s32.totalorder %v6079_v3, %v5413_v21  ;;  %v6494_v39 = vsel %vm449_vm3, 1.0, %v9470_v54 }
  0xd6   :  { %9574 = vst [vmem:[#allocation29_spill] sm:$0xff] %v6494_v39  ;;  %v6497_v43 = vsel %vm450_vm12, 1.0, %v9470_v54 }
  0xd7   :  { %9575 = vst [vmem:[#allocation30_spill] sm:$0xff] %v6497_v43  ;;  %v499_v45 = vpack.c.bf16 %v6497_v43, %v6494_v39 }
  0xdc   :  { %5007 = vmatmul.msk.bf16.gmra.mxu1 %vm9531_vm4, %v6449_v22 }
  0xdd   :  { %4999 = vmatmul.msk.bf16.gmra.mxu0 %vm9538_vm9, %v497_v37  ;;  %v6468_v37 = vpack.c.bf16 %v4945_v57, %v4944_v56  ;;  %v5488_v56 = vcvt.f32.s32 %v5487_v50  ;;  %v5493_v57 = vcvt.f32.s32 %v5492_v25 }
  0xdf   :  { %9573 = vst [vmem:[#allocation28_spill] sm:$0xff] %v6468_v37  ;;  %vm534_vm6 = vcmp.eq.s32.totalorder %v6079_v3, %v5488_v56  ;;  %vm535_vm10 = vcmp.eq.s32.totalorder %v6079_v3, %v5493_v57 }
  0xe0   :  { %v4946_v31 = vsel %vm534_vm6, 1.0, %v9470_v54  ;;  %v4947_v40 = vsel %vm535_vm10, 1.0, %v9470_v54 }
  0xe1   :  { %v6499_v44 = vpack.c.bf16 %v4947_v40, %v4946_v31 }
  0xe3   :  { %9576 = vst [vmem:[#allocation31_spill] sm:$0xff] %v6499_v44 }
  0xec   :  { %5008 = vmatmul.msk.bf16.gmra.mxu1 %vm9531_vm4, %v6468_v37 }
  0xed   :  { %5000 = vmatmul.msk.bf16.gmra.mxu0 %vm9538_vm9, %v498_v48 }
  0xfc   :  { %5009 = vmatmul.msk.bf16.gmra.mxu1 %vm9531_vm4, %v6499_v44 }
  0xfd   :  { %5001 = vmatmul.msk.bf16.gmra.mxu0 %vm9538_vm9, %v499_v45 }
 0x109   :  { %v853_v30 = vpop.f32.mrf.mxu1 }
 0x10a   :  { %v6506_v48 = vpop.f32.mrf.mxu0 }
 0x10b   :  { %9577 = vst [vmem:[#allocation32_spill] sm:$0xff] %v6506_v48 }
 0x111   :  { %v855_v25 = vpop.f32.mrf.mxu1 }
 0x112   :  { %v6508_v50 = vpop.f32.mrf.mxu0  ;;  %v901_v35 = vpack.c.bf16 %v855_v25, %v853_v30 }
 0x113   :  { %9578 = vst [vmem:[#allocation33_spill] sm:$0xff] %v6508_v50  ;;  %v893_v53 = vpack.c.bf16 %v6508_v50, %v6506_v48 }
 0x114   :  { %5018 = vmatmul.msk.bf16.vlgmr.msra.gmra.mxu2 %vm9540_vm14, %v901_v35 }
 0x115   :  { %5034 = vmatmul.msk.bf16.vlgmr.msrb.gmra.mxu0 %vm9540_vm14, %v893_v53 }
 0x119   :  { %v858_v56 = vpop.f32.mrf.mxu1 }
 0x11a   :  { %v6514_v57 = vpop.f32.mrf.mxu0 }
 0x11b   :  { %9579 = vst [vmem:[#allocation34_spill] sm:$0xff] %v6514_v57 }
 0x121   :  { %v860_v15 = vpop.f32.mrf.mxu1 }
 0x122   :  { %v6516_v17 = vpop.f32.mrf.mxu0  ;;  %v902_v19 = vpack.c.bf16 %v860_v15, %v858_v56 }
 0x123   :  { %9580 = vst [vmem:[#allocation35_spill] sm:$0xff] %v6516_v17  ;;  %v894_v21 = vpack.c.bf16 %v6516_v17, %v6514_v57 }
 0x124   :  { %5019 = vmatmul.msk.bf16.gmra.mxu2 %vm9540_vm14, %v902_v19 }
 0x125   :  { %5035 = vmatmul.msk.bf16.gmra.mxu0 %vm9540_vm14, %v894_v21 }
 0x129   :  { %v863_v31 = vpop.f32.mrf.mxu1 }
 0x12a   :  { %v6522_v40 = vpop.f32.mrf.mxu0 }
 0x12b   :  { %9581 = vst [vmem:[#allocation36_spill] sm:$0xff] %v6522_v40 }
 0x131   :  { %v865_v45 = vpop.f32.mrf.mxu1 }
 0x132   :  { %v6524_v30 = vpop.f32.mrf.mxu0  ;;  %v903_v25 = vpack.c.bf16 %v865_v45, %v863_v31 }
 0x133   :  { %9582 = vst [vmem:[#allocation37_spill] sm:$0xff] %v6524_v30  ;;  %v895_v35 = vpack.c.bf16 %v6524_v30, %v6522_v40 }
 0x134   :  { %5020 = vmatmul.msk.bf16.gmra.mxu2 %vm9540_vm14, %v903_v25 }
 0x135   :  { %5036 = vmatmul.msk.bf16.gmra.mxu0 %vm9540_vm14, %v895_v35 }
 0x139   :  { %v868_v53 = vpop.f32.mrf.mxu1 }
 0x13a   :  { %v6530_v56 = vpop.f32.mrf.mxu0 }
 0x13b   :  { %9583 = vst [vmem:[#allocation38_spill] sm:$0xff] %v6530_v56 }
 0x141   :  { %v870_v15 = vpop.f32.mrf.mxu1 }
 0x142   :  { %v6532_v19 = vpop.f32.mrf.mxu0  ;;  %v904_v21 = vpack.c.bf16 %v870_v15, %v868_v53 }
 0x143   :  { %9584 = vst [vmem:[#allocation39_spill] sm:$0xff] %v6532_v19  ;;  %v896_v54 = vpack.c.bf16 %v6532_v19, %v6530_v56 }
 0x144   :  { %5021 = vmatmul.msk.bf16.gmra.mxu2 %vm9540_vm14, %v904_v21 }
 0x145   :  { %5037 = vmatmul.msk.bf16.vlgmr.msra.gmra.mxu3 %vm9540_vm14, %v896_v54 }
 0x149   :  { %v873_v31 = vpop.f32.mrf.mxu1 }
 0x14a   :  { %v6538_v45 = vpop.f32.mrf.mxu0 }
 0x14b   :  { %9585 = vst [vmem:[#allocation40_spill] sm:$0xff] %v6538_v45 }
 0x151   :  { %v875_v25 = vpop.f32.mrf.mxu1 }
 0x152   :  { %v6540_v52 = vpop.f32.mrf.mxu0  ;;  %v905_v35 = vpack.c.bf16 %v875_v25, %v873_v31 }
 0x153   :  { %9586 = vst [vmem:[#allocation41_spill] sm:$0xff] %v6540_v52  ;;  %v897_v51 = vpack.c.bf16 %v6540_v52, %v6538_v45 }
 0x154   :  { %5022 = vmatmul.msk.bf16.gmra.mxu2 %vm9540_vm14, %v905_v35 }
 0x155   :  { %5038 = vmatmul.msk.bf16.gmra.mxu3 %vm9540_vm14, %v897_v51 }
 0x159   :  { %v878_v53 = vpop.f32.mrf.mxu1 }
 0x15a   :  { %v6546_v15 = vpop.f32.mrf.mxu0 }
 0x15b   :  { %9587 = vst [vmem:[#allocation42_spill] sm:$0xff] %v6546_v15 }
 0x161   :  { %v880_v21 = vpop.f32.mrf.mxu1 }
 0x162   :  { %v6548_v47 = vpop.f32.mrf.mxu0  ;;  %v906_v54 = vpack.c.bf16 %v880_v21, %v878_v53 }
 0x163   :  { %9588 = vst [vmem:[#allocation43_spill] sm:$0xff] %v6548_v47  ;;  %v898_v46 = vpack.c.bf16 %v6548_v47, %v6546_v15 }
 0x164   :  { %5023 = vmatmul.msk.bf16.gmra.mxu2 %vm9540_vm14, %v906_v54 }
 0x165   :  { %5039 = vmatmul.msk.bf16.gmra.mxu3 %vm9540_vm14, %v898_v46 }
 0x169   :  { %v883_v31 = vpop.f32.mrf.mxu1 }
 0x16a   :  { %v6554_v25 = vpop.f32.mrf.mxu0 }
 0x16b   :  { %9589 = vst [vmem:[#allocation44_spill] sm:$0xff] %v6554_v25 }
 0x171   :  { %v885_v35 = vpop.f32.mrf.mxu1 }
 0x172   :  { %v6556_v42 = vpop.f32.mrf.mxu0  ;;  %v907_v51 = vpack.c.bf16 %v885_v35, %v883_v31 }
 0x173   :  { %9590 = vst [vmem:[#allocation45_spill] sm:$0xff] %v6556_v42  ;;  %v899_v38 = vpack.c.bf16 %v6556_v42, %v6554_v25 }
 0x174   :  { %5024 = vmatmul.msk.bf16.gmra.mxu2 %vm9540_vm14, %v907_v51 }
 0x175   :  { %5040 = vmatmul.msk.bf16.gmra.mxu3 %vm9540_vm14, %v899_v38 }
 0x179   :  { %v888_v53 = vpop.f32.mrf.mxu1 }
 0x17a   :  { %v6562_v21 = vpop.f32.mrf.mxu0 }
 0x17b   :  { %9591 = vst [vmem:[#allocation46_spill] sm:$0xff] %v6562_v21 }
 0x181   :  { %v890_v54 = vpop.f32.mrf.mxu1 }
 0x182   :  { %v6564_v34 = vpop.f32.mrf.mxu0  ;;  %v908_v46 = vpack.c.bf16 %v890_v54, %v888_v53 }
 0x183   :  { %9592 = vst [vmem:[#allocation47_spill] sm:$0xff] %v6564_v34  ;;  %v900_v33 = vpack.c.bf16 %v6564_v34, %v6562_v21 }
 0x184   :  { %5025 = vmatmul.msk.bf16.gmra.mxu2 %vm9540_vm14, %v908_v46 }
 0x185   :  { %5041 = vmatmul.msk.bf16.gmra.mxu3 %vm9540_vm14, %v900_v33 }
 0x192   :  { %v6584_v22 = vpop.f32.mrf.mxu0 }
 0x197   :  { %v6570_v31 = vpop.f32.mrf.mxu2 }
 0x19a   :  { %v1050_v48 = vpop.f32.mrf.mxu0 }
 0x19f   :  { %v6572_v35 = vpop.f32.mrf.mxu2 }
 0x1a7   :  { %v6574_v51 = vpop.f32.mrf.mxu2 }
 0x1af   :  { %v6576_v38 = vpop.f32.mrf.mxu2 }
 0x1b7   :  { %v973_v58 = vpop.f32.mrf.mxu2 }
 0x1bf   :  { %v6578_v63 = vpop.f32.mrf.mxu2 }
 0x1c7   :  { %v6580_v2 = vpop.f32.mrf.mxu2 }
 0x1c8   :  { %v6582_v53 = vpop.f32.mrf.mxu3 }
 0x1cf   :  { %v980_v54 = vpop.f32.mrf.mxu2 }
 0x1d0   :  { %v1065_v12 = vpop.f32.mrf.mxu3 }
 0x1d1   :  { %v1066_v15 = vadd.f32 %v1065_v12, %v980_v54 }
 0x1d3   :  { %v6615_v42 = vadd.f32 %v6592_v61, %v1066_v15 }
 0x1d7   :  { %v983_v46 = vpop.f32.mrf.mxu2 }
 0x1d8   :  { %v1068_v44 = vpop.f32.mrf.mxu3 }
 0x1d9   :  { %v1069_v54 = vadd.f32 %v1068_v44, %v983_v46 }
 0x1df   :  { %v985_v33 = vpop.f32.mrf.mxu2 }
 0x1e0   :  { %v1070_v37 = vpop.f32.mrf.mxu3 }
 0x1e7   :  { %v988_v26 = vpop.f32.mrf.mxu2 }
 0x1e8   :  { %v1073_v36 = vpop.f32.mrf.mxu3 }
 0x1e9   :  { %v1074_v49 = vadd.f32 %v1073_v36, %v988_v26  ;;  %v1053_v26 = vpop.f32.mrf.mxu0 }
 0x1eb   :  { %v6595_v9 = vadd.f32 %v6592_v61, %v1074_v49 }
 0x1ed   :  { %v1135_v50 = vsel %vm9540_vm14, %v6595_v9, 0.0 }
 0x1ee   :  { %1136 = vadd.xlane.f32.xlu1 %v1135_v50 }
 0x1ef   :  { %v990_v57 = vpop.f32.mrf.mxu2 }
 0x1f0   :  { %v1075_v17 = vpop.f32.mrf.mxu3 }
 0x1f1   :  { %v1076_v30 = vadd.f32 %v1075_v17, %v990_v57  ;;  %v1055_v17 = vpop.f32.mrf.mxu0 }
 0x1f3   :  { %v6600_v40 = vadd.f32 %v6592_v61, %v1076_v30 }
 0x1f5   :  { %v1138_v36 = vsel %vm9540_vm14, %v6600_v40, 0.0 }
 0x1f6   :  { %1139 = vadd.xlane.f32.xlu0 %v1138_v36 }
 0x1f7   :  { %v993_v19 = vpop.f32.mrf.mxu2 }
 0x1f8   :  { %v1078_v56 = vpop.f32.mrf.mxu3 }
 0x1f9   :  { %v1079_v49 = vadd.f32 %v1078_v56, %v993_v19  ;;  %v1058_v25 = vpop.f32.mrf.mxu0 }
 0x1fa   :  { %v1059_v34 = vadd.f32 %v1058_v25, %v973_v58  ;;  %v1051_v25 = vadd.f32 %v1050_v48, %v6572_v35  ;;  %v1064_v35 = vadd.f32 %v6582_v53, %v6580_v2  ;;  %v1056_v2 = vadd.f32 %v1055_v17, %v6576_v38 }
 0x1fb   :  { %v6605_v52 = vadd.f32 %v6592_v61, %v1079_v49 }
 0x1fc   :  { %v6625_v15 = vadd.f32 %v6592_v61, %v1059_v34 }
 0x1fd   :  { %v1141_v50 = vsel %vm9540_vm14, %v6605_v52, 0.0 }
 0x1fe   :  { %1142 = vadd.xlane.f32.xlu2 %v1141_v50  ;;  %v1117_v44 = vsel %vm9540_vm14, %v6625_v15, 0.0 }
 0x1ff   :  { %v995_v45 = vpop.f32.mrf.mxu2 }
 0x200   :  { %v1080_v57 = vpop.f32.mrf.mxu3 }
 0x201   :  { %v1081_v30 = vadd.f32 %v1080_v57, %v995_v45  ;;  %v1126_v45 = vsel %vm9540_vm14, %v6615_v42, 0.0 }
 0x203   :  { %v6610_v47 = vadd.f32 %v6592_v61, %v1081_v30 }
 0x205   :  { %v1144_v36 = vsel %vm9540_vm14, %v6610_v47, 0.0 }
 0x206   :  { %1145 = vadd.xlane.f32.xlu1 %v1144_v36 }
 0x207   :  { %v998_v56 = vpop.f32.mrf.mxu2 }
 0x208   :  { %v1083_v19 = vpop.f32.mrf.mxu3 }
 0x209   :  { %v1084_v49 = vadd.f32 %v1083_v19, %v998_v56  ;;  %v6628_v56 = vadd.f32 %v6592_v61, %v1069_v54  ;;  %v1060_v19 = vpop.f32.mrf.mxu0  ;;  %v1054_v54 = vadd.f32 %v1053_v26, %v6574_v51  ;;  %v6671_v26 = vadd.f32 %v6592_v61, %v1056_v2 }
 0x20b   :  { %v6618_v50 = vadd.f32 %v6592_v61, %v1084_v49  ;;  %v1071_v49 = vadd.f32 %v1070_v37, %v985_v33  ;;  %v1129_v34 = vsel %vm9540_vm14, %v6628_v56, 0.0 }
 0x20d   :  { %v1147_v12 = vsel %vm9540_vm14, %v6618_v50, 0.0  ;;  %v6645_v48 = vadd.f32 %v6592_v61, %v1071_v49  ;;  %v5994_v49 = vmov 32.0  }
 0x20e   :  { %1127 = vadd.xlane.f32.xlu1 %v1126_v45  ;;  %1148 = vadd.xlane.f32.xlu0 %v1147_v12  ;;  %v1061_v45 = vadd.f32 %v1060_v19, %v6578_v63  ;;  %v6642_v12 = vadd.f32 %v6592_v61, %v1051_v25  ;;  %v1049_v25 = vadd.f32 %v6584_v22, %v6570_v31  ;;  %v1114_v19 = vsel %vm9540_vm14, %v6671_v26, 0.0 }
 0x20f   :  { %v1000_v57 = vpop.f32.mrf.mxu2  ;;  %v1132_v33 = vsel %vm9540_vm14, %v6645_v48, 0.0  ;;  %5686 = vrcp.f32 %v5994_v49 }
 0x210   :  { %v1085_v30 = vpop.f32.mrf.mxu3  ;;  %v6648_v37 = vadd.f32 %v6592_v61, %v1061_v45  ;;  %v1108_v63 = vsel %vm9540_vm14, %v6642_v12, 0.0  ;;  %v6678_v38 = vadd.f32 %v6592_v61, %v1049_v25 }
 0x211   :  { %v1086_v36 = vadd.f32 %v1085_v30, %v1000_v57  ;;  %v6660_v30 = vadd.f32 %v6592_v61, %v1064_v35 }
 0x212   :  { %v1120_v57 = vsel %vm9540_vm14, %v6648_v37, 0.0  ;;  %v1105_v17 = vsel %vm9540_vm14, %v6678_v38, 0.0 }
 0x213   :  { %v6631_v58 = vadd.f32 %v6592_v61, %v1086_v36  ;;  %v6663_v36 = vadd.f32 %v6592_v61, %v1054_v54  ;;  %v1123_v53 = vsel %vm9540_vm14, %v6660_v30, 0.0 }
 0x215   :  { %v1150_v46 = vsel %vm9540_vm14, %v6631_v58, 0.0  ;;  %v1111_v51 = vsel %vm9540_vm14, %v6663_v36, 0.0 }
 0x216   :  { %1118 = vadd.xlane.f32.xlu1 %v1117_v44  ;;  %1151 = vadd.xlane.f32.xlu2 %v1150_v46  ;;  %v5687_v44 = vpop.eup %5686 }
 0x217   :  { %1130 = vadd.xlane.f32.xlu0 %v1129_v34  ;;  %v1154_v46 = vmul.f32 32.0, %v5687_v44  ;;  %vm1158_vm13 = vweird.f32 %v5687_v44 }
 0x219   :  { %v1155_v45 = vsub.f32 1.0, %v1154_v46 }
 0x21b   :  { %v1156_v34 = vmul.f32 %v5687_v44, %v1155_v45 }
 0x21d   :  { %v1157_v35 = vadd.f32 %v5687_v44, %v1156_v34 }
 0x21e   :  { %1109 = vadd.xlane.f32.xlu1 %v1108_v63  ;;  %1133 = vadd.xlane.f32.xlu2 %v1132_v33 }
 0x21f   :  { %1121 = vadd.xlane.f32.xlu0 %v1120_v57  ;;  %v6682_v22 = vsel %vm1158_vm13, %v5687_v44, %v1157_v35 }
 0x226   :  { %1124 = vadd.xlane.f32.xlu2 %v1123_v53 }
 0x227   :  { %1112 = vadd.xlane.f32.xlu0 %v1111_v51 }
 0x22e   :  { %1115 = vadd.xlane.f32.xlu2 %v1114_v19 }
 0x236   :  { %1106 = vadd.xlane.f32.xlu2 %v1105_v17 }
 0x261   :  { %v1137_v31 = vpop.xlane.xlu1 %1136 }
 0x262   :  { %v1170_v63 = vmul.f32 %v6682_v22, %v1137_v31 }
 0x264   :  { %v6686_v61 = vsub.f32 %v6595_v9, %v1170_v63 }
 0x266   :  { %v1202_v33 = vmul.f32 %v6686_v61, %v6686_v61 }
 0x268   :  { %v1238_v54 = vsel %vm9540_vm14, %v1202_v33, 0.0 }
 0x269   :  { %v1140_v57 = vpop.xlane.xlu0 %1139  ;;  %1239 = vadd.xlane.f32.xlu2 %v1238_v54 }
 0x26a   :  { %v1171_v2 = vmul.f32 %v6682_v22, %v1140_v57 }
 0x26c   :  { %v6693_v53 = vsub.f32 %v6600_v40, %v1171_v2 }
 0x26e   :  { %v1203_v51 = vmul.f32 %v6693_v53, %v6693_v53 }
 0x270   :  { %v1241_v25 = vsel %vm9540_vm14, %v1203_v51, 0.0 }
 0x271   :  { %v1143_v19 = vpop.xlane.xlu2 %1142  ;;  %1242 = vadd.xlane.f32.xlu1 %v1241_v25 }
 0x272   :  { %v1172_v9 = vmul.f32 %v6682_v22, %v1143_v19 }
 0x274   :  { %v6700_v17 = vsub.f32 %v6605_v52, %v1172_v9 }
 0x276   :  { %v1204_v49 = vmul.f32 %v6700_v17, %v6700_v17 }
 0x278   :  { %v1244_v44 = vsel %vm9540_vm14, %v1204_v49, 0.0 }
 0x279   :  { %v1146_v46 = vpop.xlane.xlu1 %1145  ;;  %1245 = vadd.xlane.f32.xlu0 %v1244_v44 }
 0x27a   :  { %v1173_v40 = vmul.f32 %v6682_v22, %v1146_v46 }
 0x27c   :  { %v6707_v45 = vsub.f32 %v6610_v47, %v1173_v40 }
 0x27e   :  { %v1205_v34 = vmul.f32 %v6707_v45, %v6707_v45 }
 0x280   :  { %v1247_v35 = vsel %vm9540_vm14, %v1205_v34, 0.0 }
 0x281   :  { %v1128_v31 = vpop.xlane.xlu1 %1127  ;;  %1248 = vadd.xlane.f32.xlu2 %v1247_v35  ;;  %v1149_v52 = vpop.xlane.xlu0 %1148 }
 0x282   :  { %v1167_v63 = vmul.f32 %v6682_v22, %v1128_v31  ;;  %v1174_v33 = vmul.f32 %v6682_v22, %v1149_v52 }
 0x284   :  { %v6715_v54 = vsub.f32 %v6615_v42, %v1167_v63  ;;  %v6718_v57 = vsub.f32 %v6618_v50, %v1174_v33 }
 0x286   :  { %v1199_v47 = vmul.f32 %v6715_v54, %v6715_v54  ;;  %v1206_v2 = vmul.f32 %v6718_v57, %v6718_v57 }
 0x288   :  { %v1229_v51 = vsel %vm9540_vm14, %v1199_v47, 0.0  ;;  %v1250_v25 = vsel %vm9540_vm14, %v1206_v2, 0.0 }
 0x289   :  { %v1119_v19 = vpop.xlane.xlu1 %1118  ;;  %1230 = vadd.xlane.f32.xlu2 %v1229_v51  ;;  %v1152_v9 = vpop.xlane.xlu2 %1151  ;;  %1251 = vadd.xlane.f32.xlu1 %v1250_v25 }
 0x28a   :  { %v1164_v42 = vmul.f32 %v6682_v22, %v1119_v19  ;;  %v1175_v49 = vmul.f32 %v6682_v22, %v1152_v9  ;;  %v1131_v50 = vpop.xlane.xlu0 %1130 }
 0x28b   :  { %v1168_v44 = vmul.f32 %v6682_v22, %v1131_v50 }
 0x28c   :  { %v6730_v46 = vsub.f32 %v6625_v15, %v1164_v42  ;;  %v6733_v40 = vsub.f32 %v6631_v58, %v1175_v49 }
 0x28d   :  { %v6736_v34 = vsub.f32 %v6628_v56, %v1168_v44 }
 0x28e   :  { %v1196_v35 = vmul.f32 %v6730_v46, %v6730_v46  ;;  %v1207_v31 = vmul.f32 %v6733_v40, %v6733_v40 }
 0x28f   :  { %v1200_v52 = vmul.f32 %v6736_v34, %v6736_v34 }
 0x290   :  { %v1220_v63 = vsel %vm9540_vm14, %v1196_v35, 0.0  ;;  %v1253_v15 = vsel %vm9540_vm14, %v1207_v31, 0.0 }
 0x291   :  { %v1110_v33 = vpop.xlane.xlu1 %1109  ;;  %1221 = vadd.xlane.f32.xlu2 %v1220_v63  ;;  %v1134_v58 = vpop.xlane.xlu2 %1133  ;;  %1254 = vadd.xlane.f32.xlu0 %v1253_v15  ;;  %v1232_v56 = vsel %vm9540_vm14, %v1200_v52, 0.0 }
 0x292   :  { %v1161_v47 = vmul.f32 %v6682_v22, %v1110_v33  ;;  %v1169_v2 = vmul.f32 %v6682_v22, %v1134_v58  ;;  %1233 = vadd.xlane.f32.xlu1 %v1232_v56  ;;  %v1122_v51 = vpop.xlane.xlu0 %1121 }
 0x293   :  { %v1165_v25 = vmul.f32 %v6682_v22, %v1122_v51 }
 0x294   :  { %v6751_v19 = vsub.f32 %v6642_v12, %v1161_v47  ;;  %v6754_v9 = vsub.f32 %v6645_v48, %v1169_v2 }
 0x295   :  { %v6757_v42 = vsub.f32 %v6648_v37, %v1165_v25 }
 0x296   :  { %v1193_v49 = vmul.f32 %v6751_v19, %v6751_v19  ;;  %v1201_v50 = vmul.f32 %v6754_v9, %v6754_v9 }
 0x297   :  { %v1197_v44 = vmul.f32 %v6757_v42, %v6757_v42 }
 0x298   :  { %v1211_v35 = vsel %vm9540_vm14, %v1193_v49, 0.0  ;;  %v1235_v12 = vsel %vm9540_vm14, %v1201_v50, 0.0 }
 0x299   :  { %1212 = vadd.xlane.f32.xlu2 %v1211_v35  ;;  %v1125_v31 = vpop.xlane.xlu2 %1124  ;;  %1236 = vadd.xlane.f32.xlu0 %v1235_v12  ;;  %v1223_v48 = vsel %vm9540_vm14, %v1197_v44, 0.0 }
 0x29a   :  { %v1166_v37 = vmul.f32 %v6682_v22, %v1125_v31  ;;  %1224 = vadd.xlane.f32.xlu1 %v1223_v48  ;;  %v1113_v52 = vpop.xlane.xlu0 %1112 }
 0x29b   :  { %v1162_v63 = vmul.f32 %v6682_v22, %v1113_v52 }
 0x29c   :  { %v6771_v15 = vsub.f32 %v6660_v30, %v1166_v37 }
 0x29d   :  { %v6774_v33 = vsub.f32 %v6663_v36, %v1162_v63 }
 0x29e   :  { %v1198_v58 = vmul.f32 %v6771_v15, %v6771_v15 }
 0x29f   :  { %v1194_v56 = vmul.f32 %v6774_v33, %v6774_v33 }
 0x2a0   :  { %v1226_v47 = vsel %vm9540_vm14, %v1198_v58, 0.0 }
 0x2a1   :  { %v1116_v2 = vpop.xlane.xlu2 %1115  ;;  %1227 = vadd.xlane.f32.xlu0 %v1226_v47  ;;  %v1214_v51 = vsel %vm9540_vm14, %v1194_v56, 0.0 }
 0x2a2   :  { %v1163_v25 = vmul.f32 %v6682_v22, %v1116_v2  ;;  %1215 = vadd.xlane.f32.xlu1 %v1214_v51 }
 0x2a4   :  { %v6784_v30 = vsub.f32 %v6671_v26, %v1163_v25 }
 0x2a6   :  { %v1195_v36 = vmul.f32 %v6784_v30, %v6784_v30 }
 0x2a8   :  { %v1217_v49 = vsel %vm9540_vm14, %v1195_v36, 0.0 }
 0x2a9   :  { %v1107_v50 = vpop.xlane.xlu2 %1106  ;;  %1218 = vadd.xlane.f32.xlu0 %v1217_v49 }
 0x2aa   :  { %v1160_v44 = vmul.f32 %v6682_v22, %v1107_v50 }
 0x2ac   :  { %v6791_v35 = vsub.f32 %v6678_v38, %v1160_v44 }
 0x2ae   :  { %v1192_v12 = vmul.f32 %v6791_v35, %v6791_v35 }
 0x2b0   :  { %v1208_v31 = vsel %vm9540_vm14, %v1192_v12, 0.0 }
 0x2b1   :  { %1209 = vadd.xlane.f32.xlu0 %v1208_v31  ;;  %v6800_v31 = vperm.slane %v6589_v23, 1 }
 0x2dc   :  { %v1240_v26 = vpop.xlane.xlu2 %1239 }
 0x2dd   :  { %v1266_v48 = vmul.f32 %v1240_v26, %v6682_v22 }
 0x2df   :  { %v1282_v37 = vadd.f32 1e-05, %v1266_v48 }
 0x2e1   :  { %5688 = vrsqrt.f32 %v1282_v37  ;;  %vm1394_vm8 = vweird.f32 %v1282_v37 }
 0x2e4   :  { %v1243_v52 = vpop.xlane.xlu1 %1242 }
 0x2e5   :  { %v1267_v63 = vmul.f32 %v1243_v52, %v6682_v22 }
 0x2e7   :  { %v5689_v58 = vpop.eup %5688  ;;  %v1283_v56 = vadd.f32 1e-05, %v1267_v63  ;;  %v6804_v63 = vperm.slane %v6589_v23, 2 }
 0x2e8   :  { %v1389_v47 = vmul.f32 %v5689_v58, %v1282_v37  ;;  %vm1395_vm11 = vweird.f32 %v5689_v58 }
 0x2e9   :  { %5690 = vrsqrt.f32 %v1283_v56  ;;  %vm1396_vm6 = vmor %vm1394_vm8, %vm1395_vm11  ;;  %vm1404_vm3 = vweird.f32 %v1283_v56 }
 0x2ea   :  { %v1390_v38 = vmul.f32 %v5689_v58, %v1389_v47 }
 0x2ec   :  { %v1391_v2 = vmul.f32 0.5, %v1390_v38  ;;  %v1246_v51 = vpop.xlane.xlu0 %1245 }
 0x2ed   :  { %v1268_v25 = vmul.f32 %v1246_v51, %v6682_v22 }
 0x2ee   :  { %v1392_v36 = vsub.f32 1.5, %v1391_v2 }
 0x2ef   :  { %v5691_v49 = vpop.eup %5690  ;;  %v1284_v50 = vadd.f32 1e-05, %v1268_v25 }
 0x2f0   :  { %v1393_v44 = vmul.f32 %v5689_v58, %v1392_v36  ;;  %v1399_v12 = vmul.f32 %v5691_v49, %v1283_v56  ;;  %vm1405_vm10 = vweird.f32 %v5691_v49 }
 0x2f1   :  { %5692 = vrsqrt.f32 %v1284_v50  ;;  %vm1406_vm12 = vmor %vm1404_vm3, %vm1405_vm10  ;;  %vm1414_vm11 = vweird.f32 %v1284_v50 }
 0x2f2   :  { %v1397_v26 = vsel %vm1396_vm6, %v5689_v58, %v1393_v44  ;;  %v1400_v48 = vmul.f32 %v5691_v49, %v1399_v12 }
 0x2f3   :  { %v1458_v52 = vmul.f32 %v1397_v26, %v6686_v61 }
 0x2f4   :  { %v1401_v47 = vmul.f32 0.5, %v1400_v48  ;;  %v1249_v38 = vpop.xlane.xlu2 %1248 }
 0x2f5   :  { %v1269_v2 = vmul.f32 %v1249_v38, %v6682_v22  ;;  %v1475_v51 = vmul.f32 %v6800_v31, %v1458_v52 }
 0x2f6   :  { %v1402_v37 = vsub.f32 1.5, %v1401_v47 }
 0x2f7   :  { %v5693_v25 = vpop.eup %5692  ;;  %v1285_v36 = vadd.f32 1e-05, %v1269_v2  ;;  %v1492_v21 = vadd.f32 %v6804_v63, %v1475_v51  ;;  %v6813_v2 = vperm.slane %v6589_v23, 3 }
 0x2f8   :  { %v1403_v3 = vmul.f32 %v5691_v49, %v1402_v37  ;;  %v1409_v58 = vmul.f32 %v5693_v25, %v1284_v50  ;;  %vm1415_vm13 = vweird.f32 %v5693_v25 }
 0x2f9   :  { %5694 = vrsqrt.f32 %v1285_v36  ;;  %vm1416_vm8 = vmor %vm1414_vm11, %vm1415_vm13  ;;  %vm1424_vm10 = vweird.f32 %v1285_v36 }
 0x2fa   :  { %v1407_v61 = vsel %vm1406_vm12, %v5691_v49, %v1403_v3  ;;  %v1410_v44 = vmul.f32 %v5693_v25, %v1409_v58  ;;  %5696 = vtanh.f32 %v1492_v21 }
 0x2fb   :  { %v1459_v12 = vmul.f32 %v1407_v61, %v6693_v53 }
 0x2fc   :  { %v1411_v26 = vmul.f32 0.5, %v1410_v44  ;;  %v1231_v48 = vpop.xlane.xlu2 %1230  ;;  %v1252_v38 = vpop.xlane.xlu1 %1251 }
 0x2fd   :  { %v1263_v52 = vmul.f32 %v1231_v48, %v6682_v22  ;;  %v1270_v47 = vmul.f32 %v1252_v38, %v6682_v22  ;;  %v1476_v56 = vmul.f32 %v6800_v31, %v1459_v12 }
 0x2fe   :  { %v1412_v51 = vsub.f32 1.5, %v1411_v26 }
 0x2ff   :  { %v5695_v37 = vpop.eup %5694  ;;  %v6816_v3 = vadd.f32 1e-05, %v1263_v52  ;;  %v6818_v21 = vadd.f32 1e-05, %v1270_v47  ;;  %v1493_v53 = vadd.f32 %v6804_v63, %v1476_v56 }
 0x300   :  { %v5697_v49 = vpop.eup %5696  ;;  %v1413_v58 = vmul.f32 %v5693_v25, %v1412_v51  ;;  %v1419_v61 = vmul.f32 %v5695_v37, %v1285_v36  ;;  %vm1425_vm6 = vweird.f32 %v5695_v37 }
 0x301   :  { %5698 = vrsqrt.f32 %v6816_v3  ;;  %v1525_v23 = vmul.f32 %v5697_v49, %v6813_v2  ;;  %vm1426_vm3 = vmor %vm1424_vm10, %vm1425_vm6  ;;  %vm1364_vm12 = vweird.f32 %v6816_v3  ;;  %vm1434_vm11 = vweird.f32 %v6818_v21 }
 0x302   :  { %v1417_v44 = vsel %vm1416_vm8, %v5693_v25, %v1413_v58  ;;  %v1420_v12 = vmul.f32 %v5695_v37, %v1419_v61  ;;  %5700 = vrsqrt.f32 %v6818_v21 }
 0x303   :  { %v1460_v26 = vmul.f32 %v1417_v44, %v6700_v17  ;;  %v1561_v48 = vsel %vm9540_vm14, %v1525_v23, 0.0  ;;  %5702 = vtanh.f32 %v1493_v53 }
 0x304   :  { %v1421_v38 = vmul.f32 0.5, %v1420_v12  ;;  %1562 = vadd.xlane.f32.xlu0 %v1561_v48  ;;  %v1222_v52 = vpop.xlane.xlu2 %1221  ;;  %v1255_v47 = vpop.xlane.xlu0 %1254 }
 0x305   :  { %v1260_v50 = vmul.f32 %v1222_v52, %v6682_v22  ;;  %v1234_v56 = vpop.xlane.xlu1 %1233  ;;  %v1271_v51 = vmul.f32 %v1255_v47, %v6682_v22  ;;  %v1477_v49 = vmul.f32 %v6800_v31, %v1460_v26 }
 0x306   :  { %v1422_v25 = vsub.f32 1.5, %v1421_v38  ;;  %v1264_v58 = vmul.f32 %v1234_v56, %v6682_v22 }
 0x307   :  { %v5699_v61 = vpop.eup %5698  ;;  %v6830_v17 = vadd.f32 1e-05, %v1260_v50  ;;  %v6832_v23 = vadd.f32 1e-05, %v1271_v51  ;;  %v1494_v38 = vadd.f32 %v6804_v63, %v1477_v49 }
 0x308   :  { %v6834_v53 = vpop.eup %5700  ;;  %v1423_v44 = vmul.f32 %v5695_v37, %v1422_v25  ;;  %v1359_v12 = vmul.f32 %v5699_v61, %v6816_v3  ;;  %v6837_v48 = vadd.f32 1e-05, %v1264_v58  ;;  %vm1365_vm13 = vweird.f32 %v5699_v61 }
 0x309   :  { %v5703_v52 = vpop.eup %5702  ;;  %v1429_v26 = vmul.f32 %v6834_v53, %v6818_v21  ;;  %5704 = vrsqrt.f32 %v6830_v17  ;;  %vm1435_vm8 = vweird.f32 %v6834_v53  ;;  %vm1366_vm6 = vmor %vm1364_vm12, %vm1365_vm13  ;;  %vm1334_vm10 = vweird.f32 %v6830_v17 }
 0x30a   :  { %v1427_v47 = vsel %vm1426_vm3, %v5695_v37, %v1423_v44  ;;  %v1360_v50 = vmul.f32 %v5699_v61, %v1359_v12  ;;  %5706 = vrsqrt.f32 %v6837_v48  ;;  %v1526_v25 = vmul.f32 %v5703_v52, %v6813_v2  ;;  %vm6896_vm5 = vmor %vm1434_vm11, %vm1435_vm8 }
 0x30b   :  { %v1461_v56 = vmul.f32 %v1427_v47, %v6707_v45  ;;  %v1430_v36 = vmul.f32 %v6834_v53, %v1429_v26  ;;  %5708 = vrsqrt.f32 %v6832_v23  ;;  %vm1374_vm3 = vweird.f32 %v6837_v48 }
 0x30c   :  { %v1361_v51 = vmul.f32 0.5, %v1360_v50  ;;  %v1213_v58 = vpop.xlane.xlu2 %1212  ;;  %v1237_v43 = vpop.xlane.xlu0 %1236  ;;  %5710 = vtanh.f32 %v1494_v38  ;;  %v1564_v45 = vsel %vm9540_vm14, %v1526_v25, 0.0 }
 0x30d   :  { %v1431_v39 = vmul.f32 0.5, %v1430_v36  ;;  %v1257_v49 = vmul.f32 %v1213_v58, %v6682_v22  ;;  %v1225_v37 = vpop.xlane.xlu1 %1224  ;;  %v1265_v44 = vmul.f32 %v1237_v43, %v6682_v22  ;;  %1565 = vadd.xlane.f32.xlu2 %v1564_v45  ;;  %v1478_v36 = vmul.f32 %v6800_v31, %v1461_v56 }
 0x30e   :  { %v1362_v12 = vsub.f32 1.5, %v1361_v51  ;;  %v1261_v26 = vmul.f32 %v1225_v37, %v6682_v22 }
 0x30f   :  { %v6853_v47 = vpop.eup %5704  ;;  %v1432_v50 = vsub.f32 1.5, %v1431_v39  ;;  %v6856_v52 = vadd.f32 1e-05, %v1257_v49  ;;  %v6875_v56 = vadd.f32 1e-05, %v1265_v44  ;;  %v1495_v7 = vadd.f32 %v6804_v63, %v1478_v36 }
 0x310   :  { %v6859_v58 = vpop.eup %5706  ;;  %v1363_v43 = vmul.f32 %v5699_v61, %v1362_v12  ;;  %v1329_v38 = vmul.f32 %v6853_v47, %v6830_v17  ;;  %v6864_v51 = vadd.f32 1e-05, %v1261_v26  ;;  %vm1335_vm12 = vweird.f32 %v6853_v47 }
 0x311   :  { %v6866_v25 = vpop.eup %5708  ;;  %v1369_v39 = vmul.f32 %v6859_v58, %v6837_v48  ;;  %5712 = vrsqrt.f32 %v6856_v52  ;;  %v1433_v3 = vmul.f32 %v6834_v53, %v1432_v50  ;;  %vm1375_vm13 = vweird.f32 %v6859_v58  ;;  %vm6916_vm11 = vmor %vm1334_vm10, %vm1335_vm12 }
 0x312   :  { %v1367_v49 = vsel %vm1366_vm6, %v5699_v61, %v1363_v43  ;;  %v1330_v37 = vmul.f32 %v6853_v47, %v1329_v38  ;;  %v1439_v12 = vmul.f32 %v6866_v25, %v6832_v23  ;;  %v5711_v45 = vpop.eup %5710  ;;  %5714 = vrsqrt.f32 %v6864_v51  ;;  %vm6935_vm8 = vmor %vm1374_vm3, %vm1375_vm13 }
 0x313   :  { %v1370_v26 = vmul.f32 %v6859_v58, %v1369_v39  ;;  %v1455_v44 = vmul.f32 %v1367_v49, %v6715_v54  ;;  %vm1444_vm6 = vweird.f32 %v6832_v23  ;;  %vm1445_vm7 = vweird.f32 %v6866_v25 }
 0x314   :  { %v1331_v16 = vmul.f32 0.5, %v1330_v37  ;;  %v1440_v61 = vmul.f32 %v6866_v25, %v1439_v12  ;;  %v1228_v43 = vpop.xlane.xlu0 %1227  ;;  %5716 = vrsqrt.f32 %v6875_v56  ;;  %v1527_v49 = vmul.f32 %v5711_v45, %v6813_v2  ;;  %vm6964_vm13 = vmor %vm1444_vm6, %vm1445_vm7 }
 0x315   :  { %v1371_v38 = vmul.f32 0.5, %v1370_v26  ;;  %v1216_v50 = vpop.xlane.xlu1 %1215  ;;  %v1437_v26 = vsel %vm6896_vm5, %v6834_v53, %v1433_v3  ;;  %v1262_v6 = vmul.f32 %v1228_v43, %v6682_v22  ;;  %5718 = vtanh.f32 %v1495_v7 }
 0x316   :  { %v1332_v36 = vsub.f32 1.5, %v1331_v16  ;;  %v1441_v39 = vmul.f32 0.5, %v1440_v61  ;;  %v1258_v37 = vmul.f32 %v1216_v50, %v6682_v22  ;;  %v1472_v45 = vmul.f32 %v6800_v31, %v1455_v44 }
 0x317   :  { %v6902_v12 = vpop.eup %5712  ;;  %v1372_v32 = vsub.f32 1.5, %v1371_v38  ;;  %vm1304_vm5 = vweird.f32 %v6856_v52  ;;  %v1567_v7 = vsel %vm9540_vm14, %v1527_v49, 0.0  ;;  %v1462_v44 = vmul.f32 %v1437_v26, %v6718_v57 }
 0x318   :  { %v1333_v21 = vmul.f32 %v6853_v47, %v1332_v36  ;;  %v1442_v5 = vsub.f32 1.5, %v1441_v39  ;;  %v1299_v16 = vmul.f32 %v6902_v12, %v6856_v52  ;;  %v6923_v3 = vadd.f32 1e-05, %v1258_v37  ;;  %v6925_v43 = vpop.eup %5714  ;;  %1568 = vadd.xlane.f32.xlu1 %v1567_v7 }
 0x319   :  { %v1373_v53 = vmul.f32 %v6859_v58, %v1372_v32  ;;  %v6940_v50 = vadd.f32 1e-05, %v1262_v6  ;;  %v1339_v48 = vmul.f32 %v6925_v43, %v6864_v51  ;;  %vm1344_vm10 = vweird.f32 %v6864_v51 }
 0x31a   :  { %v1337_v17 = vsel %vm6916_vm11, %v6853_v47, %v1333_v21  ;;  %v1300_v38 = vmul.f32 %v6902_v12, %v1299_v16  ;;  %v6942_v54 = vpop.eup %5716  ;;  %v1443_v47 = vmul.f32 %v6866_v25, %v1442_v5  ;;  %vm1305_vm3 = vweird.f32 %v6902_v12 }
 0x31b   :  { %v1377_v57 = vsel %vm6935_vm8, %v6859_v58, %v1373_v53  ;;  %v1379_v6 = vmul.f32 %v6942_v54, %v6875_v56  ;;  %v1489_v49 = vadd.f32 %v6804_v63, %v1472_v45  ;;  %v5719_v37 = vpop.eup %5718  ;;  %v1452_v26 = vmul.f32 %v1337_v17, %v6730_v46  ;;  %vm6981_vm7 = vmor %vm1304_vm5, %vm1305_vm3 }
 0x31c   :  { %v1301_v36 = vmul.f32 0.5, %v1300_v38  ;;  %v1219_v39 = vpop.xlane.xlu0 %1218  ;;  %v1340_v58 = vmul.f32 %v6925_v43, %v1339_v48  ;;  %vm1345_vm12 = vweird.f32 %v6925_v43  ;;  %5720 = vrsqrt.f32 %v6923_v3 }
 0x31d   :  { %v1456_v5 = vmul.f32 %v1377_v57, %v6736_v34  ;;  %v1380_v45 = vmul.f32 %v6942_v54, %v1379_v6  ;;  %5722 = vrsqrt.f32 %v6940_v50  ;;  %v1447_v46 = vsel %vm6964_vm13, %v6866_v25, %v1443_v47  ;;  %vm1346_vm5 = vmor %vm1344_vm10, %vm1345_vm12 }
 0x31e   :  { %v1302_v16 = vsub.f32 1.5, %v1301_v36  ;;  %v1341_v61 = vmul.f32 0.5, %v1340_v58  ;;  %v1528_v34 = vmul.f32 %v5719_v37, %v6813_v2  ;;  %v1259_v53 = vmul.f32 %v1219_v39, %v6682_v22 }
 0x31f   :  { %v1381_v7 = vmul.f32 0.5, %v1380_v45  ;;  %5724 = vtanh.f32 %v1489_v49  ;;  %v1479_v17 = vmul.f32 %v6800_v31, %v1462_v44  ;;  %vm1385_vm6 = vweird.f32 %v6942_v54 }
 0x320   :  { %v1303_v23 = vmul.f32 %v6902_v12, %v1302_v16  ;;  %v1342_v25 = vsub.f32 1.5, %v1341_v61  ;;  %v1570_v38 = vsel %vm9540_vm14, %v1528_v34, 0.0  ;;  %v6987_v57 = vadd.f32 1e-05, %v1259_v53 }
 0x321   :  { %v1382_v44 = vsub.f32 1.5, %v1381_v7  ;;  %1571 = vadd.xlane.f32.xlu0 %v1570_v38  ;;  %v1496_v48 = vadd.f32 %v6804_v63, %v1479_v17  ;;  %v1469_v52 = vmul.f32 %v6800_v31, %v1452_v26  ;;  %v1463_v6 = vmul.f32 %v1447_v46, %v6733_v40 }
 0x322   :  { %v1307_v47 = vsel %vm6981_vm7, %v6902_v12, %v1303_v23  ;;  %v6994_v36 = vpop.eup %5720  ;;  %v1343_v39 = vmul.f32 %v6925_v43, %v1342_v25  ;;  %vm1384_vm11 = vweird.f32 %v6875_v56  ;;  %5726 = vrsqrt.f32 %v6987_v57 }
 0x323   :  { %v7000_v49 = vpop.eup %5722  ;;  %v1383_v12 = vmul.f32 %v6942_v54, %v1382_v44  ;;  %v1309_v37 = vmul.f32 %v6994_v36, %v6923_v3  ;;  %vm1314_vm8 = vweird.f32 %v6923_v3  ;;  %5728 = vtanh.f32 %v1496_v48  ;;  %vm1386_vm3 = vmor %vm1384_vm11, %vm1385_vm6 }
 0x324   :  { %v1210_v40 = vpop.xlane.xlu0 %1209  ;;  %v1473_v56 = vmul.f32 %v6800_v31, %v1456_v5  ;;  %v1449_v26 = vmul.f32 %v1307_v47, %v6751_v19  ;;  %v1347_v58 = vsel %vm1346_vm5, %v6925_v43, %v1343_v39  ;;  %v1349_v51 = vmul.f32 %v7000_v49, %v6940_v50 }
 0x325   :  { %vm1354_vm10 = vweird.f32 %v6940_v50  ;;  %v1256_v21 = vmul.f32 %v1210_v40, %v6682_v22  ;;  %v5725_v16 = vpop.eup %5724  ;;  %v1453_v45 = vmul.f32 %v1347_v58, %v6757_v42  ;;  %v1387_v46 = vsel %vm1386_vm3, %v6942_v54, %v1383_v12 }
 0x326   :  { %v1310_v5 = vmul.f32 %v6994_v36, %v1309_v37  ;;  %v1486_v19 = vadd.f32 %v6804_v63, %v1469_v52  ;;  %v1457_v43 = vmul.f32 %v1387_v46, %v6754_v9  ;;  %v1350_v61 = vmul.f32 %v7000_v49, %v1349_v51 }
 0x327   :  { %v1522_v34 = vmul.f32 %v5725_v16, %v6813_v2  ;;  %v7026_v53 = vadd.f32 1e-05, %v1256_v21  ;;  %v1490_v7 = vadd.f32 %v6804_v63, %v1473_v56  ;;  %v1480_v42 = vmul.f32 %v6800_v31, %v1463_v6 }
 0x328   :  { %v1311_v23 = vmul.f32 0.5, %v1310_v5  ;;  %5730 = vtanh.f32 %v1486_v19  ;;  %v5727_v17 = vpop.eup %5726  ;;  %vm1315_vm12 = vweird.f32 %v6994_v36  ;;  %v1351_v54 = vmul.f32 0.5, %v1350_v61 }
 0x329   :  { %v1552_v32 = vsel %vm9540_vm14, %v1522_v34, 0.0  ;;  %5732 = vrsqrt.f32 %v7026_v53  ;;  %v5729_v9 = vpop.eup %5728  ;;  %vm1355_vm13 = vweird.f32 %v7000_v49  ;;  %v1319_v38 = vmul.f32 %v5727_v17, %v6987_v57  ;;  %vm1316_vm6 = vmor %vm1314_vm8, %vm1315_vm12 }
 0x32a   :  { %v1312_v25 = vsub.f32 1.5, %v1311_v23  ;;  %vm1324_vm7 = vweird.f32 %v6987_v57  ;;  %1553 = vadd.xlane.f32.xlu0 %v1552_v32  ;;  %5734 = vtanh.f32 %v1490_v7  ;;  %v1352_v47 = vsub.f32 1.5, %v1351_v54  ;;  %vm1356_vm11 = vmor %vm1354_vm10, %vm1355_vm13 }
 0x32b   :  { %v1529_v44 = vmul.f32 %v5729_v9, %v6813_v2  ;;  %v1497_v48 = vadd.f32 %v6804_v63, %v1480_v42  ;;  %v1466_v52 = vmul.f32 %v6800_v31, %v1449_v26  ;;  %v1320_v39 = vmul.f32 %v5727_v17, %v1319_v38 }
 0x32c   :  { %v1313_v6 = vmul.f32 %v6994_v36, %v1312_v25  ;;  %v1470_v12 = vmul.f32 %v6800_v31, %v1453_v45  ;;  %v1474_v37 = vmul.f32 %v6800_v31, %v1457_v43  ;;  %v1353_v40 = vmul.f32 %v7000_v49, %v1352_v47 }
 0x32d   :  { %v1573_v56 = vsel %vm9540_vm14, %v1529_v44, 0.0  ;;  %5736 = vtanh.f32 %v1497_v48  ;;  %v1483_v58 = vadd.f32 %v6804_v63, %v1466_v52  ;;  %v1321_v21 = vmul.f32 0.5, %v1320_v39 }
 0x32e   :  { %v5731_v26 = vpop.eup %5730  ;;  %v1317_v51 = vsel %vm1316_vm6, %v6994_v36, %v1313_v6  ;;  %1574 = vadd.xlane.f32.xlu2 %v1573_v56  ;;  %v1487_v3 = vadd.f32 %v6804_v63, %v1470_v12  ;;  %v1491_v16 = vadd.f32 %v6804_v63, %v1474_v37  ;;  %v1357_v5 = vsel %vm1356_vm11, %v7000_v49, %v1353_v40 }
 0x32f   :  { %v5733_v45 = vpop.eup %5732  ;;  %v1450_v46 = vmul.f32 %v1317_v51, %v6774_v33  ;;  %v1519_v19 = vmul.f32 %v5731_v26, %v6813_v2  ;;  %5738 = vtanh.f32 %v1483_v58  ;;  %v1454_v43 = vmul.f32 %v1357_v5, %v6771_v15 }
 0x330   :  { %v5735_v36 = vpop.eup %5734  ;;  %v1322_v61 = vsub.f32 1.5, %v1321_v21  ;;  %vm1325_vm5 = vweird.f32 %v5727_v17  ;;  %v1289_v50 = vmul.f32 %v5733_v45, %v7026_v53  ;;  %5740 = vtanh.f32 %v1487_v3 }
 0x331   :  { %v1543_v34 = vsel %vm9540_vm14, %v1519_v19, 0.0  ;;  %v1523_v23 = vmul.f32 %v5735_v36, %v6813_v2  ;;  %v1467_v7 = vmul.f32 %v6800_v31, %v1450_v46  ;;  %5742 = vtanh.f32 %v1491_v16  ;;  %vm1326_vm8 = vmor %vm1324_vm7, %vm1325_vm5 }
 0x332   :  { %v1323_v33 = vmul.f32 %v5727_v17, %v1322_v61  ;;  %v1290_v42 = vmul.f32 %v5733_v45, %v1289_v50  ;;  %1544 = vadd.xlane.f32.xlu0 %v1543_v34  ;;  %v1471_v49 = vmul.f32 %v6800_v31, %v1454_v43  ;;  %vm1295_vm3 = vweird.f32 %v5733_v45 }
 0x333   :  { %v5737_v54 = vpop.eup %5736  ;;  %v1555_v15 = vsel %vm9540_vm14, %v1523_v23, 0.0  ;;  %v1484_v32 = vadd.f32 %v6804_v63, %v1467_v7  ;;  %vm1294_vm10 = vweird.f32 %v7026_v53 }
 0x334   :  { %v1327_v9 = vsel %vm1326_vm8, %v5727_v17, %v1323_v33  ;;  %v1291_v25 = vmul.f32 0.5, %v1290_v42  ;;  %v1530_v38 = vmul.f32 %v5737_v54, %v6813_v2  ;;  %v1488_v47 = vadd.f32 %v6804_v63, %v1471_v49  ;;  %vm1296_vm12 = vmor %vm1294_vm10, %vm1295_vm3  ;;  %v5960_v54 = vld [vmem:[%s9449_s13] sm:$0xff] }
 0x335   :  { %v5739_v44 = vpop.eup %5738  ;;  %v1451_v48 = vmul.f32 %v1327_v9, %v6784_v30  ;;  %5744 = vtanh.f32 %v1484_v32 }
 0x336   :  { %v1292_v52 = vsub.f32 1.5, %v1291_v25  ;;  %1556 = vadd.xlane.f32.xlu2 %v1555_v15  ;;  %v1576_v6 = vsel %vm9540_vm14, %v1530_v38, 0.0  ;;  %v1516_v57 = vmul.f32 %v5739_v44, %v6813_v2  ;;  %v5741_v39 = vpop.eup %5740  ;;  %5746 = vtanh.f32 %v1488_v47  ;;  %v1609_v38 = vld [vmem:[%s9450_s10 + $0x68] sm:$0xff]  ;;  %v1611_v44 = vld [vmem:[%s9450_s10 + $0x78] sm:$0xff] }
 0x337   :  { %1577 = vadd.xlane.f32.xlu1 %v1576_v6  ;;  %v1468_v17 = vmul.f32 %v6800_v31, %v1451_v48  ;;  %v5743_v12 = vpop.eup %5742  ;;  %v1520_v30 = vmul.f32 %v5741_v39, %v6813_v2  ;;  %v7097_v15 = vperm.slane %v5960_v54, 4  ;;  %v1608_v39 = vld [vmem:[%s9450_s10 + $0x60] sm:$0xff] }
 0x338   :  { %v1293_v37 = vmul.f32 %v5733_v45, %v1292_v52  ;;  %v1534_v40 = vsel %vm9540_vm14, %v1516_v57, 0.0  ;;  %v1524_v56 = vmul.f32 %v5743_v12, %v6813_v2 }
 0x339   :  { %v1546_v51 = vsel %vm9540_vm14, %v1520_v30, 0.0  ;;  %v1485_v21 = vadd.f32 %v6804_v63, %v1468_v17  ;;  %v1607_v30 = vld [vmem:[%s9450_s10 + $0x58] sm:$0xff] }
 0x33a   :  { %v1297_v58 = vsel %vm1296_vm12, %v5733_v45, %v1293_v37  ;;  %1535 = vadd.xlane.f32.xlu0 %v1534_v40  ;;  %v1558_v16 = vsel %vm9540_vm14, %v1524_v56, 0.0  ;;  %v1606_v56 = vld [vmem:[%s9450_s10 + $0x50] sm:$0xff] }
 0x33b   :  { %v1448_v26 = vmul.f32 %v1297_v58, %v6791_v35  ;;  %v5745_v3 = vpop.eup %5744  ;;  %5748 = vtanh.f32 %v1485_v21 }
 0x33c   :  { %v5747_v53 = vpop.eup %5746  ;;  %v1517_v46 = vmul.f32 %v5745_v3, %v6813_v2 }
 0x33d   :  { %v1465_v5 = vmul.f32 %v6800_v31, %v1448_v26  ;;  %v1521_v45 = vmul.f32 %v5747_v53, %v6813_v2 }
 0x33e   :  { %1547 = vadd.xlane.f32.xlu2 %v1546_v51  ;;  %v1537_v19 = vsel %vm9540_vm14, %v1517_v46, 0.0  ;;  %v1605_v46 = vld [vmem:[%s9450_s10 + $0x48] sm:$0xff] }
 0x33f   :  { %1559 = vadd.xlane.f32.xlu1 %v1558_v16  ;;  %v1482_v35 = vadd.f32 %v6804_v63, %v1465_v5  ;;  %v1549_v36 = vsel %vm9540_vm14, %v1521_v45, 0.0 }
 0x341   :  { %v5749_v43 = vpop.eup %5748  ;;  %5750 = vtanh.f32 %v1482_v35 }
 0x342   :  { %v1518_v61 = vmul.f32 %v5749_v43, %v6813_v2 }
 0x344   :  { %v1540_v50 = vsel %vm9540_vm14, %v1518_v61, 0.0 }
 0x346   :  { %1538 = vadd.xlane.f32.xlu2 %v1537_v19 }
 0x347   :  { %1550 = vadd.xlane.f32.xlu1 %v1549_v36  ;;  %v5751_v34 = vpop.eup %5750  ;;  %v1604_v36 = vld [vmem:[%s9450_s10 + $0x40] sm:$0xff] }
 0x348   :  { %v1515_v31 = vmul.f32 %v5751_v34, %v6813_v2  ;;  %v1610_v2 = vld [vmem:[%s9450_s10 + $0x70] sm:$0xff] }
 0x34a   :  { %v1531_v23 = vsel %vm9540_vm14, %v1515_v31, 0.0  ;;  %v1603_v31 = vld [vmem:[%s9450_s10 + $0x38] sm:$0xff] }
 0x34f   :  { %1541 = vadd.xlane.f32.xlu1 %v1540_v50 }
 0x357   :  { %1532 = vadd.xlane.f32.xlu1 %v1531_v23 }
 0x377   :  { %v1563_v7 = vpop.xlane.xlu0 %1562 }
 0x378   :  { %v1590_v40 = vadd.f32 %v7097_v15, %v1563_v7 }
 0x37a   :  { %v1622_v16 = vadd.f32 %v1606_v56, %v1590_v40 }
 0x37c   :  { %v1648_v7 = vmul.f32 1.442695, %v1622_v16  ;;  %v9603_v16 = vmov 0 }
 0x380   :  { %v1566_v33 = vpop.xlane.xlu2 %1565 }
 0x381   :  { %v1591_v17 = vadd.f32 %v7097_v15, %v1566_v33 }
 0x383   :  { %v1623_v21 = vadd.f32 %v1607_v30, %v1591_v17 }
 0x385   :  { %v1650_v61 = vmul.f32 1.442695, %v1623_v21 }
 0x38b   :  { %v1569_v49 = vpop.xlane.xlu1 %1568 }
 0x38c   :  { %v1592_v52 = vadd.f32 %v7097_v15, %v1569_v49 }
 0x38e   :  { %v1624_v58 = vadd.f32 %v1608_v39, %v1592_v52 }
 0x390   :  { %v1652_v45 = vmul.f32 1.442695, %v1624_v58 }
 0x394   :  { %v1572_v63 = vpop.xlane.xlu0 %1571 }
 0x395   :  { %v1593_v9 = vadd.f32 %v7097_v15, %v1572_v63 }
 0x397   :  { %v1625_v12 = vadd.f32 %v1609_v38, %v1593_v9 }
 0x399   :  { %v1654_v3 = vmul.f32 1.442695, %v1625_v12 }
 0x39d   :  { %v1554_v47 = vpop.xlane.xlu0 %1553 }
 0x39e   :  { %v1587_v50 = vadd.f32 %v7097_v15, %v1554_v47 }
 0x3a1   :  { %v1575_v42 = vpop.xlane.xlu2 %1574 }
 0x3a2   :  { %v1594_v32 = vadd.f32 %v7097_v15, %v1575_v42  ;;  %v1619_v42 = vadd.f32 %v1603_v31, %v1587_v50 }
 0x3a4   :  { %v1626_v6 = vadd.f32 %v1610_v2, %v1594_v32  ;;  %v1601_v32 = vld [vmem:[%s9450_s10 + $0x28] sm:$0xff]  ;;  %v1602_v2 = vld [vmem:[%s9450_s10 + $0x30] sm:$0xff]  ;;  %v1642_v39 = vmul.f32 1.442695, %v1619_v42 }
 0x3a5   :  { %v1545_v43 = vpop.xlane.xlu0 %1544 }
 0x3a6   :  { %v1656_v26 = vmul.f32 1.442695, %v1626_v6  ;;  %v1584_v47 = vadd.f32 %v7097_v15, %v1545_v43  ;;  %v7159_v6 = vld [vmem:[%s9445_s4] ss:$0 sm:$0xff] }
 0x3a7   :  { %vm452_vm13 = vcmp.eq.s32.totalorder %v6081_v4, %v7159_v6  ;;  %vm453_vm7 = vcmp.eq.s32.totalorder %v6097_v11, %v7159_v6  ;;  %vm454_vm11 = vcmp.eq.s32.totalorder %v6094_v10, %v7159_v6  ;;  %vm455_vm5 = vcmp.eq.s32.totalorder %v6108_v14, %v7159_v6 }
 0x3a8   :  { %vm7184_vm6 = vmpackc.low %vm453_vm7, %vm452_vm13  ;;  %vm456_vm3 = vcmp.eq.s32.totalorder %v6133_v20, %v7159_v6  ;;  %vm457_vm10 = vcmp.eq.s32.totalorder %v6150_v24, %v7159_v6  ;;  %vm459_vm1 = vcmp.eq.s32.totalorder %v6167_v28, %v7159_v6 }
 0x3a9   :  { %v1557_v25 = vpop.xlane.xlu2 %1556  ;;  %v9604_v16 = vsel %vm7184_vm6, 4294967295, %v9603_v16  ;;  %vm7233_vm8 = vmpackc.low %vm455_vm5, %vm454_vm11 }
 0x3aa   :  { %v1578_v48 = vpop.xlane.xlu1 %1577  ;;  %v1588_v19 = vadd.f32 %v7097_v15, %v1557_v25  ;;  %9605 = vst [vmem:[#allocation48_spill] sm:$0xff] %v9604_v16  ;;  %vm7254_vm12 = vmpackc.low %vm457_vm10, %vm456_vm3 }
 0x3ab   :  { %v1595_v57 = vadd.f32 %v7097_v15, %v1578_v48  ;;  %v1600_v48 = vld [vmem:[%s9450_s10 + $0x20] sm:$0xff] }
 0x3ac   :  { %v1620_v33 = vadd.f32 %v1604_v36, %v1588_v19  ;;  %v1616_v30 = vadd.f32 %v1600_v48, %v1584_v47  ;;  %v9606_v48 = vmov 0 }
 0x3ad   :  { %v1627_v37 = vadd.f32 %v1611_v44, %v1595_v57  ;;  %v9607_v48 = vsel %vm7233_vm8, 4294967295, %v9606_v48 }
 0x3ae   :  { %v1644_v38 = vmul.f32 1.442695, %v1620_v33  ;;  %v1636_v19 = vmul.f32 1.442695, %v1616_v30  ;;  %9608 = vst [vmem:[#allocation49_spill] sm:$0xff] %v9607_v48 }
 0x3af   :  { %v1658_v51 = vmul.f32 1.442695, %v1627_v37  ;;  %v1536_v37 = vpop.xlane.xlu0 %1535 }
 0x3b1   :  { %5752 = vpow2.f32 %v1658_v51  ;;  %v1548_v53 = vpop.xlane.xlu2 %1547 }
 0x3b2   :  { %v1560_v5 = vpop.xlane.xlu1 %1559  ;;  %5754 = vpow2.f32 %v1656_v26  ;;  %v1585_v49 = vadd.f32 %v7097_v15, %v1548_v53  ;;  %v1598_v26 = vld [vmem:[%s9450_s10 + $0x10] sm:$0xff]  ;;  %v1597_v53 = vld [vmem:[%s9450_s10 + $0x8] sm:$0xff] }
 0x3b3   :  { %v1589_v35 = vadd.f32 %v7097_v15, %v1560_v5  ;;  %5756 = vpow2.f32 %v1654_v3  ;;  %v1581_v3 = vadd.f32 %v7097_v15, %v1536_v37  ;;  %v9612_v37 = vmov 0 }
 0x3b4   :  { %5758 = vpow2.f32 %v1652_v45  ;;  %v1617_v17 = vadd.f32 %v1601_v32, %v1585_v49  ;;  %v1596_v49 = vld [vmem:[%s9450_s10] sm:$0xff] }
 0x3b5   :  { %v1621_v34 = vadd.f32 %v1605_v46, %v1589_v35  ;;  %5760 = vpow2.f32 %v1650_v61  ;;  %v1599_v46 = vld [vmem:[%s9450_s10 + $0x18] sm:$0xff]  ;;  %v1613_v61 = vadd.f32 %v1597_v53, %v1581_v3 }
 0x3b6   :  { %5762 = vpow2.f32 %v1648_v7  ;;  %v1638_v21 = vmul.f32 1.442695, %v1617_v17  ;;  %v5995_v17 = vmov 1.0  }
 0x3b7   :  { %v7135_v23 = vpop.eup %5752  ;;  %v1646_v54 = vmul.f32 1.442695, %v1621_v34  ;;  %v1630_v42 = vmul.f32 1.442695, %v1613_v61 }
 0x3b8   :  { %1660 = vmatpush.msrb.mxu1 %v7135_v23  ;;  %v7138_v63 = vpop.eup %5754 }
 0x3b9   :  { %v7148_v25 = vpop.eup %5756  ;;  %v1539_v52 = vpop.xlane.xlu2 %1538  ;;  %5764 = vpow2.f32 %v1646_v54 }
 0x3ba   :  { %1661 = vmatpush.msrb.mxu1 %v7138_v63  ;;  %v1551_v9 = vpop.xlane.xlu1 %1550  ;;  %v7161_v57 = vpop.eup %5758  ;;  %5766 = vpow2.f32 %v1644_v38  ;;  %v1582_v56 = vadd.f32 %v7097_v15, %v1539_v52 }
 0x3bb   :  { %v1586_v44 = vadd.f32 %v7097_v15, %v1551_v9  ;;  %v7164_v40 = vpop.eup %5760  ;;  %5768 = vpow2.f32 %v1642_v39 }
 0x3bc   :  { %1662 = vmatpush.msrb.mxu1 %v7148_v25  ;;  %v7175_v51 = vpop.eup %5762  ;;  %v1614_v35 = vadd.f32 %v1598_v26, %v1582_v56 }
 0x3bd   :  { %v1618_v12 = vadd.f32 %v1602_v2, %v1586_v44 }
 0x3be   :  { %1663 = vmatpush.msrb.mxu1 %v7161_v57  ;;  %v1632_v31 = vmul.f32 1.442695, %v1614_v35 }
 0x3bf   :  { %v1640_v58 = vmul.f32 1.442695, %v1618_v12  ;;  %v7195_v45 = vpop.eup %5764  ;;  %v9609_v12 = vmov 0 }
 0x3c0   :  { %1664 = vmatpush.msrb.mxu1 %v7164_v40  ;;  %v7199_v43 = vpop.eup %5766  ;;  %v9610_v12 = vsel %vm7254_vm12, 4294967295, %v9609_v12 }
 0x3c1   :  { %5770 = vpow2.f32 %v1640_v58  ;;  %v7202_v34 = vpop.eup %5768  ;;  %9611 = vst [vmem:[#allocation50_spill] sm:$0xff] %v9610_v12 }
 0x3c2   :  { %v1542_v5 = vpop.xlane.xlu1 %1541  ;;  %1665 = vmatpush.msrb.mxu1 %v7175_v51  ;;  %5772 = vpow2.f32 %v1638_v21 }
 0x3c3   :  { %v1583_v36 = vadd.f32 %v7097_v15, %v1542_v5  ;;  %5774 = vpow2.f32 %v1636_v19  ;;  %v9621_v19 = vld [vmem:[#allocation30_spill] sm:$0xff] }
 0x3c4   :  { %1666 = vmatpush.msrb.mxu1 %v7195_v45 }
 0x3c5   :  { %v1615_v50 = vadd.f32 %v1599_v46, %v1583_v36 }
 0x3c6   :  { %1667 = vmatpush.msrb.mxu1 %v7199_v43 }
 0x3c7   :  { %v1634_v7 = vmul.f32 1.442695, %v1615_v50  ;;  %v7205_v33 = vpop.eup %5770 }
 0x3c8   :  { %1668 = vmatpush.msrb.mxu1 %v7202_v34  ;;  %v7211_v32 = vpop.eup %5772 }
 0x3c9   :  { %5776 = vpow2.f32 %v1634_v7  ;;  %v7215_v9 = vpop.eup %5774 }
 0x3ca   :  { %v1533_v54 = vpop.xlane.xlu1 %1532  ;;  %1669 = vmatpush.msrb.mxu1 %v7205_v33  ;;  %5778 = vpow2.f32 %v1632_v31 }
 0x3cb   :  { %v1580_v2 = vadd.f32 %v7097_v15, %v1533_v54  ;;  %5780 = vpow2.f32 %v1630_v42 }
 0x3cc   :  { %1670 = vmatpush.msrb.mxu1 %v7211_v32 }
 0x3cd   :  { %v1612_v38 = vadd.f32 %v1596_v49, %v1580_v2  ;;  %v5996_v2 = vmov 0  }
 0x3ce   :  { %1671 = vmatpush.msrb.mxu1 %v7215_v9  ;;  %5679 = vset.pattern.permute.xlu1 %v5996_v2 }
 0x3cf   :  { %v7218_v47 = vpop.eup %5776  ;;  %v1628_v44 = vmul.f32 1.442695, %v1612_v38  ;;  %5680 = vset.pattern.permute.xlu2 %v5996_v2  ;;  %5681 = vset.pattern.permute.xlu0 %v5996_v2 }
 0x3d0   :  { %1672 = vmatpush.msrb.mxu1 %v7218_v47  ;;  %v7225_v15 = vpop.eup %5778 }
 0x3d1   :  { %5782 = vpow2.f32 %v1628_v44  ;;  %v7238_v52 = vpop.eup %5780 }
 0x3d2   :  { %1673 = vmatpush.msrb.mxu1 %v7225_v15 }
 0x3d4   :  { %1674 = vmatpush.msrb.mxu1 %v7238_v52 }
 0x3d7   :  { %v7241_v39 = vpop.eup %5782 }
 0x3d8   :  { %1675 = vmatpush.msrb.mxu1 %v7241_v39 }
 0x3d9   :  { %5042 = vmatmul.msk.f32.vlgmr.msrb.gmra.mxu1 %vm452_vm13, %v5995_v17  ;;  %vm458_vm13 = vcmp.eq.s32.totalorder %v6170_v29, %v7159_v6 }
 0x3da   :  { %vm7268_vm4 = vmpackc.low %vm459_vm1, %vm458_vm13 }
 0x3db   :  { %v9613_v37 = vsel %vm7268_vm4, 4294967295, %v9612_v37 }
 0x3dc   :  { %9614 = vst [vmem:[#allocation51_spill] sm:$0xff] %v9613_v37 }
 0x3e1   :  { %5043 = vmatmul.msk.f32.gmra.mxu1 %vm453_vm7, %v5995_v17 }
 0x3e9   :  { %5044 = vmatmul.msk.f32.gmra.mxu1 %vm454_vm11, %v5995_v17 }
 0x3f1   :  { %5045 = vmatmul.msk.f32.gmra.mxu1 %vm455_vm5, %v5995_v17 }
 0x3f9   :  { %5046 = vmatmul.msk.f32.gmra.mxu1 %vm456_vm3, %v5995_v17 }
 0x401   :  { %5047 = vmatmul.msk.f32.gmra.mxu1 %vm457_vm10, %v5995_v17 }
 0x409   :  { %5048 = vmatmul.msk.f32.gmra.mxu1 %vm458_vm13, %v5995_v17 }
 0x411   :  { %5049 = vmatmul.msk.f32.gmra.mxu1 %vm459_vm1, %v5995_v17  ;;  %vm412_vm1 = vcmask 130048  }
 0x456   :  { %v1677_v30 = vpop.f32.mrf.mxu1 }
 0x45e   :  { %v1680_v56 = vpop.f32.mrf.mxu1 }
 0x466   :  { %v1683_v58 = vpop.f32.mrf.mxu1 }
 0x46e   :  { %v1686_v26 = vpop.f32.mrf.mxu1 }
 0x476   :  { %v1689_v21 = vpop.f32.mrf.mxu1 }
 0x47e   :  { %v1692_v3 = vpop.f32.mrf.mxu1 }
 0x486   :  { %v1695_v53 = vpop.f32.mrf.mxu1 }
 0x48e   :  { %v1698_v46 = vpop.f32.mrf.mxu1 }
 0x48f   :  { %1757 = vmatpush.msrb.mxu2 %v1698_v46 }
 0x491   :  { %1758 = vmatpush.msrb.mxu2 %v1695_v53 }
 0x493   :  { %1759 = vmatpush.msrb.mxu2 %v1692_v3 }
 0x495   :  { %1760 = vmatpush.msrb.mxu2 %v1689_v21 }
 0x497   :  { %1761 = vmatpush.msrb.mxu2 %v1686_v26 }
 0x499   :  { %1762 = vmatpush.msrb.mxu2 %v1683_v58 }
 0x49b   :  { %1763 = vmatpush.msrb.mxu2 %v1680_v56 }
 0x49d   :  { %1764 = vmatpush.msrb.mxu2 %v1677_v30 }
 0x49e   :  { %5050 = vmatmul.msk.f32.vlgmr.msrb.gmra.mxu2 %vm9538_vm9, %v6346_v59  ;;  %v9615_v59 = vld [vmem:[#allocation24_spill] sm:$0xff] }
 0x4a6   :  { %5051 = vmatmul.msk.f32.gmra.mxu2 %vm9538_vm9, %v6349_v60  ;;  %v9616_v60 = vld [vmem:[#allocation26_spill] sm:$0xff] }
 0x4ae   :  { %5052 = vmatmul.msk.f32.gmra.mxu2 %vm9538_vm9, %v6364_v27  ;;  %v9617_v27 = vld [vmem:[#allocation27_spill] sm:$0xff] }
 0x4b6   :  { %5053 = vmatmul.msk.f32.gmra.mxu2 %vm9538_vm9, %v6369_v41  ;;  %v97_v41 = vld [vmem:[%s9451_s8] sm:$0x1] }
 0x4be   :  { %5054 = vmatmul.msk.f32.gmra.mxu2 %vm9538_vm9, %v6384_v13  ;;  %v406_v13 = vcvt.s32.f32 %v97_v41 }
 0x4c6   :  { %5055 = vmatmul.msk.f32.gmra.mxu2 %vm9538_vm9, %v6387_v18  ;;  %v408_v18 = vperm.slane %v406_v13, 0 }
 0x4ce   :  { %5056 = vmatmul.msk.f32.gmra.mxu2 %vm9538_vm9, %v6404_v0 }
 0x4d6   :  { %5057 = vmatmul.msk.f32.gmra.mxu2 %vm9538_vm9, %v6407_v1  ;;  %v411_v1 = vsel %vm6116_vm2, %v408_v18, 0.0 }
 0x4d7   :  { %v416_v6 = vsel %vm412_vm1, %v411_v1, 0.0 }
 0x4d8   :  { %417 = vadd.xlane.f32.xlu0 %v416_v6 }
 0x4de   :  { %5058 = vmatmul.msk.f32.gmra.mxu2 %vm9538_vm9, %v6423_v55 }
 0x4e6   :  { %5059 = vmatmul.msk.f32.gmra.mxu2 %vm9538_vm9, %v6428_v8  ;;  %v410_v8 = vsel %vm6085_vm0, %v408_v18, 0.0 }
 0x4e7   :  { %v413_v5 = vsel %vm412_vm1, %v410_v8, 0.0 }
 0x4e8   :  { %414 = vadd.xlane.f32.xlu2 %v413_v5 }
 0x4ee   :  { %5060 = vmatmul.msk.f32.gmra.mxu2 %vm9538_vm9, %v6444_v62  ;;  %v9620_v62 = vld [vmem:[#allocation29_spill] sm:$0xff] }
 0x4f6   :  { %5061 = vmatmul.msk.f32.gmra.mxu2 %vm9538_vm9, %v9615_v59 }
 0x4fe   :  { %5062 = vmatmul.msk.f32.gmra.mxu2 %vm9538_vm9, %v9616_v60 }
 0x506   :  { %5063 = vmatmul.msk.f32.gmra.mxu2 %vm9538_vm9, %v9617_v27 }
 0x50e   :  { %5064 = vmatmul.msk.f32.gmra.mxu2 %vm9538_vm9, %v9620_v62 }
 0x516   :  { %5065 = vmatmul.msk.f32.gmra.mxu2 %vm9538_vm9, %v9621_v19 }
 0x521   :  { %v1766_v35 = vpop.f32.mrf.mxu2 }
 0x522   :  { %v7343_v1 = vadd.f32 1e-12, %v1766_v35 }
 0x529   :  { %v1769_v36 = vpop.f32.mrf.mxu2 }
 0x52a   :  { %v7325_v30 = vadd.f32 1e-12, %v1769_v36 }
 0x531   :  { %v1772_v61 = vpop.f32.mrf.mxu2 }
 0x532   :  { %v7327_v56 = vadd.f32 1e-12, %v1772_v61 }
 0x539   :  { %v7313_v50 = vpop.f32.mrf.mxu2 }
 0x541   :  { %v7315_v31 = vpop.f32.mrf.mxu2 }
 0x549   :  { %v7317_v7 = vpop.f32.mrf.mxu2 }
 0x551   :  { %v7319_v42 = vpop.f32.mrf.mxu2 }
 0x559   :  { %v1787_v49 = vpop.f32.mrf.mxu2 }
 0x55a   :  { %v7329_v58 = vadd.f32 1e-12, %v1787_v49 }
 0x55b   :  { %v415_v35 = vpop.xlane.xlu2 %414 }
 0x55c   :  { %vm5654_vm10 = vcmp.lt.s32.totalorder %v415_v35, 0 }
 0x561   :  { %v7321_v54 = vpop.f32.mrf.mxu2 }
 0x569   :  { %v7323_v38 = vpop.f32.mrf.mxu2 }
 0x571   :  { %v1796_v44 = vpop.f32.mrf.mxu2 }
 0x572   :  { %v1797_v17 = vadd.f32 1e-12, %v1796_v44  ;;  %v418_v44 = vpop.xlane.xlu0 %417 }
 0x573   :  { %vm5659_vm13 = vcmp.lt.s32.totalorder %v418_v44, 0  ;;  %v5660_v36 = vceil.f32 %v418_v44  ;;  %v5661_v0 = vfloor.f32 %v418_v44 }
 0x574   :  { %5784 = vrcp.f32 %v1797_v17  ;;  %v1975_v59 = vand.u32 2147483648, %v1797_v17  ;;  %v1973_v41 = vand.u32 2147483647, %v1797_v17  ;;  %vm1969_vm11 = vweird.f32 %v1797_v17 }
 0x575   :  { %5786 = vrcp.f32 %v7325_v30  ;;  %v5662_v37 = vsel %vm5659_vm13, %v5660_v36, %v5661_v0  ;;  %vm1849_vm13 = vweird.f32 %v7327_v56 }
 0x576   :  { %5788 = vrcp.f32 %v7327_v56  ;;  %v1976_v19 = vor.u32 1.1754944e-38, %v1975_v59  ;;  %vm1974_vm3 = vcmp.eq.f32.partialorder %v1973_v41, 8.507059e+37  ;;  %v5655_v41 = vceil.f32 %v415_v35 }
 0x577   :  { %5790 = vrcp.f32 %v7329_v58  ;;  %v5663_v28 = vcvt.f32.s32 %v5662_v37 }
 0x579   :  { %v1799_v26 = vpop.f32.mrf.mxu2 }
 0x57a   :  { %v5785_v21 = vpop.eup %5784  ;;  %v7333_v3 = vadd.f32 1e-12, %v1799_v26 }
 0x57b   :  { %v1965_v53 = vmul.f32 %v5785_v21, %v1797_v17  ;;  %v7337_v60 = vpop.eup %5786  ;;  %vm1970_vm7 = vweird.f32 %v5785_v21 }
 0x57c   :  { %5792 = vrcp.f32 %v7333_v3  ;;  %v7339_v13 = vpop.eup %5788  ;;  %vm1971_vm5 = vmor %vm1969_vm11, %vm1970_vm7  ;;  %v7350_v61 = vmul.f32 %v7337_v60, %v7325_v30  ;;  %vm1984_vm11 = vweird.f32 %v7333_v3 }
 0x57d   :  { %v1966_v46 = vsub.f32 1.0, %v1965_v53  ;;  %v7341_v18 = vpop.eup %5790  ;;  %v1845_v17 = vmul.f32 %v7339_v13, %v7327_v56 }
 0x57e   :  { %v1920_v26 = vmul.f32 %v7341_v18, %v7329_v58 }
 0x57f   :  { %v1967_v27 = vmul.f32 %v5785_v21, %v1966_v46 }
 0x580   :  { %v1921_v48 = vsub.f32 1.0, %v1920_v26  ;;  %v9623_v26 = vmov 0.0  }
 0x581   :  { %v1802_v8 = vpop.f32.mrf.mxu2  ;;  %v1968_v62 = vadd.f32 %v5785_v21, %v1967_v27  ;;  %v1988_v27 = vand.u32 2147483647, %v7333_v3 }
 0x582   :  { %v5793_v6 = vpop.eup %5792  ;;  %v7345_v5 = vadd.f32 1e-12, %v1802_v8  ;;  %v5656_v8 = vfloor.f32 %v415_v35 }
 0x583   :  { %v1980_v49 = vmul.f32 %v5793_v6, %v7333_v3  ;;  %v1972_v2 = vsel %vm1971_vm5, %v5785_v21, %v1968_v62  ;;  %v1990_v21 = vand.u32 2147483648, %v7333_v3  ;;  %vm1985_vm7 = vweird.f32 %v5793_v6 }
 0x584   :  { %5794 = vrcp.f32 %v7345_v5  ;;  %v1977_v53 = vsel %vm1974_vm3, %v1976_v19, %v1972_v2  ;;  %v77_v19 = vld [vmem:[%s9452_s3] sm:$0xff]  ;;  %v7368_v2 = vadd.f32 1e-12, %v7321_v54  ;;  %vm1986_vm5 = vmor %vm1984_vm11, %vm1985_vm7  ;;  %vm1989_vm3 = vcmp.eq.f32.partialorder %v1988_v27, 8.507059e+37 }
 0x585   :  { %v1981_v46 = vsub.f32 1.0, %v1980_v49  ;;  %v1978_v59 = vmul.f32 %v7175_v51, %v1977_v53  ;;  %v78_v51 = vld [vmem:[%s9452_s3 + $0x8] sm:$0xff]  ;;  %v1846_v49 = vsub.f32 1.0, %v1845_v17  ;;  %v5657_v53 = vsel %vm5654_vm10, %v5655_v41, %v5656_v8  ;;  %v9622_v8 = vld [vmem:[#allocation2_spill] sm:$0xff] }
 0x586   :  { %v7370_v35 = vpack.c.bf16 %v78_v51, %v77_v19  ;;  %v5658_v55 = vcvt.f32.s32 %v5657_v53  ;;  %v1991_v17 = vor.u32 1.1754944e-38, %v1990_v21  ;;  %v7381_v3 = vadd.f32 1e-12, %v7319_v42 }
 0x587   :  { %2106 = vperm.xlu1 %5679, %v1978_v59   ;;  %v1982_v62 = vmul.f32 %v5793_v6, %v1981_v46  ;;  %v1847_v36 = vmul.f32 %v7339_v13, %v1846_v49  ;;  %v1922_v27 = vmul.f32 %v7341_v18, %v1921_v48  ;;  %vm723_vm7 = vcmp.eq.s32.totalorder %v9622_v8, %v5663_v28 }
 0x588   :  { %2181 = vmatpush.bf16.msra.mxu0 %v7370_v35  ;;  %vm722_vm10 = vcmp.eq.s32.totalorder %v9622_v8, %v5658_v55  ;;  %v1853_v55 = vand.u32 2147483647, %v7327_v56  ;;  %v4990_v19 = vsel %vm723_vm7, 1.0, %v9623_v26  ;;  %v1855_v51 = vand.u32 2147483648, %v7327_v56 }
 0x589   :  { %v1805_v59 = vpop.f32.mrf.mxu2  ;;  %v1983_v46 = vadd.f32 %v5793_v6, %v1982_v62  ;;  %v4989_v21 = vsel %vm722_vm10, 1.0, %v9623_v26  ;;  %v2003_v62 = vand.u32 2147483647, %v7345_v5  ;;  %v7403_v28 = vadd.f32 %v7339_v13, %v1847_v36 }
 0x58a   :  { %v5795_v12 = vpop.eup %5794  ;;  %v7374_v16 = vadd.f32 1e-12, %v1805_v59  ;;  %v7398_v48 = vpack.c.bf16 %v4990_v19, %v4989_v21  ;;  %vm1925_vm7 = vweird.f32 %v7341_v18 }
 0x58b   :  { %v1995_v54 = vmul.f32 %v5795_v12, %v7345_v5  ;;  %v1987_v41 = vsel %vm1986_vm5, %v5793_v6, %v1983_v46  ;;  %v2005_v6 = vand.u32 2147483648, %v7345_v5  ;;  %vm2000_vm11 = vweird.f32 %v5795_v12 }
 0x58c   :  { %5796 = vrcp.f32 %v7374_v16  ;;  %v1992_v0 = vsel %vm1989_vm3, %v1991_v17, %v1987_v41  ;;  %vm1850_vm5 = vweird.f32 %v7339_v13  ;;  %vm1999_vm3 = vweird.f32 %v7345_v5  ;;  %5068 = vmatmul.msk.bf16.vlgmr.msra.gmra.mxu0 %vm412_vm1, %v7398_v48 }
 0x58d   :  { %5798 = vrcp.f32 %v7368_v2  ;;  %v1996_v44 = vsub.f32 1.0, %v1995_v54  ;;  %v1993_v37 = vmul.f32 %v7164_v40, %v1992_v0  ;;  %v1831_v40 = vsub.f32 1.0, %v7350_v61  ;;  %vm2001_vm10 = vmor %vm1999_vm3, %vm2000_vm11 }
 0x58e   :  { %5800 = vrcp.f32 %v7381_v3  ;;  %v7406_v46 = vadd.f32 1e-12, %v7323_v38  ;;  %v2006_v17 = vor.u32 1.1754944e-38, %v2005_v6  ;;  %vm2004_vm9 = vcmp.eq.f32.partialorder %v2003_v62, 8.507059e+37 }
 0x58f   :  { %2111 = vperm.xlu2 %5680, %v1993_v37   ;;  %v1997_v42 = vmul.f32 %v5795_v12, %v1996_v44  ;;  %v1923_v0 = vadd.f32 %v7341_v18, %v1922_v27  ;;  %v7419_v38 = vadd.f32 1e-12, %v7315_v31  ;;  %v1930_v44 = vand.u32 2147483648, %v7329_v58 }
 0x590   :  { %vm1835_vm11 = vweird.f32 %v7337_v60  ;;  %vm1924_vm3 = vweird.f32 %v7329_v58  ;;  %v7428_v6 = vadd.f32 1e-12, %v7317_v7  ;;  %v2020_v27 = vand.u32 2147483648, %v7374_v16 }
 0x591   :  { %v1808_v49 = vpop.f32.mrf.mxu2  ;;  %v1998_v53 = vadd.f32 %v5795_v12, %v1997_v42 }
 0x592   :  { %v5797_v59 = vpop.eup %5796  ;;  %v7408_v61 = vadd.f32 1e-12, %v1808_v49  ;;  %v1931_v49 = vor.u32 1.1754944e-38, %v1930_v44 }
 0x593   :  { %v7414_v54 = vpop.eup %5798  ;;  %v2010_v5 = vmul.f32 %v5797_v59, %v7374_v16  ;;  %v2002_v41 = vsel %vm2001_vm10, %v5795_v12, %v1998_v53  ;;  %v1928_v12 = vand.u32 2147483647, %v7329_v58  ;;  %vm1834_vm10 = vweird.f32 %v7325_v30 }
 0x594   :  { %5802 = vrcp.f32 %v7408_v61  ;;  %v2007_v36 = vsel %vm2004_vm9, %v2006_v17, %v2002_v41  ;;  %v1935_v31 = vmul.f32 %v7414_v54, %v7368_v2  ;;  %vm7436_vm9 = vmor %vm1924_vm3, %vm1925_vm7  ;;  %vm2015_vm15 = vweird.f32 %v5797_v59 }
 0x595   :  { %v2011_v37 = vsub.f32 1.0, %v2010_v5  ;;  %v2008_v21 = vmul.f32 %v7161_v57, %v2007_v36  ;;  %5804 = vrcp.f32 %v7406_v46  ;;  %v7441_v57 = vpop.eup %5800  ;;  %v2018_v58 = vand.u32 2147483647, %v7374_v16  ;;  %vm7451_vm7 = vmor %vm1849_vm13, %vm1850_vm5 }
 0x596   :  { %v1927_v62 = vsel %vm7436_vm9, %v7341_v18, %v1923_v0  ;;  %v1852_v53 = vsel %vm7451_vm7, %v7339_v13, %v7403_v28  ;;  %vm7459_vm3 = vcmp.eq.f32.partialorder %v1853_v55, 8.507059e+37  ;;  %v1832_v18 = vmul.f32 %v7337_v60, %v1831_v40 }
 0x597   :  { %2116 = vperm.xlu0 %5681, %v2008_v21   ;;  %v2012_v7 = vmul.f32 %v5797_v59, %v2011_v37  ;;  %5806 = vrcp.f32 %v7419_v38  ;;  %vm2014_vm13 = vweird.f32 %v7374_v16  ;;  %vm1929_vm5 = vcmp.eq.f32.partialorder %v1928_v12, 8.507059e+37 }
 0x598   :  { %v1936_v36 = vsub.f32 1.0, %v1935_v31  ;;  %vm2016_vm9 = vmor %vm2014_vm13, %vm2015_vm15  ;;  %v2021_v13 = vor.u32 1.1754944e-38, %v2020_v27  ;;  %v1932_v55 = vsel %vm1929_vm5, %v1931_v49, %v1927_v62  ;;  %5808 = vrcp.f32 %v7428_v6 }
 0x599   :  { %v1811_v5 = vpop.f32.mrf.mxu2  ;;  %v2013_v41 = vadd.f32 %v5797_v59, %v2012_v7  ;;  %vm2019_vm7 = vcmp.eq.f32.partialorder %v2018_v58, 8.507059e+37  ;;  %v1856_v21 = vor.u32 1.1754944e-38, %v1855_v51  ;;  %v1833_v12 = vadd.f32 %v7337_v60, %v1832_v18  ;;  %vm7497_vm13 = vmor %vm1834_vm10, %vm1835_vm11 }
 0x59a   :  { %v5803_v0 = vpop.eup %5802  ;;  %v7466_v44 = vadd.f32 1e-12, %v1811_v5  ;;  %v7478_v31 = vadd.f32 1e-12, %v7313_v50  ;;  %v1933_v7 = vmul.f32 %v7202_v34, %v1932_v55  ;;  %v2035_v58 = vand.u32 2147483648, %v7408_v61 }
 0x59b   :  { %v2025_v28 = vmul.f32 %v5803_v0, %v7408_v61  ;;  %v2017_v40 = vsel %vm2016_vm9, %v5797_v59, %v2013_v41  ;;  %v7471_v37 = vpop.eup %5804  ;;  %v1905_v59 = vmul.f32 %v7441_v57, %v7381_v3  ;;  %v1857_v62 = vsel %vm7459_vm3, %v1856_v21, %v1852_v53 }
 0x59c   :  { %5810 = vrcp.f32 %v7466_v44  ;;  %v2022_v16 = vsel %vm2019_vm7, %v2021_v13, %v2017_v40  ;;  %v1937_v56 = vmul.f32 %v7414_v54, %v1936_v36  ;;  %v1950_v50 = vmul.f32 %v7471_v37, %v7406_v46 }
 0x59d   :  { %v2026_v27 = vsub.f32 1.0, %v2025_v28  ;;  %v2023_v42 = vmul.f32 %v7148_v25, %v2022_v16  ;;  %v7488_v51 = vpop.eup %5806  ;;  %vm2030_vm15 = vweird.f32 %v5803_v0  ;;  %v2033_v34 = vand.u32 2147483647, %v7408_v61 }
 0x59e   :  { %5812 = vrcp.f32 %v7343_v1  ;;  %v1837_v49 = vsel %vm7497_vm13, %v7337_v60, %v1833_v12  ;;  %v9632_v53 = vand.u32 2147483647, %v7325_v30  ;;  %v1840_v18 = vand.u32 2147483648, %v7325_v30  ;;  %v7512_v5 = vpop.eup %5808 }
 0x59f   :  { %2121 = vperm.xlu2 %5680, %v2023_v42   ;;  %2091 = vperm.xlu0 %5681, %v1933_v7   ;;  %v2027_v25 = vmul.f32 %v5803_v0, %v2026_v27  ;;  %5814 = vrcp.f32 %v7478_v31  ;;  %vm2029_vm11 = vweird.f32 %v7408_v61  ;;  %v1858_v36 = vmul.f32 %v7225_v15, %v1857_v62 }
 0x5a0   :  { %vm7507_vm3 = vcmp.eq.f32.partialorder %v9632_v53, 8.507059e+37  ;;  %v1906_v55 = vsub.f32 1.0, %v1905_v59  ;;  %vm2031_vm10 = vmor %vm2029_vm11, %vm2030_vm15  ;;  %v2036_v60 = vor.u32 1.1754944e-38, %v2035_v58  ;;  %v1938_v28 = vadd.f32 %v7414_v54, %v1937_v56 }
 0x5a1   :  { %v2028_v41 = vadd.f32 %v5803_v0, %v2027_v25  ;;  %vm1940_vm5 = vweird.f32 %v7414_v54  ;;  %v1951_v40 = vsub.f32 1.0, %v1950_v50  ;;  %vm2034_vm9 = vcmp.eq.f32.partialorder %v2033_v34, 8.507059e+37 }
 0x5a2   :  { %v5811_v13 = vpop.eup %5810  ;;  %v1875_v21 = vmul.f32 %v7488_v51, %v7419_v38  ;;  %vm1939_vm7 = vweird.f32 %v7368_v2  ;;  %v1945_v15 = vand.u32 2147483648, %v7368_v2  ;;  %v1890_v61 = vmul.f32 %v7512_v5, %v7428_v6 }
 0x5a3   :  { %v2040_v30 = vmul.f32 %v5811_v13, %v7466_v44  ;;  %v2032_v16 = vsel %vm2031_vm10, %v5803_v0, %v2028_v41  ;;  %vm7527_vm15 = vmor %vm1939_vm7, %vm1940_vm5  ;;  %v1943_v0 = vand.u32 2147483647, %v7368_v2  ;;  %v2050_v58 = vand.u32 2147483648, %v7466_v44 }
 0x5a4   :  { %v2037_v12 = vsel %vm2034_vm9, %v2036_v60, %v2032_v16  ;;  %v7532_v59 = vpop.eup %5812  ;;  %v1942_v62 = vsel %vm7527_vm15, %v7414_v54, %v1938_v28  ;;  %v1841_v56 = vor.u32 1.1754944e-38, %v1840_v18  ;;  %v1907_v50 = vmul.f32 %v7441_v57, %v1906_v55 }
 0x5a5   :  { %v2041_v27 = vsub.f32 1.0, %v2040_v30  ;;  %v2038_v42 = vmul.f32 %v7138_v63, %v2037_v12  ;;  %v7539_v25 = vpop.eup %5814  ;;  %vm2045_vm13 = vweird.f32 %v5811_v13  ;;  %v2048_v34 = vand.u32 2147483647, %v7466_v44 }
 0x5a6   :  { %v1952_v2 = vmul.f32 %v7471_v37, %v1951_v40  ;;  %v1876_v19 = vsub.f32 1.0, %v1875_v21  ;;  %v1946_v53 = vor.u32 1.1754944e-38, %v1945_v15  ;;  %v1842_v41 = vsel %vm7507_vm3, %v1841_v56, %v1837_v49 }
 0x5a7   :  { %2126 = vperm.xlu1 %5679, %v2038_v42   ;;  %2066 = vperm.xlu0 %5681, %v1858_v36   ;;  %v2042_v63 = vmul.f32 %v5811_v13, %v2041_v27  ;;  %vm1909_vm11 = vweird.f32 %v7381_v3  ;;  %v1891_v54 = vsub.f32 1.0, %v1890_v61  ;;  %vm2044_vm10 = vweird.f32 %v7466_v44 }
 0x5a8   :  { %vm1944_vm5 = vcmp.eq.f32.partialorder %v1943_v0, 8.507059e+37  ;;  %vm2046_vm9 = vmor %vm2044_vm10, %vm2045_vm13  ;;  %v2051_v36 = vor.u32 1.1754944e-38, %v2050_v58  ;;  %v1908_v60 = vadd.f32 %v7441_v57, %v1907_v50  ;;  %vm1910_vm7 = vweird.f32 %v7441_v57 }
 0x5a9   :  { %v2043_v18 = vadd.f32 %v5811_v13, %v2042_v63  ;;  %v1947_v55 = vsel %vm1944_vm5, %v1946_v53, %v1942_v62  ;;  %vm2049_vm15 = vcmp.eq.f32.partialorder %v2048_v34, 8.507059e+37  ;;  %v1953_v40 = vadd.f32 %v7471_v37, %v1952_v2  ;;  %vm7560_vm10 = vmor %vm1909_vm11, %vm1910_vm7 }
 0x5aa   :  { %vm1955_vm3 = vweird.f32 %v7471_v37  ;;  %v1960_v17 = vand.u32 2147483648, %v7406_v46  ;;  %v1913_v30 = vand.u32 2147483647, %v7381_v3  ;;  %v1915_v44 = vand.u32 2147483648, %v7381_v3 }
 0x5ab   :  { %v2047_v28 = vsel %vm2046_vm9, %v5811_v13, %v2043_v18  ;;  %v1948_v21 = vmul.f32 %v7199_v43, %v1947_v55  ;;  %vm1954_vm13 = vweird.f32 %v7406_v46  ;;  %v1958_v13 = vand.u32 2147483647, %v7406_v46 }
 0x5ac   :  { %v2052_v49 = vsel %vm2049_vm15, %v2051_v36, %v2047_v28  ;;  %v1815_v15 = vmul.f32 %v7532_v59, %v7343_v1  ;;  %v1860_v61 = vmul.f32 %v7539_v25, %v7478_v31  ;;  %vm1956_vm5 = vmor %vm1954_vm13, %vm1955_vm3  ;;  %v1877_v43 = vmul.f32 %v7488_v51, %v1876_v19 }
 0x5ad   :  { %v2053_v16 = vmul.f32 %v7135_v23, %v2052_v49  ;;  %v1843_v23 = vmul.f32 %v7238_v52, %v1842_v41  ;;  %v1957_v46 = vsel %vm1956_vm5, %v7471_v37, %v1953_v40  ;;  %v1912_v3 = vsel %vm7560_vm10, %v7441_v57, %v1908_v60 }
 0x5ae   :  { %v1892_v27 = vmul.f32 %v7512_v5, %v1891_v54  ;;  %v1961_v42 = vor.u32 1.1754944e-38, %v1960_v17  ;;  %v1916_v7 = vor.u32 1.1754944e-38, %v1915_v44  ;;  %vm1959_vm11 = vcmp.eq.f32.partialorder %v1958_v13, 8.507059e+37 }
 0x5af   :  { %2131 = vperm.xlu2 %5680, %v2053_v16   ;;  %2096 = vperm.xlu1 %5679, %v1948_v21   ;;  %vm1914_vm9 = vcmp.eq.f32.partialorder %v1913_v30, 8.507059e+37  ;;  %v1816_v0 = vsub.f32 1.0, %v1815_v15  ;;  %vm1880_vm7 = vweird.f32 %v7488_v51  ;;  %v1861_v62 = vsub.f32 1.0, %v1860_v61  ;;  %v9639_v61 = vld [vmem:[#allocation46_spill] sm:$0xff] }
 0x5b0   :  { %2061 = vperm.xlu0 %5681, %v1843_v23   ;;  %v1962_v52 = vsel %vm1959_vm11, %v1961_v42, %v1957_v46  ;;  %v1917_v58 = vsel %vm1914_vm9, %v1916_v7, %v1912_v3  ;;  %v1893_v56 = vadd.f32 %v7512_v5, %v1892_v27  ;;  %vm1895_vm15 = vweird.f32 %v7512_v5  ;;  %v9641_v27 = vld [vmem:[#allocation44_spill] sm:$0xff] }
 0x5b1   :  { %v1878_v37 = vadd.f32 %v7488_v51, %v1877_v43  ;;  %v1900_v57 = vand.u32 2147483648, %v7428_v6  ;;  %vm1879_vm3 = vweird.f32 %v7419_v38  ;;  %v1883_v50 = vand.u32 2147483647, %v7419_v38  ;;  %v9640_v43 = vld [vmem:[#allocation47_spill] sm:$0xff] }
 0x5b2   :  { %v1885_v63 = vand.u32 2147483648, %v7419_v38  ;;  %v1963_v34 = vmul.f32 %v7195_v45, %v1962_v52  ;;  %v1918_v2 = vmul.f32 %v7205_v33, %v1917_v58  ;;  %vm1894_vm13 = vweird.f32 %v7428_v6  ;;  %vm1881_vm10 = vmor %vm1879_vm3, %vm1880_vm7 }
 0x5b3   :  { %v1898_v19 = vand.u32 2147483647, %v7428_v6  ;;  %vm1896_vm5 = vmor %vm1894_vm13, %vm1895_vm15  ;;  %v1817_v53 = vmul.f32 %v7532_v59, %v1816_v0  ;;  %v1882_v54 = vsel %vm1881_vm10, %v7488_v51, %v1878_v37  ;;  %v1862_v38 = vmul.f32 %v7539_v25, %v1861_v62  ;;  %v9642_v0 = vld [vmem:[#allocation45_spill] sm:$0xff]  ;;  %v9643_v62 = vld [vmem:[#allocation42_spill] sm:$0xff] }
 0x5b4   :  { %v1897_v41 = vsel %vm1896_vm5, %v7512_v5, %v1893_v56  ;;  %v1901_v18 = vor.u32 1.1754944e-38, %v1900_v57  ;;  %v1886_v45 = vor.u32 1.1754944e-38, %v1885_v63  ;;  %vm1884_vm9 = vcmp.eq.f32.partialorder %v1883_v50, 8.507059e+37  ;;  %v9644_v57 = vld [vmem:[#allocation43_spill] sm:$0xff] }
 0x5b5   :  { %vm1899_vm11 = vcmp.eq.f32.partialorder %v1898_v19, 8.507059e+37  ;;  %vm1820_vm14 = vweird.f32 %v7532_v59  ;;  %v1863_v6 = vadd.f32 %v7539_v25, %v1862_v38  ;;  %vm1865_vm7 = vweird.f32 %v7539_v25 }
 0x5b6   :  { %v1902_v33 = vsel %vm1899_vm11, %v1901_v18, %v1897_v41  ;;  %v1887_v36 = vsel %vm1884_vm9, %v1886_v45, %v1882_v54  ;;  %v1818_v55 = vadd.f32 %v7532_v59, %v1817_v53  ;;  %v1870_v5 = vand.u32 2147483648, %v7478_v31  ;;  %v9646_v53 = vld [vmem:[#allocation41_spill] sm:$0xff]  ;;  %v9647_v45 = vld [vmem:[#allocation38_spill] sm:$0xff] }
 0x5b7   :  { %2101 = vperm.xlu2 %5680, %v1963_v34   ;;  %2086 = vperm.xlu1 %5679, %v1918_v2   ;;  %vm1819_vm15 = vweird.f32 %v7343_v1  ;;  %v1823_v51 = vand.u32 2147483647, %v7343_v1  ;;  %v1825_v60 = vand.u32 2147483648, %v7343_v1  ;;  %v1903_v28 = vmul.f32 %v7211_v32, %v1902_v33  ;;  %v9645_v2 = vld [vmem:[#allocation40_spill] sm:$0xff] }
 0x5b8   :  { %v1888_v40 = vmul.f32 %v7215_v9, %v1887_v36  ;;  %vm1864_vm3 = vweird.f32 %v7478_v31  ;;  %v1868_v49 = vand.u32 2147483647, %v7478_v31  ;;  %vm1821_vm13 = vmor %vm1819_vm15, %vm1820_vm14  ;;  %v1871_v44 = vor.u32 1.1754944e-38, %v1870_v5  ;;  %v2189_v31 = vld [vmem:[%s9453_s11 + $0x8] sm:$0xff] }
 0x5b9   :  { %vm1866_vm10 = vmor %vm1864_vm3, %vm1865_vm7  ;;  %v1822_v30 = vsel %vm1821_vm13, %v7532_v59, %v1818_v55  ;;  %v1826_v16 = vor.u32 1.1754944e-38, %v1825_v60  ;;  %vm1824_vm11 = vcmp.eq.f32.partialorder %v1823_v51, 8.507059e+37  ;;  %v2188_v59 = vld [vmem:[%s9453_s11] sm:$0xff]  ;;  %v9648_v36 = vld [vmem:[#allocation39_spill] sm:$0xff]  ;;  %vm9656_vm15 = vcmask 261120  }
 0x5ba   :  { %v1867_v17 = vsel %vm1866_vm10, %v7539_v25, %v1863_v6  ;;  %vm1869_vm5 = vcmp.eq.f32.partialorder %v1868_v49, 8.507059e+37  ;;  %v9650_v49 = vld [vmem:[#allocation37_spill] sm:$0xff]  ;;  %vm9657_vm3 = vmmov %vm9656_vm15 }
 0x5bb   :  { %v1872_v1 = vsel %vm1869_vm5, %v1871_v44, %v1867_v17  ;;  %v1827_v32 = vsel %vm1824_vm11, %v1826_v16, %v1822_v30  ;;  %v9651_v44 = vld [vmem:[#allocation35_spill] sm:$0xff]  ;;  %vm9658_vm13 = vmmov %vm9657_vm3 }
 0x5bc   :  { %v1873_v9 = vmul.f32 %v7218_v47, %v1872_v1  ;;  %v1828_v21 = vmul.f32 %v7241_v39, %v1827_v32  ;;  %v9652_v1 = vld [vmem:[#allocation34_spill] sm:$0xff]  ;;  %vm9659_vm10 = vmmov %vm9657_vm3 }
 0x5bd   :  { %vm9660_vm5 = vmmov %vm9657_vm3 }
 0x5bf   :  { %2081 = vperm.xlu1 %5679, %v1903_v28   ;;  %2076 = vperm.xlu2 %5680, %v1888_v40   ;;  %v9649_v28 = vld [vmem:[#allocation36_spill] sm:$0xff] }
 0x5c7   :  { %2071 = vperm.xlu2 %5680, %v1873_v9   ;;  %2056 = vperm.xlu1 %5679, %v1828_v21   ;;  %v5683_v21 = vld [vmem:[%s9444_s5] ss:$0 sm:$0xff] }
 0x5c8   :  { %vm577_vm14 = vcmp.eq.s32.totalorder %v6081_v4, %v5683_v21  ;;  %v5961_v21 = vld [vmem:[%s9449_s13] sm:$0xff] }
 0x5c9   :  { %vm5066_vm9 = vmpackc.low %vm577_vm14, %vm577_vm14 }
 0x5cf   :  { %2197 = vperm.xlu1 %5679, %v2189_v31   ;;  %2192 = vperm.xlu2 %5680, %v2188_v59  }
 0x5e9   :  { %v7613_v25 = vpop.permute.xlu2 %2111 }
 0x5ea   :  { %v2145_v50 = vmul.f32 %v7613_v25, %v9644_v57  ;;  %v5684_v57 = vld [vmem:[%s9454_s9] ss:$0 sm:$0xff] }
 0x5eb   :  { %vm737_vm7 = vcmp.eq.s32.totalorder %v6081_v4, %v5684_v57  ;;  %v5306_v57 = vld [vmem:[%s9448_s12 + $0x50] sm:$0xff] }
 0x5f9   :  { %v7615_v13 = vpop.permute.xlu2 %2121  ;;  %v7617_v12 = vpop.permute.xlu1 %2106 }
 0x5fa   :  { %v2147_v52 = vmul.f32 %v7615_v13, %v9642_v0  ;;  %v2144_v56 = vmul.f32 %v7617_v12, %v9643_v62 }
 0x5fc   :  { %v2155_v34 = vpack.c.bf16 %v2145_v50, %v2144_v56 }
 0x609   :  { %v7619_v47 = vpop.permute.xlu2 %2131  ;;  %v7621_v39 = vpop.permute.xlu0 %2116 }
 0x60a   :  { %v2149_v46 = vmul.f32 %v7619_v47, %v9640_v43  ;;  %v2146_v42 = vmul.f32 %v7621_v39, %v9641_v27  ;;  %v2183_v31 = vpop.f32.mrf.mxu0 }
 0x60c   :  { %v2156_v58 = vpack.c.bf16 %v2147_v52, %v2146_v42  ;;  %v9541_v52 = vmov 1.0|1.0  }
 0x611   :  { %v7631_v7 = vpop.permute.xlu2 %2101  ;;  %v7641_v63 = vpop.permute.xlu0 %2091 }
 0x612   :  { %v2143_v41 = vmul.f32 %v7631_v7, %v9646_v53  ;;  %v2141_v6 = vmul.f32 %v7641_v63, %v9648_v36  ;;  %v2185_v0 = vpop.f32.mrf.mxu0  ;;  %v5303_v53 = vld [vmem:[%s9448_s12 + $0x38] sm:$0xff]  ;;  %v5304_v36 = vld [vmem:[%s9448_s12 + $0x40] sm:$0xff] }
 0x613   :  { %2250 = vmatpush.bf16.msrb.mxu0 %v5303_v53 }
 0x619   :  { %v7623_v15 = vpop.permute.xlu1 %2126  ;;  %v7647_v54 = vpop.permute.xlu2 %2076 }
 0x61a   :  { %v2148_v23 = vmul.f32 %v7623_v15, %v9639_v61  ;;  %v7655_v5 = vpop.permute.xlu0 %2066  ;;  %v2138_v40 = vmul.f32 %v7647_v54, %v9649_v28 }
 0x61b   :  { %v2136_v32 = vmul.f32 %v7655_v5, %v9652_v1 }
 0x61c   :  { %v2157_v3 = vpack.c.bf16 %v2149_v46, %v2148_v23  ;;  %v9653_v23 = vld [vmem:[#allocation33_spill] sm:$0xff]  ;;  %v9654_v46 = vld [vmem:[#allocation32_spill] sm:$0xff] }
 0x61e   :  { %2158 = vmatpush.bf16.msrb.mxu3 %v2157_v3 }
 0x621   :  { %v7637_v37 = vpop.permute.xlu1 %2096  ;;  %v7657_v51 = vpop.permute.xlu2 %2071 }
 0x622   :  { %2159 = vmatpush.bf16.msrb.mxu3 %v2156_v58  ;;  %v2142_v19 = vmul.f32 %v7637_v37, %v9645_v2  ;;  %v2137_v16 = vmul.f32 %v7657_v51, %v9651_v44  ;;  %v7669_v9 = vpop.permute.xlu0 %2061 }
 0x623   :  { %v2135_v43 = vmul.f32 %v7669_v9, %v9653_v23 }
 0x624   :  { %v2154_v38 = vpack.c.bf16 %v2143_v41, %v2142_v19  ;;  %v2151_v59 = vpack.c.bf16 %v2137_v16, %v2136_v32  ;;  %v5301_v19 = vld [vmem:[%s9448_s12 + $0x28] sm:$0xff]  ;;  %v5300_v41 = vld [vmem:[%s9448_s12 + $0x20] sm:$0xff] }
 0x626   :  { %2160 = vmatpush.bf16.msrb.mxu3 %v2155_v34  ;;  %v4993_v34 = vsel %vm737_vm7, 1.0, %v9623_v26  ;;  %vm9661_vm7 = vmmov %vm9657_vm3 }
 0x627   :  { %v740_v2 = vpack.c.bf16 %v4993_v34, %v4993_v34 }
 0x629   :  { %v7649_v18 = vpop.permute.xlu1 %2086  ;;  %v2193_v42 = vpop.permute.xlu2 %2192 }
 0x62a   :  { %2161 = vmatpush.bf16.msrb.mxu3 %v2154_v38  ;;  %v2140_v33 = vmul.f32 %v7649_v18, %v9647_v45  ;;  %v2200_v62 = vmul.f32 %v2193_v42, %v2183_v31  ;;  %v9655_v38 = vld [vmem:[#allocation17_spill] sm:$0xff]  ;;  %v5302_v45 = vld [vmem:[%s9448_s12 + $0x30] sm:$0xff]  ;;  %v2317_v31 = vperm.slane %v5961_v21, 5 }
 0x62b   :  { %2251 = vmatpush.bf16.msrb.mxu0 %v5302_v45 }
 0x62c   :  { %v2153_v55 = vpack.c.bf16 %v2141_v6, %v2140_v33  ;;  %v5305_v33 = vld [vmem:[%s9448_s12 + $0x48] sm:$0xff] }
 0x62e   :  { %2162 = vmatpush.bf16.msrb.mxu3 %v2153_v55 }
 0x62f   :  { %2309 = vmatpush.bf16.msra.mxu0 %v5305_v33 }
 0x631   :  { %v7659_v60 = vpop.permute.xlu1 %2081 }
 0x632   :  { %v2139_v17 = vmul.f32 %v7659_v60, %v9650_v49 }
 0x633   :  { %2310 = vmatpush.bf16.msra.mxu0 %v5304_v36  ;;  %v2341_v36 = vperm.slane %v5961_v21, 6 }
 0x634   :  { %v2152_v30 = vpack.c.bf16 %v2139_v17, %v2138_v40 }
 0x636   :  { %2163 = vmatpush.bf16.msrb.mxu3 %v2152_v30 }
 0x639   :  { %v7674_v61 = vpop.permute.xlu1 %2056 }
 0x63a   :  { %v2134_v3 = vmul.f32 %v7674_v61, %v9654_v46  ;;  %2164 = vmatpush.bf16.msrb.mxu3 %v2151_v59 }
 0x63c   :  { %v2150_v27 = vpack.c.bf16 %v2135_v43, %v2134_v3 }
 0x63e   :  { %2165 = vmatpush.bf16.msrb.mxu3 %v2150_v27 }
 0x641   :  { %5067 = vmatmul.msk.bf16.vlgmr.msrb.gmra.mxu3 %vm5066_vm9, %v9541_v52  ;;  %v2198_v58 = vpop.permute.xlu1 %2197 }
 0x642   :  { %v2201_v56 = vmul.f32 %v2198_v58, %v2185_v0 }
 0x644   :  { %v2202_v50 = vpack.c.bf16 %v2201_v56, %v2200_v62  ;;  %v5307_v56 = vld [vmem:[%s9448_s12 + $0x58] sm:$0xff] }
 0x646   :  { %2213 = vmatpush.bf16.msra.mxu3 %v2202_v50 }
 0x64a   :  { %2277 = vmatpush.bf16.msrb.mxu3 %v5301_v19 }
 0x64e   :  { %2278 = vmatpush.bf16.msrb.mxu3 %v5300_v41 }
 0x651   :  { %5069 = vmatmul.msk.bf16.vlgmr.msra.gmra.mxu3 %vm412_vm1, %v740_v2 }
 0x652   :  { %2373 = vmatpush.bf16.msra.mxu3 %v5307_v56 }
 0x656   :  { %2374 = vmatpush.bf16.msra.mxu3 %v5306_v57 }
 0x661   :  { %5087 = vmatmul.msk.bf16.vlgmr.msrb.gmra.mxu3 %vm9656_vm15, %v9655_v38  ;;  %vm9662_vm15 = vmmov %vm9657_vm3 }
 0x6c4   :  { %v2167_v6 = vpop.f32.mrf.mxu3 }
 0x6c5   :  { %v2220_v17 = vpack.c.bf16 %v2167_v6, %v2167_v6 }
 0x6cc   :  { %v2169_v55 = vpop.f32.mrf.mxu3 }
 0x6d4   :  { %v2215_v28 = vpop.f32.mrf.mxu3 }
 0x6d5   :  { %v2219_v40 = vpack.c.bf16 %v2215_v28, %v2215_v28  ;;  %v2343_v28 = vperm.slane %v5961_v21, 7 }
 0x6d7   :  { %5078 = vmatmul.msk.bf16.vlgmr.msrb.gmra.mxu0 %vm9657_vm3, %v2219_v40 }
 0x6dc   :  { %v2217_v49 = vpop.f32.mrf.mxu3 }
 0x6e4   :  { %v2280_v30 = vpop.f32.mrf.mxu3 }
 0x6e7   :  { %5096 = vmatmul.msk.bf16.vlgmr.msra.gmra.mxu0 %vm9658_vm13, %v2220_v17 }
 0x6ec   :  { %v2282_v44 = vpop.f32.mrf.mxu3 }
 0x6ed   :  { %v7727_v44 = vld [vmem:[%s9449_s13 + $0x8] sm:$0xff] }
 0x754   :  { %v2253_v16 = vpop.f32.mrf.mxu0 }
 0x755   :  { %v2281_v32 = vadd.f32 %v2280_v30, %v2253_v16  ;;  %v2351_v16 = vperm.slane %v7727_v44, 0 }
 0x75c   :  { %v2255_v1 = vpop.f32.mrf.mxu0 }
 0x764   :  { %v2312_v59 = vpop.f32.mrf.mxu0 }
 0x765   :  { %v2316_v23 = vadd.f32 %v2312_v59, %v2281_v32 }
 0x767   :  { %v2318_v43 = vadd.f32 %v2317_v31, %v2316_v23 }
 0x769   :  { %v2319_v46 = vsel %vm9659_vm10, %v2318_v43, 0.0 }
 0x76a   :  { %2320 = vadd.xlane.f32.xlu0 %v2319_v46 }
 0x76c   :  { %v2314_v3 = vpop.f32.mrf.mxu0 }
 0x7dd   :  { %v2321_v27 = vpop.xlane.xlu0 %2320 }
 0x7de   :  { %v2322_v42 = vmul.f32 %v2321_v27, %v6682_v22 }
 0x7e0   :  { %v2323_v0 = vsub.f32 %v2318_v43, %v2322_v42 }
 0x7e2   :  { %v2324_v58 = vmul.f32 %v2323_v0, %v2323_v0 }
 0x7e4   :  { %v2325_v62 = vsel %vm9660_vm5, %v2324_v58, 0.0 }
 0x7e5   :  { %2326 = vadd.xlane.f32.xlu2 %v2325_v62 }
 0x858   :  { %v2327_v50 = vpop.xlane.xlu2 %2326 }
 0x859   :  { %v2328_v34 = vmul.f32 %v2327_v50, %v6682_v22 }
 0x85b   :  { %v2329_v2 = vadd.f32 1e-05, %v2328_v34 }
 0x85d   :  { %5816 = vrsqrt.f32 %v2329_v2  ;;  %vm2336_vm14 = vweird.f32 %v2329_v2 }
 0x863   :  { %v5817_v19 = vpop.eup %5816 }
 0x864   :  { %v2331_v53 = vmul.f32 %v5817_v19, %v2329_v2  ;;  %vm2337_vm11 = vweird.f32 %v5817_v19  ;;  %v2402_v2 = vperm.slane %v7727_v44, 1 }
 0x865   :  { %vm2338_vm9 = vmor %vm2336_vm14, %vm2337_vm11  ;;  %vm9664_vm14 = vcmask 1043456  }
 0x866   :  { %v2332_v41 = vmul.f32 %v5817_v19, %v2331_v53  ;;  %vm9663_vm11 = vmmov %vm9657_vm3 }
 0x868   :  { %v2333_v38 = vmul.f32 0.5, %v2332_v41  ;;  %v2404_v41 = vperm.slane %v7727_v44, 2 }
 0x86a   :  { %v2334_v45 = vsub.f32 1.5, %v2333_v38 }
 0x86c   :  { %v2335_v33 = vmul.f32 %v5817_v19, %v2334_v45 }
 0x86e   :  { %v2339_v6 = vsel %vm2338_vm9, %v5817_v19, %v2335_v33  ;;  %vm9666_vm9 = vcmask 64512  }
 0x86f   :  { %v2340_v55 = vmul.f32 %v2339_v6, %v2323_v0 }
 0x871   :  { %v2342_v40 = vmul.f32 %v2341_v36, %v2340_v55  ;;  %v5962_v36 = vld [vmem:[%s9447_s2] sm:$0xff] }
 0x873   :  { %v2344_v49 = vadd.f32 %v2343_v28, %v2342_v40  ;;  %v9665_v40 = vld [vmem:[#allocation19_spill] sm:$0xff] }
 0x875   :  { %v2345_v17 = vmax.f32 %v2344_v49, 0.0  ;;  %v9667_v49 = vld [vmem:[#allocation20_spill] sm:$0xff] }
 0x877   :  { %v2346_v30 = vpack.c.bf16 %v2345_v17, %v2345_v17  ;;  %v9669_v17 = vld [vmem:[#allocation21_spill] sm:$0xff] }
 0x879   :  { %5105 = vmatmul.msk.bf16.vlgmr.msra.gmra.mxu3 %vm9661_vm7, %v2346_v30  ;;  %vm9668_vm7 = vmmov %vm9666_vm9  ;;  %v9671_v30 = vld [vmem:[#allocation22_spill] sm:$0xff] }
 0x8fc   :  { %v2376_v1 = vpop.f32.mrf.mxu3 }
 0x8fd   :  { %v2377_v32 = vadd.f32 %v2376_v1, %v2351_v16  ;;  %v9673_v16 = vld [vmem:[#allocation23_spill] sm:$0xff]  ;;  %v9675_v1 = vld [vmem:[#allocation25_spill] sm:$0xff] }
 0x8ff   :  { %v2380_v31 = vsel %vm9662_vm15, %v2377_v32, 0.0  ;;  %vm9670_vm15 = vmmov %vm9668_vm7 }
 0x900   :  { %2381 = vadd.xlane.f32.xlu1 %v2380_v31  ;;  %v9679_v31 = vld [vmem:[#allocation31_spill] sm:$0xff] }
 0x904   :  { %v2378_v59 = vpop.f32.mrf.mxu3 }
 0x973   :  { %v2382_v21 = vpop.xlane.xlu1 %2381 }
 0x974   :  { %v2383_v23 = vmul.f32 %v2382_v21, %v6682_v22 }
 0x976   :  { %v2384_v43 = vsub.f32 %v2377_v32, %v2383_v23  ;;  %v9677_v32 = vld [vmem:[#allocation28_spill] sm:$0xff] }
 0x977   :  { %v74_v23 = vld [vmem:[%s9456_s1 + $0x70] sm:$0xff] }
 0x978   :  { %v2385_v46 = vmul.f32 %v2384_v43, %v2384_v43 }
 0x97a   :  { %v2386_v3 = vsel %vm9657_vm3, %v2385_v46, 0.0  ;;  %vm9672_vm3 = vmmov %vm9668_vm7 }
 0x97b   :  { %2387 = vadd.xlane.f32.xlu2 %v2386_v3 }
 0x9ee   :  { %v2388_v27 = vpop.xlane.xlu2 %2387 }
 0x9ef   :  { %v2389_v42 = vmul.f32 %v2388_v27, %v6682_v22  ;;  %v72_v27 = vld [vmem:[%s9456_s1 + $0x60] sm:$0xff] }
 0x9f1   :  { %v2390_v0 = vadd.f32 1e-05, %v2389_v42  ;;  %v73_v42 = vld [vmem:[%s9456_s1 + $0x68] sm:$0xff] }
 0x9f3   :  { %5818 = vrsqrt.f32 %v2390_v0  ;;  %vm2397_vm10 = vweird.f32 %v2390_v0 }
 0x9f9   :  { %v5819_v58 = vpop.eup %5818 }
 0x9fa   :  { %v2392_v62 = vmul.f32 %v5819_v58, %v2390_v0  ;;  %vm2398_vm13 = vweird.f32 %v5819_v58  ;;  %v70_v0 = vld [vmem:[%s9456_s1 + $0x50] sm:$0xff] }
 0x9fb   :  { %vm2399_vm5 = vmor %vm2397_vm10, %vm2398_vm13 }
 0x9fc   :  { %v2393_v56 = vmul.f32 %v5819_v58, %v2392_v62  ;;  %vm9674_vm13 = vmmov %vm9672_vm3  ;;  %v71_v62 = vld [vmem:[%s9456_s1 + $0x58] sm:$0xff] }
 0x9fd   :  { %vm9676_vm10 = vmmov %vm9672_vm3 }
 0x9fe   :  { %v2394_v57 = vmul.f32 0.5, %v2393_v56  ;;  %v7794_v56 = vpack.c.bf16 %v71_v62, %v70_v0 }
 0xa00   :  { %v2395_v50 = vsub.f32 1.5, %v2394_v57 }
 0xa02   :  { %v2396_v34 = vmul.f32 %v5819_v58, %v2395_v50  ;;  %v68_v50 = vld [vmem:[%s9456_s1 + $0x40] sm:$0xff] }
 0xa04   :  { %v2400_v19 = vsel %vm2399_vm5, %v5819_v58, %v2396_v34  ;;  %vm9678_vm5 = vmmov %vm9672_vm3  ;;  %v7788_v58 = vpack.c.bf16 %v73_v42, %v72_v27  ;;  %v69_v34 = vld [vmem:[%s9456_s1 + $0x48] sm:$0xff]  ;;  %v9681_v27 = vld [vmem:[#allocation5_spill] sm:$0xff] }
 0xa05   :  { %v2401_v53 = vmul.f32 %v2400_v19, %v2384_v43  ;;  %v75_v43 = vld [vmem:[%s9456_s1 + $0x78] sm:$0xff]  ;;  %v66_v19 = vld [vmem:[%s9456_s1 + $0x30] sm:$0xff] }
 0xa06   :  { %v7774_v46 = vpack.c.bf16 %v75_v43, %v74_v23 }
 0xa07   :  { %v2403_v38 = vmul.f32 %v2402_v2, %v2401_v53  ;;  %v7805_v2 = vpack.c.bf16 %v69_v34, %v68_v50  ;;  %v67_v53 = vld [vmem:[%s9456_s1 + $0x38] sm:$0xff] }
 0xa08   :  { %2514 = vmatpush.bf16.msrb.mxu3 %v7774_v46 }
 0xa09   :  { %v2405_v45 = vadd.f32 %v2404_v41, %v2403_v38  ;;  %v7814_v41 = vpack.c.bf16 %v67_v53, %v66_v19 }
 0xa0b   :  { %v2406_v33 = vmax.f32 %v2405_v45, 0.0  ;;  %v64_v45 = vld [vmem:[%s9456_s1 + $0x20] sm:$0xff] }
 0xa0c   :  { %2515 = vmatpush.bf16.msrb.mxu3 %v7788_v58 }
 0xa0d   :  { %v2407_v6 = vadd.f32 %v5962_v36, %v2406_v33  ;;  %v65_v33 = vld [vmem:[%s9456_s1 + $0x28] sm:$0xff]  ;;  %v62_v36 = vld [vmem:[%s9456_s1 + $0x10] sm:$0xff] }
 0xa0f   :  { %v2408_v55 = vpack.c.bf16 %v2407_v6, %v2407_v6  ;;  %4901 = vst.msk [vmem:[%s9455_s14 + $0xc0] sm:$0xff] %vm9663_vm11, %v2407_v6  ;;  %vm9680_vm11 = vmmov %vm9672_vm3  ;;  %v7828_v6 = vpack.c.bf16 %v65_v33, %v64_v45 }
 0xa10   :  { %2516 = vmatpush.bf16.msrb.mxu3 %v7794_v56 }
 0xa11   :  { %v7744_v28 = vsel %vm9664_vm14, %v2408_v55, 0  ;;  %v63_v55 = vld [vmem:[%s9456_s1 + $0x18] sm:$0xff] }
 0xa12   :  { %2419 = vmatpush.bf16.msrb.mxu0 %v7744_v28  ;;  %3243 = vmatpush.bf16.msra.mxu2 %v7744_v28 }
 0xa14   :  { %2517 = vmatpush.bf16.msrb.mxu3 %v7805_v2 }
 0xa15   :  { %5106 = vmatmul.msk.bf16.vlgmr.msrb.gmra.mxu0 %vm9666_vm9, %v9665_v40  ;;  %v7834_v40 = vpack.c.bf16 %v63_v55, %v62_v36 }
 0xa18   :  { %2518 = vmatpush.bf16.msrb.mxu3 %v7814_v41 }
 0xa1c   :  { %2519 = vmatpush.bf16.msrb.mxu3 %v7828_v6 }
 0xa20   :  { %2520 = vmatpush.bf16.msrb.mxu3 %v7834_v40 }
 0xa25   :  { %5107 = vmatmul.msk.bf16.gmra.mxu0 %vm9668_vm7, %v9667_v49 }
 0xa35   :  { %5108 = vmatmul.msk.bf16.gmra.mxu0 %vm9670_vm15, %v9669_v17  ;;  %v60_v17 = vld [vmem:[%s9456_s1] sm:$0xff] }
 0xa45   :  { %5109 = vmatmul.msk.bf16.gmra.mxu0 %vm9672_vm3, %v9671_v30  ;;  %v61_v30 = vld [vmem:[%s9456_s1 + $0x8] sm:$0xff] }
 0xa55   :  { %5110 = vmatmul.msk.bf16.gmra.mxu0 %vm9674_vm13, %v9673_v16  ;;  %v7843_v16 = vpack.c.bf16 %v61_v30, %v60_v17 }
 0xa57   :  { %2521 = vmatpush.bf16.msrb.mxu3 %v7843_v16 }
 0xa65   :  { %5111 = vmatmul.msk.bf16.gmra.mxu0 %vm9676_vm10, %v9675_v1  ;;  %v5685_v1 = vld [vmem:[%s9457_s7] ss:$0 sm:$0xff] }
 0xa66   :  { %vm694_vm14 = vcmp.eq.s32.totalorder %v6081_v4, %v5685_v1  ;;  %vm695_vm9 = vcmp.eq.s32.totalorder %v6097_v11, %v5685_v1  ;;  %vm696_vm15 = vcmp.eq.s32.totalorder %v6094_v10, %v5685_v1  ;;  %vm697_vm3 = vcmp.eq.s32.totalorder %v6108_v14, %v5685_v1 }
 0xa67   :  { %vm5122_vm7 = vmpackc.low %vm695_vm9, %vm694_vm14  ;;  %vm698_vm10 = vcmp.eq.s32.totalorder %v6133_v20, %v5685_v1  ;;  %vm700_vm14 = vcmp.eq.s32.totalorder %v6170_v29, %v5685_v1  ;;  %vm701_vm9 = vcmp.eq.s32.totalorder %v9681_v27, %v5685_v1 }
 0xa68   :  { %5123 = vmatmul.msk.bf16.vlgmr.msrb.gmra.mxu3 %vm5122_vm7, %v9541_v52  ;;  %vm5124_vm13 = vmpackc.low %vm697_vm3, %vm696_vm15 }
 0xa69   :  { %vm5128_vm7 = vmpackc.low %vm701_vm9, %vm700_vm14 }
 0xa75   :  { %5112 = vmatmul.msk.bf16.gmra.mxu0 %vm9678_vm5, %v9677_v32  ;;  %vm699_vm5 = vcmp.eq.s32.totalorder %v6150_v24, %v5685_v1 }
 0xa78   :  { %5125 = vmatmul.msk.bf16.gmra.mxu3 %vm5124_vm13, %v9541_v52 }
 0xa85   :  { %5113 = vmatmul.msk.bf16.gmra.mxu0 %vm9680_vm11, %v9679_v31  ;;  %vm5126_vm11 = vmpackc.low %vm699_vm5, %vm698_vm10 }
 0xa88   :  { %5127 = vmatmul.msk.bf16.gmra.mxu3 %vm5126_vm11, %v9541_v52 }
 0xa92   :  { %v7764_v59 = vpop.f32.mrf.mxu0 }
 0xa98   :  { %5129 = vmatmul.msk.bf16.gmra.mxu3 %vm5128_vm7, %v9541_v52  ;;  %vm9703_vm7 = vcmask 64512  }
 0xa9a   :  { %v7766_v21 = vpop.f32.mrf.mxu0 }
 0xaa2   :  { %v7777_v3 = vpop.f32.mrf.mxu0 }
 0xaaa   :  { %v7796_v57 = vpop.f32.mrf.mxu0 }
 0xab2   :  { %v7816_v38 = vpop.f32.mrf.mxu0 }
 0xaba   :  { %v2433_v49 = vpop.f32.mrf.mxu0 }
 0xac2   :  { %v2436_v32 = vpop.f32.mrf.mxu0 }
 0xaca   :  { %v2438_v31 = vpop.f32.mrf.mxu0 }
 0xad2   :  { %v2441_v23 = vpop.f32.mrf.mxu0 }
 0xad3   :  { %v2469_v52 = vmul.f32 %v2441_v23, %v7637_v37  ;;  %v2463_v37 = vmul.f32 %v7777_v3, %v7655_v5  ;;  %v5311_v5 = vld [vmem:[%s9448_s12 + $0x78] sm:$0xff] }
 0xada   :  { %v2443_v43 = vpop.f32.mrf.mxu0 }
 0xadb   :  { %v2470_v30 = vmul.f32 %v2443_v43, %v7631_v7 }
 0xae2   :  { %v2446_v4 = vpop.f32.mrf.mxu0 }
 0xae3   :  { %v2471_v17 = vmul.f32 %v2446_v4, %v7617_v12  ;;  %v2464_v12 = vmul.f32 %v7796_v57, %v7657_v51 }
 0xaea   :  { %v2448_v11 = vpop.f32.mrf.mxu0 }
 0xaeb   :  { %v2472_v36 = vmul.f32 %v2448_v11, %v7613_v25  ;;  %v2465_v25 = vmul.f32 %v7816_v38, %v7647_v54  ;;  %v9682_v54 = vmov 1.0|1.0   ;;  %v2523_v3 = vpop.f32.mrf.mxu3 }
 0xaed   :  { %v2482_v1 = vpack.c.bf16 %v2472_v36, %v2471_v17  ;;  %v9694_v17 = vld [vmem:[#allocation16_spill] sm:$0xff] }
 0xaf2   :  { %v2451_v42 = vpop.f32.mrf.mxu0 }
 0xaf3   :  { %v2473_v33 = vmul.f32 %v2451_v42, %v7621_v39  ;;  %v2466_v39 = vmul.f32 %v2433_v49, %v7659_v60  ;;  %v2461_v60 = vmul.f32 %v7764_v59, %v7674_v61  ;;  %v5309_v61 = vld [vmem:[%s9448_s12 + $0x68] sm:$0xff]  ;;  %v5308_v59 = vld [vmem:[%s9448_s12 + $0x60] sm:$0xff]  ;;  %v2525_v57 = vpop.f32.mrf.mxu3 }
 0xaf5   :  { %v2479_v7 = vpack.c.bf16 %v2466_v39, %v2465_v25  ;;  %v9700_v25 = vld [vmem:[#allocation14_spill] sm:$0xff] }
 0xafa   :  { %v2453_v0 = vpop.f32.mrf.mxu0 }
 0xafb   :  { %v2474_v53 = vmul.f32 %v2453_v0, %v7615_v13  ;;  %v2467_v13 = vmul.f32 %v2436_v32, %v7649_v18  ;;  %v2478_v18 = vpack.c.bf16 %v2464_v12, %v2463_v37  ;;  %v2528_v32 = vpop.f32.mrf.mxu3 }
 0xafd   :  { %v2483_v55 = vpack.c.bf16 %v2474_v53, %v2473_v33 }
 0xb02   :  { %v2456_v62 = vpop.f32.mrf.mxu0 }
 0xb03   :  { %v2475_v34 = vmul.f32 %v2456_v62, %v7623_v15  ;;  %v2481_v15 = vpack.c.bf16 %v2470_v30, %v2469_v52  ;;  %v2530_v23 = vpop.f32.mrf.mxu3 }
 0xb04   :  { %v2544_v4 = vpack.c.bf16 %v2530_v23, %v2528_v32 }
 0xb0a   :  { %v2458_v50 = vpop.f32.mrf.mxu0 }
 0xb0b   :  { %v2476_v19 = vmul.f32 %v2458_v50, %v7619_v47  ;;  %v2468_v47 = vmul.f32 %v2438_v31, %v7641_v63  ;;  %v2462_v63 = vmul.f32 %v7766_v21, %v7669_v9  ;;  %v5310_v9 = vld [vmem:[%s9448_s12 + $0x70] sm:$0xff]  ;;  %v2543_v31 = vpack.c.bf16 %v2525_v57, %v2523_v3  ;;  %v2533_v43 = vpop.f32.mrf.mxu3  ;;  %v5313_v50 = vld [vmem:[%s9448_s12 + $0x88] sm:$0xff] }
 0xb0c   :  { %2699 = vmatpush.bf16.msra.mxu3 %v5313_v50 }
 0xb0d   :  { %v2484_v45 = vpack.c.bf16 %v2476_v19, %v2475_v34  ;;  %v2480_v42 = vpack.c.bf16 %v2468_v47, %v2467_v13  ;;  %v2477_v52 = vpack.c.bf16 %v2462_v63, %v2461_v60  ;;  %v5312_v34 = vld [vmem:[%s9448_s12 + $0x80] sm:$0xff] }
 0xb0f   :  { %2485 = vmatpush.bf16.msra.mxu1 %v2484_v45  ;;  %v9691_v45 = vld [vmem:[#allocation18_spill] sm:$0xff] }
 0xb10   :  { %2700 = vmatpush.bf16.msra.mxu3 %v5312_v34 }
 0xb13   :  { %2486 = vmatpush.bf16.msra.mxu1 %v2483_v55  ;;  %v2535_v11 = vpop.f32.mrf.mxu3 }
 0xb14   :  { %v2545_v0 = vpack.c.bf16 %v2535_v11, %v2533_v43 }
 0xb17   :  { %2487 = vmatpush.bf16.msra.mxu1 %v2482_v1 }
 0xb1b   :  { %2488 = vmatpush.bf16.msra.mxu1 %v2481_v15  ;;  %v2538_v62 = vpop.f32.mrf.mxu3  ;;  %v9697_v15 = vld [vmem:[#allocation15_spill] sm:$0xff] }
 0xb1f   :  { %2489 = vmatpush.bf16.msra.mxu1 %v2480_v42 }
 0xb23   :  { %2490 = vmatpush.bf16.msra.mxu1 %v2479_v7 }
 0xb27   :  { %2491 = vmatpush.bf16.msra.mxu1 %v2478_v18 }
 0xb2b   :  { %2492 = vmatpush.bf16.msra.mxu1 %v2477_v52 }
 0xb2e   :  { %5115 = vmatmul.msk.bf16.vlgmr.msra.gmra.mxu1 %vm7184_vm6, %v9682_v54  ;;  %vm9687_vm6 = vcmask 261120  }
 0xb2f   :  { %2589 = vmatpush.bf16.msrb.mxu1 %v5311_v5 }
 0xb33   :  { %2590 = vmatpush.bf16.msrb.mxu1 %v5310_v9 }
 0xb37   :  { %2642 = vmatpush.bf16.msra.mxu1 %v5309_v61 }
 0xb3b   :  { %2643 = vmatpush.bf16.msra.mxu1 %v5308_v59  ;;  %v2730_v59 = vperm.slane %v7727_v44, 3 }
 0xb3e   :  { %5117 = vmatmul.msk.bf16.gmra.mxu1 %vm7233_vm8, %v9682_v54  ;;  %vm9688_vm8 = vmmov %vm9687_vm6 }
 0xb4e   :  { %5119 = vmatmul.msk.bf16.gmra.mxu1 %vm7254_vm12, %v9682_v54  ;;  %vm9689_vm12 = vmmov %vm9687_vm6 }
 0xb5e   :  { %5121 = vmatmul.msk.bf16.gmra.mxu1 %vm7268_vm4, %v9682_v54  ;;  %vm9690_vm4 = vmmov %vm9687_vm6 }
 0xb5f   :  { %vm9692_vm15 = vmmov %vm9690_vm4 }
 0xb60   :  { %vm9693_vm3 = vmmov %vm9690_vm4 }
 0xb61   :  { %vm9695_vm13 = vmmov %vm9693_vm3 }
 0xb62   :  { %vm9696_vm10 = vmmov %vm9693_vm3 }
 0xb63   :  { %vm9698_vm5 = vmmov %vm9693_vm3 }
 0xb64   :  { %vm9699_vm11 = vmmov %vm9693_vm3 }
 0xb65   :  { %vm9701_vm14 = vmmov %vm9693_vm3 }
 0xb66   :  { %vm9702_vm9 = vmmov %vm9693_vm3 }
 0xb6e   :  { %5138 = vmatmul.msk.bf16.vlgmr.msrb.gmra.mxu1 %vm9687_vm6, %v2543_v31  ;;  %vm9704_vm6 = vmmov %vm9693_vm3 }
 0xb6f   :  { %3226 = vmatpush.bf16.msrb.mxu1 %v7744_v28  ;;  %v2540_v28 = vpop.f32.mrf.mxu3 }
 0xb70   :  { %v2546_v19 = vpack.c.bf16 %v2540_v28, %v2538_v62 }
 0xb7e   :  { %5139 = vmatmul.msk.bf16.gmra.mxu1 %vm9688_vm8, %v2544_v4  ;;  %vm9705_vm8 = vmmov %vm9693_vm3 }
 0xb8e   :  { %5140 = vmatmul.msk.bf16.gmra.mxu1 %vm9689_vm12, %v2545_v0  ;;  %vm9706_vm12 = vmmov %vm9693_vm3 }
 0xb9e   :  { %5141 = vmatmul.msk.bf16.gmra.mxu1 %vm9690_vm4, %v2546_v19  ;;  %vm9707_vm4 = vmmov %vm9693_vm3 }
 0xbab   :  { %v2494_v53 = vpop.f32.mrf.mxu1 }
 0xbae   :  { %5150 = vmatmul.msk.bf16.vlgmr.msra.gmra.mxu1 %vm9692_vm15, %v9691_v45  ;;  %vm9708_vm15 = vmmov %vm9693_vm3 }
 0xbb3   :  { %v2496_v33 = vpop.f32.mrf.mxu1 }
 0xbb4   :  { %v2547_v36 = vpack.c.bf16 %v2496_v33, %v2494_v53 }
 0xbb6   :  { %5162 = vmatmul.msk.bf16.vlgmr.msra.gmra.mxu3 %vm9693_vm3, %v2547_v36 }
 0xbbb   :  { %v2499_v55 = vpop.f32.mrf.mxu1 }
 0xbbe   :  { %5151 = vmatmul.msk.bf16.gmra.mxu1 %vm9695_vm13, %v9694_v17  ;;  %vm9709_vm13 = vmmov %vm9693_vm3 }
 0xbc3   :  { %v2501_v30 = vpop.f32.mrf.mxu1 }
 0xbc4   :  { %v2548_v1 = vpack.c.bf16 %v2501_v30, %v2499_v55 }
 0xbc6   :  { %5163 = vmatmul.msk.bf16.gmra.mxu3 %vm9696_vm10, %v2548_v1  ;;  %vm9710_vm10 = vmmov %vm9693_vm3 }
 0xbcb   :  { %v2504_v47 = vpop.f32.mrf.mxu1 }
 0xbce   :  { %5152 = vmatmul.msk.bf16.gmra.mxu1 %vm9698_vm5, %v9697_v15  ;;  %vm9711_vm5 = vmmov %vm9693_vm3 }
 0xbd3   :  { %v2506_v13 = vpop.f32.mrf.mxu1 }
 0xbd4   :  { %v2549_v39 = vpack.c.bf16 %v2506_v13, %v2504_v47 }
 0xbd6   :  { %5164 = vmatmul.msk.bf16.gmra.mxu3 %vm9699_vm11, %v2549_v39  ;;  %vm9712_vm11 = vmmov %vm9693_vm3 }
 0xbdb   :  { %v2509_v42 = vpop.f32.mrf.mxu1 }
 0xbde   :  { %5153 = vmatmul.msk.bf16.gmra.mxu1 %vm9701_vm14, %v9700_v25  ;;  %vm9713_vm14 = vmmov %vm9693_vm3 }
 0xbe3   :  { %v2511_v12 = vpop.f32.mrf.mxu1 }
 0xbe4   :  { %v2550_v7 = vpack.c.bf16 %v2511_v12, %v2509_v42 }
 0xbe6   :  { %5165 = vmatmul.msk.bf16.gmra.mxu3 %vm9702_vm9, %v2550_v7  ;;  %vm9714_vm9 = vmmov %vm9693_vm3 }
 0xbeb   :  { %v2592_v37 = vpop.f32.mrf.mxu1 }
 0xbee   :  { %5178 = vmatmul.msk.bf16.vlgmr.msrb.gmra.mxu1 %vm9703_vm7, %v7398_v48  ;;  %vm9715_vm7 = vmmov %vm9693_vm3 }
 0xbf3   :  { %v2594_v63 = vpop.f32.mrf.mxu1 }
 0xbfb   :  { %v2597_v18 = vpop.f32.mrf.mxu1 }
 0xc03   :  { %v2599_v60 = vpop.f32.mrf.mxu1 }
 0xc0b   :  { %v2602_v52 = vpop.f32.mrf.mxu1 }
 0xc13   :  { %v2604_v54 = vpop.f32.mrf.mxu1 }
 0xc1b   :  { %v2607_v38 = vpop.f32.mrf.mxu1 }
 0xc23   :  { %v2609_v51 = vpop.f32.mrf.mxu1 }
 0xc2b   :  { %v2645_v5 = vpop.f32.mrf.mxu1 }
 0xc2c   :  { %v2646_v61 = vadd.f32 %v2645_v5, %v2592_v37 }
 0xc33   :  { %v2647_v9 = vpop.f32.mrf.mxu1 }
 0xc34   :  { %v2648_v48 = vadd.f32 %v2647_v9, %v2594_v63 }
 0xc39   :  { %v2702_v21 = vpop.f32.mrf.mxu3 }
 0xc3a   :  { %v2722_v3 = vadd.f32 %v2702_v21, %v2646_v61 }
 0xc3b   :  { %v2650_v49 = vpop.f32.mrf.mxu1 }
 0xc3c   :  { %v2731_v57 = vadd.f32 %v2730_v59, %v2722_v3  ;;  %v2651_v0 = vadd.f32 %v2650_v49, %v2597_v18 }
 0xc3e   :  { %v2739_v32 = vsel %vm9704_vm6, %v2731_v57, 0.0  ;;  %vm9716_vm6 = vmmov %vm9693_vm3 }
 0xc3f   :  { %2740 = vadd.xlane.f32.xlu0 %v2739_v32 }
 0xc41   :  { %v2704_v31 = vpop.f32.mrf.mxu3 }
 0xc42   :  { %v2723_v23 = vadd.f32 %v2704_v31, %v2648_v48 }
 0xc43   :  { %v2652_v11 = vpop.f32.mrf.mxu1 }
 0xc44   :  { %v2732_v43 = vadd.f32 %v2730_v59, %v2723_v23  ;;  %v2653_v19 = vadd.f32 %v2652_v11, %v2599_v60 }
 0xc46   :  { %v2742_v4 = vsel %vm9705_vm8, %v2732_v43, 0.0  ;;  %vm9718_vm8 = vmmov %vm9693_vm3 }
 0xc47   :  { %2743 = vadd.xlane.f32.xlu1 %v2742_v4 }
 0xc49   :  { %v2707_v62 = vpop.f32.mrf.mxu3 }
 0xc4a   :  { %v2724_v50 = vadd.f32 %v2707_v62, %v2651_v0 }
 0xc4b   :  { %v2655_v53 = vpop.f32.mrf.mxu1 }
 0xc4c   :  { %v2733_v34 = vadd.f32 %v2730_v59, %v2724_v50  ;;  %v2656_v17 = vadd.f32 %v2655_v53, %v2602_v52 }
 0xc4e   :  { %v2745_v28 = vsel %vm9706_vm12, %v2733_v34, 0.0 }
 0xc4f   :  { %2746 = vadd.xlane.f32.xlu2 %v2745_v28 }
 0xc51   :  { %v2709_v45 = vpop.f32.mrf.mxu3 }
 0xc52   :  { %v2725_v33 = vadd.f32 %v2709_v45, %v2653_v19 }
 0xc53   :  { %v2657_v47 = vpop.f32.mrf.mxu1 }
 0xc54   :  { %v2734_v36 = vadd.f32 %v2730_v59, %v2725_v33  ;;  %v2658_v39 = vadd.f32 %v2657_v47, %v2604_v54  ;;  %v98_v47 = vld [vmem:[%s9454_s9] sm:$0x1] }
 0xc56   :  { %v2748_v55 = vsel %vm9707_vm4, %v2734_v36, 0.0 }
 0xc57   :  { %2749 = vadd.xlane.f32.xlu0 %v2748_v55 }
 0xc59   :  { %v2712_v30 = vpop.f32.mrf.mxu3 }
 0xc5a   :  { %v2726_v1 = vadd.f32 %v2712_v30, %v2656_v17 }
 0xc5b   :  { %v2660_v7 = vpop.f32.mrf.mxu1 }
 0xc5c   :  { %v2735_v15 = vadd.f32 %v2730_v59, %v2726_v1  ;;  %v2661_v63 = vadd.f32 %v2660_v7, %v2607_v38 }
 0xc5e   :  { %v2751_v13 = vsel %vm9708_vm15, %v2735_v15, 0.0 }
 0xc5f   :  { %2752 = vadd.xlane.f32.xlu1 %v2751_v13 }
 0xc61   :  { %v2714_v42 = vpop.f32.mrf.mxu3 }
 0xc62   :  { %v2727_v25 = vadd.f32 %v2714_v42, %v2658_v39  ;;  %v421_v42 = vcvt.s32.f32 %v98_v47 }
 0xc63   :  { %v2662_v21 = vpop.f32.mrf.mxu1 }
 0xc64   :  { %v2736_v12 = vadd.f32 %v2730_v59, %v2727_v25  ;;  %v2663_v49 = vadd.f32 %v2662_v21, %v2609_v51  ;;  %v423_v7 = vperm.slane %v421_v42, 0 }
 0xc66   :  { %v2754_v37 = vsel %vm9693_vm3, %v2736_v12, 0.0 }
 0xc67   :  { %2755 = vadd.xlane.f32.xlu2 %v2754_v37 }
 0xc69   :  { %v2717_v18 = vpop.f32.mrf.mxu3 }
 0xc6a   :  { %v2728_v60 = vadd.f32 %v2717_v18, %v2661_v63 }
 0xc6c   :  { %v2737_v5 = vadd.f32 %v2730_v59, %v2728_v60 }
 0xc6e   :  { %v2757_v52 = vsel %vm9709_vm13, %v2737_v5, 0.0 }
 0xc6f   :  { %2758 = vadd.xlane.f32.xlu2 %v2757_v52  ;;  %v425_v52 = vsel %vm6085_vm0, %v423_v7, 0.0 }
 0xc71   :  { %v2719_v54 = vpop.f32.mrf.mxu3 }
 0xc72   :  { %v2729_v48 = vadd.f32 %v2719_v54, %v2663_v49  ;;  %v426_v49 = vsel %vm6116_vm2, %v423_v7, 0.0 }
 0xc74   :  { %v2738_v11 = vadd.f32 %v2730_v59, %v2729_v48 }
 0xc76   :  { %v2760_v51 = vsel %vm9712_vm11, %v2738_v11, 0.0 }
 0xcb2   :  { %v2741_v9 = vpop.xlane.xlu0 %2740 }
 0xcb3   :  { %v2763_v61 = vmul.f32 %v2741_v9, %v6682_v22 }
 0xcb5   :  { %v7940_v3 = vsub.f32 %v2731_v57, %v2763_v61 }
 0xcb7   :  { %v2779_v32 = vmul.f32 %v7940_v3, %v7940_v3 }
 0xcb9   :  { %v2787_v38 = vsel %vm9710_vm10, %v2779_v32, 0.0  ;;  %v430_v32 = vsel %vm412_vm1, %v426_v49, 0.0 }
 0xcba   :  { %v2744_v31 = vpop.xlane.xlu1 %2743  ;;  %2788 = vadd.xlane.f32.xlu0 %v2787_v38 }
 0xcbb   :  { %v2764_v23 = vmul.f32 %v2744_v31, %v6682_v22 }
 0xcbd   :  { %v7946_v4 = vsub.f32 %v2732_v43, %v2764_v23  ;;  %v5314_v23 = vld [vmem:[%s9448_s12 + $0x90] sm:$0xff] }
 0xcbf   :  { %v2780_v0 = vmul.f32 %v7946_v4, %v7946_v4 }
 0xcc1   :  { %v2790_v57 = vsel %vm9711_vm5, %v2780_v0, 0.0 }
 0xcc2   :  { %v2747_v62 = vpop.xlane.xlu2 %2746  ;;  %2791 = vadd.xlane.f32.xlu1 %v2790_v57  ;;  %2761 = vadd.xlane.f32.xlu0 %v2760_v51 }
 0xcc3   :  { %v2765_v50 = vmul.f32 %v2747_v62, %v6682_v22 }
 0xcc5   :  { %v7953_v28 = vsub.f32 %v2733_v34, %v2765_v50 }
 0xcc7   :  { %v2781_v19 = vmul.f32 %v7953_v28, %v7953_v28 }
 0xcc9   :  { %v2793_v43 = vsel %vm9713_vm14, %v2781_v19, 0.0 }
 0xcca   :  { %2794 = vadd.xlane.f32.xlu1 %v2793_v43  ;;  %v2750_v59 = vpop.xlane.xlu0 %2749 }
 0xccb   :  { %v2766_v53 = vmul.f32 %v2750_v59, %v6682_v22 }
 0xccd   :  { %v7959_v45 = vsub.f32 %v2734_v36, %v2766_v53 }
 0xccf   :  { %v2782_v33 = vmul.f32 %v7959_v45, %v7959_v45 }
 0xcd1   :  { %v2796_v55 = vsel %vm9714_vm9, %v2782_v33, 0.0 }
 0xcd2   :  { %v2753_v17 = vpop.xlane.xlu1 %2752  ;;  %2797 = vadd.xlane.f32.xlu2 %v2796_v55 }
 0xcd3   :  { %v2767_v34 = vmul.f32 %v2753_v17, %v6682_v22 }
 0xcd5   :  { %v7965_v30 = vsub.f32 %v2735_v15, %v2767_v34 }
 0xcd7   :  { %v2783_v1 = vmul.f32 %v7965_v30, %v7965_v30 }
 0xcd9   :  { %v2799_v36 = vsel %vm9715_vm7, %v2783_v1, 0.0 }
 0xcda   :  { %v2756_v13 = vpop.xlane.xlu2 %2755  ;;  %2800 = vadd.xlane.f32.xlu0 %v2799_v36 }
 0xcdb   :  { %v2768_v39 = vmul.f32 %v2756_v13, %v6682_v22 }
 0xcdd   :  { %v7974_v25 = vsub.f32 %v2736_v12, %v2768_v39  ;;  %v427_v12 = vsel %vm412_vm1, %v425_v52, 0.0  ;;  %vm9720_vm1 = vmmov %vm9693_vm3 }
 0xcde   :  { %vm9721_vm9 = vmmov %vm9720_vm1 }
 0xcdf   :  { %v2784_v15 = vmul.f32 %v7974_v25, %v7974_v25 }
 0xce1   :  { %v2802_v37 = vsel %vm9716_vm6, %v2784_v15, 0.0 }
 0xce2   :  { %2803 = vadd.xlane.f32.xlu1 %v2802_v37  ;;  %v2759_v63 = vpop.xlane.xlu2 %2758 }
 0xce3   :  { %v2769_v18 = vmul.f32 %v2759_v63, %v6682_v22  ;;  %v8007_v63 = vperm.slane %v7727_v44, 4 }
 0xce5   :  { %v7982_v9 = vsub.f32 %v2737_v5, %v2769_v18  ;;  %v5315_v5 = vld [vmem:[%s9448_s12 + $0x98] sm:$0xff] }
 0xce6   :  { %2980 = vmatpush.bf16.msra.mxu0 %v5315_v5 }
 0xce7   :  { %v2785_v61 = vmul.f32 %v7982_v9, %v7982_v9 }
 0xce9   :  { %v2805_v21 = vsel %vm9718_vm8, %v2785_v61, 0.0 }
 0xcea   :  { %2806 = vadd.xlane.f32.xlu2 %v2805_v21  ;;  %428 = vadd.xlane.f32.xlu1 %v427_v12 }
 0xceb   :  { %2981 = vmatpush.bf16.msra.mxu0 %v5314_v23 }
 0xcf2   :  { %431 = vadd.xlane.f32.xlu2 %v430_v32 }
 0xd2d   :  { %v2789_v48 = vpop.xlane.xlu0 %2788 }
 0xd2e   :  { %v2811_v38 = vmul.f32 %v2789_v48, %v6682_v22  ;;  %v8012_v48 = vperm.slane %v7727_v44, 5 }
 0xd30   :  { %v2819_v31 = vadd.f32 1e-05, %v2811_v38 }
 0xd32   :  { %5820 = vrsqrt.f32 %v2819_v31  ;;  %vm2833_vm4 = vweird.f32 %v2819_v31 }
 0xd35   :  { %v2792_v0 = vpop.xlane.xlu1 %2791  ;;  %v2762_v57 = vpop.xlane.xlu0 %2761 }
 0xd36   :  { %v2812_v51 = vmul.f32 %v2792_v0, %v6682_v22  ;;  %v2770_v62 = vmul.f32 %v2762_v57, %v6682_v22 }
 0xd38   :  { %v5821_v50 = vpop.eup %5820  ;;  %v2820_v19 = vadd.f32 1e-05, %v2812_v51  ;;  %v8000_v43 = vsub.f32 %v2738_v11, %v2770_v62 }
 0xd39   :  { %v2828_v59 = vmul.f32 %v5821_v50, %v2819_v31  ;;  %vm2834_vm12 = vweird.f32 %v5821_v50 }
 0xd3a   :  { %5822 = vrsqrt.f32 %v2820_v19  ;;  %v2786_v53 = vmul.f32 %v8000_v43, %v8000_v43  ;;  %vm2835_vm15 = vmor %vm2833_vm4, %vm2834_vm12  ;;  %vm2843_vm13 = vweird.f32 %v2820_v19 }
 0xd3b   :  { %v2829_v33 = vmul.f32 %v5821_v50, %v2828_v59 }
 0xd3c   :  { %v2808_v55 = vsel %vm9720_vm1, %v2786_v53, 0.0 }
 0xd3d   :  { %v2830_v17 = vmul.f32 0.5, %v2829_v33  ;;  %v2795_v34 = vpop.xlane.xlu1 %2794  ;;  %2809 = vadd.xlane.f32.xlu0 %v2808_v55 }
 0xd3e   :  { %v2813_v1 = vmul.f32 %v2795_v34, %v6682_v22 }
 0xd3f   :  { %v2831_v47 = vsub.f32 1.5, %v2830_v17 }
 0xd40   :  { %v5823_v36 = vpop.eup %5822  ;;  %v2821_v13 = vadd.f32 1e-05, %v2813_v1 }
 0xd41   :  { %v2832_v39 = vmul.f32 %v5821_v50, %v2831_v47  ;;  %v2838_v11 = vmul.f32 %v5823_v36, %v2820_v19  ;;  %vm2844_vm3 = vweird.f32 %v5823_v36 }
 0xd42   :  { %5824 = vrsqrt.f32 %v2821_v13  ;;  %vm2845_vm10 = vmor %vm2843_vm13, %vm2844_vm3  ;;  %vm2853_vm11 = vweird.f32 %v2821_v13 }
 0xd43   :  { %v2836_v42 = vsel %vm2835_vm15, %v5821_v50, %v2832_v39  ;;  %v2839_v15 = vmul.f32 %v5823_v36, %v2838_v11  ;;  %vm9722_vm13 = vmmov %vm9721_vm9 }
 0xd44   :  { %v2907_v18 = vmul.f32 %v2836_v42, %v7940_v3 }
 0xd45   :  { %v2840_v7 = vmul.f32 0.5, %v2839_v15  ;;  %v2798_v37 = vpop.xlane.xlu2 %2797 }
 0xd46   :  { %v2814_v52 = vmul.f32 %v2798_v37, %v6682_v22  ;;  %v2916_v38 = vmul.f32 %v8007_v63, %v2907_v18  ;;  %v5316_v37 = vld [vmem:[%s9448_s12 + $0xa0] sm:$0xff] }
 0xd47   :  { %v2841_v61 = vsub.f32 1.5, %v2840_v7 }
 0xd48   :  { %v5825_v12 = vpop.eup %5824  ;;  %v2822_v21 = vadd.f32 1e-05, %v2814_v52  ;;  %v2925_v57 = vadd.f32 %v8012_v48, %v2916_v38 }
 0xd49   :  { %v2842_v49 = vmul.f32 %v5823_v36, %v2841_v61  ;;  %v2848_v32 = vmul.f32 %v5825_v12, %v2821_v13  ;;  %vm2854_vm5 = vweird.f32 %v5825_v12  ;;  %v5317_v13 = vld [vmem:[%s9448_s12 + $0xa8] sm:$0xff] }
 0xd4a   :  { %5826 = vrsqrt.f32 %v2822_v21  ;;  %v2933_v55 = vmax.f32 %v2925_v57, 0.0  ;;  %vm2855_vm14 = vmor %vm2853_vm11, %vm2854_vm5  ;;  %3310 = vmatpush.bf16.msrb.mxu2 %v5317_v13  ;;  %vm2863_vm6 = vweird.f32 %v2822_v21 }
 0xd4b   :  { %v2846_v5 = vsel %vm2845_vm10, %v5823_v36, %v2842_v49  ;;  %v2849_v31 = vmul.f32 %v5825_v12, %v2848_v32 }
 0xd4c   :  { %v2908_v3 = vmul.f32 %v2846_v5, %v7946_v4 }
 0xd4d   :  { %v2850_v23 = vmul.f32 0.5, %v2849_v31  ;;  %v2801_v0 = vpop.xlane.xlu0 %2800 }
 0xd4e   :  { %v2917_v51 = vmul.f32 %v8007_v63, %v2908_v3  ;;  %v2815_v62 = vmul.f32 %v2801_v0, %v6682_v22  ;;  %3311 = vmatpush.bf16.msrb.mxu2 %v5316_v37 }
 0xd4f   :  { %v2851_v50 = vsub.f32 1.5, %v2850_v23 }
 0xd50   :  { %v5827_v44 = vpop.eup %5826  ;;  %v2926_v19 = vadd.f32 %v8012_v48, %v2917_v51  ;;  %v2823_v59 = vadd.f32 1e-05, %v2815_v62 }
 0xd51   :  { %v2852_v53 = vmul.f32 %v5825_v12, %v2851_v50  ;;  %v2858_v33 = vmul.f32 %v5827_v44, %v2822_v21  ;;  %vm2864_vm7 = vweird.f32 %v5827_v44 }
 0xd52   :  { %v2934_v17 = vmax.f32 %v2926_v19, 0.0  ;;  %5828 = vrsqrt.f32 %v2823_v59  ;;  %vm2865_vm8 = vmor %vm2863_vm6, %vm2864_vm7  ;;  %vm2873_vm4 = vweird.f32 %v2823_v59  ;;  %vm9723_vm7 = vcmask 64512  }
 0xd53   :  { %v2856_v4 = vsel %vm2855_vm14, %v5825_v12, %v2852_v53  ;;  %v2859_v34 = vmul.f32 %v5827_v44, %v2858_v33  ;;  %vm9724_vm6 = vmmov %vm9722_vm13 }
 0xd54   :  { %v2941_v1 = vpack.c.bf16 %v2934_v17, %v2933_v55  ;;  %v2909_v39 = vmul.f32 %v2856_v4, %v7953_v28 }
 0xd55   :  { %v2860_v47 = vmul.f32 0.5, %v2859_v34  ;;  %v2804_v36 = vpop.xlane.xlu1 %2803 }
 0xd56   :  { %v2816_v11 = vmul.f32 %v2804_v36, %v6682_v22  ;;  %5174 = vmatmul.msk.bf16.vlgmr.msra.gmra.mxu0 %vm9721_vm9, %v2941_v1  ;;  %v2918_v52 = vmul.f32 %v8007_v63, %v2909_v39 }
 0xd57   :  { %v2861_v42 = vsub.f32 1.5, %v2860_v47 }
 0xd58   :  { %v5829_v15 = vpop.eup %5828  ;;  %v2824_v7 = vadd.f32 1e-05, %v2816_v11  ;;  %v2927_v23 = vadd.f32 %v8012_v48, %v2918_v52 }
 0xd59   :  { %v2862_v18 = vmul.f32 %v5827_v44, %v2861_v42  ;;  %v2868_v28 = vmul.f32 %v5829_v15, %v2823_v59  ;;  %vm2874_vm12 = vweird.f32 %v5829_v15 }
 0xd5a   :  { %5830 = vrsqrt.f32 %v2824_v7  ;;  %vm2875_vm15 = vmor %vm2873_vm4, %vm2874_vm12  ;;  %vm2883_vm11 = vweird.f32 %v2824_v7 }
 0xd5b   :  { %v2866_v61 = vsel %vm2865_vm8, %v5827_v44, %v2862_v18  ;;  %v2869_v12 = vmul.f32 %v5829_v15, %v2868_v28  ;;  %v2935_v44 = vmax.f32 %v2927_v23, 0.0  ;;  %vm9725_vm8 = vmmov %vm9724_vm6 }
 0xd5c   :  { %v2910_v49 = vmul.f32 %v2866_v61, %v7959_v45 }
 0xd5d   :  { %v2870_v32 = vmul.f32 0.5, %v2869_v12  ;;  %v2807_v38 = vpop.xlane.xlu2 %2806  ;;  %v429_v5 = vpop.xlane.xlu1 %428 }
 0xd5e   :  { %v2919_v31 = vmul.f32 %v8007_v63, %v2910_v49  ;;  %vm5664_vm1 = vcmp.lt.s32.totalorder %v429_v5, 0  ;;  %v5665_v3 = vceil.f32 %v429_v5  ;;  %v5666_v0 = vfloor.f32 %v429_v5 }
 0xd5f   :  { %v2871_v21 = vsub.f32 1.5, %v2870_v32 }
 0xd60   :  { %v5831_v57 = vpop.eup %5830  ;;  %v2928_v51 = vadd.f32 %v8012_v48, %v2919_v31  ;;  %v5667_v45 = vsel %vm5664_vm1, %v5665_v3, %v5666_v0 }
 0xd61   :  { %v2872_v62 = vmul.f32 %v5829_v15, %v2871_v21  ;;  %v2878_v50 = vmul.f32 %v5831_v57, %v2824_v7  ;;  %v5668_v55 = vcvt.f32.s32 %v5667_v45  ;;  %vm2884_vm10 = vweird.f32 %v5831_v57  ;;  %v3228_v7 = vpop.f32.mrf.mxu1 }
 0xd62   :  { %v2936_v19 = vmax.f32 %v2928_v51, 0.0  ;;  %vm2885_vm14 = vmor %vm2883_vm11, %vm2884_vm10 }
 0xd63   :  { %v2876_v53 = vsel %vm2875_vm15, %v5829_v15, %v2872_v62  ;;  %v2879_v33 = vmul.f32 %v5831_v57, %v2878_v50  ;;  %vm729_vm5 = vcmp.eq.s32.totalorder %v9622_v8, %v5668_v55  ;;  %vm9726_vm10 = vmmov %vm9724_vm6 }
 0xd64   :  { %v2942_v17 = vpack.c.bf16 %v2936_v19, %v2935_v44  ;;  %v2911_v1 = vmul.f32 %v2876_v53, %v7965_v30  ;;  %v4991_v15 = vsel %vm729_vm5, 1.0, %v9623_v26  ;;  %vm9727_vm5 = vmmov %vm9724_vm6 }
 0xd65   :  { %v2880_v4 = vmul.f32 0.5, %v2879_v33  ;;  %v432_v34 = vpop.xlane.xlu2 %431  ;;  %vm9728_vm11 = vmmov %vm9727_vm5 }
 0xd66   :  { %vm5669_vm3 = vcmp.lt.s32.totalorder %v432_v34, 0  ;;  %v5670_v47 = vceil.f32 %v432_v34  ;;  %v5671_v36 = vfloor.f32 %v432_v34  ;;  %5175 = vmatmul.msk.bf16.gmra.mxu0 %vm9722_vm13, %v2942_v17  ;;  %v2920_v42 = vmul.f32 %v8007_v63, %v2911_v1 }
 0xd67   :  { %v2881_v39 = vsub.f32 1.5, %v2880_v4 }
 0xd68   :  { %v5672_v59 = vsel %vm5669_vm3, %v5670_v47, %v5671_v36  ;;  %v2929_v61 = vadd.f32 %v8012_v48, %v2920_v42 }
 0xd69   :  { %v2882_v11 = vmul.f32 %v5831_v57, %v2881_v39  ;;  %v5673_v13 = vcvt.f32.s32 %v5672_v59  ;;  %v3230_v31 = vpop.f32.mrf.mxu1 }
 0xd6a   :  { %v2937_v49 = vmax.f32 %v2929_v61, 0.0  ;;  %v3250_v3 = vpack.c.bf16 %v3230_v31, %v3228_v7  ;;  %v8074_v61 = vld [vmem:[%s9449_s13 + $0x8] sm:$0xff] }
 0xd6b   :  { %v2886_v37 = vsel %vm2885_vm14, %v5831_v57, %v2882_v11  ;;  %vm730_vm9 = vcmp.eq.s32.totalorder %v9622_v8, %v5673_v13  ;;  %v2949_v7 = vperm.slane %v8074_v61, 6  ;;  %vm9729_vm14 = vmmov %vm9727_vm5 }
 0xd6c   :  { %v2912_v30 = vmul.f32 %v2886_v37, %v7974_v25  ;;  %v4992_v18 = vsel %vm730_vm9, 1.0, %v9623_v26  ;;  %v2817_v25 = vmul.f32 %v2807_v38, %v6682_v22  ;;  %vm9730_vm9 = vmmov %vm9727_vm5 }
 0xd6d   :  { %v735_v28 = vpack.c.bf16 %v4992_v18, %v4991_v15 }
 0xd6e   :  { %v2921_v52 = vmul.f32 %v8007_v63, %v2912_v30  ;;  %v2825_v23 = vadd.f32 1e-05, %v2817_v25 }
 0xd6f   :  { %5179 = vmatmul.msk.bf16.vlgmr.msra.gmra.mxu2 %vm9723_vm7, %v735_v28  ;;  %vm9731_vm7 = vmmov %vm9727_vm5 }
 0xd70   :  { %v2930_v12 = vadd.f32 %v8012_v48, %v2921_v52  ;;  %5832 = vrsqrt.f32 %v2825_v23  ;;  %vm2893_vm12 = vweird.f32 %v2825_v23 }
 0xd72   :  { %v2938_v32 = vmax.f32 %v2930_v12, 0.0 }
 0xd74   :  { %v2943_v5 = vpack.c.bf16 %v2938_v32, %v2937_v49 }
 0xd76   :  { %5176 = vmatmul.msk.bf16.gmra.mxu0 %vm9724_vm6, %v2943_v5  ;;  %v5833_v21 = vpop.eup %5832  ;;  %vm9732_vm6 = vmmov %vm9727_vm5 }
 0xd77   :  { %v2888_v0 = vmul.f32 %v5833_v21, %v2825_v23  ;;  %vm2894_vm1 = vweird.f32 %v5833_v21 }
 0xd78   :  { %vm2895_vm4 = vmor %vm2893_vm12, %vm2894_vm1 }
 0xd79   :  { %v2889_v57 = vmul.f32 %v5833_v21, %v2888_v0  ;;  %vm9734_vm1 = vmmov %vm9727_vm5 }
 0xd7a   :  { %vm9735_vm12 = vmmov %vm9734_vm1 }
 0xd7b   :  { %v2890_v50 = vmul.f32 0.5, %v2889_v57 }
 0xd7d   :  { %v2891_v44 = vsub.f32 1.5, %v2890_v50 }
 0xd7f   :  { %5197 = vmatmul.msk.bf16.vlgmr.msrb.gmra.mxu2 %vm9725_vm8, %v3250_v3  ;;  %v2892_v19 = vmul.f32 %v5833_v21, %v2891_v44  ;;  %vm9733_vm8 = vmmov %vm9727_vm5 }
 0xd81   :  { %v2896_v55 = vsel %vm2895_vm4, %v5833_v21, %v2892_v19  ;;  %vm9736_vm4 = vmmov %vm9734_vm1 }
 0xd82   :  { %v2913_v4 = vmul.f32 %v2896_v55, %v7982_v9  ;;  %v5321_v9 = vld [vmem:[%s9448_s12 + $0xc8] sm:$0xff] }
 0xd83   :  { %3343 = vmatpush.bf16.msrb.mxu3 %v5321_v9  ;;  %v96_v9 = vld [vmem:[%s9457_s7] sm:$0x1] }
 0xd84   :  { %v2922_v47 = vmul.f32 %v8007_v63, %v2913_v4 }
 0xd86   :  { %v2931_v11 = vadd.f32 %v8012_v48, %v2922_v47 }
 0xd88   :  { %v2939_v42 = vmax.f32 %v2931_v11, 0.0 }
 0xdb0   :  { %v2810_v51 = vpop.xlane.xlu0 %2809 }
 0xdb1   :  { %v2818_v62 = vmul.f32 %v2810_v51, %v6682_v22 }
 0xdb3   :  { %v2826_v45 = vadd.f32 1e-05, %v2818_v62 }
 0xdb5   :  { %5834 = vrsqrt.f32 %v2826_v45  ;;  %vm2903_vm3 = vweird.f32 %v2826_v45 }
 0xdbb   :  { %v5835_v53 = vpop.eup %5834 }
 0xdbc   :  { %v2898_v33 = vmul.f32 %v5835_v53, %v2826_v45  ;;  %vm2904_vm15 = vweird.f32 %v5835_v53 }
 0xdbd   :  { %vm2905_vm13 = vmor %vm2903_vm3, %vm2904_vm15 }
 0xdbe   :  { %v2899_v38 = vmul.f32 %v5835_v53, %v2898_v33  ;;  %vm9737_vm15 = vmmov %vm9734_vm1 }
 0xdbf   :  { %vm9738_vm3 = vmmov %vm9734_vm1 }
 0xdc0   :  { %v2900_v17 = vmul.f32 0.5, %v2899_v38 }
 0xdc2   :  { %v2901_v34 = vsub.f32 1.5, %v2900_v17 }
 0xdc4   :  { %v2902_v1 = vmul.f32 %v5835_v53, %v2901_v34 }
 0xdc6   :  { %v2906_v36 = vsel %vm2905_vm13, %v5835_v53, %v2902_v1  ;;  %vm9739_vm13 = vmmov %vm9734_vm1 }
 0xdc7   :  { %v2914_v39 = vmul.f32 %v2906_v36, %v8000_v43  ;;  %v5319_v43 = vld [vmem:[%s9448_s12 + $0xb8] sm:$0xff] }
 0xdc8   :  { %3281 = vmatpush.bf16.msra.mxu1 %v5319_v43  ;;  %v338_v43 = vcvt.s32.f32 %v96_v9 }
 0xdc9   :  { %v2923_v59 = vmul.f32 %v8007_v63, %v2914_v39  ;;  %v5320_v63 = vld [vmem:[%s9448_s12 + $0xc0] sm:$0xff] }
 0xdca   :  { %3344 = vmatpush.bf16.msrb.mxu3 %v5320_v63 }
 0xdcb   :  { %v2932_v13 = vadd.f32 %v8012_v48, %v2923_v59  ;;  %v5318_v48 = vld [vmem:[%s9448_s12 + $0xb0] sm:$0xff] }
 0xdcc   :  { %3282 = vmatpush.bf16.msra.mxu1 %v5318_v48 }
 0xdcd   :  { %v2940_v15 = vmax.f32 %v2932_v13, 0.0  ;;  %5206 = vmatmul.msk.bf16.vlgmr.msrb.gmra.mxu3 %vm9727_vm5, %v7370_v35  ;;  %vm9741_vm5 = vmmov %vm9734_vm1 }
 0xdcf   :  { %v2944_v37 = vpack.c.bf16 %v2940_v15, %v2939_v42  ;;  %v95_v15 = vld [vmem:[%s9458_s6] sm:$0x1] }
 0xdd1   :  { %5177 = vmatmul.msk.bf16.gmra.mxu0 %vm9726_vm10, %v2944_v37  ;;  %v270_v37 = vcvt.s32.f32 %v95_v15  ;;  %vm9740_vm10 = vmmov %vm9734_vm1 }
 0xdd3   :  { %v2983_v30 = vpop.f32.mrf.mxu0 }
 0xdd4   :  { %v2984_v19 = vadd.f32 %v2983_v30, %v2949_v7  ;;  %v8104_v30 = vperm.slane %v270_v37, 0 }
 0xdd6   :  { %v3003_v55 = vsel %vm9735_vm12, %v2984_v19, 0.0  ;;  %v274_v48 = vsel %vm6085_vm0, %v8104_v30, 0.0 }
 0xddb   :  { %v2985_v18 = vpop.f32.mrf.mxu0 }
 0xddc   :  { %v2986_v38 = vadd.f32 %v2985_v18, %v2949_v7 }
 0xdde   :  { %v3006_v17 = vsel %vm9736_vm4, %v2986_v38, 0.0 }
 0xde3   :  { %v2988_v28 = vpop.f32.mrf.mxu0 }
 0xde4   :  { %v2989_v53 = vadd.f32 %v2988_v28, %v2949_v7 }
 0xde6   :  { %v3009_v33 = vsel %vm9734_vm1, %v2989_v53, 0.0 }
 0xdeb   :  { %v2990_v52 = vpop.f32.mrf.mxu0 }
 0xdec   :  { %v2991_v31 = vadd.f32 %v2990_v52, %v2949_v7  ;;  %v8112_v52 = vperm.slane %v338_v43, 0 }
 0xdee   :  { %v3012_v25 = vsel %vm9730_vm9, %v2991_v31, 0.0  ;;  %vm9744_vm9 = vmmov %vm9734_vm1  ;;  %v342_v54 = vsel %vm6085_vm0, %v8112_v52, 0.0  ;;  %vm9750_vm0 = vcmp.eq.s32.totalorder %v9622_v8, %v6108_v14 }
 0xdef   :  { %vm9751_vm12 = vmmov %vm9750_vm0 }
 0xdf0   :  { %v345_v60 = vsel %vm9751_vm12, %v8112_v52, 0.0 }
 0xdf2   :  { %v3245_v12 = vpop.f32.mrf.mxu2 }
 0xdf3   :  { %v2993_v49 = vpop.f32.mrf.mxu0 }
 0xdf4   :  { %v2994_v32 = vadd.f32 %v2993_v49, %v2949_v7 }
 0xdf6   :  { %v3015_v5 = vsel %vm9728_vm11, %v2994_v32, 0.0  ;;  %vm9742_vm11 = vcmp.eq.s32.totalorder %v9622_v8, %v6094_v10  ;;  %v277_v10 = vsel %vm9750_vm0, %v8104_v30, 0.0 }
 0xdf7   :  { %3016 = vadd.xlane.f32.xlu2 %v3015_v5  ;;  %v343_v5 = vsel %vm6116_vm2, %v8112_v52, 0.0 }
 0xdfa   :  { %v3247_v3 = vpop.f32.mrf.mxu2 }
 0xdfb   :  { %v3251_v35 = vpack.c.bf16 %v3247_v3, %v3245_v12  ;;  %v2995_v23 = vpop.f32.mrf.mxu0 }
 0xdfc   :  { %v2996_v51 = vadd.f32 %v2995_v23, %v2949_v7 }
 0xdfd   :  { %5188 = vmatmul.msk.bf16.vlgmr.msra.gmra.mxu1 %vm9729_vm14, %v3251_v35  ;;  %vm9743_vm14 = vmmov %vm9734_vm1 }
 0xdfe   :  { %v3018_v44 = vsel %vm9733_vm8, %v2996_v51, 0.0  ;;  %vm9747_vm8 = vcmp.eq.s32.totalorder %v9622_v8, %v6170_v29 }
 0xdff   :  { %3013 = vadd.xlane.f32.xlu2 %v3012_v25  ;;  %v280_v37 = vsel %vm9747_vm8, %v8104_v30, 0.0 }
 0xe4e   :  { %v2998_v21 = vpop.f32.mrf.mxu0 }
 0xe4f   :  { %v2999_v0 = vadd.f32 %v2998_v21, %v2949_v7 }
 0xe51   :  { %v3021_v57 = vsel %vm9731_vm7, %v2999_v0, 0.0  ;;  %vm9745_vm7 = vcmp.eq.s32.totalorder %v9622_v8, %v6150_v24 }
 0xe52   :  { %3022 = vadd.xlane.f32.xlu0 %v3021_v57 }
 0xe56   :  { %v3000_v62 = vpop.f32.mrf.mxu0 }
 0xe57   :  { %v3001_v50 = vadd.f32 %v3000_v62, %v2949_v7 }
 0xe59   :  { %v3024_v45 = vsel %vm9732_vm6, %v3001_v50, 0.0  ;;  %vm9746_vm6 = vmmov %vm9734_vm1  ;;  %vm9749_vm1 = vcmp.eq.s32.totalorder %v9622_v8, %v9681_v27 }
 0xe5a   :  { %3025 = vadd.xlane.f32.xlu1 %v3024_v45  ;;  %3019 = vadd.xlane.f32.xlu0 %v3018_v44 }
 0xe62   :  { %3010 = vadd.xlane.f32.xlu1 %v3009_v33  ;;  %3004 = vadd.xlane.f32.xlu0 %v3003_v55 }
 0xe6a   :  { %v3017_v4 = vpop.xlane.xlu2 %3016  ;;  %3007 = vadd.xlane.f32.xlu1 %v3006_v17 }
 0xe6b   :  { %v3031_v34 = vmul.f32 %v3017_v4, %v6682_v22 }
 0xe6d   :  { %v8087_v1 = vsub.f32 %v2994_v32, %v3031_v34 }
 0xe6f   :  { %v3047_v47 = vmul.f32 %v8087_v1, %v8087_v1 }
 0xe71   :  { %v3063_v36 = vsel %vm9737_vm15, %v3047_v47, 0.0 }
 0xe72   :  { %v3014_v39 = vpop.xlane.xlu2 %3013  ;;  %3064 = vadd.xlane.f32.xlu1 %v3063_v36 }
 0xe73   :  { %v3030_v59 = vmul.f32 %v3014_v39, %v6682_v22 }
 0xe75   :  { %v8093_v11 = vsub.f32 %v2991_v31, %v3030_v59 }
 0xe77   :  { %v3046_v13 = vmul.f32 %v8093_v11, %v8093_v11 }
 0xe79   :  { %v3060_v42 = vsel %vm9738_vm3, %v3046_v13, 0.0  ;;  %v275_v13 = vsel %vm6116_vm2, %v8104_v30, 0.0  ;;  %vm9748_vm2 = vmmov %vm9742_vm11 }
 0xe7a   :  { %3061 = vadd.xlane.f32.xlu1 %v3060_v42  ;;  %v276_v43 = vsel %vm9748_vm2, %v8104_v30, 0.0  ;;  %vm9756_vm2 = vmmov %vm9746_vm6 }
 0xe82   :  { %290 = vadd.xlane.f32.xlu1 %v274_v48 }
 0xe8a   :  { %360 = vadd.xlane.f32.xlu1 %v343_v5 }
 0xec5   :  { %v3023_v63 = vpop.xlane.xlu0 %3022 }
 0xec6   :  { %v3033_v18 = vmul.f32 %v3023_v63, %v6682_v22 }
 0xec8   :  { %v8110_v28 = vsub.f32 %v2999_v0, %v3033_v18 }
 0xeca   :  { %v3049_v7 = vmul.f32 %v8110_v28, %v8110_v28 }
 0xecc   :  { %v3069_v12 = vsel %vm9739_vm13, %v3049_v7, 0.0  ;;  %vm9752_vm13 = vcmp.eq.s32.totalorder %v9622_v8, %v6133_v20 }
 0xecd   :  { %v3026_v49 = vpop.xlane.xlu1 %3025  ;;  %3070 = vadd.xlane.f32.xlu2 %v3069_v12  ;;  %v3020_v32 = vpop.xlane.xlu0 %3019  ;;  %v349_v12 = vsel %vm9749_vm1, %v8112_v52, 0.0  ;;  %v278_v14 = vsel %vm9752_vm13, %v8104_v30, 0.0 }
 0xece   :  { %v3034_v31 = vmul.f32 %v3026_v49, %v6682_v22  ;;  %v3032_v3 = vmul.f32 %v3020_v32, %v6682_v22 }
 0xed0   :  { %v8122_v35 = vsub.f32 %v3001_v50, %v3034_v31  ;;  %v8124_v25 = vsub.f32 %v2996_v51, %v3032_v3  ;;  %v344_v51 = vsel %vm9742_vm11, %v8112_v52, 0.0 }
 0xed1   :  { %362 = vadd.xlane.f32.xlu1 %v344_v51 }
 0xed2   :  { %v3050_v23 = vmul.f32 %v8122_v35, %v8122_v35  ;;  %v3048_v21 = vmul.f32 %v8124_v25, %v8124_v25 }
 0xed4   :  { %v3072_v0 = vsel %vm9740_vm10, %v3050_v23, 0.0  ;;  %v3066_v57 = vsel %vm9741_vm5, %v3048_v21, 0.0  ;;  %vm9753_vm10 = vmmov %vm9752_vm13 }
 0xed5   :  { %v3011_v62 = vpop.xlane.xlu1 %3010  ;;  %3073 = vadd.xlane.f32.xlu0 %v3072_v0  ;;  %3067 = vadd.xlane.f32.xlu2 %v3066_v57  ;;  %v3005_v45 = vpop.xlane.xlu0 %3004  ;;  %v8187_v0 = vperm.slane %v8074_v61, 7  ;;  %v346_v57 = vsel %vm9753_vm10, %v8112_v52, 0.0 }
 0xed6   :  { %v3029_v50 = vmul.f32 %v3011_v62, %v6682_v22  ;;  %v3027_v44 = vmul.f32 %v3005_v45, %v6682_v22  ;;  %v3284_v62 = vpop.f32.mrf.mxu1  ;;  %v50_v45 = vld [vmem:[%s9449_s13 + $0x10] sm:$0xff] }
 0xed7   :  { %v8200_v61 = vperm.slane %v50_v45, 0 }
 0xed8   :  { %v8138_v33 = vsub.f32 %v2989_v53, %v3029_v50  ;;  %v8140_v55 = vsub.f32 %v2984_v19, %v3027_v44  ;;  %v279_v53 = vsel %vm9745_vm7, %v8104_v30, 0.0 }
 0xed9   :  { %300 = vadd.xlane.f32.xlu1 %v279_v53 }
 0xeda   :  { %v3045_v17 = vmul.f32 %v8138_v33, %v8138_v33  ;;  %v3043_v4 = vmul.f32 %v8140_v55, %v8140_v55 }
 0xedc   :  { %v3057_v34 = vsel %vm9743_vm14, %v3045_v17, 0.0  ;;  %v3051_v47 = vsel %vm9744_vm9, %v3043_v4, 0.0  ;;  %v3313_v17 = vpop.f32.mrf.mxu2  ;;  %vm9754_vm9 = vmmov %vm9745_vm7 }
 0xedd   :  { %v3008_v36 = vpop.xlane.xlu1 %3007  ;;  %3058 = vadd.xlane.f32.xlu0 %v3057_v34  ;;  %3052 = vadd.xlane.f32.xlu2 %v3051_v47  ;;  %v3346_v47 = vpop.f32.mrf.mxu3  ;;  %vm9755_vm7 = vmmov %vm9749_vm1 }
 0xede   :  { %v3028_v19 = vmul.f32 %v3008_v36, %v6682_v22  ;;  %v3314_v36 = vadd.f32 %v3313_v17, %v3284_v62  ;;  %vm9757_vm1 = vmmov %vm9756_vm2 }
 0xedf   :  { %vm9758_vm0 = vmmov %vm9757_vm1 }
 0xee0   :  { %v8153_v39 = vsub.f32 %v2986_v38, %v3028_v19 }
 0xee1   :  { %302 = vadd.xlane.f32.xlu1 %v280_v37  ;;  %v3353_v37 = vperm.slane %v50_v45, 1 }
 0xee2   :  { %v3044_v59 = vmul.f32 %v8153_v39, %v8153_v39 }
 0xee4   :  { %v3054_v42 = vsel %vm9746_vm6, %v3044_v59, 0.0  ;;  %v281_v59 = vsel %vm9755_vm7, %v8104_v30, 0.0  ;;  %v3315_v27 = vpop.f32.mrf.mxu2 }
 0xee5   :  { %v3065_v15 = vpop.xlane.xlu1 %3064  ;;  %3055 = vadd.xlane.f32.xlu0 %v3054_v42  ;;  %292 = vadd.xlane.f32.xlu2 %v275_v13 }
 0xee6   :  { %v3079_v38 = vmul.f32 %v3065_v15, %v6682_v22  ;;  %v3351_v15 = vadd.f32 %v3346_v47, %v3314_v36 }
 0xee8   :  { %v3087_v9 = vadd.f32 1e-05, %v3079_v38 }
 0xee9   :  { %372 = vadd.xlane.f32.xlu1 %v349_v12 }
 0xeea   :  { %5836 = vrsqrt.f32 %v3087_v9  ;;  %vm3137_vm15 = vweird.f32 %v3087_v9 }
 0xeed   :  { %v3062_v63 = vpop.xlane.xlu1 %3061  ;;  %358 = vadd.xlane.f32.xlu0 %v342_v54  ;;  %294 = vadd.xlane.f32.xlu2 %v276_v43  ;;  %v3286_v43 = vpop.f32.mrf.mxu1 }
 0xeee   :  { %v3078_v48 = vmul.f32 %v3062_v63, %v6682_v22  ;;  %v8225_v63 = vadd.f32 %v3353_v37, %v3351_v15 }
 0xef0   :  { %v5837_v18 = vpop.eup %5836  ;;  %v3086_v7 = vadd.f32 1e-05, %v3078_v48 }
 0xef1   :  { %v3132_v49 = vmul.f32 %v5837_v18, %v3087_v9  ;;  %vm3138_vm4 = vweird.f32 %v5837_v18  ;;  %v5964_v9 = vld [vmem:[%s9446_s0 + $0x20] sm:$0xff] }
 0xef2   :  { %5838 = vrsqrt.f32 %v3086_v7  ;;  %vm3139_vm3 = vmor %vm3137_vm15, %vm3138_vm4  ;;  %vm3127_vm11 = vweird.f32 %v3086_v7 }
 0xef3   :  { %v3133_v32 = vmul.f32 %v5837_v18, %v3132_v49 }
 0xef5   :  { %v3134_v5 = vmul.f32 0.5, %v3133_v32  ;;  %296 = vadd.xlane.f32.xlu0 %v277_v10  ;;  %364 = vadd.xlane.f32.xlu2 %v345_v60  ;;  %v3356_v10 = vsel %vm9756_vm2, %v8225_v63, 0.0  ;;  %v5965_v60 = vld [vmem:[%s9446_s0 + $0x18] sm:$0xff] }
 0xef7   :  { %v3135_v31 = vsub.f32 1.5, %v3134_v5 }
 0xef8   :  { %v5839_v3 = vpop.eup %5838 }
 0xef9   :  { %v3136_v23 = vmul.f32 %v5837_v18, %v3135_v31  ;;  %v3122_v21 = vmul.f32 %v5839_v3, %v3086_v7  ;;  %vm3128_vm5 = vweird.f32 %v5839_v3  ;;  %v348_v7 = vsel %vm9747_vm8, %v8112_v52, 0.0  ;;  %v9759_v31 = vld [vmem:[#allocation6_spill] sm:$0xff] }
 0xefa   :  { %vm3129_vm14 = vmor %vm3127_vm11, %vm3128_vm5  ;;  %vm9760_vm12 = vcmp.eq.s32.totalorder %v9622_v8, %v9759_v31 }
 0xefb   :  { %v3140_v51 = vsel %vm3139_vm3, %v5837_v18, %v3136_v23  ;;  %v3123_v50 = vmul.f32 %v5839_v3, %v3122_v21  ;;  %v3348_v18 = vpop.f32.mrf.mxu3  ;;  %v9761_v23 = vld [vmem:[#allocation7_spill] sm:$0xff]  ;;  %vm9764_vm3 = vmmov %vm9760_vm12 }
 0xefc   :  { %v3175_v44 = vmul.f32 %v3140_v51, %v8087_v1  ;;  %v347_v1 = vsel %vm9754_vm9, %v8112_v52, 0.0  ;;  %vm9762_vm4 = vcmp.eq.s32.totalorder %v9622_v8, %v9761_v23  ;;  %v350_v51 = vsel %vm9764_vm3, %v8112_v52, 0.0 }
 0xefd   :  { %v3124_v4 = vmul.f32 0.5, %v3123_v50  ;;  %298 = vadd.xlane.f32.xlu0 %v278_v14  ;;  %366 = vadd.xlane.f32.xlu2 %v346_v57  ;;  %v283_v21 = vsel %vm9762_vm4, %v8104_v30, 0.0  ;;  %vm9763_vm15 = vmmov %vm9762_vm4 }
 0xefe   :  { %v3184_v34 = vmul.f32 %v8187_v0, %v3175_v44  ;;  %v351_v45 = vsel %vm9763_vm15, %v8112_v52, 0.0 }
 0xeff   :  { %v3125_v20 = vsub.f32 1.5, %v3124_v4 }
 0xf00   :  { %v3193_v53 = vadd.f32 %v8200_v61, %v3184_v34 }
 0xf01   :  { %v3126_v19 = vmul.f32 %v5839_v3, %v3125_v20 }
 0xf02   :  { %v3201_v13 = vmax.f32 %v3193_v53, 0.0  ;;  %v9765_v53 = vld [vmem:[#allocation8_spill] sm:$0xff] }
 0xf03   :  { %v3130_v42 = vsel %vm3129_vm14, %v5839_v3, %v3126_v19  ;;  %v282_v3 = vsel %vm9760_vm12, %v8104_v30, 0.0  ;;  %vm9766_vm13 = vcmp.eq.s32.totalorder %v9622_v8, %v9765_v53 }
 0xf04   :  { %v3174_v38 = vmul.f32 %v3130_v42, %v8093_v11  ;;  %v8217_v54 = vadd.f32 %v5964_v9, %v3201_v13  ;;  %v3316_v11 = vadd.f32 %v3315_v27, %v3286_v43  ;;  %306 = vadd.xlane.f32.xlu1 %v282_v3  ;;  %v284_v19 = vsel %vm9766_vm13, %v8104_v30, 0.0  ;;  %vm9769_vm14 = vmmov %vm9766_vm13 }
 0xf05   :  { %368 = vadd.xlane.f32.xlu0 %v347_v1  ;;  %304 = vadd.xlane.f32.xlu2 %v281_v59  ;;  %v9767_v1 = vld [vmem:[#allocation9_spill] sm:$0xff] }
 0xf06   :  { %4881 = vst.msk [vmem:[%s9455_s14 + $0x20] sm:$0xff] %vm9746_vm6, %v8217_v54  ;;  %v3183_v24 = vmul.f32 %v8187_v0, %v3174_v38  ;;  %v3352_v49 = vadd.f32 %v3348_v18, %v3316_v11  ;;  %vm9768_vm10 = vcmp.eq.s32.totalorder %v9622_v8, %v9767_v1 }
 0xf07   :  { %v285_v59 = vsel %vm9768_vm10, %v8104_v30, 0.0  ;;  %vm9770_vm7 = vmmov %vm9768_vm10 }
 0xf08   :  { %v3192_v48 = vadd.f32 %v8200_v61, %v3183_v24  ;;  %v8244_v29 = vadd.f32 %v3353_v37, %v3352_v49  ;;  %v353_v3 = vsel %vm9770_vm7, %v8112_v52, 0.0 }
 0xf0a   :  { %v3200_v12 = vmax.f32 %v3192_v48, 0.0  ;;  %v3359_v5 = vsel %vm9758_vm0, %v8244_v29, 0.0 }
 0xf0c   :  { %v8237_v32 = vadd.f32 %v5965_v60, %v3200_v12  ;;  %376 = vadd.xlane.f32.xlu1 %v351_v45  ;;  %v352_v12 = vsel %vm9769_vm14, %v8112_v52, 0.0 }
 0xf0d   :  { %370 = vadd.xlane.f32.xlu0 %v348_v7  ;;  %3357 = vadd.xlane.f32.xlu2 %v3356_v10 }
 0xf0e   :  { %4880 = vst.msk [vmem:[%s9455_s14 + $0x18] sm:$0xff] %vm9757_vm1, %v8237_v32 }
 0xf14   :  { %378 = vadd.xlane.f32.xlu1 %v352_v12 }
 0xf15   :  { %3360 = vadd.xlane.f32.xlu0 %v3359_v5  ;;  %308 = vadd.xlane.f32.xlu2 %v283_v21 }
 0xf1d   :  { %374 = vadd.xlane.f32.xlu0 %v350_v51  ;;  %310 = vadd.xlane.f32.xlu2 %v284_v19  ;;  %v8299_v19 = vpop.xlane.xlu1 %290 }
 0xf25   :  { %312 = vadd.xlane.f32.xlu0 %v285_v59  ;;  %380 = vadd.xlane.f32.xlu2 %v353_v3 }
 0xf40   :  { %v3071_v14 = vpop.xlane.xlu2 %3070 }
 0xf41   :  { %v3081_v57 = vmul.f32 %v3071_v14, %v6682_v22 }
 0xf43   :  { %v3089_v62 = vadd.f32 1e-05, %v3081_v57 }
 0xf45   :  { %5840 = vrsqrt.f32 %v3089_v62  ;;  %vm3157_vm11 = vweird.f32 %v3089_v62 }
 0xf48   :  { %v3068_v50 = vpop.xlane.xlu2 %3067  ;;  %v3074_v44 = vpop.xlane.xlu0 %3073 }
 0xf49   :  { %v3080_v17 = vmul.f32 %v3068_v50, %v6682_v22  ;;  %v3082_v4 = vmul.f32 %v3074_v44, %v6682_v22 }
 0xf4b   :  { %v5841_v34 = vpop.eup %5840  ;;  %v3088_v47 = vadd.f32 1e-05, %v3080_v17  ;;  %v3090_v20 = vadd.f32 1e-05, %v3082_v4 }
 0xf4c   :  { %v3152_v36 = vmul.f32 %v5841_v34, %v3089_v62  ;;  %vm3158_vm5 = vweird.f32 %v5841_v34 }
 0xf4d   :  { %5842 = vrsqrt.f32 %v3088_v47  ;;  %vm3159_vm9 = vmor %vm3157_vm11, %vm3158_vm5  ;;  %vm3147_vm2 = vweird.f32 %v3088_v47  ;;  %vm3167_vm0 = vweird.f32 %v3090_v20  ;;  %vm9771_vm5 = vcmask 261120  }
 0xf4e   :  { %v3153_v13 = vmul.f32 %v5841_v34, %v3152_v36  ;;  %5844 = vrsqrt.f32 %v3090_v20 }
 0xf50   :  { %v3154_v42 = vmul.f32 0.5, %v3153_v13  ;;  %v3053_v15 = vpop.xlane.xlu2 %3052  ;;  %v3059_v37 = vpop.xlane.xlu0 %3058 }
 0xf51   :  { %v3075_v38 = vmul.f32 %v3053_v15, %v6682_v22  ;;  %v3077_v9 = vmul.f32 %v3059_v37, %v6682_v22 }
 0xf52   :  { %v3155_v43 = vsub.f32 1.5, %v3154_v42 }
 0xf53   :  { %v5843_v24 = vpop.eup %5842  ;;  %v8277_v27 = vadd.f32 1e-05, %v3075_v38  ;;  %v8279_v11 = vadd.f32 1e-05, %v3077_v9 }
 0xf54   :  { %v5845_v48 = vpop.eup %5844  ;;  %v3156_v18 = vmul.f32 %v5841_v34, %v3155_v43  ;;  %v3142_v7 = vmul.f32 %v5843_v24, %v3088_v47  ;;  %vm3148_vm6 = vweird.f32 %v5843_v24 }
 0xf55   :  { %v3162_v49 = vmul.f32 %v5845_v48, %v3090_v20  ;;  %5846 = vrsqrt.f32 %v8277_v27  ;;  %vm3168_vm8 = vweird.f32 %v5845_v48  ;;  %vm3149_vm1 = vmor %vm3147_vm2, %vm3148_vm6  ;;  %vm3097_vm3 = vweird.f32 %v8277_v27 }
 0xf56   :  { %v3160_v10 = vsel %vm3159_vm9, %v5841_v34, %v3156_v18  ;;  %v3143_v60 = vmul.f32 %v5843_v24, %v3142_v7  ;;  %5848 = vrsqrt.f32 %v8279_v11  ;;  %vm3169_vm12 = vmor %vm3167_vm0, %vm3168_vm8  ;;  %vm3117_vm10 = vweird.f32 %v8279_v11 }
 0xf57   :  { %v3177_v5 = vmul.f32 %v3160_v10, %v8110_v28  ;;  %v3163_v31 = vmul.f32 %v5845_v48, %v3162_v49  ;;  %vm5494_vm9 = vcmp.lt.s32.totalorder %v8299_v19, 0  ;;  %vm9774_vm6 = vmmov %vm9771_vm5 }
 0xf58   :  { %v3144_v23 = vmul.f32 0.5, %v3143_v60  ;;  %v8292_v21 = vpop.xlane.xlu2 %292  ;;  %v3056_v14 = vpop.xlane.xlu0 %3055 }
 0xf59   :  { %v3186_v57 = vmul.f32 %v8187_v0, %v3177_v5  ;;  %v3164_v62 = vmul.f32 0.5, %v3163_v31  ;;  %v3076_v51 = vmul.f32 %v3056_v14, %v6682_v22  ;;  %v9772_v5 = vld [vmem:[#allocation10_spill] sm:$0xff]  ;;  %vm5499_vm7 = vcmp.lt.s32.totalorder %v8292_v21, 0 }
 0xf5a   :  { %v3145_v45 = vsub.f32 1.5, %v3144_v23  ;;  %vm9773_vm11 = vcmp.eq.s32.totalorder %v9622_v8, %v9772_v5 }
 0xf5b   :  { %v5847_v50 = vpop.eup %5846  ;;  %v3165_v28 = vsub.f32 1.5, %v3164_v62  ;;  %v3195_v44 = vadd.f32 %v8200_v61, %v3186_v57  ;;  %v8301_v13 = vadd.f32 1e-05, %v3076_v51  ;;  %v287_v31 = vsel %vm9773_vm11, %v8104_v30, 0.0  ;;  %v361_v62 = vpop.xlane.xlu1 %360 }
 0xf5c   :  { %v5849_v17 = vpop.eup %5848  ;;  %v3146_v4 = vmul.f32 %v5843_v24, %v3145_v45  ;;  %v3092_v34 = vmul.f32 %v5847_v50, %v8277_v27  ;;  %vm3098_vm4 = vweird.f32 %v5847_v50  ;;  %316 = vadd.xlane.f32.xlu1 %v287_v31  ;;  %vm5579_vm8 = vcmp.lt.s32.totalorder %v361_v62, 0 }
 0xf5d   :  { %v3166_v36 = vmul.f32 %v5845_v48, %v3165_v28  ;;  %v3112_v53 = vmul.f32 %v5849_v17, %v8279_v11  ;;  %v3203_v37 = vmax.f32 %v3195_v44, 0.0  ;;  %5850 = vrsqrt.f32 %v8301_v13  ;;  %vm3099_vm13 = vmor %vm3097_vm3, %vm3098_vm4 }
 0xf5e   :  { %v3150_v1 = vsel %vm3149_vm1, %v5843_v24, %v3146_v4  ;;  %v3093_v59 = vmul.f32 %v5847_v50, %v3092_v34  ;;  %vm3118_vm15 = vweird.f32 %v5849_v17 }
 0xf5f   :  { %v3170_v42 = vsel %vm3169_vm12, %v5845_v48, %v3166_v36  ;;  %v3113_v15 = vmul.f32 %v5849_v17, %v3112_v53  ;;  %v3176_v38 = vmul.f32 %v3150_v1, %v8124_v25  ;;  %v5966_v25 = vld [vmem:[%s9446_s0 + $0x30] sm:$0xff]  ;;  %vm3119_vm14 = vmor %vm3117_vm10, %vm3118_vm15  ;;  %v5496_v36 = vfloor.f32 %v8299_v19 }
 0xf60   :  { %v3178_v47 = vmul.f32 %v3170_v42, %v8122_v35  ;;  %v3094_v9 = vmul.f32 0.5, %v3093_v59  ;;  %v8306_v20 = vpop.xlane.xlu2 %294  ;;  %v8308_v43 = vpop.xlane.xlu0 %358  ;;  %v3211_v48 = vadd.f32 %v5966_v25, %v3203_v37  ;;  %v5501_v37 = vfloor.f32 %v8292_v21  ;;  %vm9778_vm15 = vmmov %vm9771_vm5 }
 0xf61   :  { %v3114_v18 = vmul.f32 0.5, %v3113_v15  ;;  %v3185_v10 = vmul.f32 %v8187_v0, %v3176_v38  ;;  %v5500_v15 = vceil.f32 %v8292_v21  ;;  %v5576_v25 = vfloor.f32 %v8308_v43  ;;  %vm9780_vm10 = vmmov %vm9773_vm11 }
 0xf62   :  { %v3187_v24 = vmul.f32 %v8187_v0, %v3178_v47  ;;  %v3095_v7 = vsub.f32 1.5, %v3094_v9  ;;  %4883 = vst.msk [vmem:[%s9455_s14 + $0x30] sm:$0xff] %vm9771_vm5, %v3211_v48  ;;  %v9775_v47 = vld [vmem:[#allocation11_spill] sm:$0xff]  ;;  %vm3107_vm12 = vweird.f32 %v8301_v13  ;;  %vm5574_vm4 = vcmp.lt.s32.totalorder %v8308_v43, 0 }
 0xf63   :  { %v3115_v12 = vsub.f32 1.5, %v3114_v18  ;;  %v5851_v3 = vpop.eup %5850  ;;  %v3194_v11 = vadd.f32 %v8200_v61, %v3185_v10  ;;  %vm9776_vm2 = vcmp.eq.s32.totalorder %v9622_v8, %v9775_v47 }
 0xf64   :  { %v3096_v35 = vmul.f32 %v5847_v50, %v3095_v7  ;;  %v3196_v49 = vadd.f32 %v8200_v61, %v3187_v24  ;;  %v3102_v57 = vmul.f32 %v5851_v3, %v8301_v13  ;;  %v354_v9 = vsel %vm9776_vm2, %v8112_v52, 0.0  ;;  %v5968_v7 = vld [vmem:[%s9446_s0 + $0x28] sm:$0xff]  ;;  %vm9777_vm0 = vmmov %vm9776_vm2 }
 0xf65   :  { %v3116_v60 = vmul.f32 %v5849_v17, %v3115_v12  ;;  %v3202_v59 = vmax.f32 %v3194_v11, 0.0  ;;  %vm3108_vm1 = vweird.f32 %v5851_v3  ;;  %v5575_v24 = vceil.f32 %v8308_v43  ;;  %382 = vadd.xlane.f32.xlu2 %v354_v9 }
 0xf66   :  { %v3100_v27 = vsel %vm3099_vm13, %v5847_v50, %v3096_v35  ;;  %v3204_v23 = vmax.f32 %v3196_v49, 0.0  ;;  %v5967_v50 = vld [vmem:[%s9446_s0 + $0x38] sm:$0xff]  ;;  %v3103_v34 = vmul.f32 %v5851_v3, %v3102_v57  ;;  %v286_v49 = vsel %vm9777_vm0, %v8104_v30, 0.0  ;;  %vm3109_vm3 = vmor %vm3107_vm12, %vm3108_vm1 }
 0xf67   :  { %v3120_v14 = vsel %vm3119_vm14, %v5849_v17, %v3116_v60  ;;  %v3171_v45 = vmul.f32 %v3100_v27, %v8140_v55  ;;  %v5495_v17 = vceil.f32 %v8299_v19  ;;  %v5581_v55 = vfloor.f32 %v361_v62  ;;  %314 = vadd.xlane.f32.xlu0 %v286_v49  ;;  %v5970_v19 = vld [vmem:[%s9446_s0] sm:$0xff]  ;;  %vm9779_vm13 = vmmov %vm9771_vm5 }
 0xf68   :  { %v3173_v51 = vmul.f32 %v3120_v14, %v8138_v33  ;;  %v8330_v28 = vpop.xlane.xlu2 %364  ;;  %v8332_v44 = vpop.xlane.xlu0 %296  ;;  %v3212_v4 = vadd.f32 %v5967_v50, %v3204_v23  ;;  %v5580_v33 = vceil.f32 %v361_v62  ;;  %v3104_v53 = vmul.f32 0.5, %v3103_v34  ;;  %v5969_v50 = vld [vmem:[%s9446_s0 + $0x10] sm:$0xff] }
 0xf69   :  { %v3180_v38 = vmul.f32 %v8187_v0, %v3171_v45  ;;  %v3210_v12 = vadd.f32 %v5968_v7, %v3202_v59  ;;  %v5502_v11 = vsel %vm5499_vm7, %v5500_v15, %v5501_v37  ;;  %v355_v43 = vsel %vm9780_vm10, %v8112_v52, 0.0 }
 0xf6a   :  { %4884 = vst.msk [vmem:[%s9455_s14 + $0x38] sm:$0xff] %vm9774_vm6, %v3212_v4  ;;  %v3216_v1 = vpack.c.bf16 %v3212_v4, %v3211_v48  ;;  %v3182_v42 = vmul.f32 %v8187_v0, %v3173_v51  ;;  %v3105_v18 = vsub.f32 1.5, %v3104_v53  ;;  %v5582_v13 = vsel %vm5579_vm8, %v5580_v33, %v5581_v55  ;;  %v363_v53 = vpop.xlane.xlu1 %362  ;;  %vm9781_vm6 = vmmov %vm9771_vm5 }
 0xf6b   :  { %v3189_v35 = vadd.f32 %v8200_v61, %v3180_v38  ;;  %v3215_v60 = vpack.c.bf16 %v3210_v12, %v8217_v54  ;;  %4882 = vst.msk [vmem:[%s9455_s14 + $0x28] sm:$0xff] %vm9778_vm15, %v3210_v12  ;;  %v5497_v54 = vsel %vm5494_vm9, %v5495_v17, %v5496_v36  ;;  %v5577_v51 = vsel %vm5574_vm4, %v5575_v24, %v5576_v25  ;;  %v9782_v12 = vld [vmem:[#allocation12_spill] sm:$0xff] }
 0xf6c   :  { %3525 = vmatpush.bf16.msra.mxu2 %v3216_v1  ;;  %3598 = vmatpush.bf16.msra.mxu3 %v3216_v1  ;;  %v3191_v48 = vadd.f32 %v8200_v61, %v3182_v42  ;;  %v3106_v10 = vmul.f32 %v5851_v3, %v3105_v18  ;;  %v5498_v34 = vcvt.f32.s32 %v5497_v54  ;;  %v5583_v21 = vcvt.f32.s32 %v5582_v13 }
 0xf6d   :  { %v3197_v14 = vmax.f32 %v3189_v35, 0.0  ;;  %v5503_v17 = vcvt.f32.s32 %v5502_v11  ;;  %v5578_v36 = vcvt.f32.s32 %v5577_v51  ;;  %v5585_v42 = vceil.f32 %v363_v53 }
 0xf6e   :  { %v3199_v23 = vmax.f32 %v3191_v48, 0.0  ;;  %v3110_v57 = vsel %vm3109_vm3, %v5851_v3, %v3106_v10  ;;  %vm581_vm11 = vcmp.eq.s32.totalorder %v9622_v8, %v5498_v34  ;;  %vm638_vm14 = vcmp.eq.s32.totalorder %v9622_v8, %v5583_v21 }
 0xf6f   :  { %v3172_v45 = vmul.f32 %v3110_v57, %v8153_v39  ;;  %v3205_v4 = vadd.f32 %v5970_v19, %v3197_v14  ;;  %384 = vadd.xlane.f32.xlu0 %v355_v43  ;;  %vm582_vm9 = vcmp.eq.s32.totalorder %v9622_v8, %v5503_v17  ;;  %vm637_vm7 = vcmp.eq.s32.totalorder %v9622_v8, %v5578_v36 }
 0xf70   :  { %v8372_v31 = vpop.xlane.xlu2 %366  ;;  %v8374_v27 = vpop.xlane.xlu0 %298  ;;  %3526 = vmatpush.bf16.msra.mxu2 %v3215_v60  ;;  %3599 = vmatpush.bf16.msra.mxu3 %v3215_v60  ;;  %v3207_v3 = vadd.f32 %v5969_v50, %v3199_v23  ;;  %v4949_v1 = vsel %vm581_vm11, 1.0, %v9623_v26  ;;  %v4966_v59 = vsel %vm638_vm14, 1.0, %v9623_v26  ;;  %v5586_v15 = vfloor.f32 %v363_v53 }
 0xf71   :  { %v3181_v62 = vmul.f32 %v8187_v0, %v3172_v45  ;;  %4877 = vst.msk [vmem:[%s9455_s14] sm:$0xff] %vm9771_vm5, %v3205_v4  ;;  %v4950_v37 = vsel %vm582_vm9, 1.0, %v9623_v26  ;;  %v5505_v38 = vceil.f32 %v8306_v20  ;;  %v4965_v47 = vsel %vm637_vm7, 1.0, %v9623_v26 }
 0xf72   :  { %v3214_v39 = vpack.c.bf16 %v8237_v32, %v3207_v3  ;;  %4879 = vst.msk [vmem:[%s9455_s14 + $0x10] sm:$0xff] %vm9779_vm13, %v3207_v3  ;;  %v5506_v18 = vfloor.f32 %v8306_v20  ;;  %v5590_v24 = vceil.f32 %v8330_v28  ;;  %v5591_v7 = vfloor.f32 %v8330_v28  ;;  %v9786_v3 = vld [vmem:[#allocation13_spill] sm:$0xff]  ;;  %vm9788_vm13 = vmmov %vm9771_vm5 }
 0xf73   :  { %v3190_v33 = vadd.f32 %v8200_v61, %v3181_v62  ;;  %v5971_v61 = vld [vmem:[%s9446_s0 + $0x8] sm:$0xff]  ;;  %vm9783_vm8 = vcmp.eq.s32.totalorder %v9622_v8, %v9782_v12  ;;  %vm5504_vm2 = vcmp.lt.s32.totalorder %v8306_v20, 0  ;;  %vm5589_vm1 = vcmp.lt.s32.totalorder %v8330_v28, 0  ;;  %v301_v62 = vpop.xlane.xlu1 %300 }
 0xf74   :  { %3527 = vmatpush.bf16.msra.mxu2 %v3214_v39  ;;  %3600 = vmatpush.bf16.msra.mxu3 %v3214_v39  ;;  %v288_v25 = vsel %vm9783_vm8, %v8104_v30, 0.0  ;;  %v5510_v48 = vceil.f32 %v8332_v44  ;;  %v5511_v35 = vfloor.f32 %v8332_v44  ;;  %vm5509_vm0 = vcmp.lt.s32.totalorder %v8332_v44, 0 }
 0xf75   :  { %v3198_v55 = vmax.f32 %v3190_v33, 0.0  ;;  %v629_v49 = vpack.c.bf16 %v4950_v37, %v4949_v1  ;;  %v685_v10 = vpack.c.bf16 %v4966_v59, %v4965_v47  ;;  %vm5584_vm12 = vcmp.lt.s32.totalorder %v363_v53, 0 }
 0xf76   :  { %v5507_v14 = vsel %vm5504_vm2, %v5505_v38, %v5506_v18  ;;  %v5592_v57 = vsel %vm5589_vm1, %v5590_v24, %v5591_v7  ;;  %vm9784_vm4 = vcmask 523264   ;;  %v5512_v28 = vsel %vm5509_vm0, %v5510_v48, %v5511_v35  ;;  %vm9790_vm1 = vmmov %vm9788_vm13 }
 0xf77   :  { %v3206_v5 = vadd.f32 %v5971_v61, %v3198_v55  ;;  %318 = vadd.xlane.f32.xlu0 %v288_v25  ;;  %vm9785_vm15 = vmmov %vm9784_vm4  ;;  %v5587_v54 = vsel %vm5584_vm12, %v5585_v42, %v5586_v15  ;;  %v5508_v44 = vcvt.f32.s32 %v5507_v14  ;;  %v5593_v11 = vcvt.f32.s32 %v5592_v57 }
 0xf78   :  { %v8405_v0 = vpop.xlane.xlu2 %304  ;;  %v8407_v32 = vpop.xlane.xlu0 %368  ;;  %v5513_v45 = vcvt.f32.s32 %v5512_v28  ;;  %v5588_v50 = vcvt.f32.s32 %v5587_v54  ;;  %vm9787_vm3 = vcmp.eq.s32.totalorder %v9622_v8, %v9786_v3  ;;  %vm5594_vm9 = vcmp.lt.s32.totalorder %v8372_v31, 0  ;;  %vm9791_vm0 = vmmov %vm9784_vm4 }
 0xf79   :  { %v3213_v9 = vpack.c.bf16 %v3206_v5, %v3205_v4  ;;  %4878 = vst.msk [vmem:[%s9455_s14 + $0x8] sm:$0xff] %vm9781_vm6, %v3206_v5  ;;  %v357_v19 = vsel %vm9787_vm3, %v8112_v52, 0.0  ;;  %vm583_vm10 = vcmp.eq.s32.totalorder %v9622_v8, %v5508_v44  ;;  %vm640_vm5 = vcmp.eq.s32.totalorder %v9622_v8, %v5593_v11  ;;  %vm9789_vm8 = vmmov %vm9787_vm3 }
 0xf7a   :  { %vm584_vm11 = vcmp.eq.s32.totalorder %v9622_v8, %v5513_v45  ;;  %vm639_vm14 = vcmp.eq.s32.totalorder %v9622_v8, %v5588_v50  ;;  %vm5519_vm7 = vcmp.lt.s32.totalorder %v301_v62, 0  ;;  %v5595_v21 = vceil.f32 %v8372_v31  ;;  %vm9792_vm12 = vmmov %vm9791_vm0 }
 0xf7b   :  { %3528 = vmatpush.bf16.msra.mxu2 %v3213_v9  ;;  %3601 = vmatpush.bf16.msra.mxu3 %v3213_v9  ;;  %v5596_v17 = vfloor.f32 %v8372_v31  ;;  %vm5514_vm6 = vcmp.lt.s32.totalorder %v8374_v27, 0  ;;  %v4951_v39 = vsel %vm583_vm10, 1.0, %v9623_v26  ;;  %v4952_v43 = vsel %vm584_vm11, 1.0, %v9623_v26 }
 0xf7c   :  { %v4967_v33 = vsel %vm639_vm14, 1.0, %v9623_v26  ;;  %v4968_v55 = vsel %vm640_vm5, 1.0, %v9623_v26  ;;  %v5515_v61 = vceil.f32 %v8374_v27  ;;  %v5516_v5 = vfloor.f32 %v8374_v27 }
 0xf7d   :  { %v5600_v1 = vceil.f32 %v8407_v32  ;;  %v5601_v59 = vfloor.f32 %v8407_v32  ;;  %v5520_v42 = vceil.f32 %v301_v62  ;;  %v5521_v15 = vfloor.f32 %v301_v62 }
 0xf7e   :  { %5216 = vmatmul.msk.bf16.vlgmr.msra.gmra.mxu2 %vm9784_vm4, %v629_v49  ;;  %5224 = vmatmul.msk.bf16.vlgmr.msra.gmra.mxu3 %vm9785_vm15, %v685_v10  ;;  %vm5599_vm2 = vcmp.lt.s32.totalorder %v8407_v32, 0  ;;  %v630_v38 = vpack.c.bf16 %v4952_v43, %v4951_v39  ;;  %v686_v47 = vpack.c.bf16 %v4968_v55, %v4967_v33  ;;  %v5597_v9 = vsel %vm5594_vm9, %v5595_v21, %v5596_v17 }
 0xf7f   :  { %388 = vadd.xlane.f32.xlu0 %v357_v19  ;;  %v5517_v18 = vsel %vm5514_vm6, %v5515_v61, %v5516_v5  ;;  %v5602_v24 = vsel %vm5599_vm2, %v5600_v1, %v5601_v59  ;;  %v5522_v32 = vsel %vm5519_vm7, %v5520_v42, %v5521_v15  ;;  %v5598_v7 = vcvt.f32.s32 %v5597_v9  ;;  %vm9794_vm7 = vmmov %vm9791_vm0 }
 0xf80   :  { %v3358_v60 = vpop.xlane.xlu2 %3357  ;;  %v8437_v23 = vpop.xlane.xlu0 %370  ;;  %v5518_v25 = vcvt.f32.s32 %v5517_v18  ;;  %v5603_v48 = vcvt.f32.s32 %v5602_v24  ;;  %v5523_v35 = vcvt.f32.s32 %v5522_v32  ;;  %vm9793_vm4 = vcmp.eq.s32.totalorder %v9622_v8, %v9782_v12  ;;  %vm9795_vm6 = vmmov %vm9791_vm0 }
 0xf81   :  { %v3362_v20 = vmul.f32 %v3358_v60, %v6682_v22  ;;  %v356_v31 = vsel %vm9793_vm4, %v8112_v52, 0.0  ;;  %vm641_vm15 = vcmp.eq.s32.totalorder %v9622_v8, %v5598_v7  ;;  %vm5529_vm5 = vcmp.lt.s32.totalorder %v8405_v0, 0  ;;  %vm9796_vm4 = vmmov %vm9795_vm6 }
 0xf82   :  { %vm585_vm3 = vcmp.eq.s32.totalorder %v9622_v8, %v5518_v25  ;;  %vm586_vm10 = vcmp.eq.s32.totalorder %v9622_v8, %v5523_v35  ;;  %v4969_v12 = vsel %vm641_vm15, 1.0, %v9623_v26  ;;  %v5530_v60 = vceil.f32 %v8405_v0  ;;  %vm9797_vm15 = vmmov %vm9796_vm4 }
 0xf83   :  { %v8443_v13 = vsub.f32 %v8225_v63, %v3362_v20  ;;  %v4953_v49 = vsel %vm585_vm3, 1.0, %v9623_v26  ;;  %v4954_v10 = vsel %vm586_vm10, 1.0, %v9623_v26  ;;  %v5531_v14 = vfloor.f32 %v8405_v0 }
 0xf84   :  { %v5605_v28 = vceil.f32 %v8437_v23  ;;  %v5606_v54 = vfloor.f32 %v8437_v23  ;;  %vm5604_vm14 = vcmp.lt.s32.totalorder %v8437_v23, 0  ;;  %v631_v45 = vpack.c.bf16 %v4954_v10, %v4953_v49 }
 0xf85   :  { %v3366_v51 = vmul.f32 %v8443_v13, %v8443_v13  ;;  %v5532_v50 = vsel %vm5529_vm5, %v5530_v60, %v5531_v14 }
 0xf86   :  { %v5607_v19 = vsel %vm5604_vm14, %v5605_v28, %v5606_v54  ;;  %v5533_v62 = vcvt.f32.s32 %v5532_v50 }
 0xf87   :  { %v3368_v4 = vsel %vm9788_vm13, %v3366_v51, 0.0  ;;  %vm642_vm13 = vcmp.eq.s32.totalorder %v9622_v8, %v5603_v48 }
 0xf88   :  { %3369 = vadd.xlane.f32.xlu1 %v3368_v4  ;;  %v3361_v63 = vpop.xlane.xlu0 %3360  ;;  %v4970_v52 = vsel %vm642_vm13, 1.0, %v9623_v26 }
 0xf89   :  { %v3363_v34 = vmul.f32 %v3361_v63, %v6682_v22  ;;  %v687_v51 = vpack.c.bf16 %v4970_v52, %v4969_v12 }
 0xf8b   :  { %v8462_v36 = vsub.f32 %v8244_v29, %v3363_v34  ;;  %v289_v29 = vsel %vm9789_vm8, %v8104_v30, 0.0  ;;  %v303_v30 = vpop.xlane.xlu1 %302  ;;  %v5608_v34 = vcvt.f32.s32 %v5607_v19  ;;  %vm588_vm8 = vcmp.eq.s32.totalorder %v9622_v8, %v5533_v62 }
 0xf8c   :  { %vm5524_vm11 = vcmp.lt.s32.totalorder %v303_v30, 0  ;;  %v5525_v57 = vceil.f32 %v303_v30  ;;  %v5526_v20 = vfloor.f32 %v303_v30  ;;  %v4956_v23 = vsel %vm588_vm8, 1.0, %v9623_v26 }
 0xf8d   :  { %v3367_v53 = vmul.f32 %v8462_v36, %v8462_v36 }
 0xf8e   :  { %5217 = vmatmul.msk.bf16.gmra.mxu2 %vm9791_vm0, %v630_v38  ;;  %5225 = vmatmul.msk.bf16.gmra.mxu3 %vm9792_vm12, %v686_v47  ;;  %v5527_v3 = vsel %vm5524_vm11, %v5525_v57, %v5526_v20 }
 0xf8f   :  { %v3371_v37 = vsel %vm9790_vm1, %v3367_v53, 0.0  ;;  %v5528_v63 = vcvt.f32.s32 %v5527_v3  ;;  %vm643_vm1 = vcmp.eq.s32.totalorder %v9622_v8, %v5608_v34  ;;  %v309_v53 = vpop.xlane.xlu2 %308 }
 0xf90   :  { %3372 = vadd.xlane.f32.xlu2 %v3371_v37  ;;  %320 = vadd.xlane.f32.xlu1 %v289_v29  ;;  %v4971_v17 = vsel %vm643_vm1, 1.0, %v9623_v26  ;;  %vm5539_vm3 = vcmp.lt.s32.totalorder %v309_v53, 0  ;;  %v5540_v1 = vceil.f32 %v309_v53  ;;  %v5541_v59 = vfloor.f32 %v309_v53  ;;  %v375_v47 = vpop.xlane.xlu0 %374 }
 0xf91   :  { %vm587_vm2 = vcmp.eq.s32.totalorder %v9622_v8, %v5528_v63  ;;  %vm5614_vm11 = vcmp.lt.s32.totalorder %v375_v47, 0  ;;  %v5615_v18 = vceil.f32 %v375_v47  ;;  %v5616_v24 = vfloor.f32 %v375_v47 }
 0xf92   :  { %v4955_v0 = vsel %vm587_vm2, 1.0, %v9623_v26  ;;  %v5542_v15 = vsel %vm5539_vm3, %v5540_v1, %v5541_v59  ;;  %vm9799_vm2 = vmmov %vm9796_vm4 }
 0xf93   :  { %v373_v27 = vpop.xlane.xlu1 %372  ;;  %v632_v43 = vpack.c.bf16 %v4956_v23, %v4955_v0  ;;  %v5543_v37 = vcvt.f32.s32 %v5542_v15  ;;  %v5617_v35 = vsel %vm5614_vm11, %v5615_v18, %v5616_v24 }
 0xf94   :  { %v5610_v44 = vceil.f32 %v373_v27  ;;  %v5611_v11 = vfloor.f32 %v373_v27  ;;  %vm5609_vm9 = vcmp.lt.s32.totalorder %v373_v27, 0 }
 0xf95   :  { %vm590_vm10 = vcmp.eq.s32.totalorder %v9622_v8, %v5543_v37 }
 0xf96   :  { %v5612_v4 = vsel %vm5609_vm9, %v5610_v44, %v5611_v11  ;;  %v4958_v7 = vsel %vm590_vm10, 1.0, %v9623_v26  ;;  %vm9801_vm10 = vmmov %vm9799_vm2 }
 0xf97   :  { %v5613_v21 = vcvt.f32.s32 %v5612_v4  ;;  %v311_v49 = vpop.xlane.xlu2 %310 }
 0xf98   :  { %386 = vadd.xlane.f32.xlu2 %v356_v31  ;;  %v5618_v31 = vcvt.f32.s32 %v5617_v35  ;;  %v313_v10 = vpop.xlane.xlu0 %312  ;;  %v5545_v12 = vceil.f32 %v311_v49  ;;  %v5546_v52 = vfloor.f32 %v311_v49  ;;  %v5325_v35 = vld [vmem:[%s9448_s12 + $0xe8] sm:$0xff] }
 0xf99   :  { %vm644_vm0 = vcmp.eq.s32.totalorder %v9622_v8, %v5613_v21  ;;  %vm5549_vm8 = vcmp.lt.s32.totalorder %v313_v10, 0  ;;  %v5550_v60 = vceil.f32 %v313_v10  ;;  %v5551_v14 = vfloor.f32 %v313_v10  ;;  %3794 = vmatpush.bf16.msrb.mxu0 %v5325_v35 }
 0xf9a   :  { %v4972_v39 = vsel %vm644_vm0, 1.0, %v9623_v26  ;;  %vm645_vm9 = vcmp.eq.s32.totalorder %v9622_v8, %v5618_v31 }
 0xf9b   :  { %v307_v33 = vpop.xlane.xlu1 %306  ;;  %v688_v55 = vpack.c.bf16 %v4972_v39, %v4971_v17  ;;  %v4973_v57 = vsel %vm645_vm9, 1.0, %v9623_v26  ;;  %v5552_v11 = vsel %vm5549_vm8, %v5550_v60, %v5551_v14 }
 0xf9c   :  { %vm5534_vm12 = vcmp.lt.s32.totalorder %v307_v33, 0  ;;  %v5535_v61 = vceil.f32 %v307_v33  ;;  %v5536_v5 = vfloor.f32 %v307_v33 }
 0xf9e   :  { %5218 = vmatmul.msk.bf16.gmra.mxu2 %vm9794_vm7, %v631_v45  ;;  %5226 = vmatmul.msk.bf16.gmra.mxu3 %vm9795_vm6, %v687_v51  ;;  %v5537_v29 = vsel %vm5534_vm12, %v5535_v61, %v5536_v5  ;;  %vm5544_vm7 = vcmp.lt.s32.totalorder %v311_v49, 0  ;;  %vm9798_vm6 = vmmov %vm9796_vm4  ;;  %v5553_v45 = vcvt.f32.s32 %v5552_v11 }
 0xf9f   :  { %v5538_v42 = vcvt.f32.s32 %v5537_v29  ;;  %v5547_v28 = vsel %vm5544_vm7, %v5545_v12, %v5546_v52  ;;  %v381_v63 = vpop.xlane.xlu2 %380  ;;  %v5324_v12 = vld [vmem:[%s9448_s12 + $0xe0] sm:$0xff] }
 0xfa0   :  { %v5548_v44 = vcvt.f32.s32 %v5547_v28  ;;  %vm592_vm0 = vcmp.eq.s32.totalorder %v9622_v8, %v5553_v45  ;;  %v5630_v21 = vceil.f32 %v381_v63  ;;  %v5631_v0 = vfloor.f32 %v381_v63  ;;  %3795 = vmatpush.bf16.msrb.mxu0 %v5324_v12 }
 0xfa1   :  { %vm589_vm13 = vcmp.eq.s32.totalorder %v9622_v8, %v5538_v42  ;;  %v4960_v4 = vsel %vm592_vm0, 1.0, %v9623_v26  ;;  %vm9802_vm0 = vmmov %vm9799_vm2 }
 0xfa2   :  { %v4957_v32 = vsel %vm589_vm13, 1.0, %v9623_v26  ;;  %vm591_vm1 = vcmp.eq.s32.totalorder %v9622_v8, %v5548_v44  ;;  %vm9800_vm13 = vmmov %vm9799_vm2 }
 0xfa3   :  { %v377_v38 = vpop.xlane.xlu1 %376  ;;  %v633_v27 = vpack.c.bf16 %v4958_v7, %v4957_v32  ;;  %v4959_v19 = vsel %vm591_vm1, 1.0, %v9623_v26 }
 0xfa4   :  { %vm5619_vm5 = vcmp.lt.s32.totalorder %v377_v38, 0  ;;  %v5620_v9 = vceil.f32 %v377_v38  ;;  %v5621_v30 = vfloor.f32 %v377_v38  ;;  %v634_v23 = vpack.c.bf16 %v4960_v4, %v4959_v19  ;;  %v5329_v19 = vld [vmem:[%s9448_s12 + $0x108] sm:$0xff] }
 0xfa5   :  { %3883 = vmatpush.bf16.msrb.mxu2 %v5329_v19 }
 0xfa6   :  { %v5622_v25 = vsel %vm5619_vm5, %v5620_v9, %v5621_v30 }
 0xfa7   :  { %v5623_v48 = vcvt.f32.s32 %v5622_v25 }
 0xfa9   :  { %vm646_vm14 = vcmp.eq.s32.totalorder %v9622_v8, %v5623_v48 }
 0xfaa   :  { %v4974_v20 = vsel %vm646_vm14, 1.0, %v9623_v26 }
 0xfab   :  { %v689_v54 = vpack.c.bf16 %v4974_v20, %v4973_v57  ;;  %v379_v51 = vpop.xlane.xlu1 %378 }
 0xfac   :  { %vm5624_vm12 = vcmp.lt.s32.totalorder %v379_v51, 0  ;;  %v5625_v50 = vceil.f32 %v379_v51  ;;  %v5626_v3 = vfloor.f32 %v379_v51 }
 0xfae   :  { %5219 = vmatmul.msk.bf16.gmra.mxu2 %vm9796_vm4, %v632_v43  ;;  %5227 = vmatmul.msk.bf16.gmra.mxu3 %vm9797_vm15, %v688_v55  ;;  %v5627_v62 = vsel %vm5624_vm12, %v5625_v50, %v5626_v3  ;;  %vm5629_vm4 = vcmp.lt.s32.totalorder %v381_v63, 0  ;;  %v5323_v3 = vld [vmem:[%s9448_s12 + $0xd8] sm:$0xff] }
 0xfaf   :  { %v5628_v34 = vcvt.f32.s32 %v5627_v62  ;;  %v5632_v17 = vsel %vm5629_vm4, %v5630_v21, %v5631_v0  ;;  %3435 = vmatpush.bf16.msrb.mxu1 %v5323_v3 }
 0xfb0   :  { %v5633_v39 = vcvt.f32.s32 %v5632_v17  ;;  %v5322_v17 = vld [vmem:[%s9448_s12 + $0xd0] sm:$0xff] }
 0xfb1   :  { %vm647_vm15 = vcmp.eq.s32.totalorder %v9622_v8, %v5628_v34 }
 0xfb2   :  { %vm648_vm3 = vcmp.eq.s32.totalorder %v9622_v8, %v5633_v39  ;;  %v4975_v43 = vsel %vm647_vm15, 1.0, %v9623_v26 }
 0xfb3   :  { %v4976_v33 = vsel %vm648_vm3, 1.0, %v9623_v26  ;;  %3436 = vmatpush.bf16.msrb.mxu1 %v5322_v17 }
 0xfb4   :  { %v690_v55 = vpack.c.bf16 %v4976_v33, %v4975_v43  ;;  %v5328_v43 = vld [vmem:[%s9448_s12 + $0x100] sm:$0xff]  ;;  %v5327_v33 = vld [vmem:[%s9448_s12 + $0xf8] sm:$0xff] }
 0xfb5   :  { %3884 = vmatpush.bf16.msrb.mxu2 %v5328_v43 }
 0xfb7   :  { %3709 = vmatpush.bf16.msra.mxu1 %v5327_v33 }
 0xfbe   :  { %5220 = vmatmul.msk.bf16.gmra.mxu2 %vm9798_vm6, %v633_v27  ;;  %5228 = vmatmul.msk.bf16.gmra.mxu3 %vm9799_vm2, %v689_v54 }
 0xfce   :  { %5221 = vmatmul.msk.bf16.gmra.mxu2 %vm9800_vm13, %v634_v23  ;;  %5229 = vmatmul.msk.bf16.gmra.mxu3 %vm9801_vm10, %v690_v55 }
 0xfcf   :  { %v317_v61 = vpop.xlane.xlu1 %316 }
 0xfd0   :  { %v5560_v5 = vceil.f32 %v317_v61  ;;  %v5561_v53 = vfloor.f32 %v317_v61  ;;  %vm5559_vm5 = vcmp.lt.s32.totalorder %v317_v61, 0 }
 0xfd2   :  { %v5562_v29 = vsel %vm5559_vm5, %v5560_v5, %v5561_v53 }
 0xfd3   :  { %v5563_v1 = vcvt.f32.s32 %v5562_v29 }
 0xfd5   :  { %vm594_vm9 = vcmp.eq.s32.totalorder %v9622_v8, %v5563_v1 }
 0xfd6   :  { %v4962_v24 = vsel %vm594_vm9, 1.0, %v9623_v26 }
 0xfd8   :  { %v383_v59 = vpop.xlane.xlu2 %382 }
 0xfd9   :  { %v5635_v42 = vceil.f32 %v383_v59  ;;  %v5636_v15 = vfloor.f32 %v383_v59  ;;  %vm5634_vm11 = vcmp.lt.s32.totalorder %v383_v59, 0 }
 0xfda   :  { %v315_v37 = vpop.xlane.xlu0 %314 }
 0xfdb   :  { %vm5554_vm14 = vcmp.lt.s32.totalorder %v315_v37, 0  ;;  %v5555_v38 = vceil.f32 %v315_v37  ;;  %v5556_v47 = vfloor.f32 %v315_v37  ;;  %v5637_v9 = vsel %vm5634_vm11, %v5635_v42, %v5636_v15  ;;  %v5326_v15 = vld [vmem:[%s9448_s12 + $0xf0] sm:$0xff]  ;;  %vm9803_vm11 = vmmov %vm9802_vm0 }
 0xfdc   :  { %v5638_v32 = vcvt.f32.s32 %v5637_v9  ;;  %3710 = vmatpush.bf16.msra.mxu1 %v5326_v15 }
 0xfdd   :  { %v5557_v30 = vsel %vm5554_vm14, %v5555_v38, %v5556_v47 }
 0xfde   :  { %v5558_v18 = vcvt.f32.s32 %v5557_v30  ;;  %vm649_vm8 = vcmp.eq.s32.totalorder %v9622_v8, %v5638_v32 }
 0xfdf   :  { %v4977_v52 = vsel %vm649_vm8, 1.0, %v9623_v26 }
 0xfe0   :  { %vm593_vm7 = vcmp.eq.s32.totalorder %v9622_v8, %v5558_v18 }
 0xfe1   :  { %v4961_v7 = vsel %vm593_vm7, 1.0, %v9623_v26  ;;  %vm9804_vm7 = vcmask 261120  }
 0xfe2   :  { %v385_v25 = vpop.xlane.xlu0 %384  ;;  %v635_v48 = vpack.c.bf16 %v4962_v24, %v4961_v7 }
 0xfe3   :  { %vm5639_vm6 = vcmp.lt.s32.totalorder %v385_v25, 0  ;;  %v5640_v31 = vceil.f32 %v385_v25  ;;  %v5641_v27 = vfloor.f32 %v385_v25 }
 0xfe4   :  { %5222 = vmatmul.msk.bf16.gmra.mxu2 %vm9799_vm2, %v635_v48 }
 0xfe5   :  { %v5642_v49 = vsel %vm5639_vm6, %v5640_v31, %v5641_v27 }
 0xfe6   :  { %v5643_v10 = vcvt.f32.s32 %v5642_v49 }
 0xfe8   :  { %vm650_vm1 = vcmp.eq.s32.totalorder %v9622_v8, %v5643_v10 }
 0xfe9   :  { %v4978_v60 = vsel %vm650_vm1, 1.0, %v9623_v26  ;;  %vm9805_vm1 = vmmov %vm9802_vm0 }
 0xfea   :  { %v691_v14 = vpack.c.bf16 %v4978_v60, %v4977_v52  ;;  %v319_v57 = vpop.xlane.xlu0 %318 }
 0xfeb   :  { %v5565_v20 = vceil.f32 %v319_v57  ;;  %v5566_v28 = vfloor.f32 %v319_v57  ;;  %vm5564_vm12 = vcmp.lt.s32.totalorder %v319_v57, 0 }
 0xfec   :  { %5230 = vmatmul.msk.bf16.gmra.mxu3 %vm9802_vm0, %v691_v14 }
 0xfed   :  { %v5567_v45 = vsel %vm5564_vm12, %v5565_v20, %v5566_v28  ;;  %v8589_v28 = vld [vmem:[%s9449_s13 + $0x10] sm:$0xff] }
 0xfee   :  { %v5568_v50 = vcvt.f32.s32 %v5567_v45 }
 0xff0   :  { %vm595_vm3 = vcmp.eq.s32.totalorder %v9622_v8, %v5568_v50 }
 0xff1   :  { %v4963_v59 = vsel %vm595_vm3, 1.0, %v9623_v26 }
 0xff2   :  { %v389_v51 = vpop.xlane.xlu0 %388 }
 0xff3   :  { %v5650_v4 = vceil.f32 %v389_v51  ;;  %v5651_v62 = vfloor.f32 %v389_v51  ;;  %vm5649_vm4 = vcmp.lt.s32.totalorder %v389_v51, 0 }
 0xff5   :  { %v5652_v53 = vsel %vm5649_vm4, %v5650_v4, %v5651_v62  ;;  %vm9806_vm4 = vmmov %vm9804_vm7 }
 0xff6   :  { %v5653_v37 = vcvt.f32.s32 %v5652_v53  ;;  %vm9808_vm3 = vmmov %vm9806_vm4 }
 0xff8   :  { %vm652_vm14 = vcmp.eq.s32.totalorder %v9622_v8, %v5653_v37 }
 0xff9   :  { %v4980_v12 = vsel %vm652_vm14, 1.0, %v9623_v26  ;;  %vm9813_vm14 = vmmov %vm9808_vm3 }
 0xffb   :  { %v3370_v54 = vpop.xlane.xlu1 %3369 }
 0xffc   :  { %v3374_v44 = vmul.f32 %v3370_v54, %v6682_v22  ;;  %v3400_v54 = vperm.slane %v8589_v28, 2 }
 0xffe   :  { %v3376_v11 = vadd.f32 1e-05, %v3374_v44 }
0x1000   :  { %5852 = vrsqrt.f32 %v3376_v11  ;;  %vm3384_vm9 = vweird.f32 %v3376_v11 }
0x1001   :  { %v3530_v39 = vpop.f32.mrf.mxu2  ;;  %v3603_v49 = vpop.f32.mrf.mxu3 }
0x1003   :  { %v3373_v63 = vpop.xlane.xlu2 %3372  ;;  %v321_v34 = vpop.xlane.xlu1 %320 }
0x1004   :  { %v3375_v21 = vmul.f32 %v3373_v63, %v6682_v22  ;;  %vm5569_vm15 = vcmp.lt.s32.totalorder %v321_v34, 0  ;;  %v5570_v0 = vceil.f32 %v321_v34  ;;  %v5571_v23 = vfloor.f32 %v321_v34 }
0x1006   :  { %v5853_v55 = vpop.eup %5852  ;;  %v3377_v61 = vadd.f32 1e-05, %v3375_v21  ;;  %v5572_v5 = vsel %vm5569_vm15, %v5570_v0, %v5571_v23  ;;  %vm9807_vm15 = vmmov %vm9806_vm4 }
0x1007   :  { %v3379_v29 = vmul.f32 %v5853_v55, %v3376_v11  ;;  %v5573_v1 = vcvt.f32.s32 %v5572_v5  ;;  %vm3385_vm5 = vweird.f32 %v5853_v55 }
0x1008   :  { %5854 = vrsqrt.f32 %v3377_v61  ;;  %vm3386_vm6 = vmor %vm3384_vm9, %vm3385_vm5  ;;  %vm3394_vm0 = vweird.f32 %v3377_v61 }
0x1009   :  { %v3380_v42 = vmul.f32 %v5853_v55, %v3379_v29  ;;  %vm596_vm13 = vcmp.eq.s32.totalorder %v9622_v8, %v5573_v1  ;;  %v3532_v18 = vpop.f32.mrf.mxu2  ;;  %v3605_v3 = vpop.f32.mrf.mxu3  ;;  %vm9811_vm5 = vmmov %vm9808_vm3 }
0x100a   :  { %v4964_v38 = vsel %vm596_vm13, 1.0, %v9623_v26  ;;  %v3643_v25 = vpack.c.bf16 %v3532_v18, %v3530_v39  ;;  %vm9809_vm13 = vmmov %vm9808_vm3 }
0x100b   :  { %v3381_v47 = vmul.f32 0.5, %v3380_v42  ;;  %v636_v9 = vpack.c.bf16 %v4964_v38, %v4963_v59  ;;  %v387_v30 = vpop.xlane.xlu2 %386  ;;  %vm9814_vm9 = vmmov %vm9808_vm3 }
0x100c   :  { %vm5644_vm10 = vcmp.lt.s32.totalorder %v387_v30, 0  ;;  %v5645_v24 = vceil.f32 %v387_v30  ;;  %v5646_v32 = vfloor.f32 %v387_v30  ;;  %5256 = vmatmul.msk.bf16.vlgmr.msrb.gmra.mxu0 %vm9804_vm7, %v3643_v25  ;;  %vm9815_vm7 = vmmov %vm9808_vm3 }
0x100d   :  { %v3382_v7 = vsub.f32 1.5, %v3381_v47  ;;  %5223 = vmatmul.msk.bf16.gmra.mxu2 %vm9803_vm11, %v636_v9  ;;  %vm9812_vm11 = vmmov %vm9808_vm3 }
0x100e   :  { %v5855_v48 = vpop.eup %5854  ;;  %v5647_v35 = vsel %vm5644_vm10, %v5645_v24, %v5646_v32  ;;  %vm9810_vm10 = vmmov %vm9808_vm3 }
0x100f   :  { %v3383_v31 = vmul.f32 %v5853_v55, %v3382_v7  ;;  %v3389_v27 = vmul.f32 %v5855_v48, %v3377_v61  ;;  %v5648_v10 = vcvt.f32.s32 %v5647_v35  ;;  %vm3395_vm2 = vweird.f32 %v5855_v48 }
0x1010   :  { %vm3396_vm12 = vmor %vm3394_vm0, %vm3395_vm2 }
0x1011   :  { %v3387_v52 = vsel %vm3386_vm6, %v5853_v55, %v3383_v31  ;;  %v3390_v60 = vmul.f32 %v5855_v48, %v3389_v27  ;;  %vm651_vm8 = vcmp.eq.s32.totalorder %v9622_v8, %v5648_v10  ;;  %v3535_v11 = vpop.f32.mrf.mxu2  ;;  %v3403_v8 = vperm.slane %v8589_v28, 3  ;;  %v3608_v17 = vpop.f32.mrf.mxu3  ;;  %vm9816_vm6 = vmmov %vm9808_vm3 }
0x1012   :  { %v4979_v14 = vsel %vm651_vm8, 1.0, %v9623_v26  ;;  %v3398_v44 = vmul.f32 %v3387_v52, %v8443_v13  ;;  %vm9817_vm8 = vmmov %vm9808_vm3 }
0x1013   :  { %v3391_v57 = vmul.f32 0.5, %v3390_v60  ;;  %v692_v20 = vpack.c.bf16 %v4980_v12, %v4979_v14  ;;  %vm9818_vm2 = vmmov %vm9808_vm3 }
0x1014   :  { %v3401_v26 = vmul.f32 %v3400_v54, %v3398_v44 }
0x1015   :  { %v3392_v45 = vsub.f32 1.5, %v3391_v57  ;;  %5231 = vmatmul.msk.bf16.gmra.mxu3 %vm9805_vm1, %v692_v20  ;;  %vm9819_vm1 = vmmov %vm9818_vm2 }
0x1016   :  { %v3404_v4 = vadd.f32 %v3403_v8, %v3401_v26  ;;  %vm9820_vm0 = vmmov %vm9819_vm1 }
0x1017   :  { %v3393_v51 = vmul.f32 %v5855_v48, %v3392_v45  ;;  %v8633_v45 = vperm.slane %v8589_v28, 7 }
0x1018   :  { %v3406_v21 = vmax.f32 %v3404_v4, 0.0 }
0x1019   :  { %v3397_v50 = vsel %vm3396_vm12, %v5855_v48, %v3393_v51  ;;  %v3537_v63 = vpop.f32.mrf.mxu2  ;;  %vm9821_vm12 = vmmov %vm9820_vm0 }
0x101a   :  { %v3399_v19 = vmul.f32 %v3397_v50, %v8462_v36  ;;  %v3644_v13 = vpack.c.bf16 %v3537_v63, %v3535_v11  ;;  %v3610_v36 = vpop.f32.mrf.mxu3 }
0x101b   :  { %v3652_v1 = vpack.c.bf16 %v3610_v36, %v3608_v17 }
0x101c   :  { %v3402_v62 = vmul.f32 %v3400_v54, %v3399_v19  ;;  %5257 = vmatmul.msk.bf16.gmra.mxu0 %vm9807_vm15, %v3644_v13  ;;  %vm9823_vm15 = vmmov %vm9820_vm0 }
0x101d   :  { %5272 = vmatmul.msk.bf16.vlgmr.msrb.gmra.mxu2 %vm9806_vm4, %v7843_v16  ;;  %v3651_v16 = vpack.c.bf16 %v3605_v3, %v3603_v49  ;;  %vm9822_vm4 = vmmov %vm9820_vm0 }
0x101e   :  { %v3405_v34 = vadd.f32 %v3403_v8, %v3402_v62 }
0x1020   :  { %v3407_v0 = vmax.f32 %v3405_v34, 0.0 }
0x1021   :  { %v3540_v39 = vpop.f32.mrf.mxu2 }
0x1022   :  { %v3408_v23 = vpack.c.bf16 %v3407_v0, %v3406_v21  ;;  %v3613_v61 = vpop.f32.mrf.mxu3 }
0x1024   :  { %5215 = vmatmul.msk.bf16.vlgmr.msrb.gmra.mxu1 %vm9808_vm3, %v3408_v23  ;;  %vm9824_vm3 = vmmov %vm9820_vm0 }
0x1029   :  { %v3542_v43 = vpop.f32.mrf.mxu2 }
0x102a   :  { %v3645_v33 = vpack.c.bf16 %v3542_v43, %v3540_v39  ;;  %v3615_v29 = vpop.f32.mrf.mxu3 }
0x102b   :  { %v3653_v37 = vpack.c.bf16 %v3615_v29, %v3613_v61 }
0x102c   :  { %5258 = vmatmul.msk.bf16.gmra.mxu0 %vm9810_vm10, %v3645_v33  ;;  %vm9826_vm10 = vmmov %vm9820_vm0 }
0x102d   :  { %5273 = vmatmul.msk.bf16.gmra.mxu2 %vm9809_vm13, %v7834_v40  ;;  %vm9825_vm13 = vmmov %vm9820_vm0 }
0x1031   :  { %v3545_v55 = vpop.f32.mrf.mxu2 }
0x1032   :  { %v3618_v59 = vpop.f32.mrf.mxu3 }
0x1034   :  { %5240 = vmatmul.msk.bf16.vlgmr.msra.gmra.mxu1 %vm9811_vm5, %v3651_v16  ;;  %vm9827_vm5 = vmmov %vm9820_vm0 }
0x1039   :  { %v3547_v5 = vpop.f32.mrf.mxu2 }
0x103a   :  { %v3646_v53 = vpack.c.bf16 %v3547_v5, %v3545_v55  ;;  %v3620_v38 = vpop.f32.mrf.mxu3 }
0x103b   :  { %v3654_v18 = vpack.c.bf16 %v3620_v38, %v3618_v59 }
0x103c   :  { %5259 = vmatmul.msk.bf16.gmra.mxu0 %vm9813_vm14, %v3646_v53  ;;  %vm9829_vm14 = vmmov %vm9820_vm0 }
0x103d   :  { %5274 = vmatmul.msk.bf16.gmra.mxu2 %vm9812_vm11, %v7828_v6  ;;  %vm9828_vm11 = vmmov %vm9820_vm0 }
0x1041   :  { %v3550_v40 = vpop.f32.mrf.mxu2 }
0x1042   :  { %v3623_v30 = vpop.f32.mrf.mxu3 }
0x1044   :  { %5241 = vmatmul.msk.bf16.gmra.mxu1 %vm9814_vm9, %v3652_v1  ;;  %vm9830_vm9 = vmmov %vm9820_vm0 }
0x1049   :  { %v3552_v42 = vpop.f32.mrf.mxu2 }
0x104a   :  { %v3647_v15 = vpack.c.bf16 %v3552_v42, %v3550_v40 }
0x104c   :  { %5260 = vmatmul.msk.bf16.gmra.mxu0 %vm9816_vm6, %v3647_v15  ;;  %vm9832_vm6 = vmmov %vm9820_vm0 }
0x104d   :  { %5275 = vmatmul.msk.bf16.gmra.mxu2 %vm9815_vm7, %v7814_v41  ;;  %v3625_v41 = vpop.f32.mrf.mxu3  ;;  %vm9831_vm7 = vmmov %vm9820_vm0 }
0x104e   :  { %v3655_v32 = vpack.c.bf16 %v3625_v41, %v3623_v30 }
0x1051   :  { %v3555_v6 = vpop.f32.mrf.mxu2 }
0x1054   :  { %5242 = vmatmul.msk.bf16.gmra.mxu1 %vm9817_vm8, %v3653_v37  ;;  %vm9833_vm8 = vmmov %vm9820_vm0 }
0x1055   :  { %v3628_v7 = vpop.f32.mrf.mxu3 }
0x1059   :  { %v3557_v47 = vpop.f32.mrf.mxu2 }
0x105a   :  { %v3648_v9 = vpack.c.bf16 %v3557_v47, %v3555_v6 }
0x105c   :  { %5261 = vmatmul.msk.bf16.gmra.mxu0 %vm9819_vm1, %v3648_v9  ;;  %vm9835_vm1 = vmmov %vm9820_vm0 }
0x105d   :  { %5276 = vmatmul.msk.bf16.gmra.mxu2 %vm9818_vm2, %v7805_v2  ;;  %v3630_v35 = vpop.f32.mrf.mxu3  ;;  %vm9834_vm2 = vmmov %vm9820_vm0 }
0x105e   :  { %v3656_v2 = vpack.c.bf16 %v3630_v35, %v3628_v7 }
0x1064   :  { %5243 = vmatmul.msk.bf16.gmra.mxu1 %vm9820_vm0, %v3654_v18 }
0x1067   :  { %v3560_v24 = vpop.f32.mrf.mxu2 }
0x106d   :  { %5277 = vmatmul.msk.bf16.gmra.mxu2 %vm9821_vm12, %v7794_v56  ;;  %vm9836_vm12 = vmmov %vm9820_vm0 }
0x106f   :  { %v3562_v25 = vpop.f32.mrf.mxu2  ;;  %v3633_v31 = vpop.f32.mrf.mxu3 }
0x1070   :  { %v3649_v48 = vpack.c.bf16 %v3562_v25, %v3560_v24 }
0x1072   :  { %5262 = vmatmul.msk.bf16.gmra.mxu0 %vm9823_vm15, %v3649_v48  ;;  %vm9838_vm15 = vmmov %vm9820_vm0 }
0x1074   :  { %5244 = vmatmul.msk.bf16.gmra.mxu1 %vm9822_vm4, %v3655_v32  ;;  %vm9837_vm4 = vmmov %vm9820_vm0 }
0x1077   :  { %v3635_v56 = vpop.f32.mrf.mxu3 }
0x1078   :  { %v3657_v49 = vpack.c.bf16 %v3635_v56, %v3633_v31 }
0x107d   :  { %5278 = vmatmul.msk.bf16.gmra.mxu2 %vm9824_vm3, %v7788_v58  ;;  %vm9839_vm3 = vmmov %vm9820_vm0 }
0x1084   :  { %5245 = vmatmul.msk.bf16.gmra.mxu1 %vm9825_vm13, %v3656_v2  ;;  %vm9840_vm13 = vmmov %vm9820_vm0 }
0x1089   :  { %v3797_v57 = vpop.f32.mrf.mxu0 }
0x108d   :  { %5279 = vmatmul.msk.bf16.gmra.mxu2 %vm9826_vm10, %v7774_v46  ;;  %vm9841_vm10 = vmmov %vm9820_vm0 }
0x1090   :  { %v3565_v27 = vpop.f32.mrf.mxu2 }
0x1091   :  { %v3799_v46 = vpop.f32.mrf.mxu0 }
0x1094   :  { %5246 = vmatmul.msk.bf16.gmra.mxu1 %vm9827_vm5, %v3657_v49  ;;  %vm9842_vm5 = vmmov %vm9820_vm0 }
0x1098   :  { %v3567_v10 = vpop.f32.mrf.mxu2  ;;  %v3638_v12 = vpop.f32.mrf.mxu3 }
0x1099   :  { %v3650_v52 = vpack.c.bf16 %v3567_v10, %v3565_v27  ;;  %v3802_v3 = vpop.f32.mrf.mxu0 }
0x109b   :  { %5263 = vmatmul.msk.bf16.gmra.mxu0 %vm9828_vm11, %v3650_v52  ;;  %vm9843_vm11 = vmmov %vm9820_vm0 }
0x10a0   :  { %v3640_v60 = vpop.f32.mrf.mxu3  ;;  %v3886_v20 = vpop.f32.mrf.mxu2 }
0x10a1   :  { %v8627_v14 = vpop.f32.mrf.mxu1  ;;  %v3658_v58 = vpack.c.bf16 %v3640_v60, %v3638_v12  ;;  %v3804_v23 = vpop.f32.mrf.mxu0 }
0x10a4   :  { %5247 = vmatmul.msk.bf16.gmra.mxu1 %vm9829_vm14, %v3658_v58  ;;  %vm9844_vm14 = vmmov %vm9820_vm0 }
0x10a8   :  { %v3888_v11 = vpop.f32.mrf.mxu2 }
0x10a9   :  { %v8630_v54 = vpop.f32.mrf.mxu1  ;;  %v3807_v61 = vpop.f32.mrf.mxu0 }
0x10b0   :  { %v3891_v4 = vpop.f32.mrf.mxu2 }
0x10b1   :  { %v3712_v44 = vpop.f32.mrf.mxu1  ;;  %v3809_v15 = vpop.f32.mrf.mxu0 }
0x10b2   :  { %v3798_v51 = vadd.f32 %v3797_v57, %v3712_v44 }
0x10b4   :  { %v3926_v8 = vadd.f32 %v3886_v20, %v3798_v51 }
0x10b6   :  { %v3943_v26 = vadd.f32 %v8633_v45, %v3926_v8 }
0x10b8   :  { %v3959_v50 = vsel %vm9830_vm9, %v3943_v26, 0.0  ;;  %v3893_v17 = vpop.f32.mrf.mxu2  ;;  %vm9845_vm9 = vmmov %vm9820_vm0 }
0x10b9   :  { %v3714_v19 = vpop.f32.mrf.mxu1  ;;  %3960 = vadd.xlane.f32.xlu1 %v3959_v50  ;;  %v3812_v18 = vpop.f32.mrf.mxu0 }
0x10ba   :  { %v3800_v62 = vadd.f32 %v3799_v46, %v3714_v19 }
0x10bc   :  { %v3927_v63 = vadd.f32 %v3888_v11, %v3800_v62 }
0x10be   :  { %v3944_v13 = vadd.f32 %v8633_v45, %v3927_v63 }
0x10c0   :  { %v3962_v34 = vsel %vm9831_vm7, %v3944_v13, 0.0  ;;  %v3896_v5 = vpop.f32.mrf.mxu2  ;;  %vm9846_vm7 = vmmov %vm9820_vm0 }
0x10c1   :  { %v3717_v21 = vpop.f32.mrf.mxu1  ;;  %3963 = vadd.xlane.f32.xlu2 %v3962_v34  ;;  %v3814_v56 = vpop.f32.mrf.mxu0 }
0x10c2   :  { %v3803_v0 = vadd.f32 %v3802_v3, %v3717_v21 }
0x10c4   :  { %v3928_v39 = vadd.f32 %v3891_v4, %v3803_v0 }
0x10c6   :  { %v8640_v43 = vadd.f32 %v8633_v45, %v3928_v39 }
0x10c8   :  { %v3965_v36 = vsel %vm9832_vm6, %v8640_v43, 0.0  ;;  %v3898_v37 = vpop.f32.mrf.mxu2  ;;  %vm9847_vm6 = vmmov %vm9820_vm0 }
0x10c9   :  { %v3719_v33 = vpop.f32.mrf.mxu1  ;;  %3966 = vadd.xlane.f32.xlu0 %v3965_v36  ;;  %v3817_v49 = vpop.f32.mrf.mxu0 }
0x10ca   :  { %v3805_v16 = vadd.f32 %v3804_v23, %v3719_v33 }
0x10cc   :  { %v3929_v55 = vadd.f32 %v3893_v17, %v3805_v16 }
0x10ce   :  { %v8645_v53 = vadd.f32 %v8633_v45, %v3929_v55 }
0x10d0   :  { %v3968_v29 = vsel %vm9833_vm8, %v8645_v53, 0.0  ;;  %v3901_v32 = vpop.f32.mrf.mxu2  ;;  %vm9848_vm8 = vmmov %vm9820_vm0 }
0x10d1   :  { %v3722_v1 = vpop.f32.mrf.mxu1  ;;  %3969 = vadd.xlane.f32.xlu1 %v3968_v29  ;;  %v3819_v8 = vpop.f32.mrf.mxu0 }
0x10d2   :  { %v3808_v40 = vadd.f32 %v3807_v61, %v3722_v1 }
0x10d4   :  { %v3930_v59 = vadd.f32 %v3896_v5, %v3808_v40 }
0x10d6   :  { %v8650_v42 = vadd.f32 %v8633_v45, %v3930_v59 }
0x10d8   :  { %v3971_v6 = vsel %vm9834_vm2, %v8650_v42, 0.0  ;;  %v3903_v31 = vpop.f32.mrf.mxu2  ;;  %vm9849_vm2 = vmmov %vm9820_vm0 }
0x10d9   :  { %v3724_v38 = vpop.f32.mrf.mxu1  ;;  %3972 = vadd.xlane.f32.xlu2 %v3971_v6  ;;  %v3822_v36 = vpop.f32.mrf.mxu0 }
0x10da   :  { %v3810_v47 = vadd.f32 %v3809_v15, %v3724_v38 }
0x10dc   :  { %v3931_v9 = vadd.f32 %v3898_v37, %v3810_v47 }
0x10de   :  { %v8655_v30 = vadd.f32 %v8633_v45, %v3931_v9 }
0x10e0   :  { %v3974_v41 = vsel %vm9835_vm1, %v8655_v30, 0.0  ;;  %v3906_v12 = vpop.f32.mrf.mxu2  ;;  %vm9850_vm1 = vmmov %vm9820_vm0 }
0x10e1   :  { %v3727_v24 = vpop.f32.mrf.mxu1  ;;  %3975 = vadd.xlane.f32.xlu0 %v3974_v41  ;;  %v3824_v6 = vpop.f32.mrf.mxu0 }
0x10e2   :  { %v3813_v7 = vadd.f32 %v3812_v18, %v3727_v24 }
0x10e4   :  { %v3932_v25 = vadd.f32 %v3901_v32, %v3813_v7 }
0x10e6   :  { %v8660_v48 = vadd.f32 %v8633_v45, %v3932_v25 }
0x10e8   :  { %v3977_v35 = vsel %vm9820_vm0, %v8660_v48, 0.0  ;;  %v3908_v50 = vpop.f32.mrf.mxu2 }
0x10e9   :  { %3978 = vadd.xlane.f32.xlu0 %v3977_v35  ;;  %v3729_v2 = vpop.f32.mrf.mxu1 }
0x10ea   :  { %v3815_v60 = vadd.f32 %v3814_v56, %v3729_v2 }
0x10ec   :  { %v3933_v46 = vadd.f32 %v3903_v31, %v3815_v60 }
0x10ee   :  { %v8672_v3 = vadd.f32 %v8633_v45, %v3933_v46 }
0x10f0   :  { %v3980_v63 = vsel %vm9838_vm15, %v8672_v3, 0.0  ;;  %v3911_v33 = vpop.f32.mrf.mxu2 }
0x10f1   :  { %v3732_v27 = vpop.f32.mrf.mxu1 }
0x10f8   :  { %v3913_v38 = vpop.f32.mrf.mxu2 }
0x10f9   :  { %v3734_v20 = vpop.f32.mrf.mxu1 }
0x10fa   :  { %v3820_v39 = vadd.f32 %v3819_v8, %v3734_v20 }
0x10fc   :  { %v3935_v5 = vadd.f32 %v3908_v50, %v3820_v39 }
0x10fe   :  { %v8698_v59 = vadd.f32 %v8633_v45, %v3935_v5 }
0x1100   :  { %v3986_v9 = vsel %vm9842_vm5, %v8698_v59, 0.0 }
0x1101   :  { %v3737_v0 = vpop.f32.mrf.mxu1 }
0x1102   :  { %v3823_v15 = vadd.f32 %v3822_v36, %v3737_v0 }
0x1104   :  { %v3936_v18 = vadd.f32 %v3911_v33, %v3823_v15 }
0x1106   :  { %v8710_v32 = vadd.f32 %v8633_v45, %v3936_v18 }
0x1108   :  { %v3989_v31 = vsel %vm9844_vm14, %v8710_v32, 0.0  ;;  %vm9853_vm14 = vmmov %vm9820_vm0 }
0x1109   :  { %v3739_v1 = vpop.f32.mrf.mxu1 }
0x110a   :  { %v3825_v7 = vadd.f32 %v3824_v6, %v3739_v1  ;;  %v5331_v6 = vld [vmem:[%s9448_s12 + $0x118] sm:$0xff] }
0x110b   :  { %4416 = vmatpush.bf16.msrb.mxu3 %v5331_v6 }
0x110c   :  { %v3937_v56 = vadd.f32 %v3913_v38, %v3825_v7  ;;  %v5330_v7 = vld [vmem:[%s9448_s12 + $0x110] sm:$0xff] }
0x110f   :  { %4417 = vmatpush.bf16.msrb.mxu3 %v5330_v7 }
0x1111   :  { %v3742_v25 = vpop.f32.mrf.mxu1 }
0x1119   :  { %v3744_v20 = vpop.f32.mrf.mxu1 }
0x112c   :  { %v3961_v10 = vpop.xlane.xlu1 %3960 }
0x112d   :  { %v4007_v52 = vmul.f32 %v3961_v10, %v6682_v22 }
0x112f   :  { %v8665_v58 = vsub.f32 %v3943_v26, %v4007_v52  ;;  %v3818_v26 = vadd.f32 %v3817_v49, %v3732_v27  ;;  %v3827_v27 = vpop.f32.mrf.mxu0  ;;  %v8722_v52 = vadd.f32 %v8633_v45, %v3937_v56 }
0x1130   :  { %v3828_v60 = vadd.f32 %v3827_v27, %v3742_v25 }
0x1131   :  { %v4039_v57 = vmul.f32 %v8665_v58, %v8665_v58  ;;  %v3934_v34 = vadd.f32 %v3906_v12, %v3818_v26  ;;  %v3992_v46 = vsel %vm9845_vm9, %v8722_v52, 0.0 }
0x1133   :  { %v4055_v44 = vsel %vm9836_vm12, %v4039_v57, 0.0 }
0x1134   :  { %v3964_v11 = vpop.xlane.xlu2 %3963  ;;  %4056 = vadd.xlane.f32.xlu1 %v4055_v44 }
0x1135   :  { %v4008_v51 = vmul.f32 %v3964_v11, %v6682_v22 }
0x1137   :  { %v8674_v19 = vsub.f32 %v3944_v13, %v4008_v51  ;;  %v8686_v13 = vadd.f32 %v8633_v45, %v3934_v34  ;;  %v3829_v8 = vpop.f32.mrf.mxu0 }
0x1139   :  { %v4040_v4 = vmul.f32 %v8674_v19, %v8674_v19  ;;  %v3983_v55 = vsel %vm9839_vm3, %v8686_v13, 0.0  ;;  %vm9851_vm3 = vmmov %vm9820_vm0 }
0x113b   :  { %v4058_v62 = vsel %vm9837_vm4, %v4040_v4, 0.0 }
0x113c   :  { %4059 = vadd.xlane.f32.xlu2 %v4058_v62  ;;  %3981 = vadd.xlane.f32.xlu1 %v3980_v63  ;;  %v3967_v21 = vpop.xlane.xlu0 %3966  ;;  %v3830_v62 = vadd.f32 %v3829_v8, %v3744_v20 }
0x113d   :  { %v4009_v23 = vmul.f32 %v3967_v21, %v6682_v22 }
0x113f   :  { %v8683_v17 = vsub.f32 %v8640_v43, %v4009_v23  ;;  %v3747_v23 = vpop.f32.mrf.mxu1  ;;  %v3832_v39 = vpop.f32.mrf.mxu0 }
0x1140   :  { %v3833_v36 = vadd.f32 %v3832_v39, %v3747_v23 }
0x1141   :  { %v4041_v16 = vmul.f32 %v8683_v17, %v8683_v17 }
0x1143   :  { %v4061_v61 = vsel %vm9840_vm13, %v4041_v16, 0.0 }
0x1144   :  { %v3970_v29 = vpop.xlane.xlu1 %3969  ;;  %3984 = vadd.xlane.f32.xlu1 %v3983_v55  ;;  %4062 = vadd.xlane.f32.xlu2 %v4061_v61 }
0x1145   :  { %v4010_v43 = vmul.f32 %v3970_v29, %v6682_v22 }
0x1147   :  { %v8695_v40 = vsub.f32 %v8645_v53, %v4010_v43 }
0x1149   :  { %v4042_v37 = vmul.f32 %v8695_v40, %v8695_v40 }
0x114b   :  { %v4064_v47 = vsel %vm9841_vm10, %v4042_v37, 0.0 }
0x114c   :  { %v3973_v41 = vpop.xlane.xlu2 %3972  ;;  %4065 = vadd.xlane.f32.xlu0 %v4064_v47  ;;  %3987 = vadd.xlane.f32.xlu2 %v3986_v9 }
0x114d   :  { %v4011_v53 = vmul.f32 %v3973_v41, %v6682_v22 }
0x114f   :  { %v8707_v24 = vsub.f32 %v8650_v42, %v4011_v53  ;;  %v3916_v42 = vpop.f32.mrf.mxu2 }
0x1150   :  { %v3938_v11 = vadd.f32 %v3916_v42, %v3828_v60 }
0x1151   :  { %v4043_v35 = vmul.f32 %v8707_v24, %v8707_v24 }
0x1152   :  { %v8734_v4 = vadd.f32 %v8633_v45, %v3938_v11 }
0x1153   :  { %v4067_v2 = vsel %vm9843_vm11, %v4043_v35, 0.0  ;;  %vm9852_vm11 = vmmov %vm9820_vm0 }
0x1154   :  { %4068 = vadd.xlane.f32.xlu0 %v4067_v2  ;;  %3990 = vadd.xlane.f32.xlu2 %v3989_v31  ;;  %v3976_v49 = vpop.xlane.xlu0 %3975  ;;  %v3995_v34 = vsel %vm9847_vm6, %v8734_v4, 0.0  ;;  %v3749_v2 = vpop.f32.mrf.mxu1 }
0x1155   :  { %v4012_v10 = vmul.f32 %v3976_v49, %v6682_v22 }
0x1157   :  { %v8719_v12 = vsub.f32 %v8655_v30, %v4012_v10  ;;  %v3918_v50 = vpop.f32.mrf.mxu2  ;;  %v3834_v10 = vpop.f32.mrf.mxu0 }
0x1158   :  { %v3939_v0 = vadd.f32 %v3918_v50, %v3830_v62  ;;  %v3835_v20 = vadd.f32 %v3834_v10, %v3749_v2  ;;  %v8776_v50 = vld [vmem:[%s9449_s13 + $0x18] sm:$0x1f] }
0x1159   :  { %v4044_v57 = vmul.f32 %v8719_v12, %v8719_v12  ;;  %v8780_v39 = vperm.slane %v8776_v50, 0  ;;  %v8792_v6 = vperm.slane %v8776_v50, 1 }
0x115b   :  { %v4070_v44 = vsel %vm9846_vm7, %v4044_v57, 0.0 }
0x115c   :  { %3993 = vadd.xlane.f32.xlu0 %v3992_v46  ;;  %4071 = vadd.xlane.f32.xlu1 %v4070_v44  ;;  %v3979_v51 = vpop.xlane.xlu0 %3978 }
0x115d   :  { %v4013_v30 = vmul.f32 %v3979_v51, %v6682_v22 }
0x115f   :  { %v8731_v26 = vsub.f32 %v8660_v48, %v4013_v30  ;;  %v8742_v48 = vadd.f32 %v8633_v45, %v3939_v0  ;;  %v3921_v33 = vpop.f32.mrf.mxu2 }
0x1160   :  { %v3940_v55 = vadd.f32 %v3921_v33, %v3833_v36 }
0x1161   :  { %v4045_v63 = vmul.f32 %v8731_v26, %v8731_v26  ;;  %v3998_v16 = vsel %vm9849_vm2, %v8742_v48, 0.0  ;;  %vm9855_vm2 = vmmov %vm9820_vm0 }
0x1162   :  { %v8747_v61 = vadd.f32 %v8633_v45, %v3940_v55 }
0x1163   :  { %v4073_v21 = vsel %vm9848_vm8, %v4045_v63, 0.0  ;;  %vm9854_vm8 = vmmov %vm9820_vm0 }
0x1164   :  { %3996 = vadd.xlane.f32.xlu0 %v3995_v34  ;;  %4074 = vadd.xlane.f32.xlu1 %v4073_v21  ;;  %v4001_v5 = vsel %vm9850_vm1, %v8747_v61, 0.0 }
0x1167   :  { %v3923_v11 = vpop.f32.mrf.mxu2 }
0x1168   :  { %v3941_v34 = vadd.f32 %v3923_v11, %v3835_v20 }
0x116c   :  { %3999 = vadd.xlane.f32.xlu1 %v3998_v16 }
0x1174   :  { %4002 = vadd.xlane.f32.xlu1 %v4001_v5 }
0x11a7   :  { %v4057_v29 = vpop.xlane.xlu1 %4056 }
0x11a8   :  { %v4103_v43 = vmul.f32 %v4057_v29, %v6682_v22  ;;  %v8786_v29 = vadd.f32 %v8633_v45, %v3941_v34 }
0x11aa   :  { %v4119_v1 = vadd.f32 1e-05, %v4103_v43 }
0x11ac   :  { %5856 = vrsqrt.f32 %v4119_v1  ;;  %vm4141_vm4 = vweird.f32 %v4119_v1 }
0x11af   :  { %v4060_v15 = vpop.xlane.xlu2 %4059  ;;  %v3982_v37 = vpop.xlane.xlu1 %3981 }
0x11b0   :  { %v4104_v38 = vmul.f32 %v4060_v15, %v6682_v22  ;;  %v4014_v47 = vmul.f32 %v3982_v37, %v6682_v22 }
0x11b2   :  { %v5857_v9 = vpop.eup %5856  ;;  %v4120_v18 = vadd.f32 1e-05, %v4104_v38  ;;  %v8758_v41 = vsub.f32 %v8672_v3, %v4014_v47 }
0x11b3   :  { %v4136_v53 = vmul.f32 %v5857_v9, %v4119_v1  ;;  %vm4142_vm12 = vweird.f32 %v5857_v9 }
0x11b4   :  { %5858 = vrsqrt.f32 %v4120_v18  ;;  %v4046_v25 = vmul.f32 %v8758_v41, %v8758_v41  ;;  %vm4143_vm15 = vmor %vm4141_vm4, %vm4142_vm12  ;;  %vm4151_vm10 = vweird.f32 %v4120_v18 }
0x11b5   :  { %v4137_v35 = vmul.f32 %v5857_v9, %v4136_v53  ;;  %vm9856_vm4 = vmmov %vm9855_vm2 }
0x11b6   :  { %v4076_v31 = vsel %vm9820_vm0, %v4046_v25, 0.0 }
0x11b7   :  { %v4138_v56 = vmul.f32 0.5, %v4137_v35  ;;  %v3985_v27 = vpop.xlane.xlu1 %3984  ;;  %4077 = vadd.xlane.f32.xlu2 %v4076_v31  ;;  %v4063_v49 = vpop.xlane.xlu2 %4062 }
0x11b8   :  { %v4015_v3 = vmul.f32 %v3985_v27, %v6682_v22  ;;  %v4105_v42 = vmul.f32 %v4063_v49, %v6682_v22 }
0x11b9   :  { %v4139_v60 = vsub.f32 1.5, %v4138_v56 }
0x11ba   :  { %v5859_v57 = vpop.eup %5858  ;;  %v8769_v46 = vsub.f32 %v8686_v13, %v4015_v3  ;;  %v4121_v44 = vadd.f32 1e-05, %v4105_v42 }
0x11bb   :  { %v4140_v51 = vmul.f32 %v5857_v9, %v4139_v60  ;;  %v4146_v30 = vmul.f32 %v5859_v57, %v4120_v18  ;;  %vm4152_vm13 = vweird.f32 %v5859_v57 }
0x11bc   :  { %5860 = vrsqrt.f32 %v4121_v44  ;;  %v4047_v8 = vmul.f32 %v8769_v46, %v8769_v46  ;;  %vm4153_vm5 = vmor %vm4151_vm10, %vm4152_vm13  ;;  %vm4161_vm7 = vweird.f32 %v4121_v44 }
0x11bd   :  { %v4144_v62 = vsel %vm4143_vm15, %v5857_v9, %v4140_v51  ;;  %v4147_v63 = vmul.f32 %v5859_v57, %v4146_v30  ;;  %vm9857_vm10 = vmmov %vm9855_vm2 }
0x11be   :  { %v4079_v13 = vsel %vm9851_vm3, %v4047_v8, 0.0  ;;  %v4295_v36 = vmul.f32 %v4144_v62, %v8665_v58 }
0x11bf   :  { %v4148_v21 = vmul.f32 0.5, %v4147_v63  ;;  %4080 = vadd.xlane.f32.xlu2 %v4079_v13  ;;  %v3988_v0 = vpop.xlane.xlu2 %3987  ;;  %v4066_v23 = vpop.xlane.xlu0 %4065 }
0x11c0   :  { %v4016_v33 = vmul.f32 %v3988_v0, %v6682_v22  ;;  %v4106_v16 = vmul.f32 %v4066_v23, %v6682_v22  ;;  %v4312_v58 = vmul.f32 %v8780_v39, %v4295_v36 }
0x11c1   :  { %v4149_v55 = vsub.f32 1.5, %v4148_v21 }
0x11c2   :  { %v5861_v5 = vpop.eup %5860  ;;  %v8789_v43 = vsub.f32 %v8698_v59, %v4016_v33  ;;  %v4122_v1 = vadd.f32 1e-05, %v4106_v16  ;;  %v4004_v59 = vsel %vm9852_vm11, %v8786_v29, 0.0  ;;  %v4329_v35 = vadd.f32 %v8792_v6, %v4312_v58 }
0x11c3   :  { %v4150_v15 = vmul.f32 %v5859_v57, %v4149_v55  ;;  %v4156_v37 = vmul.f32 %v5861_v5, %v4121_v44  ;;  %vm4162_vm9 = vweird.f32 %v5861_v5 }
0x11c4   :  { %5862 = vrsqrt.f32 %v4122_v1  ;;  %v4048_v38 = vmul.f32 %v8789_v43, %v8789_v43  ;;  %vm4163_vm6 = vmor %vm4161_vm7, %vm4162_vm9  ;;  %vm4171_vm0 = vweird.f32 %v4122_v1 }
0x11c5   :  { %v4154_v47 = vsel %vm4153_vm5, %v5859_v57, %v4150_v15  ;;  %v4157_v45 = vmul.f32 %v5861_v5, %v4156_v37  ;;  %v4345_v57 = vmax.f32 %v4329_v35, 0.0  ;;  %vm9858_vm5 = vmmov %vm9855_vm2 }
0x11c6   :  { %v4296_v9 = vmul.f32 %v4154_v47, %v8674_v19  ;;  %v4082_v18 = vsel %vm9853_vm14, %v4048_v38, 0.0  ;;  %vm9859_vm7 = vmmov %vm9855_vm2 }
0x11c7   :  { %v4158_v53 = vmul.f32 0.5, %v4157_v45  ;;  %4005 = vadd.xlane.f32.xlu2 %v4004_v59  ;;  %4083 = vadd.xlane.f32.xlu0 %v4082_v18  ;;  %v3991_v7 = vpop.xlane.xlu2 %3990  ;;  %v4069_v25 = vpop.xlane.xlu0 %4068 }
0x11c8   :  { %v4313_v2 = vmul.f32 %v8780_v39, %v4296_v9  ;;  %v4017_v31 = vmul.f32 %v3991_v7, %v6682_v22  ;;  %v4107_v56 = vmul.f32 %v4069_v25, %v6682_v22 }
0x11c9   :  { %v4159_v27 = vsub.f32 1.5, %v4158_v53 }
0x11ca   :  { %v5863_v19 = vpop.eup %5862  ;;  %v4330_v49 = vadd.f32 %v8792_v6, %v4313_v2  ;;  %v8807_v3 = vsub.f32 %v8710_v32, %v4017_v31  ;;  %v4123_v42 = vadd.f32 1e-05, %v4107_v56 }
0x11cb   :  { %v4160_v10 = vmul.f32 %v5861_v5, %v4159_v27  ;;  %v4166_v60 = vmul.f32 %v5863_v19, %v4122_v1  ;;  %vm4172_vm1 = vweird.f32 %v5863_v19 }
0x11cc   :  { %v4346_v20 = vmax.f32 %v4330_v49, 0.0  ;;  %5864 = vrsqrt.f32 %v4123_v42  ;;  %v4049_v11 = vmul.f32 %v8807_v3, %v8807_v3  ;;  %vm4173_vm12 = vmor %vm4171_vm0, %vm4172_vm1  ;;  %vm4181_vm3 = vweird.f32 %v4123_v42 }
0x11cd   :  { %v4164_v51 = vsel %vm4163_vm6, %v5861_v5, %v4160_v10  ;;  %v4167_v30 = vmul.f32 %v5863_v19, %v4166_v60  ;;  %vm9860_vm6 = vmmov %vm9855_vm2 }
0x11ce   :  { %v4361_v8 = vpack.c.bf16 %v4346_v20, %v4345_v57  ;;  %v4085_v62 = vsel %vm9854_vm8, %v4049_v11, 0.0  ;;  %v4297_v13 = vmul.f32 %v4164_v51, %v8683_v17  ;;  %vm9861_vm8 = vmmov %vm9855_vm2 }
0x11cf   :  { %v4168_v63 = vmul.f32 0.5, %v4167_v30  ;;  %4086 = vadd.xlane.f32.xlu0 %v4085_v62  ;;  %v4072_v32 = vpop.xlane.xlu1 %4071  ;;  %v3994_v34 = vpop.xlane.xlu0 %3993  ;;  %vm9862_vm1 = vmmov %vm9855_vm2 }
0x11d0   :  { %v4108_v44 = vmul.f32 %v4072_v32, %v6682_v22  ;;  %v4018_v21 = vmul.f32 %v3994_v34, %v6682_v22  ;;  %5288 = vmatmul.msk.bf16.vlgmr.msrb.gmra.mxu3 %vm9855_vm2, %v4361_v8  ;;  %v4314_v5 = vmul.f32 %v8780_v39, %v4297_v13 }
0x11d1   :  { %v4169_v0 = vsub.f32 1.5, %v4168_v63 }
0x11d2   :  { %v5865_v23 = vpop.eup %5864  ;;  %v4124_v36 = vadd.f32 1e-05, %v4108_v44  ;;  %v8817_v33 = vsub.f32 %v8722_v52, %v4018_v21  ;;  %v4331_v59 = vadd.f32 %v8792_v6, %v4314_v5 }
0x11d3   :  { %v4170_v16 = vmul.f32 %v5863_v19, %v4169_v0  ;;  %v4176_v55 = vmul.f32 %v5865_v23, %v4123_v42  ;;  %vm4182_vm15 = vweird.f32 %v5865_v23 }
0x11d4   :  { %5866 = vrsqrt.f32 %v4124_v36  ;;  %v4050_v17 = vmul.f32 %v8817_v33, %v8817_v33  ;;  %vm4183_vm13 = vmor %vm4181_vm3, %vm4182_vm15  ;;  %v4347_v31 = vmax.f32 %v4331_v59, 0.0  ;;  %vm4191_vm14 = vweird.f32 %v4124_v36 }
0x11d5   :  { %v4174_v15 = vsel %vm4173_vm12, %v5863_v19, %v4170_v16  ;;  %v4177_v37 = vmul.f32 %v5865_v23, %v4176_v55 }
0x11d6   :  { %v4298_v58 = vmul.f32 %v4174_v15, %v8695_v40  ;;  %v4088_v38 = vsel %vm9856_vm4, %v4050_v17, 0.0 }
0x11d7   :  { %v4178_v47 = vmul.f32 0.5, %v4177_v37  ;;  %v4075_v45 = vpop.xlane.xlu1 %4074  ;;  %4089 = vadd.xlane.f32.xlu1 %v4088_v38  ;;  %v3997_v52 = vpop.xlane.xlu0 %3996 }
0x11d8   :  { %v4315_v1 = vmul.f32 %v8780_v39, %v4298_v58  ;;  %v4019_v9 = vmul.f32 %v3997_v52, %v6682_v22  ;;  %v4109_v17 = vmul.f32 %v4075_v45, %v6682_v22 }
0x11d9   :  { %v4179_v18 = vsub.f32 1.5, %v4178_v47 }
0x11da   :  { %v5867_v53 = vpop.eup %5866  ;;  %v8828_v7 = vsub.f32 %v8734_v4, %v4019_v9  ;;  %v4332_v40 = vadd.f32 %v8792_v6, %v4315_v1  ;;  %v4125_v15 = vadd.f32 1e-05, %v4109_v17 }
0x11db   :  { %v4180_v25 = vmul.f32 %v5865_v23, %v4179_v18  ;;  %v4186_v35 = vmul.f32 %v5867_v53, %v4124_v36  ;;  %vm4192_vm11 = vweird.f32 %v5867_v53 }
0x11dc   :  { %v4051_v2 = vmul.f32 %v8828_v7, %v8828_v7  ;;  %v4348_v56 = vmax.f32 %v4332_v40, 0.0  ;;  %vm4193_vm9 = vmor %vm4191_vm14, %vm4192_vm11  ;;  %5868 = vrsqrt.f32 %v4125_v15  ;;  %vm4201_vm12 = vweird.f32 %v4125_v15 }
0x11dd   :  { %v4184_v27 = vsel %vm4183_vm13, %v5865_v23, %v4180_v25  ;;  %v4187_v19 = vmul.f32 %v5867_v53, %v4186_v35 }
0x11de   :  { %v4091_v49 = vsel %vm9857_vm10, %v4051_v2, 0.0  ;;  %v4362_v10 = vpack.c.bf16 %v4348_v56, %v4347_v31  ;;  %v4299_v4 = vmul.f32 %v4184_v27, %v8707_v24  ;;  %v3413_v24 = vperm.slane %v8589_v28, 4  ;;  %vm9863_vm10 = vmmov %vm9862_vm1 }
0x11df   :  { %v4188_v60 = vmul.f32 0.5, %v4187_v19  ;;  %v4000_v57 = vpop.xlane.xlu1 %3999  ;;  %4092 = vadd.xlane.f32.xlu2 %v4091_v49 }
0x11e0   :  { %v4020_v20 = vmul.f32 %v4000_v57, %v6682_v22  ;;  %5289 = vmatmul.msk.bf16.gmra.mxu3 %vm9858_vm5, %v4362_v10  ;;  %v4316_v30 = vmul.f32 %v8780_v39, %v4299_v4  ;;  %v8850_v21 = vadd.f32 %v8627_v14, %v3413_v24  ;;  %v8863_v14 = vadd.f32 %v8630_v54, %v3413_v24 }
0x11e1   :  { %v4189_v42 = vsub.f32 1.5, %v4188_v60 }
0x11e2   :  { %v8838_v11 = vsub.f32 %v8742_v48, %v4020_v20  ;;  %v4333_v44 = vadd.f32 %v8792_v6, %v4316_v30  ;;  %v3443_v16 = vsel %vm9860_vm6, %v8850_v21, 0.0  ;;  %v5869_v37 = vpop.eup %5868 }
0x11e3   :  { %v4190_v51 = vmul.f32 %v5867_v53, %v4189_v42  ;;  %v4196_v58 = vmul.f32 %v5869_v37, %v4125_v15  ;;  %vm4202_vm0 = vweird.f32 %v5869_v37 }
0x11e4   :  { %v4052_v8 = vmul.f32 %v8838_v11, %v8838_v11  ;;  %v4349_v23 = vmax.f32 %v4333_v44, 0.0  ;;  %vm4203_vm4 = vmor %vm4201_vm12, %vm4202_vm0 }
0x11e5   :  { %v4194_v62 = vsel %vm4193_vm9, %v5867_v53, %v4190_v51  ;;  %v4197_v38 = vmul.f32 %v5869_v37, %v4196_v58  ;;  %vm9864_vm9 = vmmov %vm9862_vm1 }
0x11e6   :  { %v4300_v63 = vmul.f32 %v4194_v62, %v8719_v12  ;;  %v4094_v32 = vsel %vm9859_vm7, %v4052_v8, 0.0  ;;  %vm9865_vm0 = vmmov %vm9864_vm9 }
0x11e7   :  { %4095 = vadd.xlane.f32.xlu0 %v4094_v32  ;;  %v4003_v34 = vpop.xlane.xlu1 %4002  ;;  %v4198_v1 = vmul.f32 0.5, %v4197_v38 }
0x11e8   :  { %v4317_v48 = vmul.f32 %v8780_v39, %v4300_v63  ;;  %v4021_v13 = vmul.f32 %v4003_v34, %v6682_v22 }
0x11e9   :  { %v4199_v59 = vsub.f32 1.5, %v4198_v1 }
0x11ea   :  { %v8853_v0 = vsub.f32 %v8747_v61, %v4021_v13  ;;  %v4334_v28 = vadd.f32 %v8792_v6, %v4317_v48  ;;  %v3446_v61 = vsel %vm9862_vm1, %v8863_v14, 0.0 }
0x11eb   :  { %v4200_v53 = vmul.f32 %v5869_v37, %v4199_v59 }
0x11ec   :  { %v4053_v12 = vmul.f32 %v8853_v0, %v8853_v0  ;;  %v4350_v36 = vmax.f32 %v4334_v28, 0.0 }
0x11ed   :  { %v4204_v35 = vsel %vm4203_vm4, %v5869_v37, %v4200_v53  ;;  %vm9866_vm4 = vmmov %vm9865_vm0 }
0x11ee   :  { %v4097_v55 = vsel %vm9861_vm8, %v4053_v12, 0.0  ;;  %v4363_v5 = vpack.c.bf16 %v4350_v36, %v4349_v23  ;;  %v4301_v19 = vmul.f32 %v4204_v35, %v8731_v26 }
0x11ef   :  { %3444 = vadd.xlane.f32.xlu0 %v3443_v16  ;;  %4098 = vadd.xlane.f32.xlu1 %v4097_v55 }
0x11f0   :  { %5290 = vmatmul.msk.bf16.gmra.mxu3 %vm9855_vm2, %v4363_v5  ;;  %v4318_v30 = vmul.f32 %v8780_v39, %v4301_v19 }
0x11f2   :  { %v4335_v13 = vadd.f32 %v8792_v6, %v4318_v30 }
0x11f4   :  { %v4351_v16 = vmax.f32 %v4335_v13, 0.0 }
0x11f7   :  { %3447 = vadd.xlane.f32.xlu1 %v3446_v61 }
0x122a   :  { %v4078_v47 = vpop.xlane.xlu2 %4077 }
0x122b   :  { %v4110_v52 = vmul.f32 %v4078_v47, %v6682_v22 }
0x122d   :  { %v4126_v9 = vadd.f32 1e-05, %v4110_v52 }
0x122f   :  { %5870 = vrsqrt.f32 %v4126_v9  ;;  %vm4211_vm3 = vweird.f32 %v4126_v9 }
0x1232   :  { %v4081_v54 = vpop.xlane.xlu2 %4080 }
0x1233   :  { %v4111_v18 = vmul.f32 %v4081_v54, %v6682_v22 }
0x1235   :  { %v5871_v40 = vpop.eup %5870  ;;  %v4127_v25 = vadd.f32 1e-05, %v4111_v18 }
0x1236   :  { %v4206_v45 = vmul.f32 %v5871_v40, %v4126_v9  ;;  %vm4212_vm15 = vweird.f32 %v5871_v40 }
0x1237   :  { %5872 = vrsqrt.f32 %v4127_v25  ;;  %vm4213_vm13 = vmor %vm4211_vm3, %vm4212_vm15  ;;  %vm4221_vm11 = vweird.f32 %v4127_v25 }
0x1238   :  { %v4207_v2 = vmul.f32 %v5871_v40, %v4206_v45 }
0x123a   :  { %v4208_v31 = vmul.f32 0.5, %v4207_v2  ;;  %v4006_v56 = vpop.xlane.xlu2 %4005  ;;  %v4084_v27 = vpop.xlane.xlu0 %4083 }
0x123b   :  { %v4022_v49 = vmul.f32 %v4006_v56, %v6682_v22  ;;  %v4112_v10 = vmul.f32 %v4084_v27, %v6682_v22 }
0x123c   :  { %v4209_v60 = vsub.f32 1.5, %v4208_v31 }
0x123d   :  { %v5873_v57 = vpop.eup %5872  ;;  %v8874_v4 = vsub.f32 %v8786_v29, %v4022_v49  ;;  %v4128_v20 = vadd.f32 1e-05, %v4112_v10 }
0x123e   :  { %v4210_v42 = vmul.f32 %v5871_v40, %v4209_v60  ;;  %v4216_v51 = vmul.f32 %v5873_v57, %v4127_v25  ;;  %vm4222_vm5 = vweird.f32 %v5873_v57 }
0x123f   :  { %5874 = vrsqrt.f32 %v4128_v20  ;;  %v4054_v26 = vmul.f32 %v8874_v4, %v8874_v4  ;;  %vm4223_vm14 = vmor %vm4221_vm11, %vm4222_vm5  ;;  %vm4231_vm6 = vweird.f32 %v4128_v20 }
0x1240   :  { %v4214_v8 = vsel %vm4213_vm13, %v5871_v40, %v4210_v42  ;;  %v4217_v62 = vmul.f32 %v5873_v57, %v4216_v51  ;;  %v8890_v40 = vperm.slane %v8776_v50, 2  ;;  %vm9867_vm13 = vmmov %vm9865_vm0 }
0x1241   :  { %v4302_v24 = vmul.f32 %v4214_v8, %v8758_v41  ;;  %v4100_v63 = vsel %vm9863_vm10, %v4054_v26, 0.0 }
0x1242   :  { %v4218_v32 = vmul.f32 0.5, %v4217_v62  ;;  %4101 = vadd.xlane.f32.xlu2 %v4100_v63  ;;  %v4087_v29 = vpop.xlane.xlu0 %4086 }
0x1243   :  { %v4319_v34 = vmul.f32 %v8780_v39, %v4302_v24  ;;  %v4113_v48 = vmul.f32 %v4087_v29, %v6682_v22 }
0x1244   :  { %v4219_v44 = vsub.f32 1.5, %v4218_v32 }
0x1245   :  { %v5875_v28 = vpop.eup %5874  ;;  %v4129_v12 = vadd.f32 1e-05, %v4113_v48  ;;  %v4336_v23 = vadd.f32 %v8792_v6, %v4319_v34 }
0x1246   :  { %v4220_v36 = vmul.f32 %v5873_v57, %v4219_v44  ;;  %v4226_v41 = vmul.f32 %v5875_v28, %v4128_v20  ;;  %vm4232_vm7 = vweird.f32 %v5875_v28 }
0x1247   :  { %5876 = vrsqrt.f32 %v4129_v12  ;;  %v4352_v55 = vmax.f32 %v4336_v23, 0.0  ;;  %vm4233_vm8 = vmor %vm4231_vm6, %vm4232_vm7  ;;  %vm4241_vm1 = vweird.f32 %v4129_v12 }
0x1248   :  { %v4224_v5 = vsel %vm4223_vm14, %v5873_v57, %v4220_v36  ;;  %v4227_v61 = vmul.f32 %v5875_v28, %v4226_v41  ;;  %vm9868_vm14 = vmmov %vm9865_vm0 }
0x1249   :  { %v4364_v17 = vpack.c.bf16 %v4352_v55, %v4351_v16  ;;  %v4303_v58 = vmul.f32 %v4224_v5, %v8769_v46  ;;  %vm9869_vm7 = vmmov %vm9865_vm0 }
0x124a   :  { %v4228_v15 = vmul.f32 0.5, %v4227_v61  ;;  %v4090_v37 = vpop.xlane.xlu1 %4089 }
0x124b   :  { %v4114_v38 = vmul.f32 %v4090_v37, %v6682_v22  ;;  %5291 = vmatmul.msk.bf16.gmra.mxu3 %vm9864_vm9, %v4364_v17  ;;  %v4320_v54 = vmul.f32 %v8780_v39, %v4303_v58 }
0x124c   :  { %v4229_v47 = vsub.f32 1.5, %v4228_v15 }
0x124d   :  { %v5877_v52 = vpop.eup %5876  ;;  %v4130_v1 = vadd.f32 1e-05, %v4114_v38  ;;  %v4337_v56 = vadd.f32 %v8792_v6, %v4320_v54 }
0x124e   :  { %v4230_v9 = vmul.f32 %v5875_v28, %v4229_v47  ;;  %v4236_v59 = vmul.f32 %v5877_v52, %v4129_v12  ;;  %vm4242_vm2 = vweird.f32 %v5877_v52 }
0x124f   :  { %5878 = vrsqrt.f32 %v4130_v1  ;;  %vm4243_vm12 = vmor %vm4241_vm1, %vm4242_vm2  ;;  %v4353_v20 = vmax.f32 %v4337_v56, 0.0  ;;  %vm4251_vm3 = vweird.f32 %v4130_v1 }
0x1250   :  { %v4234_v18 = vsel %vm4233_vm8, %v5875_v28, %v4230_v9  ;;  %v4237_v53 = vmul.f32 %v5877_v52, %v4236_v59  ;;  %vm9870_vm2 = vmmov %vm9865_vm0 }
0x1251   :  { %v4304_v46 = vmul.f32 %v4234_v18, %v8789_v43 }
0x1252   :  { %v4238_v25 = vmul.f32 0.5, %v4237_v53  ;;  %v4093_v45 = vpop.xlane.xlu2 %4092 }
0x1253   :  { %v4321_v35 = vmul.f32 %v8780_v39, %v4304_v46  ;;  %v4115_v2 = vmul.f32 %v4093_v45, %v6682_v22  ;;  %v4419_v31 = vpop.f32.mrf.mxu3 }
0x1254   :  { %v4239_v27 = vsub.f32 1.5, %v4238_v25  ;;  %v8897_v19 = vadd.f32 %v4419_v31, %v8890_v40 }
0x1255   :  { %v5879_v49 = vpop.eup %5878  ;;  %v4131_v10 = vadd.f32 1e-05, %v4115_v2  ;;  %v4338_v50 = vadd.f32 %v8792_v6, %v4321_v35 }
0x1256   :  { %v4240_v60 = vmul.f32 %v5877_v52, %v4239_v27  ;;  %v4246_v43 = vmul.f32 %v5879_v49, %v4130_v1  ;;  %v4459_v57 = vsel %vm9865_vm0, %v8897_v19, 0.0  ;;  %vm4252_vm15 = vweird.f32 %v5879_v49 }
0x1257   :  { %5880 = vrsqrt.f32 %v4131_v10  ;;  %4460 = vadd.xlane.f32.xlu2 %v4459_v57  ;;  %v4354_v42 = vmax.f32 %v4338_v50, 0.0  ;;  %vm4253_vm10 = vmor %vm4251_vm3, %vm4252_vm15  ;;  %vm4261_vm11 = vweird.f32 %v4131_v10 }
0x1258   :  { %v4244_v51 = vsel %vm4243_vm12, %v5877_v52, %v4240_v60  ;;  %v4247_v30 = vmul.f32 %v5879_v49, %v4246_v43  ;;  %vm9871_vm12 = vmmov %vm9865_vm0 }
0x1259   :  { %v4365_v26 = vpack.c.bf16 %v4354_v42, %v4353_v20  ;;  %v4305_v24 = vmul.f32 %v4244_v51, %v8807_v3 }
0x125a   :  { %v4248_v8 = vmul.f32 0.5, %v4247_v30  ;;  %v4096_v62 = vpop.xlane.xlu0 %4095 }
0x125b   :  { %v4116_v63 = vmul.f32 %v4096_v62, %v6682_v22  ;;  %v4421_v32 = vpop.f32.mrf.mxu3  ;;  %5292 = vmatmul.msk.bf16.gmra.mxu3 %vm9866_vm4, %v4365_v26  ;;  %v4322_v3 = vmul.f32 %v8780_v39, %v4305_v24  ;;  %vm9872_vm4 = vmmov %vm9865_vm0 }
0x125c   :  { %v4249_v29 = vsub.f32 1.5, %v4248_v8  ;;  %v8906_v34 = vadd.f32 %v4421_v32, %v8890_v40 }
0x125d   :  { %v5881_v48 = vpop.eup %5880  ;;  %v4132_v13 = vadd.f32 1e-05, %v4116_v63  ;;  %v4339_v61 = vadd.f32 %v8792_v6, %v4322_v3 }
0x125e   :  { %v4250_v44 = vmul.f32 %v5879_v49, %v4249_v29  ;;  %v4256_v28 = vmul.f32 %v5881_v48, %v4131_v10  ;;  %v4462_v12 = vsel %vm9867_vm13, %v8906_v34, 0.0  ;;  %vm4262_vm5 = vweird.f32 %v5881_v48 }
0x125f   :  { %5882 = vrsqrt.f32 %v4132_v13  ;;  %4463 = vadd.xlane.f32.xlu0 %v4462_v12  ;;  %vm4263_vm9 = vmor %vm4261_vm11, %vm4262_vm5  ;;  %v4355_v52 = vmax.f32 %v4339_v61, 0.0  ;;  %vm4271_vm8 = vweird.f32 %v4132_v13 }
0x1260   :  { %v4254_v23 = vsel %vm4253_vm10, %v5879_v49, %v4250_v44  ;;  %v4257_v36 = vmul.f32 %v5881_v48, %v4256_v28 }
0x1261   :  { %v4306_v41 = vmul.f32 %v4254_v23, %v8817_v33 }
0x1262   :  { %v4258_v16 = vmul.f32 0.5, %v4257_v36  ;;  %v4099_v26 = vpop.xlane.xlu1 %4098 }
0x1263   :  { %v4323_v55 = vmul.f32 %v8780_v39, %v4306_v41  ;;  %v4424_v5 = vpop.f32.mrf.mxu3  ;;  %v4117_v8 = vmul.f32 %v4099_v26, %v6682_v22 }
0x1264   :  { %v4259_v17 = vsub.f32 1.5, %v4258_v16  ;;  %v8915_v15 = vadd.f32 %v4424_v5, %v8890_v40 }
0x1265   :  { %v5883_v37 = vpop.eup %5882  ;;  %v4340_v58 = vadd.f32 %v8792_v6, %v4323_v55  ;;  %v4133_v62 = vadd.f32 1e-05, %v4117_v8 }
0x1266   :  { %v4260_v38 = vmul.f32 %v5881_v48, %v4259_v17  ;;  %v4266_v47 = vmul.f32 %v5883_v37, %v4132_v13  ;;  %v4465_v33 = vsel %vm9868_vm14, %v8915_v15, 0.0  ;;  %vm4272_vm6 = vweird.f32 %v5883_v37  ;;  %vm9873_vm14 = vmmov %vm9865_vm0 }
0x1267   :  { %4466 = vadd.xlane.f32.xlu1 %v4465_v33  ;;  %v4356_v1 = vmax.f32 %v4340_v58, 0.0  ;;  %vm4273_vm1 = vmor %vm4271_vm8, %vm4272_vm6  ;;  %5884 = vrsqrt.f32 %v4133_v62  ;;  %vm4281_vm3 = vweird.f32 %v4133_v62 }
0x1268   :  { %v4264_v9 = vsel %vm4263_vm9, %v5881_v48, %v4260_v38  ;;  %v4267_v59 = vmul.f32 %v5883_v37, %v4266_v47  ;;  %vm9874_vm9 = vmmov %vm9865_vm0 }
0x1269   :  { %v4366_v54 = vpack.c.bf16 %v4356_v1, %v4355_v52  ;;  %v4307_v53 = vmul.f32 %v4264_v9, %v8828_v7  ;;  %vm9876_vm6 = vmmov %vm9865_vm0 }
0x126a   :  { %v4268_v18 = vmul.f32 0.5, %v4267_v59  ;;  %vm9877_vm8 = vmmov %vm9865_vm0 }
0x126b   :  { %v4426_v46 = vpop.f32.mrf.mxu3  ;;  %5293 = vmatmul.msk.bf16.gmra.mxu3 %vm9869_vm7, %v4366_v54  ;;  %v4324_v31 = vmul.f32 %v8780_v39, %v4307_v53  ;;  %vm9875_vm7 = vmmov %vm9865_vm0 }
0x126c   :  { %v4269_v25 = vsub.f32 1.5, %v4268_v18  ;;  %v8923_v45 = vadd.f32 %v4426_v46, %v8890_v40 }
0x126d   :  { %v4341_v10 = vadd.f32 %v8792_v6, %v4324_v31  ;;  %v5885_v24 = vpop.eup %5884 }
0x126e   :  { %v4270_v35 = vmul.f32 %v5883_v37, %v4269_v25  ;;  %v4468_v2 = vsel %vm9870_vm2, %v8923_v45, 0.0  ;;  %v4276_v63 = vmul.f32 %v5885_v24, %v4133_v62  ;;  %vm4282_vm15 = vweird.f32 %v5885_v24  ;;  %vm9878_vm2 = vmmov %vm9865_vm0 }
0x126f   :  { %4469 = vadd.xlane.f32.xlu2 %v4468_v2  ;;  %v4357_v57 = vmax.f32 %v4341_v10, 0.0  ;;  %vm4283_vm13 = vmor %vm4281_vm3, %vm4282_vm15 }
0x1270   :  { %v4274_v56 = vsel %vm4273_vm1, %v5883_v37, %v4270_v35  ;;  %v4277_v32 = vmul.f32 %v5885_v24, %v4276_v63  ;;  %vm9879_vm1 = vmmov %vm9865_vm0 }
0x1271   :  { %v4308_v7 = vmul.f32 %v4274_v56, %v8838_v11  ;;  %vm9882_vm15 = vmmov %vm9865_vm0 }
0x1272   :  { %v4278_v13 = vmul.f32 0.5, %v4277_v32  ;;  %vm9883_vm3 = vmmov %vm9865_vm0 }
0x1273   :  { %v4325_v27 = vmul.f32 %v8780_v39, %v4308_v7  ;;  %v4429_v49 = vpop.f32.mrf.mxu3 }
0x1274   :  { %v8932_v50 = vadd.f32 %v4429_v49, %v8890_v40  ;;  %v4279_v28 = vsub.f32 1.5, %v4278_v13 }
0x1275   :  { %v4342_v60 = vadd.f32 %v8792_v6, %v4325_v27 }
0x1276   :  { %v4471_v43 = vsel %vm9865_vm0, %v8932_v50, 0.0  ;;  %v4280_v12 = vmul.f32 %v5885_v24, %v4279_v28 }
0x1277   :  { %4472 = vadd.xlane.f32.xlu0 %v4471_v43  ;;  %v4358_v20 = vmax.f32 %v4342_v60, 0.0 }
0x1278   :  { %v4284_v36 = vsel %vm4283_vm13, %v5885_v24, %v4280_v12  ;;  %vm9884_vm13 = vmmov %vm9865_vm0 }
0x1279   :  { %v4367_v42 = vpack.c.bf16 %v4358_v20, %v4357_v57  ;;  %v4309_v55 = vmul.f32 %v4284_v36, %v8853_v0  ;;  %v3445_v20 = vpop.xlane.xlu0 %3444 }
0x127b   :  { %v4431_v51 = vpop.f32.mrf.mxu3  ;;  %5294 = vmatmul.msk.bf16.gmra.mxu3 %vm9871_vm12, %v4367_v42  ;;  %v4326_v17 = vmul.f32 %v8780_v39, %v4309_v55  ;;  %v3449_v42 = vmul.f32 %v3445_v20, %v6682_v22  ;;  %vm9880_vm12 = vmmov %vm9865_vm0 }
0x127c   :  { %v8939_v11 = vadd.f32 %v4431_v51, %v8890_v40 }
0x127d   :  { %v4343_v33 = vadd.f32 %v8792_v6, %v4326_v17  ;;  %v8989_v26 = vsub.f32 %v8850_v21, %v3449_v42 }
0x127e   :  { %v4474_v30 = vsel %vm9872_vm4, %v8939_v11, 0.0  ;;  %vm9881_vm4 = vmmov %vm9865_vm0 }
0x127f   :  { %4475 = vadd.xlane.f32.xlu1 %v4474_v30  ;;  %v4359_v9 = vmax.f32 %v4343_v33, 0.0  ;;  %v3453_v63 = vmul.f32 %v8989_v26, %v8989_v26 }
0x12b5   :  { %v4102_v29 = vpop.xlane.xlu2 %4101 }
0x12b6   :  { %v4118_v48 = vmul.f32 %v4102_v29, %v6682_v22  ;;  %v3455_v29 = vsel %vm9881_vm4, %v3453_v63, 0.0  ;;  %vm9896_vm4 = vmmov %vm9865_vm0 }
0x12b8   :  { %v4134_v44 = vadd.f32 1e-05, %v4118_v48 }
0x12ba   :  { %5886 = vrsqrt.f32 %v4134_v44  ;;  %vm4291_vm5 = vweird.f32 %v4134_v44 }
0x12c0   :  { %v5887_v3 = vpop.eup %5886 }
0x12c1   :  { %v4286_v23 = vmul.f32 %v5887_v3, %v4134_v44  ;;  %vm4292_vm10 = vweird.f32 %v5887_v3 }
0x12c2   :  { %vm4293_vm11 = vmor %vm4291_vm5, %vm4292_vm10 }
0x12c3   :  { %v4287_v41 = vmul.f32 %v5887_v3, %v4286_v23  ;;  %vm9885_vm10 = vmmov %vm9865_vm0 }
0x12c4   :  { %vm9886_vm5 = vmmov %vm9865_vm0 }
0x12c5   :  { %v4288_v16 = vmul.f32 0.5, %v4287_v41 }
0x12c7   :  { %v4289_v5 = vsub.f32 1.5, %v4288_v16  ;;  %v3448_v16 = vpop.xlane.xlu1 %3447 }
0x12c8   :  { %v3450_v55 = vmul.f32 %v3448_v16, %v6682_v22 }
0x12c9   :  { %v4290_v61 = vmul.f32 %v5887_v3, %v4289_v5 }
0x12ca   :  { %v9021_v17 = vsub.f32 %v8863_v14, %v3450_v55 }
0x12cb   :  { %v4294_v37 = vsel %vm4293_vm11, %v5887_v3, %v4290_v61  ;;  %vm9887_vm11 = vmmov %vm9865_vm0 }
0x12cc   :  { %v4310_v58 = vmul.f32 %v4294_v37, %v8874_v4  ;;  %v4461_v37 = vpop.xlane.xlu2 %4460 }
0x12ce   :  { %v4327_v38 = vmul.f32 %v8780_v39, %v4310_v58  ;;  %v4434_v47 = vpop.f32.mrf.mxu3 }
0x12cf   :  { %v8951_v52 = vadd.f32 %v4434_v47, %v8890_v40  ;;  %v4507_v47 = vmul.f32 %v4461_v37, %v6682_v22 }
0x12d0   :  { %v4344_v0 = vadd.f32 %v8792_v6, %v4327_v38 }
0x12d1   :  { %v4477_v1 = vsel %vm9873_vm14, %v8951_v52, 0.0  ;;  %v9033_v14 = vsub.f32 %v8897_v19, %v4507_v47  ;;  %vm9888_vm14 = vmmov %vm9865_vm0 }
0x12d2   :  { %4478 = vadd.xlane.f32.xlu2 %v4477_v1  ;;  %v4360_v59 = vmax.f32 %v4344_v0, 0.0  ;;  %v4464_v62 = vpop.xlane.xlu0 %4463  ;;  %v3454_v0 = vmul.f32 %v9021_v17, %v9021_v17 }
0x12d3   :  { %v4508_v24 = vmul.f32 %v4464_v62, %v6682_v22 }
0x12d4   :  { %v4368_v54 = vpack.c.bf16 %v4360_v59, %v4359_v9 }
0x12d5   :  { %v8997_v32 = vsub.f32 %v8906_v34, %v4508_v24 }
0x12d6   :  { %v4436_v18 = vpop.f32.mrf.mxu3  ;;  %5295 = vmatmul.msk.bf16.gmra.mxu3 %vm9874_vm9, %v4368_v54  ;;  %vm9889_vm9 = vmmov %vm9865_vm0 }
0x12d7   :  { %v4437_v39 = vadd.f32 %v4436_v18, %v8890_v40  ;;  %v4540_v13 = vmul.f32 %v8997_v32, %v8997_v32  ;;  %v3458_v18 = vsel %vm9886_vm5, %v3454_v0, 0.0 }
0x12d9   :  { %v4480_v4 = vsel %vm9875_vm7, %v4437_v39, 0.0  ;;  %v4558_v28 = vsel %vm9882_vm15, %v4540_v13, 0.0  ;;  %vm9890_vm7 = vmmov %vm9865_vm0 }
0x12da   :  { %4481 = vadd.xlane.f32.xlu0 %v4480_v4  ;;  %v4467_v38 = vpop.xlane.xlu1 %4466  ;;  %vm9897_vm15 = vmmov %vm9865_vm0 }
0x12db   :  { %v4509_v33 = vmul.f32 %v4467_v38, %v6682_v22 }
0x12dd   :  { %v9036_v59 = vsub.f32 %v8915_v15, %v4509_v33 }
0x12de   :  { %v4439_v53 = vpop.f32.mrf.mxu3 }
0x12df   :  { %v8960_v46 = vadd.f32 %v4439_v53, %v8890_v40 }
0x12e1   :  { %v4483_v6 = vsel %vm9876_vm6, %v8960_v46, 0.0  ;;  %vm9891_vm6 = vmmov %vm9865_vm0 }
0x12e2   :  { %4484 = vadd.xlane.f32.xlu1 %v4483_v6  ;;  %v4470_v54 = vpop.xlane.xlu2 %4469 }
0x12e3   :  { %v4510_v19 = vmul.f32 %v4470_v54, %v6682_v22 }
0x12e6   :  { %v4441_v25 = vpop.f32.mrf.mxu3 }
0x12e7   :  { %v8965_v35 = vadd.f32 %v4441_v25, %v8890_v40 }
0x12e9   :  { %v4486_v2 = vsel %vm9877_vm8, %v8965_v35, 0.0  ;;  %vm9892_vm8 = vmmov %vm9865_vm0 }
0x12ea   :  { %4487 = vadd.xlane.f32.xlu2 %v4486_v2  ;;  %v4473_v48 = vpop.xlane.xlu0 %4472  ;;  %v4541_v2 = vmul.f32 %v9036_v59, %v9036_v59 }
0x12eb   :  { %v4511_v21 = vmul.f32 %v4473_v48, %v6682_v22 }
0x12ed   :  { %v9004_v44 = vsub.f32 %v8932_v50, %v4511_v21 }
0x12ee   :  { %v4444_v31 = vpop.f32.mrf.mxu3 }
0x12ef   :  { %v8970_v56 = vadd.f32 %v4444_v31, %v8890_v40  ;;  %v4543_v12 = vmul.f32 %v9004_v44, %v9004_v44 }
0x12f1   :  { %v4489_v7 = vsel %vm9878_vm2, %v8970_v56, 0.0  ;;  %v4567_v34 = vsel %vm9883_vm3, %v4543_v12, 0.0  ;;  %vm9893_vm2 = vmmov %vm9865_vm0 }
0x12f2   :  { %4490 = vadd.xlane.f32.xlu0 %v4489_v7  ;;  %v4476_v4 = vpop.xlane.xlu1 %4475 }
0x12f3   :  { %v4512_v15 = vmul.f32 %v4476_v4, %v6682_v22 }
0x12f6   :  { %v4446_v27 = vpop.f32.mrf.mxu3 }
0x12f7   :  { %v8975_v49 = vadd.f32 %v4446_v27, %v8890_v40  ;;  %v9055_v27 = vsub.f32 %v8923_v45, %v4510_v19 }
0x12f9   :  { %v4492_v10 = vsel %vm9879_vm1, %v8975_v49, 0.0  ;;  %vm9894_vm1 = vmmov %vm9865_vm0 }
0x12fa   :  { %4493 = vadd.xlane.f32.xlu1 %v4492_v10  ;;  %v9058_v10 = vsub.f32 %v8939_v11, %v4512_v15  ;;  %v4542_v11 = vmul.f32 %v9055_v27, %v9055_v27 }
0x12fc   :  { %v4544_v45 = vmul.f32 %v9058_v10, %v9058_v10  ;;  %v4564_v63 = vsel %vm9892_vm8, %v4542_v11, 0.0  ;;  %vm9898_vm8 = vmmov %vm9865_vm0 }
0x12fe   :  { %v4449_v60 = vpop.f32.mrf.mxu3  ;;  %v4570_v24 = vsel %vm9891_vm6, %v4544_v45, 0.0 }
0x12ff   :  { %v8980_v43 = vadd.f32 %v4449_v60, %v8890_v40  ;;  %v4561_v60 = vsel %vm9889_vm9, %v4541_v2, 0.0 }
0x1301   :  { %v4495_v57 = vsel %vm9865_vm0, %v8980_v43, 0.0 }
0x1302   :  { %4496 = vadd.xlane.f32.xlu2 %v4495_v57 }
0x1306   :  { %v4451_v51 = vpop.f32.mrf.mxu3 }
0x1307   :  { %v8986_v30 = vadd.f32 %v4451_v51, %v8890_v40 }
0x1309   :  { %v4498_v8 = vsel %vm9880_vm12, %v8986_v30, 0.0  ;;  %vm9895_vm12 = vmmov %vm9865_vm0 }
0x130a   :  { %4499 = vadd.xlane.f32.xlu0 %v4498_v8 }
0x1312   :  { %3456 = vadd.xlane.f32.xlu0 %v3455_v29 }
0x131a   :  { %4559 = vadd.xlane.f32.xlu0 %v4558_v28 }
0x1322   :  { %4568 = vadd.xlane.f32.xlu0 %v4567_v34 }
0x134d   :  { %v4482_v3 = vpop.xlane.xlu0 %4481 }
0x134e   :  { %v4514_v23 = vmul.f32 %v4482_v3, %v6682_v22 }
0x1350   :  { %v9011_v36 = vsub.f32 %v4437_v39, %v4514_v23 }
0x1352   :  { %v4546_v41 = vmul.f32 %v9011_v36, %v9011_v36 }
0x1354   :  { %v4576_v50 = vsel %vm9884_vm13, %v4546_v41, 0.0 }
0x1355   :  { %4577 = vadd.xlane.f32.xlu0 %v4576_v50  ;;  %v4485_v20 = vpop.xlane.xlu1 %4484 }
0x1356   :  { %v4515_v51 = vmul.f32 %v4485_v20, %v6682_v22 }
0x1358   :  { %v9072_v62 = vsub.f32 %v8960_v46, %v4515_v51 }
0x1359   :  { %v4454_v5 = vpop.f32.mrf.mxu3 }
0x135a   :  { %v9018_v61 = vadd.f32 %v4454_v5, %v8890_v40  ;;  %v4547_v28 = vmul.f32 %v9072_v62, %v9072_v62 }
0x135c   :  { %v4501_v58 = vsel %vm9885_vm10, %v9018_v61, 0.0  ;;  %v4579_v34 = vsel %vm9893_vm2, %v4547_v28, 0.0  ;;  %vm9899_vm2 = vmmov %vm9865_vm0 }
0x135d   :  { %4502 = vadd.xlane.f32.xlu1 %v4501_v58 }
0x1361   :  { %v4456_v1 = vpop.f32.mrf.mxu3 }
0x1362   :  { %v9030_v9 = vadd.f32 %v4456_v1, %v8890_v40  ;;  %v4539_v40 = vmul.f32 %v9033_v14, %v9033_v14 }
0x1364   :  { %v4504_v39 = vsel %vm9887_vm11, %v9030_v9, 0.0  ;;  %v4555_v7 = vsel %vm9888_vm14, %v4539_v40, 0.0 }
0x1365   :  { %3459 = vadd.xlane.f32.xlu1 %v3458_v18  ;;  %4505 = vadd.xlane.f32.xlu2 %v4504_v39  ;;  %v4491_v53 = vpop.xlane.xlu0 %4490 }
0x1366   :  { %v4517_v6 = vmul.f32 %v4491_v53, %v6682_v22 }
0x1368   :  { %v9047_v25 = vsub.f32 %v8970_v56, %v4517_v6  ;;  %v4479_v56 = vpop.xlane.xlu2 %4478 }
0x1369   :  { %v4513_v42 = vmul.f32 %v4479_v56, %v6682_v22  ;;  %v9116_v56 = vld [vmem:[%s9449_s13 + $0x10] sm:$0xff] }
0x136a   :  { %v4549_v31 = vmul.f32 %v9047_v25, %v9047_v25  ;;  %v3487_v20 = vperm.slane %v9116_v56, 5  ;;  %v3490_v45 = vperm.slane %v9116_v56, 6 }
0x136b   :  { %v9069_v8 = vsub.f32 %v8951_v52, %v4513_v42 }
0x136c   :  { %v4585_v57 = vsel %vm9890_vm7, %v4549_v31, 0.0 }
0x136d   :  { %4562 = vadd.xlane.f32.xlu1 %v4561_v60  ;;  %4556 = vadd.xlane.f32.xlu2 %v4555_v7  ;;  %v4494_v48 = vpop.xlane.xlu1 %4493  ;;  %v4545_v52 = vmul.f32 %v9069_v8, %v9069_v8 }
0x136e   :  { %4586 = vadd.xlane.f32.xlu0 %v4585_v57  ;;  %v4518_v13 = vmul.f32 %v4494_v48, %v6682_v22 }
0x136f   :  { %v4573_v3 = vsel %vm9894_vm1, %v4545_v52, 0.0  ;;  %v5974_v52 = vld [vmem:[%s9449_s13 + $0x18] sm:$0x1f]  ;;  %vm9900_vm1 = vmmov %vm9865_vm0 }
0x1370   :  { %v4488_v29 = vpop.xlane.xlu2 %4487  ;;  %v9086_v12 = vsub.f32 %v8975_v49, %v4518_v13 }
0x1371   :  { %v4516_v21 = vmul.f32 %v4488_v29, %v6682_v22 }
0x1373   :  { %v9083_v46 = vsub.f32 %v8965_v35, %v4516_v21  ;;  %v4550_v35 = vmul.f32 %v9086_v12, %v9086_v12 }
0x1375   :  { %4571 = vadd.xlane.f32.xlu1 %v4570_v24  ;;  %4565 = vadd.xlane.f32.xlu2 %v4564_v63  ;;  %v4548_v49 = vmul.f32 %v9083_v46, %v9083_v46  ;;  %v4588_v58 = vsel %vm9865_vm0, %v4550_v35, 0.0 }
0x1377   :  { %v4582_v38 = vsel %vm9895_vm12, %v4548_v49, 0.0 }
0x1378   :  { %v4497_v23 = vpop.xlane.xlu2 %4496 }
0x1379   :  { %v4519_v16 = vmul.f32 %v4497_v23, %v6682_v22  ;;  %v9130_v23 = vperm.slane %v5974_v52, 4 }
0x137b   :  { %v9102_v37 = vsub.f32 %v8980_v43, %v4519_v16 }
0x137d   :  { %4580 = vadd.xlane.f32.xlu1 %v4579_v34  ;;  %4574 = vadd.xlane.f32.xlu2 %v4573_v3  ;;  %v4500_v41 = vpop.xlane.xlu0 %4499  ;;  %v4551_v1 = vmul.f32 %v9102_v37, %v9102_v37  ;;  %v9128_v34 = vperm.slane %v5974_v52, 3 }
0x137e   :  { %v4520_v50 = vmul.f32 %v4500_v41, %v6682_v22 }
0x137f   :  { %v4591_v43 = vsel %vm9897_vm15, %v4551_v1, 0.0 }
0x1380   :  { %v9093_v55 = vsub.f32 %v8986_v30, %v4520_v50 }
0x1382   :  { %v4552_v5 = vmul.f32 %v9093_v55, %v9093_v55 }
0x1384   :  { %v4594_v47 = vsel %vm9896_vm4, %v4552_v5, 0.0 }
0x1385   :  { %4589 = vadd.xlane.f32.xlu1 %v4588_v58  ;;  %4583 = vadd.xlane.f32.xlu2 %v4582_v38  ;;  %v3457_v30 = vpop.xlane.xlu0 %3456  ;;  %v5975_v58 = vld [vmem:[%s9452_s3] sm:$0xff] }
0x1386   :  { %4595 = vadd.xlane.f32.xlu0 %v4594_v47  ;;  %v3461_v33 = vmul.f32 %v3457_v30, %v6682_v22 }
0x1388   :  { %v3463_v0 = vadd.f32 1e-05, %v3461_v33 }
0x138a   :  { %5888 = vrsqrt.f32 %v3463_v0  ;;  %vm3471_vm13 = vweird.f32 %v3463_v0 }
0x138d   :  { %4592 = vadd.xlane.f32.xlu2 %v4591_v43  ;;  %v4560_v54 = vpop.xlane.xlu0 %4559  ;;  %v5976_v43 = vld [vmem:[%s9456_s1 + $0x8] sm:$0xff] }
0x138e   :  { %v4604_v18 = vmul.f32 %v4560_v54, %v6682_v22 }
0x1390   :  { %v5889_v39 = vpop.eup %5888  ;;  %v4620_v4 = vadd.f32 1e-05, %v4604_v18 }
0x1391   :  { %v3466_v53 = vmul.f32 %v5889_v39, %v3463_v0  ;;  %vm3472_vm3 = vweird.f32 %v5889_v39 }
0x1392   :  { %5890 = vrsqrt.f32 %v4620_v4  ;;  %vm3473_vm10 = vmor %vm3471_vm13, %vm3472_vm3  ;;  %vm4651_vm11 = vweird.f32 %v4620_v4 }
0x1393   :  { %v3467_v6 = vmul.f32 %v5889_v39, %v3466_v53  ;;  %vm9901_vm3 = vmmov %vm9865_vm0 }
0x1395   :  { %v3468_v40 = vmul.f32 0.5, %v3467_v6  ;;  %v4569_v19 = vpop.xlane.xlu0 %4568 }
0x1396   :  { %v4607_v15 = vmul.f32 %v4569_v19, %v6682_v22 }
0x1397   :  { %v3469_v2 = vsub.f32 1.5, %v3468_v40 }
0x1398   :  { %v5891_v31 = vpop.eup %5890  ;;  %v4623_v7 = vadd.f32 1e-05, %v4607_v15 }
0x1399   :  { %v3470_v60 = vmul.f32 %v5889_v39, %v3469_v2  ;;  %v4646_v57 = vmul.f32 %v5891_v31, %v4620_v4  ;;  %vm4652_vm5 = vweird.f32 %v5891_v31 }
0x139a   :  { %5892 = vrsqrt.f32 %v4623_v7  ;;  %vm4653_vm14 = vmor %vm4651_vm11, %vm4652_vm5  ;;  %vm4681_vm7 = vweird.f32 %v4623_v7 }
0x139b   :  { %v3474_v42 = vsel %vm3473_vm10, %v5889_v39, %v3470_v60  ;;  %v4647_v51 = vmul.f32 %v5891_v31, %v4646_v57  ;;  %vm9902_vm11 = vmmov %vm9865_vm0 }
0x139c   :  { %v3485_v11 = vmul.f32 %v3474_v42, %v8989_v26 }
0x139d   :  { %v4648_v24 = vmul.f32 0.5, %v4647_v51 }
0x139e   :  { %v3488_v63 = vmul.f32 %v3487_v20, %v3485_v11 }
0x139f   :  { %v4649_v29 = vsub.f32 1.5, %v4648_v24 }
0x13a0   :  { %v5893_v48 = vpop.eup %5892  ;;  %v3491_v21 = vadd.f32 %v3490_v45, %v3488_v63 }
0x13a1   :  { %v4650_v13 = vmul.f32 %v5891_v31, %v4649_v29  ;;  %v4676_v28 = vmul.f32 %v5893_v48, %v4623_v7  ;;  %vm4682_vm9 = vweird.f32 %v5893_v48 }
0x13a2   :  { %5894 = vtanh.f32 %v3491_v21  ;;  %vm4683_vm6 = vmor %vm4681_vm7, %vm4682_vm9 }
0x13a3   :  { %v4654_v26 = vsel %vm4653_vm14, %v5891_v31, %v4650_v13  ;;  %v4677_v3 = vmul.f32 %v5893_v48, %v4676_v28 }
0x13a4   :  { %v4796_v41 = vmul.f32 %v4654_v26, %v8997_v32 }
0x13a5   :  { %v4678_v50 = vmul.f32 0.5, %v4677_v3 }
0x13a6   :  { %v4813_v16 = vmul.f32 %v9128_v34, %v4796_v41 }
0x13a7   :  { %v4679_v35 = vsub.f32 1.5, %v4678_v50 }
0x13a8   :  { %v5895_v49 = vpop.eup %5894  ;;  %v4830_v5 = vadd.f32 %v9130_v23, %v4813_v16 }
0x13a9   :  { %v3495_v38 = vadd.f32 %v5975_v58, %v5895_v49  ;;  %v4680_v47 = vmul.f32 %v5893_v48, %v4679_v35 }
0x13aa   :  { %5896 = vtanh.f32 %v4830_v5 }
0x13ab   :  { %4902 = vst.msk [vmem:[%s9455_s14 + $0xc8] sm:$0xff] %vm9898_vm8, %v3495_v38  ;;  %v4684_v32 = vsel %vm4683_vm6, %v5893_v48, %v4680_v47 }
0x13ac   :  { %v4799_v30 = vmul.f32 %v4684_v32, %v9004_v44  ;;  %v5977_v44 = vld [vmem:[%s9456_s1 + $0x20] sm:$0xff] }
0x13ae   :  { %v4816_v33 = vmul.f32 %v9128_v34, %v4799_v30 }
0x13b0   :  { %v5897_v0 = vpop.eup %5896  ;;  %v4833_v1 = vadd.f32 %v9130_v23, %v4816_v33 }
0x13b1   :  { %v4862_v54 = vadd.f32 %v5976_v43, %v5897_v0 }
0x13b2   :  { %5898 = vtanh.f32 %v4833_v1 }
0x13b3   :  { %4886 = vst.msk [vmem:[%s9455_s14 + $0x48] sm:$0xff] %vm9899_vm2, %v4862_v54 }
0x13b8   :  { %v5899_v18 = vpop.eup %5898 }
0x13b9   :  { %v4865_v39 = vadd.f32 %v5977_v44, %v5899_v18 }
0x13bb   :  { %4889 = vst.msk [vmem:[%s9455_s14 + $0x60] sm:$0xff] %vm9900_vm1, %v4865_v39 }
0x13c8   :  { %v4578_v4 = vpop.xlane.xlu0 %4577 }
0x13c9   :  { %v4610_v53 = vmul.f32 %v4578_v4, %v6682_v22 }
0x13cb   :  { %v4626_v6 = vadd.f32 1e-05, %v4610_v53 }
0x13cd   :  { %5900 = vrsqrt.f32 %v4626_v6  ;;  %vm4711_vm4 = vweird.f32 %v4626_v6 }
0x13d0   :  { %v4503_v40 = vpop.xlane.xlu1 %4502 }
0x13d1   :  { %v4521_v19 = vmul.f32 %v4503_v40, %v6682_v22 }
0x13d3   :  { %v5901_v15 = vpop.eup %5900  ;;  %v9162_v2 = vsub.f32 %v9018_v61, %v4521_v19 }
0x13d4   :  { %v4706_v31 = vmul.f32 %v5901_v15, %v4626_v6  ;;  %vm4712_vm12 = vweird.f32 %v5901_v15  ;;  %v5978_v6 = vld [vmem:[%s9456_s1 + $0x38] sm:$0xff] }
0x13d5   :  { %v4553_v7 = vmul.f32 %v9162_v2, %v9162_v2  ;;  %vm4713_vm15 = vmor %vm4711_vm4, %vm4712_vm12 }
0x13d6   :  { %v4707_v60 = vmul.f32 %v5901_v15, %v4706_v31 }
0x13d7   :  { %v4597_v57 = vsel %vm9865_vm0, %v4553_v7, 0.0 }
0x13d8   :  { %v4708_v42 = vmul.f32 0.5, %v4707_v60  ;;  %4598 = vadd.xlane.f32.xlu1 %v4597_v57  ;;  %v3460_v51 = vpop.xlane.xlu1 %3459  ;;  %v4506_v11 = vpop.xlane.xlu2 %4505 }
0x13d9   :  { %v3462_v24 = vmul.f32 %v3460_v51, %v6682_v22  ;;  %v4522_v63 = vmul.f32 %v4506_v11, %v6682_v22 }
0x13da   :  { %v4709_v29 = vsub.f32 1.5, %v4708_v42 }
0x13db   :  { %v3464_v48 = vadd.f32 1e-05, %v3462_v24  ;;  %v9170_v61 = vsub.f32 %v9030_v9, %v4522_v63 }
0x13dc   :  { %v4710_v21 = vmul.f32 %v5901_v15, %v4709_v29 }
0x13dd   :  { %5902 = vrsqrt.f32 %v3464_v48  ;;  %v4554_v13 = vmul.f32 %v9170_v61, %v9170_v61  ;;  %vm3481_vm10 = vweird.f32 %v3464_v48 }
0x13de   :  { %v4714_v28 = vsel %vm4713_vm15, %v5901_v15, %v4710_v21 }
0x13df   :  { %v4802_v52 = vmul.f32 %v4714_v28, %v9011_v36  ;;  %v4600_v26 = vsel %vm9901_vm3, %v4554_v13, 0.0 }
0x13e0   :  { %v4563_v3 = vpop.xlane.xlu1 %4562  ;;  %4601 = vadd.xlane.f32.xlu2 %v4600_v26  ;;  %v4557_v41 = vpop.xlane.xlu2 %4556 }
0x13e1   :  { %v4819_v50 = vmul.f32 %v9128_v34, %v4802_v52  ;;  %v4605_v9 = vmul.f32 %v4563_v3, %v6682_v22  ;;  %v4603_v16 = vmul.f32 %v4557_v41, %v6682_v22  ;;  %v4587_v35 = vpop.xlane.xlu0 %4586 }
0x13e2   :  { %v4613_v49 = vmul.f32 %v4587_v35, %v6682_v22 }
0x13e3   :  { %v5903_v5 = vpop.eup %5902  ;;  %v4836_v58 = vadd.f32 %v9130_v23, %v4819_v50  ;;  %v9181_v38 = vadd.f32 1e-05, %v4605_v9  ;;  %v9183_v36 = vadd.f32 1e-05, %v4603_v16 }
0x13e4   :  { %v3476_v47 = vmul.f32 %v5903_v5, %v3464_v48  ;;  %v9185_v32 = vadd.f32 1e-05, %v4613_v49  ;;  %vm3482_vm13 = vweird.f32 %v5903_v5 }
0x13e5   :  { %5904 = vtanh.f32 %v4836_v58  ;;  %vm3483_vm5 = vmor %vm3481_vm10, %vm3482_vm13  ;;  %vm4661_vm14 = vweird.f32 %v9181_v38  ;;  %vm4641_vm9 = vweird.f32 %v9183_v36 }
0x13e6   :  { %v3477_v30 = vmul.f32 %v5903_v5, %v3476_v47  ;;  %5906 = vrsqrt.f32 %v9181_v38  ;;  %vm4741_vm7 = vweird.f32 %v9185_v32 }
0x13e7   :  { %5908 = vrsqrt.f32 %v9183_v36 }
0x13e8   :  { %v3478_v33 = vmul.f32 0.5, %v3477_v30  ;;  %5910 = vrsqrt.f32 %v9185_v32  ;;  %v4572_v0 = vpop.xlane.xlu1 %4571  ;;  %v4566_v1 = vpop.xlane.xlu2 %4565 }
0x13e9   :  { %v4608_v43 = vmul.f32 %v4572_v0, %v6682_v22  ;;  %v4606_v54 = vmul.f32 %v4566_v1, %v6682_v22 }
0x13ea   :  { %v3479_v18 = vsub.f32 1.5, %v3478_v33 }
0x13eb   :  { %v5905_v44 = vpop.eup %5904  ;;  %v9192_v39 = vadd.f32 1e-05, %v4608_v43  ;;  %v9194_v4 = vadd.f32 1e-05, %v4606_v54 }
0x13ec   :  { %v5907_v53 = vpop.eup %5906  ;;  %v4868_v40 = vadd.f32 %v5978_v6, %v5905_v44  ;;  %v3480_v19 = vmul.f32 %v5903_v5, %v3479_v18 }
0x13ed   :  { %v5909_v15 = vpop.eup %5908  ;;  %v4656_v31 = vmul.f32 %v5907_v53, %v9181_v38  ;;  %5912 = vrsqrt.f32 %v9192_v39  ;;  %vm4662_vm6 = vweird.f32 %v5907_v53  ;;  %vm4691_vm0 = vweird.f32 %v9192_v39 }
0x13ee   :  { %v5911_v7 = vpop.eup %5910  ;;  %4892 = vst.msk [vmem:[%s9455_s14 + $0x78] sm:$0xff] %vm9902_vm11, %v4868_v40  ;;  %v3484_v60 = vsel %vm3483_vm5, %v5903_v5, %v3480_v19  ;;  %v4636_v57 = vmul.f32 %v5909_v15, %v9183_v36  ;;  %5914 = vrsqrt.f32 %v9194_v4  ;;  %vm4642_vm8 = vweird.f32 %v5909_v15  ;;  %vm4663_vm1 = vmor %vm4661_vm14, %vm4662_vm6 }
0x13ef   :  { %v3486_v42 = vmul.f32 %v3484_v60, %v9021_v17  ;;  %v4657_v51 = vmul.f32 %v5907_v53, %v4656_v31  ;;  %v4736_v11 = vmul.f32 %v5911_v7, %v9185_v32  ;;  %vm4742_vm2 = vweird.f32 %v5911_v7  ;;  %vm4643_vm12 = vmor %vm4641_vm9, %vm4642_vm8 }
0x13f0   :  { %v4637_v24 = vmul.f32 %v5909_v15, %v4636_v57  ;;  %v4581_v63 = vpop.xlane.xlu1 %4580  ;;  %v4575_v29 = vpop.xlane.xlu2 %4574  ;;  %vm4671_vm4 = vweird.f32 %v9194_v4  ;;  %vm4743_vm15 = vmor %vm4741_vm7, %vm4742_vm2  ;;  %v5979_v57 = vld [vmem:[%s9452_s3 + $0x8] sm:$0xff] }
0x13f1   :  { %v3489_v48 = vmul.f32 %v3487_v20, %v3486_v42  ;;  %v4658_v21 = vmul.f32 0.5, %v4657_v51  ;;  %v4737_v13 = vmul.f32 %v5911_v7, %v4736_v11  ;;  %v4611_v28 = vmul.f32 %v4581_v63, %v6682_v22  ;;  %vm9903_vm5 = vmmov %vm9902_vm11 }
0x13f2   :  { %v4638_v17 = vmul.f32 0.5, %v4637_v24  ;;  %v4609_v52 = vmul.f32 %v4575_v29, %v6682_v22  ;;  %vm9904_vm8 = vmmov %vm9903_vm5 }
0x13f3   :  { %v9216_v26 = vpop.eup %5912  ;;  %v3492_v3 = vadd.f32 %v3490_v45, %v3489_v48  ;;  %v4659_v41 = vsub.f32 1.5, %v4658_v21  ;;  %v4738_v50 = vmul.f32 0.5, %v4737_v13  ;;  %v9220_v9 = vadd.f32 1e-05, %v4611_v28  ;;  %vm9905_vm2 = vmmov %vm9903_vm5 }
0x13f4   :  { %v9222_v16 = vpop.eup %5914  ;;  %v4639_v20 = vsub.f32 1.5, %v4638_v17  ;;  %v4686_v35 = vmul.f32 %v9216_v26, %v9192_v39  ;;  %v9226_v49 = vadd.f32 1e-05, %v4609_v52  ;;  %vm4692_vm3 = vweird.f32 %v9216_v26 }
0x13f5   :  { %5916 = vtanh.f32 %v3492_v3  ;;  %v4660_v5 = vmul.f32 %v5907_v53, %v4659_v41  ;;  %v4739_v58 = vsub.f32 1.5, %v4738_v50  ;;  %v4666_v56 = vmul.f32 %v9222_v16, %v9194_v4  ;;  %vm4693_vm10 = vmor %vm4691_vm0, %vm4692_vm3 }
0x13f6   :  { %v4640_v45 = vmul.f32 %v5909_v15, %v4639_v20  ;;  %v4687_v47 = vmul.f32 %v9216_v26, %v4686_v35  ;;  %5918 = vrsqrt.f32 %v9220_v9  ;;  %vm4672_vm13 = vweird.f32 %v9222_v16  ;;  %vm9906_vm0 = vmmov %vm9905_vm2 }
0x13f7   :  { %v4664_v30 = vsel %vm4663_vm1, %v5907_v53, %v4660_v5  ;;  %v4740_v33 = vmul.f32 %v5911_v7, %v4739_v58  ;;  %v4667_v0 = vmul.f32 %v9222_v16, %v4666_v56  ;;  %5920 = vrsqrt.f32 %v9226_v49  ;;  %vm4673_vm11 = vmor %vm4671_vm4, %vm4672_vm13 }
0x13f8   :  { %v4797_v38 = vmul.f32 %v4664_v30, %v9036_v59  ;;  %v4644_v1 = vsel %vm4643_vm12, %v5909_v15, %v4640_v45  ;;  %v4688_v43 = vmul.f32 0.5, %v4687_v47  ;;  %v4590_v54 = vpop.xlane.xlu1 %4589  ;;  %v4584_v18 = vpop.xlane.xlu2 %4583  ;;  %vm4721_vm9 = vweird.f32 %v9220_v9  ;;  %vm9907_vm4 = vmmov %vm9906_vm0 }
0x13f9   :  { %v4795_v36 = vmul.f32 %v4644_v1, %v9033_v14  ;;  %v4744_v44 = vsel %vm4743_vm15, %v5911_v7, %v4740_v33  ;;  %v4668_v53 = vmul.f32 0.5, %v4667_v0  ;;  %v4614_v19 = vmul.f32 %v4590_v54, %v6682_v22  ;;  %v4596_v32 = vpop.xlane.xlu0 %4595  ;;  %v5980_v0 = vld [vmem:[%s9456_s1 + $0x10] sm:$0xff]  ;;  %v5981_v54 = vld [vmem:[%s9456_s1] sm:$0xff]  ;;  %vm9908_vm3 = vmmov %vm9906_vm0 }
0x13fa   :  { %v4814_v6 = vmul.f32 %v9128_v34, %v4797_v38  ;;  %v4805_v59 = vmul.f32 %v4744_v44, %v9047_v25  ;;  %v4689_v40 = vsub.f32 1.5, %v4688_v43  ;;  %v4612_v14 = vmul.f32 %v4584_v18, %v6682_v22 }
0x13fb   :  { %v5917_v15 = vpop.eup %5916  ;;  %v4812_v31 = vmul.f32 %v9128_v34, %v4795_v36  ;;  %v4669_v60 = vsub.f32 1.5, %v4668_v53  ;;  %v4616_v48 = vmul.f32 %v4596_v32, %v6682_v22  ;;  %v9283_v28 = vadd.f32 1e-05, %v4614_v19  ;;  %v5982_v53 = vld [vmem:[%s9456_s1 + $0x50] sm:$0xff] }
0x13fc   :  { %v9254_v7 = vpop.eup %5918  ;;  %v3496_v42 = vadd.f32 %v5979_v57, %v5917_v15  ;;  %v4831_v25 = vadd.f32 %v9130_v23, %v4814_v6  ;;  %v4822_v51 = vmul.f32 %v9128_v34, %v4805_v59  ;;  %v4690_v11 = vmul.f32 %v9216_v26, %v4689_v40 }
0x13fd   :  { %v4829_v24 = vadd.f32 %v9130_v23, %v4812_v31  ;;  %v4670_v63 = vmul.f32 %v9222_v16, %v4669_v60  ;;  %v4716_v29 = vmul.f32 %v9254_v7, %v9220_v9  ;;  %v9271_v21 = vpop.eup %5920  ;;  %vm4722_vm14 = vweird.f32 %v9254_v7 }
0x13fe   :  { %4903 = vst.msk [vmem:[%s9455_s14 + $0xd0] sm:$0xff] %vm9903_vm5, %v3496_v42  ;;  %5922 = vtanh.f32 %v4831_v25  ;;  %v4839_v13 = vadd.f32 %v9130_v23, %v4822_v51  ;;  %v4694_v39 = vsel %vm4693_vm10, %v9216_v26, %v4690_v11  ;;  %v4696_v26 = vmul.f32 %v9271_v21, %v9226_v49  ;;  %vm4723_vm6 = vmor %vm4721_vm9, %vm4722_vm14  ;;  %v5983_v42 = vld [vmem:[%s9456_s1 + $0x28] sm:$0xff] }
0x13ff   :  { %5924 = vtanh.f32 %v4829_v24  ;;  %v4800_v17 = vmul.f32 %v4694_v39, %v9058_v10  ;;  %v4674_v52 = vsel %vm4673_vm11, %v9222_v16, %v4670_v63  ;;  %v4717_v3 = vmul.f32 %v9254_v7, %v4716_v29  ;;  %v5984_v63 = vld [vmem:[%s9456_s1 + $0x18] sm:$0xff] }
0x1400   :  { %5926 = vtanh.f32 %v4839_v13  ;;  %v4798_v41 = vmul.f32 %v4674_v52, %v9055_v27  ;;  %v4593_v50 = vpop.xlane.xlu2 %4592  ;;  %v4697_v10 = vmul.f32 %v9271_v21, %v4696_v26  ;;  %v9296_v16 = vadd.f32 1e-05, %v4612_v14 }
0x1401   :  { %v4817_v20 = vmul.f32 %v9128_v34, %v4800_v17  ;;  %v4718_v4 = vmul.f32 0.5, %v4717_v3  ;;  %5928 = vrsqrt.f32 %v9283_v28  ;;  %v9299_v58 = vadd.f32 1e-05, %v4616_v48 }
0x1402   :  { %v4815_v35 = vmul.f32 %v9128_v34, %v4798_v41  ;;  %v4615_v56 = vmul.f32 %v4593_v50, %v6682_v22  ;;  %v4698_v30 = vmul.f32 0.5, %v4697_v10  ;;  %5930 = vrsqrt.f32 %v9296_v16 }
0x1403   :  { %v4834_v5 = vadd.f32 %v9130_v23, %v4817_v20  ;;  %v4719_v27 = vsub.f32 1.5, %v4718_v4  ;;  %vm4702_vm7 = vweird.f32 %v9271_v21  ;;  %vm4701_vm1 = vweird.f32 %v9226_v49 }
0x1404   :  { %v5923_v45 = vpop.eup %5922  ;;  %v4832_v47 = vadd.f32 %v9130_v23, %v4815_v35  ;;  %v4699_v18 = vsub.f32 1.5, %v4698_v30  ;;  %v9315_v36 = vadd.f32 1e-05, %v4615_v56  ;;  %vm4703_vm12 = vmor %vm4701_vm1, %vm4702_vm7  ;;  %vm4751_vm13 = vweird.f32 %v9283_v28 }
0x1405   :  { %v5925_v33 = vpop.eup %5924  ;;  %v4863_v38 = vadd.f32 %v5980_v0, %v5923_v45  ;;  %5932 = vtanh.f32 %v4834_v5  ;;  %v4720_v1 = vmul.f32 %v9254_v7, %v4719_v27  ;;  %vm4731_vm11 = vweird.f32 %v9296_v16  ;;  %v5985_v45 = vld [vmem:[%s9456_s1 + $0x40] sm:$0xff] }
0x1406   :  { %v5927_v43 = vpop.eup %5926  ;;  %v4861_v9 = vadd.f32 %v5981_v54, %v5925_v33  ;;  %5934 = vtanh.f32 %v4832_v47  ;;  %v4700_v19 = vmul.f32 %v9271_v21, %v4699_v18  ;;  %vm4771_vm7 = vweird.f32 %v9299_v58 }
0x1407   :  { %v5929_v44 = vpop.eup %5928  ;;  %4887 = vst.msk [vmem:[%s9455_s14 + $0x50] sm:$0xff] %vm9904_vm8, %v4863_v38  ;;  %v4871_v6 = vadd.f32 %v5982_v53, %v5927_v43  ;;  %v4724_v59 = vsel %vm4723_vm6, %v9254_v7, %v4720_v1  ;;  %5936 = vrsqrt.f32 %v9299_v58  ;;  %vm9909_vm8 = vmmov %vm9906_vm0  ;;  %vm4761_vm1 = vweird.f32 %v9315_v36 }
0x1408   :  { %4885 = vst.msk [vmem:[%s9455_s14 + $0x40] sm:$0xff] %vm9905_vm2, %v4861_v9  ;;  %v4803_v40 = vmul.f32 %v4724_v59, %v9072_v62  ;;  %v4746_v32 = vmul.f32 %v5929_v44, %v9283_v28  ;;  %5938 = vrsqrt.f32 %v9315_v36  ;;  %v5931_v15 = vpop.eup %5930  ;;  %v4704_v62 = vsel %vm4703_vm12, %v9271_v21, %v4700_v19  ;;  %vm9910_vm12 = vmmov %vm9908_vm3 }
0x1409   :  { %4895 = vst.msk [vmem:[%s9455_s14 + $0x90] sm:$0xff] %vm9906_vm0, %v4871_v6  ;;  %v4801_v49 = vmul.f32 %v4704_v62, %v9069_v8  ;;  %v4726_v7 = vmul.f32 %v5931_v15, %v9296_v16  ;;  %vm4752_vm15 = vweird.f32 %v5929_v44  ;;  %vm4732_vm5 = vweird.f32 %v5931_v15 }
0x140a   :  { %v4820_v31 = vmul.f32 %v9128_v34, %v4803_v40  ;;  %v4747_v60 = vmul.f32 %v5929_v44, %v4746_v32  ;;  %vm4753_vm10 = vmor %vm4751_vm13, %vm4752_vm15  ;;  %v5987_v32 = vld [vmem:[%s9456_s1 + $0x58] sm:$0xff] }
0x140b   :  { %v5933_v14 = vpop.eup %5932  ;;  %v4818_v48 = vmul.f32 %v9128_v34, %v4801_v49  ;;  %v4727_v8 = vmul.f32 %v5931_v15, %v4726_v7  ;;  %vm4733_vm14 = vmor %vm4731_vm11, %vm4732_vm5 }
0x140c   :  { %v5935_v57 = vpop.eup %5934  ;;  %v4866_v25 = vadd.f32 %v5983_v42, %v5933_v14  ;;  %v4837_v51 = vadd.f32 %v9130_v23, %v4820_v31  ;;  %v4748_v11 = vmul.f32 0.5, %v4747_v60  ;;  %vm9912_vm15 = vmmov %vm9908_vm3  ;;  %v5989_v14 = vld [vmem:[%s9456_s1 + $0x68] sm:$0xff] }
0x140d   :  { %v5937_v24 = vpop.eup %5936  ;;  %v4864_v29 = vadd.f32 %v5984_v63, %v5935_v57  ;;  %v4835_v17 = vadd.f32 %v9130_v23, %v4818_v48  ;;  %v4728_v52 = vmul.f32 0.5, %v4727_v8  ;;  %v5990_v57 = vld [vmem:[%s9456_s1 + $0x60] sm:$0xff]  ;;  %vm9913_vm13 = vmmov %vm9908_vm3 }
0x140e   :  { %4890 = vst.msk [vmem:[%s9455_s14 + $0x68] sm:$0xff] %vm9907_vm4, %v4866_v25  ;;  %5940 = vtanh.f32 %v4837_v51  ;;  %v4749_v21 = vsub.f32 1.5, %v4748_v11  ;;  %v4766_v13 = vmul.f32 %v5937_v24, %v9299_v58  ;;  %v5939_v39 = vpop.eup %5938  ;;  %vm4772_vm9 = vweird.f32 %v5937_v24  ;;  %v5986_v58 = vld [vmem:[%s9456_s1 + $0x30] sm:$0xff]  ;;  %vm9911_vm4 = vmmov %vm9908_vm3 }
0x140f   :  { %4888 = vst.msk [vmem:[%s9455_s14 + $0x58] sm:$0xff] %vm9908_vm3, %v4864_v29  ;;  %v4756_v26 = vmul.f32 %v5939_v39, %v9315_v36  ;;  %5942 = vtanh.f32 %v4835_v17  ;;  %v4729_v50 = vsub.f32 1.5, %v4728_v52  ;;  %vm4762_vm6 = vweird.f32 %v5939_v39  ;;  %vm4773_vm2 = vmor %vm4771_vm7, %vm4772_vm9 }
0x1410   :  { %v4750_v3 = vmul.f32 %v5929_v44, %v4749_v21  ;;  %v4767_v41 = vmul.f32 %v5937_v24, %v4766_v13  ;;  %vm4763_vm0 = vmor %vm4761_vm1, %vm4762_vm6 }
0x1411   :  { %v4757_v35 = vmul.f32 %v5939_v39, %v4756_v26  ;;  %v4730_v5 = vmul.f32 %v5931_v15, %v4729_v50  ;;  %vm9914_vm6 = vmmov %vm9908_vm3 }
0x1412   :  { %v4754_v20 = vsel %vm4753_vm10, %v5929_v44, %v4750_v3  ;;  %v4768_v4 = vmul.f32 0.5, %v4767_v41 }
0x1413   :  { %v4806_v10 = vmul.f32 %v4754_v20, %v9086_v12  ;;  %v4758_v28 = vmul.f32 0.5, %v4757_v35  ;;  %v4734_v33 = vsel %vm4733_vm14, %v5931_v15, %v4730_v5 }
0x1414   :  { %v5941_v27 = vpop.eup %5940  ;;  %v4769_v56 = vsub.f32 1.5, %v4768_v4  ;;  %v4804_v12 = vmul.f32 %v4734_v33, %v9083_v46 }
0x1415   :  { %v4869_v47 = vadd.f32 %v5985_v45, %v5941_v27  ;;  %v4823_v30 = vmul.f32 %v9128_v34, %v4806_v10  ;;  %v4759_v38 = vsub.f32 1.5, %v4758_v28  ;;  %v5943_v16 = vpop.eup %5942 }
0x1416   :  { %v4770_v0 = vmul.f32 %v5937_v24, %v4769_v56  ;;  %v4867_v43 = vadd.f32 %v5986_v58, %v5943_v16  ;;  %v4821_v46 = vmul.f32 %v9128_v34, %v4804_v12 }
0x1417   :  { %4893 = vst.msk [vmem:[%s9455_s14 + $0x80] sm:$0xff] %vm9909_vm8, %v4869_v47  ;;  %v4840_v1 = vadd.f32 %v9130_v23, %v4823_v30  ;;  %v4760_v9 = vmul.f32 %v5939_v39, %v4759_v38  ;;  %vm9915_vm8 = vmmov %vm9908_vm3 }
0x1418   :  { %v4774_v54 = vsel %vm4773_vm2, %v5937_v24, %v4770_v0  ;;  %4891 = vst.msk [vmem:[%s9455_s14 + $0x70] sm:$0xff] %vm9910_vm12, %v4867_v43  ;;  %v4838_v36 = vadd.f32 %v9130_v23, %v4821_v46 }
0x1419   :  { %5944 = vtanh.f32 %v4840_v1  ;;  %v4808_v18 = vmul.f32 %v4774_v54, %v9093_v55  ;;  %v4764_v44 = vsel %vm4763_vm0, %v5939_v39, %v4760_v9 }
0x141a   :  { %v4807_v6 = vmul.f32 %v4764_v44, %v9102_v37  ;;  %5946 = vtanh.f32 %v4838_v36  ;;  %v5988_v37 = vld [vmem:[%s9456_s1 + $0x48] sm:$0xff] }
0x141b   :  { %v4825_v53 = vmul.f32 %v9128_v34, %v4808_v18 }
0x141c   :  { %v4824_v40 = vmul.f32 %v9128_v34, %v4807_v6 }
0x141d   :  { %v4842_v59 = vadd.f32 %v9130_v23, %v4825_v53 }
0x141e   :  { %v4841_v55 = vadd.f32 %v9130_v23, %v4824_v40 }
0x141f   :  { %v5945_v19 = vpop.eup %5944  ;;  %5948 = vtanh.f32 %v4842_v59 }
0x1420   :  { %v4872_v15 = vadd.f32 %v5987_v32, %v5945_v19  ;;  %5950 = vtanh.f32 %v4841_v55  ;;  %v5947_v31 = vpop.eup %5946 }
0x1421   :  { %v4870_v62 = vadd.f32 %v5988_v37, %v5947_v31 }
0x1422   :  { %4896 = vst.msk [vmem:[%s9455_s14 + $0x98] sm:$0xff] %vm9911_vm4, %v4872_v15 }
0x1423   :  { %4894 = vst.msk [vmem:[%s9455_s14 + $0x88] sm:$0xff] %vm9912_vm15, %v4870_v62 }
0x1425   :  { %v5949_v60 = vpop.eup %5948 }
0x1426   :  { %v4874_v49 = vadd.f32 %v5989_v14, %v5949_v60  ;;  %v5951_v7 = vpop.eup %5950 }
0x1427   :  { %v4873_v42 = vadd.f32 %v5990_v57, %v5951_v7 }
0x1428   :  { %4898 = vst.msk [vmem:[%s9455_s14 + $0xa8] sm:$0xff] %vm9908_vm3, %v4874_v49 }
0x1429   :  { %4897 = vst.msk [vmem:[%s9455_s14 + $0xa0] sm:$0xff] %vm9913_vm13, %v4873_v42 }
0x144b   :  { %v4599_v25 = vpop.xlane.xlu1 %4598 }
0x144c   :  { %v4617_v51 = vmul.f32 %v4599_v25, %v6682_v22 }
0x144e   :  { %v4633_v11 = vadd.f32 1e-05, %v4617_v51 }
0x1450   :  { %5952 = vrsqrt.f32 %v4633_v11  ;;  %vm4781_vm5 = vweird.f32 %v4633_v11 }
0x1453   :  { %v4602_v24 = vpop.xlane.xlu2 %4601 }
0x1454   :  { %v4618_v63 = vmul.f32 %v4602_v24, %v6682_v22 }
0x1456   :  { %v5953_v29 = vpop.eup %5952  ;;  %v4634_v48 = vadd.f32 1e-05, %v4618_v63 }
0x1457   :  { %v4776_v8 = vmul.f32 %v5953_v29, %v4633_v11  ;;  %vm4782_vm10 = vweird.f32 %v5953_v29 }
0x1458   :  { %5954 = vrsqrt.f32 %v4634_v48  ;;  %vm4783_vm11 = vmor %vm4781_vm5, %vm4782_vm10  ;;  %vm4791_vm9 = vweird.f32 %v4634_v48 }
0x1459   :  { %v4777_v21 = vmul.f32 %v5953_v29, %v4776_v8 }
0x145b   :  { %v4778_v13 = vmul.f32 0.5, %v4777_v21 }
0x145d   :  { %v4779_v39 = vsub.f32 1.5, %v4778_v13 }
0x145e   :  { %v5955_v17 = vpop.eup %5954 }
0x145f   :  { %v4780_v52 = vmul.f32 %v5953_v29, %v4779_v39  ;;  %v4786_v3 = vmul.f32 %v5955_v17, %v4634_v48  ;;  %vm4792_vm14 = vweird.f32 %v5955_v17 }
0x1460   :  { %vm4793_vm7 = vmor %vm4791_vm9, %vm4792_vm14 }
0x1461   :  { %v4784_v41 = vsel %vm4783_vm11, %v5953_v29, %v4780_v52  ;;  %v4787_v26 = vmul.f32 %v5955_v17, %v4786_v3 }
0x1462   :  { %v4809_v50 = vmul.f32 %v4784_v41, %v9162_v2  ;;  %v5991_v2 = vld [vmem:[%s9456_s1 + $0x70] sm:$0xff] }
0x1463   :  { %v4788_v20 = vmul.f32 0.5, %v4787_v26 }
0x1464   :  { %v4826_v22 = vmul.f32 %v9128_v34, %v4809_v50 }
0x1465   :  { %v4789_v4 = vsub.f32 1.5, %v4788_v20 }
0x1466   :  { %v4843_v35 = vadd.f32 %v9130_v23, %v4826_v22 }
0x1467   :  { %v4790_v10 = vmul.f32 %v5955_v17, %v4789_v4 }
0x1468   :  { %5956 = vtanh.f32 %v4843_v35 }
0x1469   :  { %v4794_v5 = vsel %vm4793_vm7, %v5955_v17, %v4790_v10 }
0x146a   :  { %v4810_v27 = vmul.f32 %v4794_v5, %v9170_v61  ;;  %v5992_v61 = vld [vmem:[%s9456_s1 + $0x78] sm:$0xff] }
0x146c   :  { %v4827_v56 = vmul.f32 %v9128_v34, %v4810_v27 }
0x146e   :  { %v5957_v28 = vpop.eup %5956  ;;  %v4844_v45 = vadd.f32 %v9130_v23, %v4827_v56 }
0x146f   :  { %v4875_v47 = vadd.f32 %v5991_v2, %v5957_v28 }
0x1470   :  { %5958 = vtanh.f32 %v4844_v45 }
0x1471   :  { %4899 = vst.msk [vmem:[%s9455_s14 + $0xb0] sm:$0xff] %vm9914_vm6, %v4875_v47 }
0x1476   :  { %v5959_v30 = vpop.eup %5958 }
0x1477   :  { %v4876_v34 = vadd.f32 %v5992_v61, %v5959_v30 }
0x1479   :  { %4900 = vst.msk [vmem:[%s9455_s14 + $0xb8] sm:$0xff] %vm9915_vm8, %v4876_v34 }

</bundles_post_ra>
